<compile_context>
chip_gen: v7x
topology: tpu7x:2x2x1
jax: 0.10.0
libtpu: 0.0.40
codegen_flags: <defaults>
</compile_context>

<pallas_src>
import functools

import jax
import jax.numpy as jnp
from jax.experimental import pallas as pl
from jax.experimental.pallas import tpu as pltpu


def _round_up(x, m):
    return (x + m - 1) // m * m


def _binarize(x):
    # QuantSign / binary-weight quantizer: >= 0 -> +1, < 0 -> -1 (0 maps to +1).
    return jnp.where(x >= 0, 1.0, -1.0)


# ----------------------------- Pallas kernel ------------------------------ #
def _fused_block_kernel(p_ref, w_ref, v_ref, res_ref, o_ref, s_ref, acc_ref):
    """acc += patches @ w  (bf16 operands, f32 accumulate), then fused epilogue.

    v_ref rows: 0 = bn_in shift (scale already folded into w), 1 = PReLU alpha,
                2 = bn_out scale, 3 = bn_out shift.
    """
    k = pl.program_id(1)

    @pl.when(k == 0)
    def _init():
        acc_ref[...] = jnp.zeros_like(acc_ref)

    acc_ref[...] += jnp.dot(p_ref[...], w_ref[...],
                            preferred_element_type=jnp.float32)

    @pl.when(k == pl.num_programs(1) - 1)
    def _epilogue():
        y = acc_ref[...] + v_ref[0:1, :]                 # bn_in (scale folded into W)
        y = jnp.where(y >= 0.0, y, v_ref[1:2, :] * y)    # per-channel PReLU
        y = y + res_ref[...]                             # shortcut / residual add
        y = y * v_ref[2:3, :] + v_ref[3:4, :]            # bn_out
        o_ref[...] = y
        s_ref[...] = jnp.where(y >= 0.0, 1.0, -1.0).astype(s_ref.dtype)


def fused_conv_bn_prelu_add_bn(patches, w2d, scale_in, shift_in, alpha,
                               residual, scale_out, shift_out, *, tm_max=512):
    """bn_out(prelu(bn_in(patches @ w2d)) + residual).

    patches:  (M, K)  +-1 values (any float dtype; cast to bf16 here)
    w2d:      (K, Cout) +-1 binarized weights
    returns:  (y_f32, sign(y)_bf16), each (M, Cout)
    """
    M, K = patches.shape
    Cout = w2d.shape[1]

    # ------------- tiled / padded geometry -------------
    Cp = _round_up(Cout, 128)                 # lane-dense output & MXU N dim
    if K <= 2048:
        tk, Kp = K, K                         # single reduction step fast path
    else:
        tk = 1152                             # 9 * 128 lanes per K slab
        Kp = _round_up(K, tk)
    # >= 2 steps on the parallel M axis when possible (both v7x TensorCores).
    tm = max(8, min(tm_max, _round_up((M + 1) // 2, 8)))
    Mp = _round_up(M, tm)
    m_tiles, k_tiles = Mp // tm, Kp // tk

    # ------------- operand prep (bf16 MXU operands, scale folded into W) ----
    p = jnp.pad(patches.astype(jnp.bfloat16), ((0, Mp - M), (0, Kp - K)))
    w = w2d.astype(jnp.float32) * scale_in.reshape(1, Cout)
    w = jnp.pad(w, ((0, Kp - K), (0, Cp - Cout))).astype(jnp.bfloat16)
    r = jnp.pad(residual.astype(jnp.float32), ((0, Mp - M), (0, Cp - Cout)))
    vecs = jnp.zeros((8, Cp), jnp.float32)
    vecs = vecs.at[0, :Cout].set(shift_in.astype(jnp.float32))
    vecs = vecs.at[1, :Cout].set(alpha.astype(jnp.float32))
    vecs = vecs.at[2, :Cout].set(scale_out.astype(jnp.float32))
    vecs = vecs.at[3, :Cout].set(shift_out.astype(jnp.float32))

    cost = pl.CostEstimate(
        flops=2 * Mp * Kp * Cp,
        transcendentals=0,
        bytes_accessed=(p.size + w.size) * 2 + (r.size + vecs.size) * 4
                       + Mp * Cp * (4 + 2))

    y, y_sign = pl.pallas_call(
        _fused_block_kernel,
        out_shape=(jax.ShapeDtypeStruct((Mp, Cp), jnp.float32),
                   jax.ShapeDtypeStruct((Mp, Cp), jnp.bfloat16)),
        grid=(m_tiles, k_tiles),
        in_specs=[
            pl.BlockSpec((tm, tk), lambda i, k: (i, k)),   # patch tile
            pl.BlockSpec((tk, Cp), lambda i, k: (k, 0)),   # weight K-slab
            pl.BlockSpec((8, Cp),  lambda i, k: (0, 0)),   # packed per-ch vectors
            pl.BlockSpec((tm, Cp), lambda i, k: (i, 0)),   # residual tile
        ],
        out_specs=(pl.BlockSpec((tm, Cp), lambda i, k: (i, 0)),
                   pl.BlockSpec((tm, Cp), lambda i, k: (i, 0))),
        scratch_shapes=[pltpu.VMEM((tm, Cp), jnp.float32)],
        compiler_params=pltpu.CompilerParams(
            dimension_semantics=("parallel", "arbitrary"),
            vmem_limit_bytes=48 * 1024 * 1024),
        cost_estimate=cost,
    )(p, w, vecs, r)
    return y[:M, :Cout], y_sign[:M, :Cout]


# ------------------------------ JAX glue ---------------------------------- #
def _im2col_3x3(x_nhwc, stride):
    """3x3 / pad=1 patches of an (already binarized) NHWC tensor.

    Padding stays 0, matching zero-padded conv of the binarized input.
    Returns (N*Ho*Wo, 9*C) and (Ho, Wo).
    """
    # TODO(synk): im2col is still materialized host-side (9x activation
    # expansion); an in-kernel halo-DMA im2col would cut that HBM traffic.
    N, H, W, C = x_nhwc.shape
    Ho = (H + 2 - 3) // stride + 1
    Wo = (W + 2 - 3) // stride + 1
    xp = jnp.pad(x_nhwc, ((0, 0), (1, 1), (1, 1), (0, 0)))
    cols = []
    for dy in range(3):
        for dx in range(3):
            cols.append(xp[:, dy: dy + (Ho - 1) * stride + 1: stride,
                           dx: dx + (Wo - 1) * stride + 1: stride, :])
    patches = jnp.stack(cols, axis=3)                     # (N, Ho, Wo, 9, C)
    return patches.reshape(N * Ho * Wo, 9 * C), (Ho, Wo)


def _weight_to_2d(w):
    # torch conv weight (Cout, Cin, 3, 3) -> binarized (9*Cin, Cout),
    # row order (ky, kx, cin) matching _im2col_3x3 patch order.
    cout, cin = w.shape[0], w.shape[1]
    return jnp.transpose(_binarize(w), (2, 3, 1, 0)).reshape(9 * cin, cout)


def _bn_affine(key, c, eps=1e-5):
    kg, kb, km, kv = jax.random.split(key, 4)
    gamma = 1.0 + 0.1 * jax.random.normal(kg, (c,), jnp.float32)
    beta = 0.1 * jax.random.normal(kb, (c,), jnp.float32)
    mean = 0.1 * jax.random.normal(km, (c,), jnp.float32)
    var = jnp.abs(jax.random.normal(kv, (c,), jnp.float32)) + 0.5
    scale = gamma / jnp.sqrt(var + eps)
    shift = beta - mean * scale
    return scale, shift


def init_basic_block(key, in_planes, planes):
    ks = jax.random.split(key, 6)
    return dict(
        w1=0.1 * jax.random.normal(ks[0], (planes, in_planes, 3, 3), jnp.float32),
        w2=0.1 * jax.random.normal(ks[1], (planes, planes, 3, 3), jnp.float32),
        alpha1=jnp.full((planes,), 0.25, jnp.float32),    # nn.PReLU default
        alpha2=jnp.full((planes,), 0.25, jnp.float32),
        bn1=_bn_affine(ks[2], planes), bn2=_bn_affine(ks[3], planes),
        bn3=_bn_affine(ks[4], planes), bn4=_bn_affine(ks[5], planes),
    )


def basic_block_forward(params, x_nhwc, in_planes, planes, stride):
    """FracBNN/ReActNet BasicBlock on an NHWC activation."""
    # TODO(synk): PGBinaryConv2d precision-gating (fractional 2nd-bit path) is
    # modeled as a plain binary-weight conv of the binarized activations.
    N, H, W, _ = x_nhwc.shape

    # shortcut: identity, or AvgPool2d(2, 2) + cat((x, x), channel)
    if stride != 1 or in_planes != planes:
        xa = x_nhwc.reshape(N, H // 2, 2, W // 2, 2, in_planes).mean(axis=(2, 4))
        sc = jnp.concatenate([xa, xa], axis=-1)
    else:
        sc = x_nhwc

    # branch 1: bn3(prelu1(bn1(conv1(binarize(x)))) + shortcut(x))
    xb = _binarize(x_nhwc).astype(jnp.bfloat16)
    patches1, (Ho, Wo) = _im2col_3x3(xb, stride)
    s1, b1 = params["bn1"]
    s3, b3 = params["bn3"]
    y1, y1_sign = fused_conv_bn_prelu_add_bn(
        patches1, _weight_to_2d(params["w1"]), s1, b1, params["alpha1"],
        sc.reshape(N * Ho * Wo, planes), s3, b3)

    # branch 2: bn4(prelu2(bn2(conv2(binarize(y1)))) + y1)
    patches2, _ = _im2col_3x3(y1_sign.reshape(N, Ho, Wo, planes), 1)
    s2, b2 = params["bn2"]
    s4, b4 = params["bn4"]
    y2, _ = fused_conv_bn_prelu_add_bn(
        patches2, _weight_to_2d(params["w2"]), s2, b2, params["alpha2"],
        y1, s4, b4)
    return y2.reshape(N, Ho, Wo, planes)


def input_encoder(x_nchw, enc_channels):
    # TODO(synk): q.InputEncoder's exact fixed-point/thermometer scheme is not
    # reproduced; approximated as a per-channel thermometer code over [0, 1]
    # with enc_channels // C levels, emitting +-1 bits.
    N, C, H, W = x_nchw.shape
    levels = enc_channels // C
    thr = (jnp.arange(levels, dtype=jnp.float32) + 0.5) / levels
    bits = jnp.where(x_nchw[:, :, None, :, :] >= thr[None, None, :, None, None],
                     1.0, -1.0)                           # (N, C, levels, H, W)
    return bits.reshape(N, C * levels, H, W)


def init_resnet(key, *, enc_channels=96, stem_planes=16, planes=32,
                num_blocks=2, num_classes=2):
    ks = jax.random.split(key, 3 + num_blocks)
    return dict(
        conv1=0.1 * jax.random.normal(
            ks[0], (stem_planes, enc_channels, 3, 3), jnp.float32),
        bn1=_bn_affine(ks[1], stem_planes),
        linear_w=0.1 * jax.random.normal(ks[2], (planes, num_classes), jnp.float32),
        linear_b=jnp.zeros((num_classes,), jnp.float32),
        blocks=[init_basic_block(ks[3 + i],
                                 stem_planes if i == 0 else planes, planes)
                for i in range(num_blocks)],
    )


def resnet_forward(params, x_nchw, *, enc_channels=96, stem_planes=16,
                   planes=32):
    """encoder -> bn1(conv1(.)) -> layer1 -> global avg pool -> linear."""
    N = x_nchw.shape[0]
    x = input_encoder(x_nchw, enc_channels)               # (N, 96, H, W), +-1
    x = jnp.transpose(x, (0, 2, 3, 1))                    # NHWC

    # stem: bn1(conv1(x)) -- same fused kernel with identity PReLU (alpha=1),
    # zero residual and identity bn_out.
    patches, (Ho, Wo) = _im2col_3x3(x.astype(jnp.bfloat16), 1)
    s1, b1 = params["bn1"]
    ones = jnp.ones((stem_planes,), jnp.float32)
    zeros = jnp.zeros((stem_planes,), jnp.float32)
    y, _ = fused_conv_bn_prelu_add_bn(
        patches, _weight_to_2d(params["conv1"]), s1, b1, ones,
        jnp.zeros((N * Ho * Wo, stem_planes), jnp.float32), ones, zeros)
    out = y.reshape(N, Ho, Wo, stem_planes)

    # layer1: first block stride=2 (avgpool+cat shortcut), rest stride=1.
    in_planes = stem_planes
    for i, blk in enumerate(params["blocks"]):
        stride = 2 if i == 0 else 1
        out = basic_block_forward(blk, out, in_planes, planes, stride)
        in_planes = planes

    # global average pool + linear head (tiny; plain JAX).
    feat = out.mean(axis=(1, 2))                           # (N, planes)
    return feat @ params["linear_w"] + params["linear_b"]


# --------------------------- pure-JAX reference ---------------------------- #
def _ref_fused(patches, w2d, scale_in, shift_in, alpha, residual,
               scale_out, shift_out):
    """Mirrors the kernel math (bf16 operands, f32 accumulate) in plain JAX."""
    wq = (w2d.astype(jnp.float32) * scale_in[None, :]).astype(jnp.bfloat16)
    acc = jnp.dot(patches.astype(jnp.bfloat16).astype(jnp.float32),
                  wq.astype(jnp.float32),
                  precision=jax.lax.Precision.HIGHEST)
    y = acc + shift_in[None, :]
    y = jnp.where(y >= 0.0, y, alpha[None, :] * y)
    y = y + residual.astype(jnp.float32)
    return y * scale_out[None, :] + shift_out[None, :]


# --------------------------------- main ------------------------------------ #
if __name__ == "__main__":
    key = jax.random.PRNGKey(0)
    kx, kp = jax.random.split(key)

    # CIFAR-like input at small batch: (2, 3, 32, 32) in [0, 1).
    x = jax.random.uniform(kx, (2, 3, 32, 32), jnp.float32)
    params = init_resnet(kp)

    fwd = jax.jit(resnet_forward)
    logits = jax.block_until_ready(fwd(params, x))
    assert logits.shape == (2, 2), logits.shape
    assert bool(jnp.all(jnp.isfinite(logits)))

    # unit check of the fused Pallas kernel against the pure-JAX reference
    kk = jax.random.split(key, 6)
    M, Cin, Cout = 384, 16, 32            # deliberately not tile-aligned
    patches = _binarize(jax.random.normal(kk[0], (M, 9 * Cin), jnp.float32))
    w2d = _binarize(jax.random.normal(kk[1], (9 * Cin, Cout), jnp.float32))
    s_in, b_in = _bn_affine(kk[2], Cout)
    s_out, b_out = _bn_affine(kk[3], Cout)
    alpha = jnp.full((Cout,), 0.25, jnp.float32)
    res = jax.random.normal(kk[4], (M, Cout), jnp.float32)

    y_k, y_sign = fused_conv_bn_prelu_add_bn(
        patches, w2d, s_in, b_in, alpha, res, s_out, b_out)
    y_r = _ref_fused(patches, w2d, s_in, b_in, alpha, res, s_out, b_out)
    err = float(jnp.max(jnp.abs(y_k - y_r)))
    assert err < 5e-2, f"fused kernel mismatch: max abs err = {err}"
    assert y_sign.shape == (M, Cout) and y_sign.dtype == jnp.bfloat16

    print("KERNEL_OK")
</pallas_src>

<mosaic_0001>
module attributes {stable_mosaic.version = 11 : i64} {
  func.func @_fused_block_kernel(%arg0: i32, %arg1: i32, %arg2: memref<512x864xbf16, #tpu.memory_space<vmem>>, %arg3: memref<864x128xbf16, #tpu.memory_space<vmem>>, %arg4: memref<8x128xf32, #tpu.memory_space<vmem>>, %arg5: memref<512x128xf32, #tpu.memory_space<vmem>>, %arg6: memref<512x128xf32, #tpu.memory_space<vmem>>, %arg7: memref<512x128xbf16, #tpu.memory_space<vmem>>, %arg8: memref<512x128xf32, #tpu.memory_space<vmem>>) attributes {dimension_semantics = [#tpu.dimension_semantics<parallel>, #tpu.dimension_semantics<arbitrary>], iteration_bounds = array<i64: 4, 1>, scalar_prefetch = 0 : i64, scratch_operands = 1 : i64, tpu.core_type = #tpu.core_type<tc>, window_params = [{transform_indices = @transform_0, window_bounds = array<i64: 512, 864>}, {transform_indices = @transform_1, window_bounds = array<i64: 864, 128>}, {pipeline_mode = #tpu.pipeline_mode<synchronous>, transform_indices = @transform_2, window_bounds = array<i64: 8, 128>}, {transform_indices = @transform_3, window_bounds = array<i64: 512, 128>}, {transform_indices = @transform_4, window_bounds = array<i64: 512, 128>}, {transform_indices = @transform_5, window_bounds = array<i64: 512, 128>}]} {
    %c0_i32 = arith.constant 0 : i32
    %0 = arith.cmpi eq, %arg1, %c0_i32 : i32
    %1 = arith.extui %0 : i1 to i32
    %c0_i32_0 = arith.constant 0 : i32
    %2 = arith.cmpi ne, %1, %c0_i32_0 : i32
    scf.if %2 {
      %cst_10 = arith.constant 0.000000e+00 : f32
      %12 = vector.broadcast %cst_10 : f32 to vector<512x128xf32>
      %c0_11 = arith.constant 0 : index
      %c0_12 = arith.constant 0 : index
      %13 = vector.load %arg8[%c0_11, %c0_12] : memref<512x128xf32, #tpu.memory_space<vmem>>, vector<512x128xf32>
      tpu.vector_store %arg8[%c0_11, %c0_12], %12 {strides = array<i32>} : memref<512x128xf32, #tpu.memory_space<vmem>>, vector<512x128xf32>,
    } else {
    }
    %c0 = arith.constant 0 : index
    %c0_1 = arith.constant 0 : index
    %3 = vector.load %arg8[%c0, %c0_1] : memref<512x128xf32, #tpu.memory_space<vmem>>, vector<512x128xf32>
    %c0_2 = arith.constant 0 : index
    %c0_3 = arith.constant 0 : index
    %4 = vector.load %arg2[%c0_2, %c0_3] : memref<512x864xbf16, #tpu.memory_space<vmem>>, vector<512x864xbf16>
    %c0_4 = arith.constant 0 : index
    %c0_5 = arith.constant 0 : index
    %5 = vector.load %arg3[%c0_4, %c0_5] : memref<864x128xbf16, #tpu.memory_space<vmem>>, vector<864x128xbf16>
    %cst = arith.constant dense<0.000000e+00> : vector<512x128xf32>
    %6 = tpu.matmul %4, %5, %cst {dimension_numbers = #tpu.dot_dimension_numbers<[1], [0], [0], [1], [0, 0, 1, 1], [], []>} : vector<512x864xbf16>, vector<864x128xbf16>, vector<512x128xf32> -> vector<512x128xf32>
    %7 = arith.addf %3, %6 : vector<512x128xf32>
    %c0_6 = arith.constant 0 : index
    %c0_7 = arith.constant 0 : index
    %8 = vector.load %arg8[%c0_6, %c0_7] : memref<512x128xf32, #tpu.memory_space<vmem>>, vector<512x128xf32>
    tpu.vector_store %arg8[%c0_6, %c0_7], %7 {strides = array<i32>} : memref<512x128xf32, #tpu.memory_space<vmem>>, vector<512x128xf32>,
    %c0_i32_8 = arith.constant 0 : i32
    %9 = arith.cmpi eq, %arg1, %c0_i32_8 : i32
    %10 = arith.extui %9 : i1 to i32
    %c0_i32_9 = arith.constant 0 : i32
    %11 = arith.cmpi ne, %10, %c0_i32_9 : i32
    scf.if %11 {
      %c0_10 = arith.constant 0 : index
      %c0_11 = arith.constant 0 : index
      %12 = vector.load %arg8[%c0_10, %c0_11] : memref<512x128xf32, #tpu.memory_space<vmem>>, vector<512x128xf32>
      %c0_12 = arith.constant 0 : index
      %c0_13 = arith.constant 0 : index
      %13 = vector.load %arg4[%c0_12, %c0_13] : memref<8x128xf32, #tpu.memory_space<vmem>>, vector<1x128xf32>
      %14 = vector.broadcast %13 : vector<1x128xf32> to vector<512x128xf32>
      %15 = arith.addf %12, %14 : vector<512x128xf32>
      %cst_14 = arith.constant 0.000000e+00 : f32
      %16 = vector.broadcast %cst_14 : f32 to vector<512x128xf32>
      %17 = arith.cmpf oge, %15, %16 : vector<512x128xf32>
      %c1 = arith.constant 1 : index
      %c0_15 = arith.constant 0 : index
      %18 = vector.load %arg4[%c1, %c0_15] : memref<8x128xf32, #tpu.memory_space<vmem>>, vector<1x128xf32>
      %19 = vector.broadcast %18 : vector<1x128xf32> to vector<512x128xf32>
      %20 = arith.mulf %19, %15 : vector<512x128xf32>
      %21 = arith.select %17, %15, %20 : vector<512x128xi1>, vector<512x128xf32>
      %c0_16 = arith.constant 0 : index
      %c0_17 = arith.constant 0 : index
      %22 = vector.load %arg5[%c0_16, %c0_17] : memref<512x128xf32, #tpu.memory_space<vmem>>, vector<512x128xf32>
      %23 = arith.addf %21, %22 : vector<512x128xf32>
      %c2 = arith.constant 2 : index
      %c0_18 = arith.constant 0 : index
      %24 = vector.load %arg4[%c2, %c0_18] : memref<8x128xf32, #tpu.memory_space<vmem>>, vector<1x128xf32>
      %25 = vector.broadcast %24 : vector<1x128xf32> to vector<512x128xf32>
      %26 = arith.mulf %23, %25 : vector<512x128xf32>
      %c3 = arith.constant 3 : index
      %c0_19 = arith.constant 0 : index
      %27 = vector.load %arg4[%c3, %c0_19] : memref<8x128xf32, #tpu.memory_space<vmem>>, vector<1x128xf32>
      %28 = vector.broadcast %27 : vector<1x128xf32> to vector<512x128xf32>
      %29 = arith.addf %26, %28 : vector<512x128xf32>
      %c0_20 = arith.constant 0 : index
      %c0_21 = arith.constant 0 : index
      %30 = vector.load %arg6[%c0_20, %c0_21] : memref<512x128xf32, #tpu.memory_space<vmem>>, vector<512x128xf32>
      tpu.vector_store %arg6[%c0_20, %c0_21], %29 {strides = array<i32>} : memref<512x128xf32, #tpu.memory_space<vmem>>, vector<512x128xf32>,
      %cst_22 = arith.constant 0.000000e+00 : f32
      %31 = vector.broadcast %cst_22 : f32 to vector<512x128xf32>
      %32 = arith.cmpf oge, %29, %31 : vector<512x128xf32>
      %cst_23 = arith.constant 1.000000e+00 : f32
      %cst_24 = arith.constant -1.000000e+00 : f32
      %33 = vector.broadcast %cst_23 : f32 to vector<512x128xf32>
      %34 = vector.broadcast %cst_24 : f32 to vector<512x128xf32>
      %35 = arith.select %32, %33, %34 : vector<512x128xi1>, vector<512x128xf32>
      %36 = arith.truncf %35 : vector<512x128xf32> to vector<512x128xbf16>
      %c0_25 = arith.constant 0 : index
      %c0_26 = arith.constant 0 : index
      %37 = vector.load %arg7[%c0_25, %c0_26] : memref<512x128xbf16, #tpu.memory_space<vmem>>, vector<512x128xbf16>
      tpu.vector_store %arg7[%c0_25, %c0_26], %36 {strides = array<i32>} : memref<512x128xbf16, #tpu.memory_space<vmem>>, vector<512x128xbf16>,
    } else {
    }
    return
  }
  func.func @transform_0(%arg0: i32, %arg1: i32) -> (i32, i32) {
    %c0_i32 = arith.constant 0 : i32
    return %arg0, %arg1 : i32, i32
  }
  func.func @transform_1(%arg0: i32, %arg1: i32) -> (i32, i32) {
    %c0_i32 = arith.constant 0 : i32
    %c0_i32_0 = arith.constant 0 : i32
    return %arg1, %c0_i32 : i32, i32
  }
  func.func @transform_2(%arg0: i32, %arg1: i32) -> (i32, i32) {
    %c0_i32 = arith.constant 0 : i32
    %c0_i32_0 = arith.constant 0 : i32
    %c0_i32_1 = arith.constant 0 : i32
    return %c0_i32, %c0_i32_0 : i32, i32
  }
  func.func @transform_3(%arg0: i32, %arg1: i32) -> (i32, i32) {
    %c0_i32 = arith.constant 0 : i32
    %c0_i32_0 = arith.constant 0 : i32
    return %arg0, %c0_i32 : i32, i32
  }
  func.func @transform_4(%arg0: i32, %arg1: i32) -> (i32, i32) {
    %c0_i32 = arith.constant 0 : i32
    %c0_i32_0 = arith.constant 0 : i32
    return %arg0, %c0_i32 : i32, i32
  }
  func.func @transform_5(%arg0: i32, %arg1: i32) -> (i32, i32) {
    %c0_i32 = arith.constant 0 : i32
    %c0_i32_0 = arith.constant 0 : i32
    return %arg0, %c0_i32 : i32, i32
  }
}

module attributes {stable_mosaic.version = 11 : i64} {
  func.func @_fused_block_kernel(%arg0: i32, %arg1: i32, %arg2: memref<256x144xbf16, #tpu.memory_space<vmem>>, %arg3: memref<144x128xbf16, #tpu.memory_space<vmem>>, %arg4: memref<8x128xf32, #tpu.memory_space<vmem>>, %arg5: memref<256x128xf32, #tpu.memory_space<vmem>>, %arg6: memref<256x128xf32, #tpu.memory_space<vmem>>, %arg7: memref<256x128xbf16, #tpu.memory_space<vmem>>, %arg8: memref<256x128xf32, #tpu.memory_space<vmem>>) attributes {dimension_semantics = [#tpu.dimension_semantics<parallel>, #tpu.dimension_semantics<arbitrary>], iteration_bounds = array<i64: 2, 1>, scalar_prefetch = 0 : i64, scratch_operands = 1 : i64, tpu.core_type = #tpu.core_type<tc>, window_params = [{transform_indices = @transform_0, window_bounds = array<i64: 256, 144>}, {transform_indices = @transform_1, window_bounds = array<i64: 144, 128>}, {pipeline_mode = #tpu.pipeline_mode<synchronous>, transform_indices = @transform_2, window_bounds = array<i64: 8, 128>}, {transform_indices = @transform_3, window_bounds = array<i64: 256, 128>}, {transform_indices = @transform_4, window_bounds = array<i64: 256, 128>}, {transform_indices = @transform_5, window_bounds = array<i64: 256, 128>}]} {
    %c0_i32 = arith.constant 0 : i32
    %0 = arith.cmpi eq, %arg1, %c0_i32 : i32
    %1 = arith.extui %0 : i1 to i32
    %c0_i32_0 = arith.constant 0 : i32
    %2 = arith.cmpi ne, %1, %c0_i32_0 : i32
    scf.if %2 {
      %cst_10 = arith.constant 0.000000e+00 : f32
      %12 = vector.broadcast %cst_10 : f32 to vector<256x128xf32>
      %c0_11 = arith.constant 0 : index
      %c0_12 = arith.constant 0 : index
      %13 = vector.load %arg8[%c0_11, %c0_12] : memref<256x128xf32, #tpu.memory_space<vmem>>, vector<256x128xf32>
      tpu.vector_store %arg8[%c0_11, %c0_12], %12 {strides = array<i32>} : memref<256x128xf32, #tpu.memory_space<vmem>>, vector<256x128xf32>,
    } else {
    }
    %c0 = arith.constant 0 : index
    %c0_1 = arith.constant 0 : index
    %3 = vector.load %arg8[%c0, %c0_1] : memref<256x128xf32, #tpu.memory_space<vmem>>, vector<256x128xf32>
    %c0_2 = arith.constant 0 : index
    %c0_3 = arith.constant 0 : index
    %4 = vector.load %arg2[%c0_2, %c0_3] : memref<256x144xbf16, #tpu.memory_space<vmem>>, vector<256x144xbf16>
    %c0_4 = arith.constant 0 : index
    %c0_5 = arith.constant 0 : index
    %5 = vector.load %arg3[%c0_4, %c0_5] : memref<144x128xbf16, #tpu.memory_space<vmem>>, vector<144x128xbf16>
    %cst = arith.constant dense<0.000000e+00> : vector<256x128xf32>
    %6 = tpu.matmul %4, %5, %cst {dimension_numbers = #tpu.dot_dimension_numbers<[1], [0], [0], [1], [0, 0, 1, 1], [], []>} : vector<256x144xbf16>, vector<144x128xbf16>, vector<256x128xf32> -> vector<256x128xf32>
    %7 = arith.addf %3, %6 : vector<256x128xf32>
    %c0_6 = arith.constant 0 : index
    %c0_7 = arith.constant 0 : index
    %8 = vector.load %arg8[%c0_6, %c0_7] : memref<256x128xf32, #tpu.memory_space<vmem>>, vector<256x128xf32>
    tpu.vector_store %arg8[%c0_6, %c0_7], %7 {strides = array<i32>} : memref<256x128xf32, #tpu.memory_space<vmem>>, vector<256x128xf32>,
    %c0_i32_8 = arith.constant 0 : i32
    %9 = arith.cmpi eq, %arg1, %c0_i32_8 : i32
    %10 = arith.extui %9 : i1 to i32
    %c0_i32_9 = arith.constant 0 : i32
    %11 = arith.cmpi ne, %10, %c0_i32_9 : i32
    scf.if %11 {
      %c0_10 = arith.constant 0 : index
      %c0_11 = arith.constant 0 : index
      %12 = vector.load %arg8[%c0_10, %c0_11] : memref<256x128xf32, #tpu.memory_space<vmem>>, vector<256x128xf32>
      %c0_12 = arith.constant 0 : index
      %c0_13 = arith.constant 0 : index
      %13 = vector.load %arg4[%c0_12, %c0_13] : memref<8x128xf32, #tpu.memory_space<vmem>>, vector<1x128xf32>
      %14 = vector.broadcast %13 : vector<1x128xf32> to vector<256x128xf32>
      %15 = arith.addf %12, %14 : vector<256x128xf32>
      %cst_14 = arith.constant 0.000000e+00 : f32
      %16 = vector.broadcast %cst_14 : f32 to vector<256x128xf32>
      %17 = arith.cmpf oge, %15, %16 : vector<256x128xf32>
      %c1 = arith.constant 1 : index
      %c0_15 = arith.constant 0 : index
      %18 = vector.load %arg4[%c1, %c0_15] : memref<8x128xf32, #tpu.memory_space<vmem>>, vector<1x128xf32>
      %19 = vector.broadcast %18 : vector<1x128xf32> to vector<256x128xf32>
      %20 = arith.mulf %19, %15 : vector<256x128xf32>
      %21 = arith.select %17, %15, %20 : vector<256x128xi1>, vector<256x128xf32>
      %c0_16 = arith.constant 0 : index
      %c0_17 = arith.constant 0 : index
      %22 = vector.load %arg5[%c0_16, %c0_17] : memref<256x128xf32, #tpu.memory_space<vmem>>, vector<256x128xf32>
      %23 = arith.addf %21, %22 : vector<256x128xf32>
      %c2 = arith.constant 2 : index
      %c0_18 = arith.constant 0 : index
      %24 = vector.load %arg4[%c2, %c0_18] : memref<8x128xf32, #tpu.memory_space<vmem>>, vector<1x128xf32>
      %25 = vector.broadcast %24 : vector<1x128xf32> to vector<256x128xf32>
      %26 = arith.mulf %23, %25 : vector<256x128xf32>
      %c3 = arith.constant 3 : index
      %c0_19 = arith.constant 0 : index
      %27 = vector.load %arg4[%c3, %c0_19] : memref<8x128xf32, #tpu.memory_space<vmem>>, vector<1x128xf32>
      %28 = vector.broadcast %27 : vector<1x128xf32> to vector<256x128xf32>
      %29 = arith.addf %26, %28 : vector<256x128xf32>
      %c0_20 = arith.constant 0 : index
      %c0_21 = arith.constant 0 : index
      %30 = vector.load %arg6[%c0_20, %c0_21] : memref<256x128xf32, #tpu.memory_space<vmem>>, vector<256x128xf32>
      tpu.vector_store %arg6[%c0_20, %c0_21], %29 {strides = array<i32>} : memref<256x128xf32, #tpu.memory_space<vmem>>, vector<256x128xf32>,
      %cst_22 = arith.constant 0.000000e+00 : f32
      %31 = vector.broadcast %cst_22 : f32 to vector<256x128xf32>
      %32 = arith.cmpf oge, %29, %31 : vector<256x128xf32>
      %cst_23 = arith.constant 1.000000e+00 : f32
      %cst_24 = arith.constant -1.000000e+00 : f32
      %33 = vector.broadcast %cst_23 : f32 to vector<256x128xf32>
      %34 = vector.broadcast %cst_24 : f32 to vector<256x128xf32>
      %35 = arith.select %32, %33, %34 : vector<256x128xi1>, vector<256x128xf32>
      %36 = arith.truncf %35 : vector<256x128xf32> to vector<256x128xbf16>
      %c0_25 = arith.constant 0 : index
      %c0_26 = arith.constant 0 : index
      %37 = vector.load %arg7[%c0_25, %c0_26] : memref<256x128xbf16, #tpu.memory_space<vmem>>, vector<256x128xbf16>
      tpu.vector_store %arg7[%c0_25, %c0_26], %36 {strides = array<i32>} : memref<256x128xbf16, #tpu.memory_space<vmem>>, vector<256x128xbf16>,
    } else {
    }
    return
  }
  func.func @transform_0(%arg0: i32, %arg1: i32) -> (i32, i32) {
    %c0_i32 = arith.constant 0 : i32
    return %arg0, %arg1 : i32, i32
  }
  func.func @transform_1(%arg0: i32, %arg1: i32) -> (i32, i32) {
    %c0_i32 = arith.constant 0 : i32
    %c0_i32_0 = arith.constant 0 : i32
    return %arg1, %c0_i32 : i32, i32
  }
  func.func @transform_2(%arg0: i32, %arg1: i32) -> (i32, i32) {
    %c0_i32 = arith.constant 0 : i32
    %c0_i32_0 = arith.constant 0 : i32
    %c0_i32_1 = arith.constant 0 : i32
    return %c0_i32, %c0_i32_0 : i32, i32
  }
  func.func @transform_3(%arg0: i32, %arg1: i32) -> (i32, i32) {
    %c0_i32 = arith.constant 0 : i32
    %c0_i32_0 = arith.constant 0 : i32
    return %arg0, %c0_i32 : i32, i32
  }
  func.func @transform_4(%arg0: i32, %arg1: i32) -> (i32, i32) {
    %c0_i32 = arith.constant 0 : i32
    %c0_i32_0 = arith.constant 0 : i32
    return %arg0, %c0_i32 : i32, i32
  }
  func.func @transform_5(%arg0: i32, %arg1: i32) -> (i32, i32) {
    %c0_i32 = arith.constant 0 : i32
    %c0_i32_0 = arith.constant 0 : i32
    return %arg0, %c0_i32 : i32, i32
  }
}

module attributes {stable_mosaic.version = 11 : i64} {
  func.func @_fused_block_kernel(%arg0: i32, %arg1: i32, %arg2: memref<256x288xbf16, #tpu.memory_space<vmem>>, %arg3: memref<288x128xbf16, #tpu.memory_space<vmem>>, %arg4: memref<8x128xf32, #tpu.memory_space<vmem>>, %arg5: memref<256x128xf32, #tpu.memory_space<vmem>>, %arg6: memref<256x128xf32, #tpu.memory_space<vmem>>, %arg7: memref<256x128xbf16, #tpu.memory_space<vmem>>, %arg8: memref<256x128xf32, #tpu.memory_space<vmem>>) attributes {dimension_semantics = [#tpu.dimension_semantics<parallel>, #tpu.dimension_semantics<arbitrary>], iteration_bounds = array<i64: 2, 1>, scalar_prefetch = 0 : i64, scratch_operands = 1 : i64, tpu.core_type = #tpu.core_type<tc>, window_params = [{transform_indices = @transform_0, window_bounds = array<i64: 256, 288>}, {transform_indices = @transform_1, window_bounds = array<i64: 288, 128>}, {pipeline_mode = #tpu.pipeline_mode<synchronous>, transform_indices = @transform_2, window_bounds = array<i64: 8, 128>}, {transform_indices = @transform_3, window_bounds = array<i64: 256, 128>}, {transform_indices = @transform_4, window_bounds = array<i64: 256, 128>}, {transform_indices = @transform_5, window_bounds = array<i64: 256, 128>}]} {
    %c0_i32 = arith.constant 0 : i32
    %0 = arith.cmpi eq, %arg1, %c0_i32 : i32
    %1 = arith.extui %0 : i1 to i32
    %c0_i32_0 = arith.constant 0 : i32
    %2 = arith.cmpi ne, %1, %c0_i32_0 : i32
    scf.if %2 {
      %cst_10 = arith.constant 0.000000e+00 : f32
      %12 = vector.broadcast %cst_10 : f32 to vector<256x128xf32>
      %c0_11 = arith.constant 0 : index
      %c0_12 = arith.constant 0 : index
      %13 = vector.load %arg8[%c0_11, %c0_12] : memref<256x128xf32, #tpu.memory_space<vmem>>, vector<256x128xf32>
      tpu.vector_store %arg8[%c0_11, %c0_12], %12 {strides = array<i32>} : memref<256x128xf32, #tpu.memory_space<vmem>>, vector<256x128xf32>,
    } else {
    }
    %c0 = arith.constant 0 : index
    %c0_1 = arith.constant 0 : index
    %3 = vector.load %arg8[%c0, %c0_1] : memref<256x128xf32, #tpu.memory_space<vmem>>, vector<256x128xf32>
    %c0_2 = arith.constant 0 : index
    %c0_3 = arith.constant 0 : index
    %4 = vector.load %arg2[%c0_2, %c0_3] : memref<256x288xbf16, #tpu.memory_space<vmem>>, vector<256x288xbf16>
    %c0_4 = arith.constant 0 : index
    %c0_5 = arith.constant 0 : index
    %5 = vector.load %arg3[%c0_4, %c0_5] : memref<288x128xbf16, #tpu.memory_space<vmem>>, vector<288x128xbf16>
    %cst = arith.constant dense<0.000000e+00> : vector<256x128xf32>
    %6 = tpu.matmul %4, %5, %cst {dimension_numbers = #tpu.dot_dimension_numbers<[1], [0], [0], [1], [0, 0, 1, 1], [], []>} : vector<256x288xbf16>, vector<288x128xbf16>, vector<256x128xf32> -> vector<256x128xf32>
    %7 = arith.addf %3, %6 : vector<256x128xf32>
    %c0_6 = arith.constant 0 : index
    %c0_7 = arith.constant 0 : index
    %8 = vector.load %arg8[%c0_6, %c0_7] : memref<256x128xf32, #tpu.memory_space<vmem>>, vector<256x128xf32>
    tpu.vector_store %arg8[%c0_6, %c0_7], %7 {strides = array<i32>} : memref<256x128xf32, #tpu.memory_space<vmem>>, vector<256x128xf32>,
    %c0_i32_8 = arith.constant 0 : i32
    %9 = arith.cmpi eq, %arg1, %c0_i32_8 : i32
    %10 = arith.extui %9 : i1 to i32
    %c0_i32_9 = arith.constant 0 : i32
    %11 = arith.cmpi ne, %10, %c0_i32_9 : i32
    scf.if %11 {
      %c0_10 = arith.constant 0 : index
      %c0_11 = arith.constant 0 : index
      %12 = vector.load %arg8[%c0_10, %c0_11] : memref<256x128xf32, #tpu.memory_space<vmem>>, vector<256x128xf32>
      %c0_12 = arith.constant 0 : index
      %c0_13 = arith.constant 0 : index
      %13 = vector.load %arg4[%c0_12, %c0_13] : memref<8x128xf32, #tpu.memory_space<vmem>>, vector<1x128xf32>
      %14 = vector.broadcast %13 : vector<1x128xf32> to vector<256x128xf32>
      %15 = arith.addf %12, %14 : vector<256x128xf32>
      %cst_14 = arith.constant 0.000000e+00 : f32
      %16 = vector.broadcast %cst_14 : f32 to vector<256x128xf32>
      %17 = arith.cmpf oge, %15, %16 : vector<256x128xf32>
      %c1 = arith.constant 1 : index
      %c0_15 = arith.constant 0 : index
      %18 = vector.load %arg4[%c1, %c0_15] : memref<8x128xf32, #tpu.memory_space<vmem>>, vector<1x128xf32>
      %19 = vector.broadcast %18 : vector<1x128xf32> to vector<256x128xf32>
      %20 = arith.mulf %19, %15 : vector<256x128xf32>
      %21 = arith.select %17, %15, %20 : vector<256x128xi1>, vector<256x128xf32>
      %c0_16 = arith.constant 0 : index
      %c0_17 = arith.constant 0 : index
      %22 = vector.load %arg5[%c0_16, %c0_17] : memref<256x128xf32, #tpu.memory_space<vmem>>, vector<256x128xf32>
      %23 = arith.addf %21, %22 : vector<256x128xf32>
      %c2 = arith.constant 2 : index
      %c0_18 = arith.constant 0 : index
      %24 = vector.load %arg4[%c2, %c0_18] : memref<8x128xf32, #tpu.memory_space<vmem>>, vector<1x128xf32>
      %25 = vector.broadcast %24 : vector<1x128xf32> to vector<256x128xf32>
      %26 = arith.mulf %23, %25 : vector<256x128xf32>
      %c3 = arith.constant 3 : index
      %c0_19 = arith.constant 0 : index
      %27 = vector.load %arg4[%c3, %c0_19] : memref<8x128xf32, #tpu.memory_space<vmem>>, vector<1x128xf32>
      %28 = vector.broadcast %27 : vector<1x128xf32> to vector<256x128xf32>
      %29 = arith.addf %26, %28 : vector<256x128xf32>
      %c0_20 = arith.constant 0 : index
      %c0_21 = arith.constant 0 : index
      %30 = vector.load %arg6[%c0_20, %c0_21] : memref<256x128xf32, #tpu.memory_space<vmem>>, vector<256x128xf32>
      tpu.vector_store %arg6[%c0_20, %c0_21], %29 {strides = array<i32>} : memref<256x128xf32, #tpu.memory_space<vmem>>, vector<256x128xf32>,
      %cst_22 = arith.constant 0.000000e+00 : f32
      %31 = vector.broadcast %cst_22 : f32 to vector<256x128xf32>
      %32 = arith.cmpf oge, %29, %31 : vector<256x128xf32>
      %cst_23 = arith.constant 1.000000e+00 : f32
      %cst_24 = arith.constant -1.000000e+00 : f32
      %33 = vector.broadcast %cst_23 : f32 to vector<256x128xf32>
      %34 = vector.broadcast %cst_24 : f32 to vector<256x128xf32>
      %35 = arith.select %32, %33, %34 : vector<256x128xi1>, vector<256x128xf32>
      %36 = arith.truncf %35 : vector<256x128xf32> to vector<256x128xbf16>
      %c0_25 = arith.constant 0 : index
      %c0_26 = arith.constant 0 : index
      %37 = vector.load %arg7[%c0_25, %c0_26] : memref<256x128xbf16, #tpu.memory_space<vmem>>, vector<256x128xbf16>
      tpu.vector_store %arg7[%c0_25, %c0_26], %36 {strides = array<i32>} : memref<256x128xbf16, #tpu.memory_space<vmem>>, vector<256x128xbf16>,
    } else {
    }
    return
  }
  func.func @transform_0(%arg0: i32, %arg1: i32) -> (i32, i32) {
    %c0_i32 = arith.constant 0 : i32
    return %arg0, %arg1 : i32, i32
  }
  func.func @transform_1(%arg0: i32, %arg1: i32) -> (i32, i32) {
    %c0_i32 = arith.constant 0 : i32
    %c0_i32_0 = arith.constant 0 : i32
    return %arg1, %c0_i32 : i32, i32
  }
  func.func @transform_2(%arg0: i32, %arg1: i32) -> (i32, i32) {
    %c0_i32 = arith.constant 0 : i32
    %c0_i32_0 = arith.constant 0 : i32
    %c0_i32_1 = arith.constant 0 : i32
    return %c0_i32, %c0_i32_0 : i32, i32
  }
  func.func @transform_3(%arg0: i32, %arg1: i32) -> (i32, i32) {
    %c0_i32 = arith.constant 0 : i32
    %c0_i32_0 = arith.constant 0 : i32
    return %arg0, %c0_i32 : i32, i32
  }
  func.func @transform_4(%arg0: i32, %arg1: i32) -> (i32, i32) {
    %c0_i32 = arith.constant 0 : i32
    %c0_i32_0 = arith.constant 0 : i32
    return %arg0, %c0_i32 : i32, i32
  }
  func.func @transform_5(%arg0: i32, %arg1: i32) -> (i32, i32) {
    %c0_i32 = arith.constant 0 : i32
    %c0_i32_0 = arith.constant 0 : i32
    return %arg0, %c0_i32 : i32, i32
  }
}

module attributes {stable_mosaic.version = 11 : i64} {
  func.func @_fused_block_kernel(%arg0: i32, %arg1: i32, %arg2: memref<256x288xbf16, #tpu.memory_space<vmem>>, %arg3: memref<288x128xbf16, #tpu.memory_space<vmem>>, %arg4: memref<8x128xf32, #tpu.memory_space<vmem>>, %arg5: memref<256x128xf32, #tpu.memory_space<vmem>>, %arg6: memref<256x128xf32, #tpu.memory_space<vmem>>, %arg7: memref<256x128xbf16, #tpu.memory_space<vmem>>, %arg8: memref<256x128xf32, #tpu.memory_space<vmem>>) attributes {dimension_semantics = [#tpu.dimension_semantics<parallel>, #tpu.dimension_semantics<arbitrary>], iteration_bounds = array<i64: 2, 1>, scalar_prefetch = 0 : i64, scratch_operands = 1 : i64, tpu.core_type = #tpu.core_type<tc>, window_params = [{transform_indices = @transform_0, window_bounds = array<i64: 256, 288>}, {transform_indices = @transform_1, window_bounds = array<i64: 288, 128>}, {pipeline_mode = #tpu.pipeline_mode<synchronous>, transform_indices = @transform_2, window_bounds = array<i64: 8, 128>}, {transform_indices = @transform_3, window_bounds = array<i64: 256, 128>}, {transform_indices = @transform_4, window_bounds = array<i64: 256, 128>}, {transform_indices = @transform_5, window_bounds = array<i64: 256, 128>}]} {
    %c0_i32 = arith.constant 0 : i32
    %0 = arith.cmpi eq, %arg1, %c0_i32 : i32
    %1 = arith.extui %0 : i1 to i32
    %c0_i32_0 = arith.constant 0 : i32
    %2 = arith.cmpi ne, %1, %c0_i32_0 : i32
    scf.if %2 {
      %cst_10 = arith.constant 0.000000e+00 : f32
      %12 = vector.broadcast %cst_10 : f32 to vector<256x128xf32>
      %c0_11 = arith.constant 0 : index
      %c0_12 = arith.constant 0 : index
      %13 = vector.load %arg8[%c0_11, %c0_12] : memref<256x128xf32, #tpu.memory_space<vmem>>, vector<256x128xf32>
      tpu.vector_store %arg8[%c0_11, %c0_12], %12 {strides = array<i32>} : memref<256x128xf32, #tpu.memory_space<vmem>>, vector<256x128xf32>,
    } else {
    }
    %c0 = arith.constant 0 : index
    %c0_1 = arith.constant 0 : index
    %3 = vector.load %arg8[%c0, %c0_1] : memref<256x128xf32, #tpu.memory_space<vmem>>, vector<256x128xf32>
    %c0_2 = arith.constant 0 : index
    %c0_3 = arith.constant 0 : index
    %4 = vector.load %arg2[%c0_2, %c0_3] : memref<256x288xbf16, #tpu.memory_space<vmem>>, vector<256x288xbf16>
    %c0_4 = arith.constant 0 : index
    %c0_5 = arith.constant 0 : index
    %5 = vector.load %arg3[%c0_4, %c0_5] : memref<288x128xbf16, #tpu.memory_space<vmem>>, vector<288x128xbf16>
    %cst = arith.constant dense<0.000000e+00> : vector<256x128xf32>
    %6 = tpu.matmul %4, %5, %cst {dimension_numbers = #tpu.dot_dimension_numbers<[1], [0], [0], [1], [0, 0, 1, 1], [], []>} : vector<256x288xbf16>, vector<288x128xbf16>, vector<256x128xf32> -> vector<256x128xf32>
    %7 = arith.addf %3, %6 : vector<256x128xf32>
    %c0_6 = arith.constant 0 : index
    %c0_7 = arith.constant 0 : index
    %8 = vector.load %arg8[%c0_6, %c0_7] : memref<256x128xf32, #tpu.memory_space<vmem>>, vector<256x128xf32>
    tpu.vector_store %arg8[%c0_6, %c0_7], %7 {strides = array<i32>} : memref<256x128xf32, #tpu.memory_space<vmem>>, vector<256x128xf32>,
    %c0_i32_8 = arith.constant 0 : i32
    %9 = arith.cmpi eq, %arg1, %c0_i32_8 : i32
    %10 = arith.extui %9 : i1 to i32
    %c0_i32_9 = arith.constant 0 : i32
    %11 = arith.cmpi ne, %10, %c0_i32_9 : i32
    scf.if %11 {
      %c0_10 = arith.constant 0 : index
      %c0_11 = arith.constant 0 : index
      %12 = vector.load %arg8[%c0_10, %c0_11] : memref<256x128xf32, #tpu.memory_space<vmem>>, vector<256x128xf32>
      %c0_12 = arith.constant 0 : index
      %c0_13 = arith.constant 0 : index
      %13 = vector.load %arg4[%c0_12, %c0_13] : memref<8x128xf32, #tpu.memory_space<vmem>>, vector<1x128xf32>
      %14 = vector.broadcast %13 : vector<1x128xf32> to vector<256x128xf32>
      %15 = arith.addf %12, %14 : vector<256x128xf32>
      %cst_14 = arith.constant 0.000000e+00 : f32
      %16 = vector.broadcast %cst_14 : f32 to vector<256x128xf32>
      %17 = arith.cmpf oge, %15, %16 : vector<256x128xf32>
      %c1 = arith.constant 1 : index
      %c0_15 = arith.constant 0 : index
      %18 = vector.load %arg4[%c1, %c0_15] : memref<8x128xf32, #tpu.memory_space<vmem>>, vector<1x128xf32>
      %19 = vector.broadcast %18 : vector<1x128xf32> to vector<256x128xf32>
      %20 = arith.mulf %19, %15 : vector<256x128xf32>
      %21 = arith.select %17, %15, %20 : vector<256x128xi1>, vector<256x128xf32>
      %c0_16 = arith.constant 0 : index
      %c0_17 = arith.constant 0 : index
      %22 = vector.load %arg5[%c0_16, %c0_17] : memref<256x128xf32, #tpu.memory_space<vmem>>, vector<256x128xf32>
      %23 = arith.addf %21, %22 : vector<256x128xf32>
      %c2 = arith.constant 2 : index
      %c0_18 = arith.constant 0 : index
      %24 = vector.load %arg4[%c2, %c0_18] : memref<8x128xf32, #tpu.memory_space<vmem>>, vector<1x128xf32>
      %25 = vector.broadcast %24 : vector<1x128xf32> to vector<256x128xf32>
      %26 = arith.mulf %23, %25 : vector<256x128xf32>
      %c3 = arith.constant 3 : index
      %c0_19 = arith.constant 0 : index
      %27 = vector.load %arg4[%c3, %c0_19] : memref<8x128xf32, #tpu.memory_space<vmem>>, vector<1x128xf32>
      %28 = vector.broadcast %27 : vector<1x128xf32> to vector<256x128xf32>
      %29 = arith.addf %26, %28 : vector<256x128xf32>
      %c0_20 = arith.constant 0 : index
      %c0_21 = arith.constant 0 : index
      %30 = vector.load %arg6[%c0_20, %c0_21] : memref<256x128xf32, #tpu.memory_space<vmem>>, vector<256x128xf32>
      tpu.vector_store %arg6[%c0_20, %c0_21], %29 {strides = array<i32>} : memref<256x128xf32, #tpu.memory_space<vmem>>, vector<256x128xf32>,
      %cst_22 = arith.constant 0.000000e+00 : f32
      %31 = vector.broadcast %cst_22 : f32 to vector<256x128xf32>
      %32 = arith.cmpf oge, %29, %31 : vector<256x128xf32>
      %cst_23 = arith.constant 1.000000e+00 : f32
      %cst_24 = arith.constant -1.000000e+00 : f32
      %33 = vector.broadcast %cst_23 : f32 to vector<256x128xf32>
      %34 = vector.broadcast %cst_24 : f32 to vector<256x128xf32>
      %35 = arith.select %32, %33, %34 : vector<256x128xi1>, vector<256x128xf32>
      %36 = arith.truncf %35 : vector<256x128xf32> to vector<256x128xbf16>
      %c0_25 = arith.constant 0 : index
      %c0_26 = arith.constant 0 : index
      %37 = vector.load %arg7[%c0_25, %c0_26] : memref<256x128xbf16, #tpu.memory_space<vmem>>, vector<256x128xbf16>
      tpu.vector_store %arg7[%c0_25, %c0_26], %36 {strides = array<i32>} : memref<256x128xbf16, #tpu.memory_space<vmem>>, vector<256x128xbf16>,
    } else {
    }
    return
  }
  func.func @transform_0(%arg0: i32, %arg1: i32) -> (i32, i32) {
    %c0_i32 = arith.constant 0 : i32
    return %arg0, %arg1 : i32, i32
  }
  func.func @transform_1(%arg0: i32, %arg1: i32) -> (i32, i32) {
    %c0_i32 = arith.constant 0 : i32
    %c0_i32_0 = arith.constant 0 : i32
    return %arg1, %c0_i32 : i32, i32
  }
  func.func @transform_2(%arg0: i32, %arg1: i32) -> (i32, i32) {
    %c0_i32 = arith.constant 0 : i32
    %c0_i32_0 = arith.constant 0 : i32
    %c0_i32_1 = arith.constant 0 : i32
    return %c0_i32, %c0_i32_0 : i32, i32
  }
  func.func @transform_3(%arg0: i32, %arg1: i32) -> (i32, i32) {
    %c0_i32 = arith.constant 0 : i32
    %c0_i32_0 = arith.constant 0 : i32
    return %arg0, %c0_i32 : i32, i32
  }
  func.func @transform_4(%arg0: i32, %arg1: i32) -> (i32, i32) {
    %c0_i32 = arith.constant 0 : i32
    %c0_i32_0 = arith.constant 0 : i32
    return %arg0, %c0_i32 : i32, i32
  }
  func.func @transform_5(%arg0: i32, %arg1: i32) -> (i32, i32) {
    %c0_i32 = arith.constant 0 : i32
    %c0_i32_0 = arith.constant 0 : i32
    return %arg0, %c0_i32 : i32, i32
  }
}

</mosaic_0001>

<bundles_post_ra>
// kernel: resnet_forward.5
= control target key start
LH: loop header
LB: loop body
LE: loop exit
PB: predicated region body
PF: predicated region fallthrough
CT: control target
= control target key end

     0   :  { %11 = vsyncpa [#allocation4], 0  ;;  %s8184_s0 = inlined_call_operand.vmem [shape: bf16[2048,864], index: 0, kind: input, shape index: {}]   ;;  %s8185_s1 = inlined_call_operand.vmem [shape: bf16[864,128], index: 1, kind: input, shape index: {}]   ;;  %s8186_s2 = inlined_call_operand.vmem [shape: f32[8,128], index: 2, kind: input, shape index: {}]   ;;  %s8187_s3 = inlined_call_operand.vmem [shape: f32[2048,128], index: 3, kind: input, shape index: {}]   ;;  %s8188_s4 = inlined_call_operand.vmem [shape: f32[2048,128], index: 4, kind: output, shape index: {0}]   ;;  %s8189_s5 = inlined_call_operand.hbm [shape: bf16[2048,128], index: 5, kind: output, shape index: {1}]  }
   0x1   :  { %13 = vsyncpa [#allocation4 + $0x1], 0  ;;  %s6378_s18 = smov 0   ;;  %s6380_s19 = smov 0  }
   0x2   :  { %s6382_s20 = smov 0   ;;  %s6384_s21 = smov 0  }
   0x3   :  { %s6386_s22 = smov 0   ;;  %s6388_s23 = smov 0  }
   0x4 LB: > { %s4899_s24 = sadd.s32 4294967295, %s6341_s23   ;;  %s4900_s25 = sadd.s32 4294967294, %s6341_s23   ;;  %s6341_s23 = sphi %s6388_s23, %s19_s23   ;;  %s6337_s22 = sphi %s6386_s22, %s8240_s22   ;;  %s6333_s21 = sphi %s6384_s21, %s8239_s21   ;;  %s6329_s20 = sphi %s6382_s20, %s8238_s20   ;;  %s6325_s19 = sphi %s6380_s19, %s8237_s19   ;;  %s6321_s18 = sphi %s6378_s18, %s8236_s18  }
   0x5   : > { %s31_s26 = sadd.s32 1, %s6337_s22  ;;  %s165_s27 = sadd.s32 1, %s6329_s20 }
   0x6   : > { %p33_p0 = scmp.ge.s32.totalorder %s31_s26, 4  ;;  %p175_p1 = scmp.ne.s32.totalorder %s6329_s20, %s6325_s19 }
   0x7   : > { %p176_p2 = scmp.eq.s32.totalorder %s4899_s24, 3  ;;  %p181_p3 = scmp.ne.s32.totalorder %s6325_s19, %s6321_s18 }
   0x8   : > { %s8242_s26 = smov (%p33_p0, %s31_s26), 0  ;;  %p182_p5 = scmp.eq.s32.totalorder %s4900_s25, 3 }
   0x9   : > { %p6418_p4 = por %p176_p2, %p175_p1  ;;  %s162_s29 = ssub.s32 %s6337_s22, %s8242_s26 }
   0xa   : > { %p4904_p6 = scmp.ge.s32.totalorder %s6341_s23, 1  ;;  %p163_p7 = scmp.eq.s32.totalorder %s162_s29, 0 }
   0xb   : > { %p6425_p8 = por %p182_p5, %p181_p3  ;;  %p236_p9 = scmp.lt.s32.totalorder %s6341_s23, 5 }
   0xc   : > { %s6431_s6 = scalar_select %p163_p7, %s6329_s20, %s165_s27  }
   0xd   : > { %p237_p10 = pnand %p4904_p6, %p236_p9 }
   0xf   : > { %240 = sbr.rel (%p237_p10) target bundleno = 824 (0x338), region = 36 }
  0x16   : > { %v5885_v0 = vld [vmem:[%s8185_s1] sm:$0xff]   ;;  %v6343_v1 = vmov 0   ;;  %v5887_v3 = vld [vmem:[%s8185_s1 + $0x8] sm:$0xff]   ;;  %v5889_v5 = vld [vmem:[%s8185_s1 + $0x10] sm:$0xff]   ;;  %s4906_s12 = sshll.u32 %s6333_s21, 6  ;;  %vm2256_vm0 = vcmask 785408  }
  0x17   : > { %2353 = vmatprep.subr.bf16.mxu1 %v6343_v1  ;;  %2642 = vmatprep.subr.bf16.mxu0 %v6343_v1  ;;  %v6441_v2 = vld [vmem:[%s8185_s1 + $0x80] sm:$0xff]   ;;  %v6451_v4 = vld [vmem:[%s8185_s1 + $0x88] sm:$0xff]   ;;  %v6462_v6 = vld [vmem:[%s8185_s1 + $0x90] sm:$0xff]   ;;  %p286_p11 = scmp.lt.s32.totalorder %s4906_s12, 255  ;;  %s281_s9 = sand.u32 1, %s6325_s19  }
  0x18   : > { %2354 = vmatpush1.bf16.msra.mxu1 %v5885_v0  ;;  %2643 = vmatpush1.bf16.msra.mxu0 %v6441_v2  ;;  %v5891_v7 = vld [vmem:[%s8185_s1 + $0x18] sm:$0xff]   ;;  %v5893_v9 = vld [vmem:[%s8185_s1 + $0x20] sm:$0xff]   ;;  %v5895_v11 = vld [vmem:[%s8185_s1 + $0x28] sm:$0xff]   ;;  %s6345_s15 = smov [#allocation3]  }
  0x19   : > { %2355 = vmatprep.subr.bf16.mxu1 %v6343_v1  ;;  %2644 = vmatprep.subr.bf16.mxu0 %v6343_v1  ;;  %v6473_v8 = vld [vmem:[%s8185_s1 + $0x98] sm:$0xff]   ;;  %v6484_v10 = vld [vmem:[%s8185_s1 + $0xa0] sm:$0xff]   ;;  %v6496_v12 = vld [vmem:[%s8185_s1 + $0xa8] sm:$0xff]   ;;  %s8244_s12 = smov (!%p286_p11, %s4906_s12), 255  ;;  %s6267_s24 = sshll.u32 %s6345_s15, 4  ;;  %s6268_s24 = int_to_ptr.vmem [resolvable:$false] %s6267_s24 }
  0x1a   : > { %v5897_v13 = vld [vmem:[%s8185_s1 + $0x30] sm:$0xff]   ;;  %v5899_v15 = vld [vmem:[%s8185_s1 + $0x38] sm:$0xff]   ;;  %s5825_s8 = smul.u32 28, %s8244_s12  ;;  %v5901_v17 = vld [vmem:[%s8185_s1 + $0x40] sm:$0xff]   ;;  %s6269_s25 = scalar_lea.vmem %s6268_s24, 8192 }
  0x1b   : > { %v6509_v14 = vld [vmem:[%s8185_s1 + $0xb0] sm:$0xff]   ;;  %v6521_v16 = vld [vmem:[%s8185_s1 + $0xb8] sm:$0xff]   ;;  %v6537_v18 = vld [vmem:[%s8185_s1 + $0xc0] sm:$0xff]  }
  0x1c   : > { %2356 = vmatpush1.bf16.msra.mxu1 %v5887_v3  ;;  %2645 = vmatpush1.bf16.msra.mxu0 %v6451_v4  ;;  %s6530_s16 = scalar_lea.vmem %s8184_s0, %s5825_s8  ;;  %v5903_v20 = vld [vmem:[%s8185_s1 + $0x48] sm:$0xff]   ;;  %v5905_v23 = vld [vmem:[%s8185_s1 + $0x50] sm:$0xff]   ;;  %v5907_v25 = vld [vmem:[%s8185_s1 + $0x58] sm:$0xff]  }
  0x1d   : > { %2357 = vmatprep.subr.bf16.mxu1 %v6343_v1  ;;  %2646 = vmatprep.subr.bf16.mxu0 %v6343_v1  ;;  %v5919_v19 = vld [vmem:[%s6530_s16 + $0x4] ss:$28 sps:$4 sm:$0xff]   ;;  %v5922_v21 = vld [vmem:[%s6530_s16 + $0xc] ss:$28 sps:$4 sm:$0xff]   ;;  %v6561_v24 = vld [vmem:[%s8185_s1 + $0xd0] sm:$0xff]  }
  0x1e   : > { %v6550_v22 = vld [vmem:[%s8185_s1 + $0xc8] sm:$0xff]   ;;  %2385 = vmatprep.mubr.bf16.mxu1 %v5919_v19  ;;  %2674 = vmatprep.mubr.bf16.mxu0 %v5922_v21  ;;  %v6572_v26 = vld [vmem:[%s8185_s1 + $0xd8] sm:$0xff]   ;;  %v5909_v27 = vld [vmem:[%s8185_s1 + $0x60] sm:$0xff]  }
  0x1f   : > { %v6583_v28 = vld [vmem:[%s8185_s1 + $0xe0] sm:$0xff]   ;;  %v5911_v29 = vld [vmem:[%s8185_s1 + $0x68] sm:$0xff]   ;;  %v5913_v31 = vld [vmem:[%s8185_s1 + $0x70] sm:$0xff]  }
  0x20   : > { %2358 = vmatpush1.bf16.msra.mxu1 %v5889_v5  ;;  %2647 = vmatpush1.bf16.msra.mxu0 %v6462_v6  ;;  %v6594_v30 = vld [vmem:[%s8185_s1 + $0xe8] sm:$0xff]   ;;  %v6605_v32 = vld [vmem:[%s8185_s1 + $0xf0] sm:$0xff]   ;;  %v5915_v33 = vld [vmem:[%s8185_s1 + $0x78] sm:$0xff]  }
  0x21   : > { %2359 = vmatprep.subr.bf16.mxu1 %v6343_v1  ;;  %2648 = vmatprep.subr.bf16.mxu0 %v6343_v1  ;;  %v6616_v34 = vld [vmem:[%s8185_s1 + $0xf8] sm:$0xff]   ;;  %v5920_v36 = vld [vmem:[%s6530_s16 + $0x8] ss:$28 sps:$4 sm:$0xff]   ;;  %v5931_v43 = vld [vmem:[%s6530_s16 + $0x74] ss:$28 sps:$4 sm:$0xff]  }
  0x22   : > { %v5917_v35 = vld [vmem:[%s6530_s16] ss:$28 sps:$4 sm:$0xff]   ;;  %v5930_v40 = vld [vmem:[%s8185_s1 + $0x108] sm:$0xff]   ;;  %v5928_v41 = vld [vmem:[%s6530_s16 + $0x38] ss:$28 sps:$4 sm:$0xff]  }
  0x23   : > { %v5923_v37 = vld [vmem:[%s8185_s1 + $0x100] sm:$0xff]   ;;  %v5924_v38 = vld [vmem:[%s6530_s16 + $0x3c] ss:$28 sps:$4 sm:$0xff]   ;;  %v5943_v45 = vld [vmem:[%s8185_s1 + $0x110] sm:$0xff]  }
  0x24   : > { %2360 = vmatpush1.bf16.msra.mxu1 %v5891_v7  ;;  %2649 = vmatpush1.bf16.msra.mxu0 %v6473_v8  ;;  %v5926_v39 = vld [vmem:[%s6530_s16 + $0x44] ss:$28 sps:$4 sm:$0xff]   ;;  %v5933_v44 = vld [vmem:[%s6530_s16 + $0x7c] ss:$28 sps:$4 sm:$0xff]   ;;  %v5935_v47 = vld [vmem:[%s6530_s16 + $0x70] ss:$28 sps:$4 sm:$0xff]  }
  0x25   : > { %2361 = vmatprep.subr.bf16.mxu1 %v6343_v1  ;;  %2650 = vmatprep.subr.bf16.mxu0 %v6343_v1  ;;  %v5929_v42 = vld [vmem:[%s6530_s16 + $0x40] ss:$28 sps:$4 sm:$0xff]   ;;  %v5936_v48 = vld [vmem:[%s6530_s16 + $0x78] ss:$28 sps:$4 sm:$0xff]   ;;  %v5937_v49 = vld [vmem:[%s6530_s16 + $0xac] ss:$28 sps:$4 sm:$0xff]  }
  0x26   : > { %v5950_v46 = vld [vmem:[%s8185_s1 + $0x118] sm:$0xff]   ;;  %v5939_v50 = vld [vmem:[%s6530_s16 + $0xb4] ss:$28 sps:$4 sm:$0xff]   ;;  %v5963_v51 = vld [vmem:[%s8185_s1 + $0x120] sm:$0xff]  }
  0x27   : > { %v5970_v52 = vld [vmem:[%s8185_s1 + $0x128] sm:$0xff]   ;;  %v5944_v55 = vld [vmem:[%s6530_s16 + $0xe4] ss:$28 sps:$4 sm:$0xff]   ;;  %v5983_v57 = vld [vmem:[%s8185_s1 + $0x130] sm:$0xff]  }
  0x28   : > { %2362 = vmatpush1.bf16.msra.mxu1 %v5893_v9  ;;  %2651 = vmatpush1.bf16.msra.mxu0 %v6484_v10  ;;  %v5941_v53 = vld [vmem:[%s6530_s16 + $0xa8] ss:$28 sps:$4 sm:$0xff]   ;;  %v5942_v54 = vld [vmem:[%s6530_s16 + $0xb0] ss:$28 sps:$4 sm:$0xff]   ;;  %v5990_v58 = vld [vmem:[%s8185_s1 + $0x138] sm:$0xff]  }
  0x29   : > { %2363 = vmatprep.subr.bf16.mxu1 %v6343_v1  ;;  %2652 = vmatprep.subr.bf16.mxu0 %v6343_v1  ;;  %v5946_v56 = vld [vmem:[%s6530_s16 + $0xec] ss:$28 sps:$4 sm:$0xff]   ;;  %v5948_v59 = vld [vmem:[%s6530_s16 + $0xe0] ss:$28 sps:$4 sm:$0xff]   ;;  %v5962_v9 = vld [vmem:[%s6530_s16 + $0x158] ss:$28 sps:$4 sm:$0xff]  }
  0x2a   : > { %v5949_v60 = vld [vmem:[%s6530_s16 + $0xe8] ss:$28 sps:$4 sm:$0xff]   ;;  %v5951_v61 = vld [vmem:[%s6530_s16 + $0x11c] ss:$28 sps:$4 sm:$0xff]   ;;  %v5961_v7 = vld [vmem:[%s6530_s16 + $0x150] ss:$28 sps:$4 sm:$0xff]  }
  0x2b   : > { %v5953_v62 = vld [vmem:[%s6530_s16 + $0x124] ss:$28 sps:$4 sm:$0xff]   ;;  %v6010_v0 = vld [vmem:[%s8185_s1 + $0x148] sm:$0xff]   ;;  %v5959_v5 = vld [vmem:[%s6530_s16 + $0x15c] ss:$28 sps:$4 sm:$0xff]  }
  0x2c   : > { %2364 = vmatpush1.bf16.msra.mxu1 %v5895_v11  ;;  %2653 = vmatpush1.bf16.msra.mxu0 %v6496_v12  ;;  %v6003_v63 = vld [vmem:[%s8185_s1 + $0x140] sm:$0xff]   ;;  %v5966_v11 = vld [vmem:[%s6530_s16 + $0x194] ss:$28 sps:$4 sm:$0xff]  }
  0x2d   : > { %2365 = vmatprep.subr.bf16.mxu1 %v6343_v1  ;;  %2654 = vmatprep.subr.bf16.mxu0 %v6343_v1  ;;  %v5956_v3 = vld [vmem:[%s6530_s16 + $0x120] ss:$28 sps:$4 sm:$0xff]   ;;  %v5976_v21 = vld [vmem:[%s6530_s16 + $0x1c8] ss:$28 sps:$4 sm:$0xff]  }
  0x2e   : > { %v5975_v19 = vld [vmem:[%s6530_s16 + $0x1c0] ss:$28 sps:$4 sm:$0xff]  }
  0x30   : > { %2366 = vmatpush1.bf16.msra.mxu1 %v5897_v13  ;;  %2655 = vmatpush1.bf16.msra.mxu0 %v6509_v14  ;;  %v5968_v13 = vld [vmem:[%s6530_s16 + $0x188] ss:$28 sps:$4 sm:$0xff]  }
  0x31   : > { %2367 = vmatprep.subr.bf16.mxu1 %v6343_v1  ;;  %2656 = vmatprep.subr.bf16.mxu0 %v6343_v1 }
  0x34   : > { %2368 = vmatpush1.bf16.msra.mxu1 %v5899_v15  ;;  %2657 = vmatpush1.bf16.msra.mxu0 %v6521_v16  ;;  %v5969_v15 = vld [vmem:[%s6530_s16 + $0x190] ss:$28 sps:$4 sm:$0xff]  }
  0x35   : > { %2369 = vmatprep.subr.bf16.mxu1 %v6343_v1  ;;  %2658 = vmatprep.subr.bf16.mxu0 %v6343_v1 }
  0x38   : > { %2370 = vmatpush1.bf16.msra.mxu1 %v5901_v17  ;;  %2659 = vmatpush1.bf16.msra.mxu0 %v6537_v18  ;;  %v5973_v17 = vld [vmem:[%s6530_s16 + $0x1cc] ss:$28 sps:$4 sm:$0xff]  }
  0x39   : > { %2371 = vmatprep.subr.bf16.mxu1 %v6343_v1  ;;  %2660 = vmatprep.subr.bf16.mxu0 %v6343_v1 }
  0x3c   : > { %2372 = vmatpush1.bf16.msra.mxu1 %v5903_v20  ;;  %2661 = vmatpush1.bf16.msra.mxu0 %v6550_v22  ;;  %v6070_v20 = vld [vmem:[%s8185_s1 + $0x178] sm:$0xff]  }
  0x3d   : > { %2373 = vmatprep.subr.bf16.mxu1 %v6343_v1  ;;  %2662 = vmatprep.subr.bf16.mxu0 %v6343_v1 }
  0x40   : > { %2374 = vmatpush1.bf16.msra.mxu1 %v5905_v23  ;;  %2663 = vmatpush1.bf16.msra.mxu0 %v6561_v24  ;;  %v5979_v23 = vld [vmem:[%s6530_s16 + $0x204] ss:$28 sps:$4 sm:$0xff]  }
  0x41   : > { %2375 = vmatprep.subr.bf16.mxu1 %v6343_v1  ;;  %2664 = vmatprep.subr.bf16.mxu0 %v6343_v1 }
  0x44   : > { %2376 = vmatpush1.bf16.msra.mxu1 %v5907_v25  ;;  %2665 = vmatpush1.bf16.msra.mxu0 %v6572_v26  ;;  %v5982_v25 = vld [vmem:[%s6530_s16 + $0x200] ss:$28 sps:$4 sm:$0xff]  }
  0x45   : > { %2377 = vmatprep.subr.bf16.mxu1 %v6343_v1  ;;  %2666 = vmatprep.subr.bf16.mxu0 %v6343_v1 }
  0x48   : > { %2378 = vmatpush1.bf16.msra.mxu1 %v5909_v27  ;;  %2667 = vmatpush1.bf16.msra.mxu0 %v6583_v28  ;;  %v5986_v27 = vld [vmem:[%s6530_s16 + $0x23c] ss:$28 sps:$4 sm:$0xff]  }
  0x49   : > { %2379 = vmatprep.subr.bf16.mxu1 %v6343_v1  ;;  %2668 = vmatprep.subr.bf16.mxu0 %v6343_v1 }
  0x4c   : > { %2380 = vmatpush1.bf16.msra.mxu1 %v5911_v29  ;;  %2669 = vmatpush1.bf16.msra.mxu0 %v6594_v30  ;;  %v5991_v29 = vld [vmem:[%s6530_s16 + $0x26c] ss:$28 sps:$4 sm:$0xff]  }
  0x4d   : > { %2381 = vmatprep.subr.bf16.mxu1 %v6343_v1  ;;  %2670 = vmatprep.subr.bf16.mxu0 %v6343_v1 }
  0x50   : > { %2382 = vmatpush1.bf16.msra.mxu1 %v5913_v31  ;;  %2671 = vmatpush1.bf16.msra.mxu0 %v6605_v32  ;;  %v5995_v31 = vld [vmem:[%s6530_s16 + $0x268] ss:$28 sps:$4 sm:$0xff]  }
  0x51   : > { %2383 = vmatprep.subr.bf16.mxu1 %v6343_v1  ;;  %2672 = vmatprep.subr.bf16.mxu0 %v6343_v1 }
  0x54   : > { %2384 = vmatpush1.bf16.msra.mxu1 %v5915_v33  ;;  %2673 = vmatpush1.bf16.msra.mxu0 %v6616_v34  ;;  %v5997_v33 = vld [vmem:[%s6530_s16 + $0x2a4] ss:$28 sps:$4 sm:$0xff]  }
  0x55   : > { %5601 = vmatprep.subr.bf16.mxu1 %v6343_v1  ;;  %2931 = vmatprep.subr.bf16.mxu0 %v6343_v1 }
  0x57   : > { %2386 = vmatmul.mubr.bf16.vlgmr.msra.gmra.mrb[0].mxu1 %v5917_v35  ;;  %2675 = vmatmul.mubr.bf16.vlgmr.msra.gmra.mrb[0].mxu0 %v5920_v36  ;;  %v6001_v35 = vld [vmem:[%s6530_s16 + $0x2a0] ss:$28 sps:$4 sm:$0xff]   ;;  %v6002_v36 = vld [vmem:[%s6530_s16 + $0x2a8] ss:$28 sps:$4 sm:$0xff]  }
  0x58   : > { %5617 = vmatpush1.bf16.msra.mxu1 %v6441_v2  ;;  %2932 = vmatpush1.bf16.msra.mxu0 %v5923_v37  ;;  %v5955_v2 = vld [vmem:[%s6530_s16 + $0x118] ss:$28 sps:$4 sm:$0xff]  }
  0x59   : > { %2393 = vmatprep.mubr.bf16.mxu1 %v5924_v38  ;;  %2682 = vmatprep.mubr.bf16.mxu0 %v5926_v39  ;;  %v6004_v37 = vld [vmem:[%s6530_s16 + $0x2dc] ss:$28 sps:$4 sm:$0xff]   ;;  %v6006_v38 = vld [vmem:[%s6530_s16 + $0x2e4] ss:$28 sps:$4 sm:$0xff]  }
  0x5a   : > { %2933 = vmatprep.subr.bf16.mxu0 %v6343_v1  ;;  %5602 = vmatprep.subr.bf16.mxu1 %v6343_v1  ;;  %v6008_v39 = vld [vmem:[%s6530_s16 + $0x2d8] ss:$28 sps:$4 sm:$0xff]  }
  0x5c   : > { %5618 = vmatpush1.bf16.msra.mxu1 %v6451_v4  ;;  %2934 = vmatpush1.bf16.msra.mxu0 %v5930_v40  ;;  %v5957_v4 = vld [vmem:[%s6530_s16 + $0x154] ss:$28 sps:$4 sm:$0xff]   ;;  %v6009_v40 = vld [vmem:[%s6530_s16 + $0x2e0] ss:$28 sps:$4 sm:$0xff]  }
  0x5d   : > { %5603 = vmatprep.subr.bf16.mxu1 %v6343_v1  ;;  %2935 = vmatprep.subr.bf16.mxu0 %v6343_v1 }
  0x5f   : > { %2394 = vmatmul.mubr.bf16.gmra.mrb[4].mxu1 %v5928_v41  ;;  %2683 = vmatmul.mubr.bf16.gmra.mrb[4].mxu0 %v5929_v42  ;;  %v6011_v41 = vld [vmem:[%s6530_s16 + $0x314] ss:$28 sps:$4 sm:$0xff]   ;;  %v6013_v42 = vld [vmem:[%s6530_s16 + $0x31c] ss:$28 sps:$4 sm:$0xff]  }
  0x60   : > { %2401 = vmatprep.mubr.bf16.mxu1 %v5931_v43  ;;  %2690 = vmatprep.mubr.bf16.mxu0 %v5933_v44  ;;  %v6015_v43 = vld [vmem:[%s6530_s16 + $0x310] ss:$28 sps:$4 sm:$0xff]   ;;  %v6016_v44 = vld [vmem:[%s6530_s16 + $0x318] ss:$28 sps:$4 sm:$0xff]  }
  0x61   : > { %2936 = vmatpush1.bf16.msra.mxu0 %v5943_v45  ;;  %5619 = vmatpush1.bf16.msra.mxu1 %v6462_v6  ;;  %v6023_v6 = vld [vmem:[%s8185_s1 + $0x150] sm:$0xff]   ;;  %v6017_v45 = vld [vmem:[%s6530_s16 + $0x34c] ss:$28 sps:$4 sm:$0xff]  }
  0x62   : > { %2937 = vmatprep.subr.bf16.mxu0 %v6343_v1  ;;  %5604 = vmatprep.subr.bf16.mxu1 %v6343_v1 }
  0x65   : > { %2938 = vmatpush1.bf16.msra.mxu0 %v5950_v46  ;;  %5620 = vmatpush1.bf16.msra.mxu1 %v6473_v8  ;;  %v6030_v8 = vld [vmem:[%s8185_s1 + $0x158] sm:$0xff]   ;;  %v6019_v46 = vld [vmem:[%s6530_s16 + $0x354] ss:$28 sps:$4 sm:$0xff]  }
  0x66   : > { %2939 = vmatprep.subr.bf16.mxu0 %v6343_v1  ;;  %5605 = vmatprep.subr.bf16.mxu1 %v6343_v1 }
  0x67   : > { %2402 = vmatmul.mubr.bf16.gmra.mrb[8].mxu1 %v5935_v47  ;;  %2691 = vmatmul.mubr.bf16.gmra.mrb[8].mxu0 %v5936_v48  ;;  %v6021_v47 = vld [vmem:[%s6530_s16 + $0x348] ss:$28 sps:$4 sm:$0xff]   ;;  %v6022_v48 = vld [vmem:[%s6530_s16 + $0x350] ss:$28 sps:$4 sm:$0xff]  }
  0x68   : > { %2409 = vmatprep.mubr.bf16.mxu1 %v5937_v49  ;;  %2698 = vmatprep.mubr.bf16.mxu0 %v5939_v50  ;;  %v6024_v49 = vld [vmem:[%s6530_s16 + $0x384] ss:$28 sps:$4 sm:$0xff]   ;;  %v6026_v50 = vld [vmem:[%s6530_s16 + $0x38c] ss:$28 sps:$4 sm:$0xff]  }
  0x69   : > { %2940 = vmatpush1.bf16.msra.mxu0 %v5963_v51  ;;  %5621 = vmatpush1.bf16.msra.mxu1 %v6484_v10  ;;  %v5964_v10 = vld [vmem:[%s6530_s16 + $0x18c] ss:$28 sps:$4 sm:$0xff]   ;;  %v6028_v51 = vld [vmem:[%s6530_s16 + $0x380] ss:$28 sps:$4 sm:$0xff]  }
  0x6a   : > { %2941 = vmatprep.subr.bf16.mxu0 %v6343_v1  ;;  %5606 = vmatprep.subr.bf16.mxu1 %v6343_v1 }
  0x6d   : > { %2942 = vmatpush1.bf16.msra.mxu0 %v5970_v52  ;;  %5622 = vmatpush1.bf16.msra.mxu1 %v6496_v12  ;;  %v6043_v12 = vld [vmem:[%s8185_s1 + $0x160] sm:$0xff]  }
  0x6e   : > { %2943 = vmatprep.subr.bf16.mxu0 %v6343_v1  ;;  %5607 = vmatprep.subr.bf16.mxu1 %v6343_v1  ;;  %v6029_v52 = vld [vmem:[%s6530_s16 + $0x388] ss:$28 sps:$4 sm:$0xff]  }
  0x6f   : > { %2410 = vmatmul.mubr.bf16.gmra.mrb[12].mxu1 %v5941_v53  ;;  %2699 = vmatmul.mubr.bf16.gmra.mrb[12].mxu0 %v5942_v54  ;;  %v6031_v53 = vld [vmem:[%s6530_s16 + $0x3bc] ss:$28 sps:$4 sm:$0xff]   ;;  %v6033_v54 = vld [vmem:[%s6530_s16 + $0x3c4] ss:$28 sps:$4 sm:$0xff]  }
  0x70   : > { %2417 = vmatprep.mubr.bf16.mxu1 %v5944_v55  ;;  %2706 = vmatprep.mubr.bf16.mxu0 %v5946_v56  ;;  %v6787_v55 = vld [vmem:[%s8185_s1 + $0x180] sm:$0xff]   ;;  %v6035_v56 = vld [vmem:[%s6530_s16 + $0x3b8] ss:$28 sps:$4 sm:$0xff]  }
  0x71   : > { %2944 = vmatpush1.bf16.msra.mxu0 %v5983_v57  ;;  %5623 = vmatpush1.bf16.msra.mxu1 %v6509_v14  ;;  %v6050_v14 = vld [vmem:[%s8185_s1 + $0x168] sm:$0xff]   ;;  %v6036_v57 = vld [vmem:[%s6530_s16 + $0x3c0] ss:$28 sps:$4 sm:$0xff]  }
  0x72   : > { %2945 = vmatprep.subr.bf16.mxu0 %v6343_v1  ;;  %5608 = vmatprep.subr.bf16.mxu1 %v6343_v1 }
  0x75   : > { %2946 = vmatpush1.bf16.msra.mxu0 %v5990_v58  ;;  %5624 = vmatpush1.bf16.msra.mxu1 %v6521_v16  ;;  %v5971_v16 = vld [vmem:[%s6530_s16 + $0x1c4] ss:$28 sps:$4 sm:$0xff]   ;;  %v6037_v58 = vld [vmem:[%s6530_s16 + $0x3f4] ss:$28 sps:$4 sm:$0xff]  }
  0x76   : > { %2947 = vmatprep.subr.bf16.mxu0 %v6343_v1  ;;  %5609 = vmatprep.subr.bf16.mxu1 %v6343_v1 }
  0x77   : > { %2418 = vmatmul.mubr.bf16.gmra.mrb[16].mxu1 %v5948_v59  ;;  %2707 = vmatmul.mubr.bf16.gmra.mrb[16].mxu0 %v5949_v60  ;;  %v6039_v59 = vld [vmem:[%s6530_s16 + $0x3fc] ss:$28 sps:$4 sm:$0xff]   ;;  %v6041_v60 = vld [vmem:[%s6530_s16 + $0x3f0] ss:$28 sps:$4 sm:$0xff]  }
  0x78   : > { %2425 = vmatprep.mubr.bf16.mxu1 %v5951_v61  ;;  %2714 = vmatprep.mubr.bf16.mxu0 %v5953_v62  ;;  %v6042_v61 = vld [vmem:[%s6530_s16 + $0x3f8] ss:$28 sps:$4 sm:$0xff]   ;;  %v6044_v62 = vld [vmem:[%s6530_s16 + $0x42c] ss:$28 sps:$4 sm:$0xff]  }
  0x79   : > { %2948 = vmatpush1.bf16.msra.mxu0 %v6003_v63  ;;  %5625 = vmatpush1.bf16.msra.mxu1 %v6537_v18  ;;  %v6063_v18 = vld [vmem:[%s8185_s1 + $0x170] sm:$0xff]  }
  0x7a   : > { %2949 = vmatprep.subr.bf16.mxu0 %v6343_v1  ;;  %5610 = vmatprep.subr.bf16.mxu1 %v6343_v1  ;;  %v6046_v63 = vld [vmem:[%s6530_s16 + $0x434] ss:$28 sps:$4 sm:$0xff]  }
  0x7d   : > { %2950 = vmatpush1.bf16.msra.mxu0 %v6010_v0  ;;  %5626 = vmatpush1.bf16.msra.mxu1 %v6550_v22  ;;  %v5977_v22 = vld [vmem:[%s6530_s16 + $0x1fc] ss:$28 sps:$4 sm:$0xff]   ;;  %v6048_v0 = vld [vmem:[%s6530_s16 + $0x428] ss:$28 sps:$4 sm:$0xff]  }
  0x7e   : > { %2951 = vmatprep.subr.bf16.mxu0 %v6343_v1  ;;  %5611 = vmatprep.subr.bf16.mxu1 %v6343_v1 }
  0x7f   : > { %2426 = vmatmul.mubr.bf16.gmra.mrb[20].mxu1 %v5955_v2  ;;  %2715 = vmatmul.mubr.bf16.gmra.mrb[20].mxu0 %v5956_v3  ;;  %v6049_v2 = vld [vmem:[%s6530_s16 + $0x430] ss:$28 sps:$4 sm:$0xff]   ;;  %v6051_v3 = vld [vmem:[%s6530_s16 + $0x464] ss:$28 sps:$4 sm:$0xff]  }
  0x80   : > { %2433 = vmatprep.mubr.bf16.mxu1 %v5957_v4  ;;  %2722 = vmatprep.mubr.bf16.mxu0 %v5959_v5  ;;  %v6053_v4 = vld [vmem:[%s6530_s16 + $0x46c] ss:$28 sps:$4 sm:$0xff]   ;;  %v6055_v5 = vld [vmem:[%s6530_s16 + $0x460] ss:$28 sps:$4 sm:$0xff]  }
  0x81   : > { %2952 = vmatpush1.bf16.msra.mxu0 %v6023_v6  ;;  %5627 = vmatpush1.bf16.msra.mxu1 %v6561_v24  ;;  %v5981_v24 = vld [vmem:[%s6530_s16 + $0x1f8] ss:$28 sps:$4 sm:$0xff]   ;;  %v6056_v6 = vld [vmem:[%s6530_s16 + $0x468] ss:$28 sps:$4 sm:$0xff]  }
  0x82   : > { %2953 = vmatprep.subr.bf16.mxu0 %v6343_v1  ;;  %5612 = vmatprep.subr.bf16.mxu1 %v6343_v1 }
  0x85   : > { %2954 = vmatpush1.bf16.msra.mxu0 %v6030_v8  ;;  %5628 = vmatpush1.bf16.msra.mxu1 %v6572_v26  ;;  %v5984_v26 = vld [vmem:[%s6530_s16 + $0x234] ss:$28 sps:$4 sm:$0xff]   ;;  %v6059_v8 = vld [vmem:[%s6530_s16 + $0x4a4] ss:$28 sps:$4 sm:$0xff]  }
  0x86   : > { %2955 = vmatprep.subr.bf16.mxu0 %v6343_v1  ;;  %5613 = vmatprep.subr.bf16.mxu1 %v6343_v1 }
  0x87   : > { %2434 = vmatmul.mubr.bf16.gmra.mrb[24].mxu1 %v5961_v7  ;;  %2723 = vmatmul.mubr.bf16.gmra.mrb[24].mxu0 %v5962_v9  ;;  %v6057_v7 = vld [vmem:[%s6530_s16 + $0x49c] ss:$28 sps:$4 sm:$0xff]  }
  0x88   : > { %2441 = vmatprep.mubr.bf16.mxu1 %v5964_v10  ;;  %2730 = vmatprep.mubr.bf16.mxu0 %v5966_v11  ;;  %v6061_v9 = vld [vmem:[%s6530_s16 + $0x498] ss:$28 sps:$4 sm:$0xff]   ;;  %v6062_v10 = vld [vmem:[%s6530_s16 + $0x4a0] ss:$28 sps:$4 sm:$0xff]  }
  0x89   : > { %2956 = vmatpush1.bf16.msra.mxu0 %v6043_v12  ;;  %5629 = vmatpush1.bf16.msra.mxu1 %v6583_v28  ;;  %v5989_v28 = vld [vmem:[%s6530_s16 + $0x238] ss:$28 sps:$4 sm:$0xff]  }
  0x8a   : > { %2957 = vmatprep.subr.bf16.mxu0 %v6343_v1  ;;  %5614 = vmatprep.subr.bf16.mxu1 %v6343_v1  ;;  %v6064_v11 = vld [vmem:[%s6530_s16 + $0x4d4] ss:$28 sps:$4 sm:$0xff]   ;;  %v6066_v12 = vld [vmem:[%s6530_s16 + $0x4dc] ss:$28 sps:$4 sm:$0xff]  }
  0x8d   : > { %2958 = vmatpush1.bf16.msra.mxu0 %v6050_v14  ;;  %5630 = vmatpush1.bf16.msra.mxu1 %v6594_v30  ;;  %v5993_v30 = vld [vmem:[%s6530_s16 + $0x274] ss:$28 sps:$4 sm:$0xff]  }
  0x8e   : > { %2959 = vmatprep.subr.bf16.mxu0 %v6343_v1  ;;  %5615 = vmatprep.subr.bf16.mxu1 %v6343_v1  ;;  %v6069_v14 = vld [vmem:[%s6530_s16 + $0x4d8] ss:$28 sps:$4 sm:$0xff]  }
  0x8f   : > { %2442 = vmatmul.mubr.bf16.gmra.mrb[28].mxu1 %v5968_v13  ;;  %2731 = vmatmul.mubr.bf16.gmra.mrb[28].mxu0 %v5969_v15  ;;  %v6068_v13 = vld [vmem:[%s6530_s16 + $0x4d0] ss:$28 sps:$4 sm:$0xff]  }
  0x90   : > { %2449 = vmatprep.mubr.bf16.mxu1 %v5971_v16  ;;  %2738 = vmatprep.mubr.bf16.mxu0 %v5973_v17  ;;  %v6071_v15 = vld [vmem:[%s6530_s16 + $0x50c] ss:$28 sps:$4 sm:$0xff]   ;;  %v6073_v16 = vld [vmem:[%s6530_s16 + $0x514] ss:$28 sps:$4 sm:$0xff]  }
  0x91   : > { %2960 = vmatpush1.bf16.msra.mxu0 %v6063_v18  ;;  %5631 = vmatpush1.bf16.msra.mxu1 %v6605_v32  ;;  %v5996_v32 = vld [vmem:[%s6530_s16 + $0x270] ss:$28 sps:$4 sm:$0xff]   ;;  %v6075_v17 = vld [vmem:[%s6530_s16 + $0x508] ss:$28 sps:$4 sm:$0xff]  }
  0x92   : > { %2961 = vmatprep.subr.bf16.mxu0 %v6343_v1  ;;  %5616 = vmatprep.subr.bf16.mxu1 %v6343_v1  ;;  %v5988_v1 = vld [vmem:[%s6530_s16 + $0x230] ss:$28 sps:$4 sm:$0xff]  }
  0x93   : > { %v6076_v18 = vld [vmem:[%s6530_s16 + $0x510] ss:$28 sps:$4 sm:$0xff]  }
  0x95   : > { %2962 = vmatpush1.bf16.msra.mxu0 %v6070_v20  ;;  %5632 = vmatpush1.bf16.msra.mxu1 %v6616_v34  ;;  %v5999_v34 = vld [vmem:[%s6530_s16 + $0x2ac] ss:$28 sps:$4 sm:$0xff]   ;;  %v6081_v20 = vld [vmem:[%s6530_s16 + $0x14] ss:$28 sps:$4 sm:$0xff]  }
  0x96   : > { %5525 = vmatprep.subr.bf16.mxu1 %v6787_v55 }
  0x97   : > { %2450 = vmatmul.mubr.bf16.gmra.mrb[32].mxu1 %v5975_v19  ;;  %2739 = vmatmul.mubr.bf16.gmra.mrb[32].mxu0 %v5976_v21  ;;  %v6077_v19 = vld [vmem:[%s6530_s16 + $0x544] ss:$28 sps:$4 sm:$0xff]  }
  0x98   : > { %2457 = vmatprep.mubr.bf16.mxu1 %v5977_v22  ;;  %2746 = vmatprep.mubr.bf16.mxu0 %v5979_v23  ;;  %v6082_v21 = vld [vmem:[%s6530_s16 + $0x540] ss:$28 sps:$4 sm:$0xff]   ;;  %v6079_v22 = vld [vmem:[%s6530_s16 + $0x10] ss:$28 sps:$4 sm:$0xff]  }
  0x99   : > { %v6083_v23 = vld [vmem:[%s6530_s16 + $0x57c] ss:$28 sps:$4 sm:$0xff]  }
  0x9f   : > { %2458 = vmatmul.mubr.bf16.gmra.mrb[36].mxu1 %v5981_v24  ;;  %2747 = vmatmul.mubr.bf16.gmra.mrb[36].mxu0 %v5982_v25  ;;  %v6085_v24 = vld [vmem:[%s6530_s16 + $0x4c] ss:$28 sps:$4 sm:$0xff]   ;;  %v6087_v25 = vld [vmem:[%s6530_s16 + $0x578] ss:$28 sps:$4 sm:$0xff]  }
  0xa0   : > { %2465 = vmatprep.mubr.bf16.mxu1 %v5984_v26  ;;  %2754 = vmatprep.mubr.bf16.mxu0 %v5986_v27  ;;  %v6088_v26 = vld [vmem:[%s6530_s16 + $0x48] ss:$28 sps:$4 sm:$0xff]   ;;  %v6089_v27 = vld [vmem:[%s6530_s16 + $0x5b4] ss:$28 sps:$4 sm:$0xff]  }
  0xa7   : > { %2466 = vmatmul.mubr.bf16.gmra.mrb[40].mxu1 %v5988_v1  ;;  %2755 = vmatmul.mubr.bf16.gmra.mrb[40].mxu0 %v5989_v28  ;;  %v6091_v1 = vld [vmem:[%s6530_s16 + $0x84] ss:$28 sps:$4 sm:$0xff]   ;;  %v6093_v28 = vld [vmem:[%s6530_s16 + $0x5b0] ss:$28 sps:$4 sm:$0xff]  }
  0xa8   : > { %2473 = vmatprep.mubr.bf16.mxu1 %v5991_v29  ;;  %2762 = vmatprep.mubr.bf16.mxu0 %v5993_v30  ;;  %v6094_v29 = vld [vmem:[%s6530_s16 + $0x80] ss:$28 sps:$4 sm:$0xff]   ;;  %v6095_v30 = vld [vmem:[%s6530_s16 + $0x5ec] ss:$28 sps:$4 sm:$0xff]  }
  0xaf   : > { %2474 = vmatmul.mubr.bf16.gmra.mrb[44].mxu1 %v5995_v31  ;;  %2763 = vmatmul.mubr.bf16.gmra.mrb[44].mxu0 %v5996_v32  ;;  %v6097_v31 = vld [vmem:[%s6530_s16 + $0xbc] ss:$28 sps:$4 sm:$0xff]  }
  0xb0   : > { %2481 = vmatprep.mubr.bf16.mxu1 %v5997_v33  ;;  %2770 = vmatprep.mubr.bf16.mxu0 %v5999_v34  ;;  %v6099_v34 = vld [vmem:[%s6530_s16 + $0x5e8] ss:$28 sps:$4 sm:$0xff]  }
  0xb7   : > { %2482 = vmatmul.mubr.bf16.gmra.mrb[48].mxu1 %v6001_v35  ;;  %2771 = vmatmul.mubr.bf16.gmra.mrb[48].mxu0 %v6002_v36  ;;  %v6100_v36 = vld [vmem:[%s6530_s16 + $0xb8] ss:$28 sps:$4 sm:$0xff]  }
  0xb8   : > { %2489 = vmatprep.mubr.bf16.mxu1 %v6004_v37  ;;  %2778 = vmatprep.mubr.bf16.mxu0 %v6006_v38  ;;  %v6101_v37 = vld [vmem:[%s6530_s16 + $0x624] ss:$28 sps:$4 sm:$0xff]  }
  0xbf   : > { %2490 = vmatmul.mubr.bf16.gmra.mrb[52].mxu1 %v6008_v39  ;;  %2779 = vmatmul.mubr.bf16.gmra.mrb[52].mxu0 %v6009_v40  ;;  %v6103_v39 = vld [vmem:[%s6530_s16 + $0xf4] ss:$28 sps:$4 sm:$0xff]  }
  0xc0   : > { %2497 = vmatprep.mubr.bf16.mxu1 %v6011_v41  ;;  %2786 = vmatprep.mubr.bf16.mxu0 %v6013_v42  ;;  %v6105_v42 = vld [vmem:[%s6530_s16 + $0x620] ss:$28 sps:$4 sm:$0xff]  }
  0xc7   : > { %2498 = vmatmul.mubr.bf16.gmra.mrb[56].mxu1 %v6015_v43  ;;  %2787 = vmatmul.mubr.bf16.gmra.mrb[56].mxu0 %v6016_v44  ;;  %v6106_v44 = vld [vmem:[%s6530_s16 + $0xf0] ss:$28 sps:$4 sm:$0xff]  }
  0xc8   : > { %2505 = vmatprep.mubr.bf16.mxu1 %v6017_v45  ;;  %2794 = vmatprep.mubr.bf16.mxu0 %v6019_v46  ;;  %v6107_v45 = vld [vmem:[%s6530_s16 + $0x65c] ss:$28 sps:$4 sm:$0xff]  }
  0xcf   : > { %2506 = vmatmul.mubr.bf16.gmra.mrb[60].mxu1 %v6021_v47  ;;  %2795 = vmatmul.mubr.bf16.gmra.mrb[60].mxu0 %v6022_v48  ;;  %v6109_v47 = vld [vmem:[%s6530_s16 + $0x12c] ss:$28 sps:$4 sm:$0xff]  }
  0xd0   : > { %2513 = vmatprep.mubr.bf16.mxu1 %v6024_v49  ;;  %2802 = vmatprep.mubr.bf16.mxu0 %v6026_v50  ;;  %v6111_v50 = vld [vmem:[%s6530_s16 + $0x658] ss:$28 sps:$4 sm:$0xff]  }
  0xd7   : > { %2514 = vmatmul.mubr.bf16.gmra.mrb[64].mxu1 %v6028_v51  ;;  %2803 = vmatmul.mubr.bf16.gmra.mrb[64].mxu0 %v6029_v52  ;;  %v6112_v52 = vld [vmem:[%s6530_s16 + $0x128] ss:$28 sps:$4 sm:$0xff]  }
  0xd8   : > { %2521 = vmatprep.mubr.bf16.mxu1 %v6031_v53  ;;  %2810 = vmatprep.mubr.bf16.mxu0 %v6033_v54  ;;  %v6113_v53 = vld [vmem:[%s6530_s16 + $0x694] ss:$28 sps:$4 sm:$0xff]  }
  0xdf   : > { %2522 = vmatmul.mubr.bf16.gmra.mrb[68].mxu1 %v6035_v56  ;;  %2811 = vmatmul.mubr.bf16.gmra.mrb[68].mxu0 %v6036_v57  ;;  %v6115_v56 = vld [vmem:[%s6530_s16 + $0x164] ss:$28 sps:$4 sm:$0xff]  }
  0xe0   : > { %2529 = vmatprep.mubr.bf16.mxu1 %v6037_v58  ;;  %2818 = vmatprep.mubr.bf16.mxu0 %v6039_v59  ;;  %v6117_v59 = vld [vmem:[%s6530_s16 + $0x690] ss:$28 sps:$4 sm:$0xff]  }
  0xe7   : > { %2530 = vmatmul.mubr.bf16.gmra.mrb[72].mxu1 %v6041_v60  ;;  %2819 = vmatmul.mubr.bf16.gmra.mrb[72].mxu0 %v6042_v61  ;;  %v6118_v61 = vld [vmem:[%s6530_s16 + $0x160] ss:$28 sps:$4 sm:$0xff]  }
  0xe8   : > { %2537 = vmatprep.mubr.bf16.mxu1 %v6044_v62  ;;  %2826 = vmatprep.mubr.bf16.mxu0 %v6046_v63  ;;  %v6119_v62 = vld [vmem:[%s6530_s16 + $0x6cc] ss:$28 sps:$4 sm:$0xff]  }
  0xef   : > { %2538 = vmatmul.mubr.bf16.gmra.mrb[76].mxu1 %v6048_v0  ;;  %2827 = vmatmul.mubr.bf16.gmra.mrb[76].mxu0 %v6049_v2  ;;  %v6121_v0 = vld [vmem:[%s6530_s16 + $0x19c] ss:$28 sps:$4 sm:$0xff]  }
  0xf0   : > { %2545 = vmatprep.mubr.bf16.mxu1 %v6051_v3  ;;  %2834 = vmatprep.mubr.bf16.mxu0 %v6053_v4  ;;  %v6123_v4 = vld [vmem:[%s6530_s16 + $0x6c8] ss:$28 sps:$4 sm:$0xff]  }
  0xf7   : > { %2546 = vmatmul.mubr.bf16.gmra.mrb[80].mxu1 %v6055_v5  ;;  %2835 = vmatmul.mubr.bf16.gmra.mrb[80].mxu0 %v6056_v6  ;;  %v6124_v6 = vld [vmem:[%s6530_s16 + $0x198] ss:$28 sps:$4 sm:$0xff]  }
  0xf8   : > { %2553 = vmatprep.mubr.bf16.mxu1 %v6057_v7  ;;  %2842 = vmatprep.mubr.bf16.mxu0 %v6059_v8  ;;  %v6127_v7 = vld [vmem:[%s6530_s16 + $0x54c] ss:$28 sps:$4 sm:$0xff]  }
  0xff   : > { %2554 = vmatmul.mubr.bf16.gmra.mrb[84].mxu1 %v6061_v9  ;;  %2843 = vmatmul.mubr.bf16.gmra.mrb[84].mxu0 %v6062_v10  ;;  %v6128_v9 = vld [vmem:[%s6530_s16 + $0x1d4] ss:$28 sps:$4 sm:$0xff]  }
 0x100   : > { %2561 = vmatprep.mubr.bf16.mxu1 %v6064_v11  ;;  %2850 = vmatprep.mubr.bf16.mxu0 %v6066_v12  ;;  %v6125_v12 = vld [vmem:[%s6530_s16 + $0x548] ss:$28 sps:$4 sm:$0xff]  }
 0x107   : > { %2562 = vmatmul.mubr.bf16.gmra.mrb[88].mxu1 %v6068_v13  ;;  %2851 = vmatmul.mubr.bf16.gmra.mrb[88].mxu0 %v6069_v14  ;;  %v6130_v14 = vld [vmem:[%s6530_s16 + $0x1d0] ss:$28 sps:$4 sm:$0xff]  }
 0x108   : > { %2569 = vmatprep.mubr.bf16.mxu1 %v6071_v15  ;;  %2858 = vmatprep.mubr.bf16.mxu0 %v6073_v16  ;;  %v6132_v16 = vld [vmem:[%s6530_s16 + $0x584] ss:$28 sps:$4 sm:$0xff]  }
 0x10f   : > { %2570 = vmatmul.mubr.bf16.gmra.mrb[92].mxu1 %v6075_v17  ;;  %2859 = vmatmul.mubr.bf16.gmra.mrb[92].mxu0 %v6076_v18  ;;  %v6134_v17 = vld [vmem:[%s6530_s16 + $0x20c] ss:$28 sps:$4 sm:$0xff]  }
 0x110   : > { %2577 = vmatprep.mubr.bf16.mxu1 %v6077_v19  ;;  %2963 = vmatprep.mubr.bf16.mxu0 %v6081_v20  ;;  %v6138_v18 = vld [vmem:[%s8185_s1 + $0x188] sm:$0xff]   ;;  %v6149_v19 = vld [vmem:[%s8185_s1 + $0x190] sm:$0xff]  }
 0x117   : > { %2578 = vmatmul.mubr.bf16.gmra.mrb[96].mxu1 %v6082_v21  ;;  %2964 = vmatmul.mubr.bf16.vlgmr.msra.gmra.mrb[0].mxu0 %v6079_v22  ;;  %v6136_v22 = vld [vmem:[%s6530_s16 + $0x580] ss:$28 sps:$4 sm:$0xff]  }
 0x118   : > { %2585 = vmatprep.mubr.bf16.mxu1 %v6083_v23  ;;  %2971 = vmatprep.mubr.bf16.mxu0 %v6085_v24  ;;  %v6137_v24 = vld [vmem:[%s6530_s16 + $0x208] ss:$28 sps:$4 sm:$0xff]  }
 0x11f   : > { %2586 = vmatmul.mubr.bf16.gmra.mrb[100].mxu1 %v6087_v25  ;;  %2972 = vmatmul.mubr.bf16.gmra.mrb[4].mxu0 %v6088_v26  ;;  %v6139_v25 = vld [vmem:[%s6530_s16 + $0x5bc] ss:$28 sps:$4 sm:$0xff]  }
 0x120   : > { %2593 = vmatprep.mubr.bf16.mxu1 %v6089_v27  ;;  %2979 = vmatprep.mubr.bf16.mxu0 %v6091_v1  ;;  %v6158_v27 = vld [vmem:[%s8185_s1 + $0x198] sm:$0xff]  }
 0x127   : > { %2594 = vmatmul.mubr.bf16.gmra.mrb[104].mxu1 %v6093_v28  ;;  %2980 = vmatmul.mubr.bf16.gmra.mrb[8].mxu0 %v6094_v29  ;;  %v6165_v28 = vld [vmem:[%s8185_s1 + $0x1a0] sm:$0xff]  }
 0x128   : > { %2601 = vmatprep.mubr.bf16.mxu1 %v6095_v30  ;;  %2987 = vmatprep.mubr.bf16.mxu0 %v6097_v31  ;;  %v6143_v30 = vld [vmem:[%s6530_s16 + $0x5b8] ss:$28 sps:$4 sm:$0xff]  }
 0x12a   : > { %v6830_v32 = vpop.f32.mrb[0].mxu1 }
 0x12b   : > { %v2389_v33 = vpop.f32.mrb[1].mxu1 }
 0x12c   : > { %v6833_v35 = vpop.f32.mrb[2].mxu1  ;;  %v6144_v33 = vld [vmem:[%s6530_s16 + $0x240] ss:$28 sps:$4 sm:$0xff]  }
 0x12d   : > { %v2392_v38 = vpop.f32.mrb[3].mxu1 }
 0x12e   : > { %v6176_v38 = vld [vmem:[%s8185_s1 + $0x1a8] sm:$0xff]  }
 0x12f   : > { %2602 = vmatmul.mubr.bf16.gmra.mrb[108].mxu1 %v6099_v34  ;;  %2988 = vmatmul.mubr.bf16.gmra.mrb[12].mxu0 %v6100_v36  ;;  %v6145_v34 = vld [vmem:[%s6530_s16 + $0x5f4] ss:$28 sps:$4 sm:$0xff]  }
 0x130   : > { %2609 = vmatprep.mubr.bf16.mxu1 %v6101_v37  ;;  %2995 = vmatprep.mubr.bf16.mxu0 %v6103_v39  ;;  %v6147_v37 = vld [vmem:[%s6530_s16 + $0x27c] ss:$28 sps:$4 sm:$0xff]  }
 0x132   : > { %v6838_v40 = vpop.f32.mrb[4].mxu1 }
 0x133   : > { %v2397_v41 = vpop.f32.mrb[5].mxu1 }
 0x134   : > { %v6841_v43 = vpop.f32.mrb[6].mxu1 }
 0x135   : > { %v2400_v46 = vpop.f32.mrb[7].mxu1 }
 0x136   : > { %v6152_v46 = vld [vmem:[%s6530_s16 + $0x62c] ss:$28 sps:$4 sm:$0xff]  }
 0x137   : > { %2610 = vmatmul.mubr.bf16.gmra.mrb[112].mxu1 %v6105_v42  ;;  %2996 = vmatmul.mubr.bf16.gmra.mrb[16].mxu0 %v6106_v44  ;;  %v6150_v42 = vld [vmem:[%s6530_s16 + $0x5f0] ss:$28 sps:$4 sm:$0xff]  }
 0x138   : > { %2617 = vmatprep.mubr.bf16.mxu1 %v6107_v45  ;;  %3003 = vmatprep.mubr.bf16.mxu0 %v6109_v47  ;;  %v6151_v45 = vld [vmem:[%s6530_s16 + $0x278] ss:$28 sps:$4 sm:$0xff]  }
 0x13a   : > { %v6846_v48 = vpop.f32.mrb[8].mxu1 }
 0x13b   : > { %v2405_v49 = vpop.f32.mrb[9].mxu1 }
 0x13c   : > { %v6849_v51 = vpop.f32.mrb[10].mxu1  ;;  %v6154_v49 = vld [vmem:[%s6530_s16 + $0x2b4] ss:$28 sps:$4 sm:$0xff]  }
 0x13d   : > { %v2408_v54 = vpop.f32.mrb[11].mxu1 }
 0x13f   : > { %2618 = vmatmul.mubr.bf16.gmra.mrb[116].mxu1 %v6111_v50  ;;  %3004 = vmatmul.mubr.bf16.gmra.mrb[20].mxu0 %v6112_v52 }
 0x140   : > { %2625 = vmatprep.mubr.bf16.mxu1 %v6113_v53  ;;  %3011 = vmatprep.mubr.bf16.mxu0 %v6115_v56  ;;  %v6156_v53 = vld [vmem:[%s6530_s16 + $0x628] ss:$28 sps:$4 sm:$0xff]   ;;  %v6157_v56 = vld [vmem:[%s6530_s16 + $0x2b0] ss:$28 sps:$4 sm:$0xff]  }
 0x142   : > { %v6854_v57 = vpop.f32.mrb[12].mxu1 }
 0x143   : > { %v2413_v58 = vpop.f32.mrb[13].mxu1 }
 0x144   : > { %v6857_v60 = vpop.f32.mrb[14].mxu1  ;;  %v6159_v58 = vld [vmem:[%s6530_s16 + $0x664] ss:$28 sps:$4 sm:$0xff]  }
 0x145   : > { %v2416_v63 = vpop.f32.mrb[15].mxu1 }
 0x147   : > { %2626 = vmatmul.mubr.bf16.gmra.mrb[120].mxu1 %v6117_v59  ;;  %3012 = vmatmul.mubr.bf16.gmra.mrb[24].mxu0 %v6118_v61  ;;  %v6161_v61 = vld [vmem:[%s6530_s16 + $0x2ec] ss:$28 sps:$4 sm:$0xff]  }
 0x148   : > { %2633 = vmatprep.mubr.bf16.mxu1 %v6119_v62  ;;  %3019 = vmatprep.mubr.bf16.mxu0 %v6121_v0  ;;  %v6163_v0 = vld [vmem:[%s6530_s16 + $0x660] ss:$28 sps:$4 sm:$0xff]  }
 0x14a   : > { %v6862_v2 = vpop.f32.mrb[16].mxu1 }
 0x14b   : > { %v2421_v3 = vpop.f32.mrb[17].mxu1 }
 0x14c   : > { %v6865_v5 = vpop.f32.mrb[18].mxu1 }
 0x14d   : > { %v2424_v8 = vpop.f32.mrb[19].mxu1 }
 0x14e   : > { %v6168_v8 = vld [vmem:[%s6530_s16 + $0x324] ss:$28 sps:$4 sm:$0xff]  }
 0x14f   : > { %2634 = vmatmul.mubr.bf16.gmra.mrb[124].mxu1 %v6123_v4  ;;  %3020 = vmatmul.mubr.bf16.gmra.mrb[28].mxu0 %v6124_v6  ;;  %v6164_v4 = vld [vmem:[%s6530_s16 + $0x2e8] ss:$28 sps:$4 sm:$0xff]   ;;  %v6166_v6 = vld [vmem:[%s6530_s16 + $0x69c] ss:$28 sps:$4 sm:$0xff]  }
 0x150   : > { %2866 = vmatprep.mubr.bf16.mxu1 %v6127_v7  ;;  %3027 = vmatprep.mubr.bf16.mxu0 %v6128_v9 }
 0x152   : > { %v6870_v10 = vpop.f32.mrb[20].mxu1 }
 0x153   : > { %v2429_v11 = vpop.f32.mrb[21].mxu1 }
 0x154   : > { %v6873_v13 = vpop.f32.mrb[22].mxu1 }
 0x155   : > { %v2432_v15 = vpop.f32.mrb[23].mxu1 }
 0x156   : > { %v6171_v15 = vld [vmem:[%s6530_s16 + $0x320] ss:$28 sps:$4 sm:$0xff]  }
 0x157   : > { %2867 = vmatmul.mubr.bf16.vlgmr.msra.gmra.mrb[96].mxu1 %v6125_v12  ;;  %3028 = vmatmul.mubr.bf16.gmra.mrb[32].mxu0 %v6130_v14  ;;  %v6170_v12 = vld [vmem:[%s6530_s16 + $0x698] ss:$28 sps:$4 sm:$0xff]  }
 0x158   : > { %5526 = vmatpush3.bf16.msra.mxu1 %v6787_v55  ;;  %2874 = vmatprep.mubr.bf16.mxu1 %v6132_v16  ;;  %v6141_v55 = vld [vmem:[%s6530_s16 + $0x244] ss:$28 sps:$4 sm:$0xff]   ;;  %v6172_v16 = vld [vmem:[%s6530_s16 + $0x6d4] ss:$28 sps:$4 sm:$0xff]  }
 0x159   : > { %3035 = vmatprep.mubr.bf16.mxu0 %v6134_v17  ;;  %5527 = vmatprep.subr.bf16.mxu1 %v6138_v18 }
 0x15a   : > { %v6885_v20 = vpop.f32.mrb[24].mxu1 }
 0x15b   : > { %v2437_v21 = vpop.f32.mrb[25].mxu1 }
 0x15c   : > { %v6888_v23 = vpop.f32.mrb[26].mxu1  ;;  %5528 = vmatpush3.bf16.msra.mxu1 %v6138_v18  ;;  %v6174_v18 = vld [vmem:[%s6530_s16 + $0x35c] ss:$28 sps:$4 sm:$0xff]  }
 0x15d   : > { %v2440_v26 = vpop.f32.mrb[27].mxu1  ;;  %5529 = vmatprep.subr.bf16.mxu1 %v6149_v19 }
 0x15e   : > { %v6181_v26 = vld [vmem:[%s6530_s16 + $0x18] ss:$28 sps:$4 sm:$0xff]  }
 0x15f   : > { %2875 = vmatmul.mubr.bf16.gmra.mrb[100].mxu1 %v6136_v22  ;;  %3036 = vmatmul.mubr.bf16.gmra.mrb[36].mxu0 %v6137_v24  ;;  %v6177_v22 = vld [vmem:[%s6530_s16 + $0x6d0] ss:$28 sps:$4 sm:$0xff]  }
 0x160   : > { %2882 = vmatprep.mubr.bf16.mxu1 %v6139_v25  ;;  %3043 = vmatprep.mubr.bf16.mxu0 %v6141_v55  ;;  %v6178_v25 = vld [vmem:[%s6530_s16 + $0x358] ss:$28 sps:$4 sm:$0xff]  }
 0x161   : > { %5530 = vmatpush3.bf16.msra.mxu1 %v6149_v19 }
 0x162   : > { %v6896_v1 = vpop.f32.mrb[28].mxu1  ;;  %5531 = vmatprep.subr.bf16.mxu1 %v6158_v27 }
 0x163   : > { %v2445_v29 = vpop.f32.mrb[29].mxu1 }
 0x164   : > { %v6902_v31 = vpop.f32.mrb[30].mxu1 }
 0x165   : > { %v2448_v36 = vpop.f32.mrb[31].mxu1  ;;  %5532 = vmatpush3.bf16.msra.mxu1 %v6158_v27  ;;  %v6179_v27 = vld [vmem:[%s6530_s16 + $0x394] ss:$28 sps:$4 sm:$0xff]  }
 0x166   : > { %5533 = vmatprep.subr.bf16.mxu1 %v6165_v28  ;;  %v6186_v36 = vld [vmem:[%s6530_s16 + $0x88] ss:$28 sps:$4 sm:$0xff]  }
 0x167   : > { %2883 = vmatmul.mubr.bf16.gmra.mrb[104].mxu1 %v6143_v30  ;;  %3044 = vmatmul.mubr.bf16.gmra.mrb[40].mxu0 %v6144_v33  ;;  %v6183_v30 = vld [vmem:[%s6530_s16 + $0x50] ss:$28 sps:$4 sm:$0xff]  }
 0x168   : > { %2890 = vmatprep.mubr.bf16.mxu1 %v6145_v34  ;;  %3051 = vmatprep.mubr.bf16.mxu0 %v6147_v37  ;;  %v6182_v34 = vld [vmem:[%s6530_s16 + $0x390] ss:$28 sps:$4 sm:$0xff]  }
 0x169   : > { %5534 = vmatpush3.bf16.msra.mxu1 %v6165_v28 }
 0x16a   : > { %v6910_v39 = vpop.f32.mrb[32].mxu1  ;;  %5535 = vmatprep.subr.bf16.mxu1 %v6176_v38 }
 0x16b   : > { %v2453_v41 = vpop.f32.mrb[33].mxu1 }
 0x16c   : > { %v6913_v44 = vpop.f32.mrb[34].mxu1 }
 0x16d   : > { %v2456_v47 = vpop.f32.mrb[35].mxu1  ;;  %5536 = vmatpush3.bf16.msra.mxu1 %v6176_v38  ;;  %v6184_v38 = vld [vmem:[%s6530_s16 + $0x3cc] ss:$28 sps:$4 sm:$0xff]  }
 0x16e   : > { %v6187_v47 = vld [vmem:[%s6530_s16 + $0x3c8] ss:$28 sps:$4 sm:$0xff]  }
 0x16f   : > { %2891 = vmatmul.mubr.bf16.gmra.mrb[108].mxu1 %v6150_v42  ;;  %3052 = vmatmul.mubr.bf16.gmra.mrb[44].mxu0 %v6151_v45  ;;  %v6188_v45 = vld [vmem:[%s6530_s16 + $0xc0] ss:$28 sps:$4 sm:$0xff]  }
 0x170   : > { %2898 = vmatprep.mubr.bf16.mxu1 %v6152_v46  ;;  %3059 = vmatprep.mubr.bf16.mxu0 %v6154_v49  ;;  %v6191_v49 = vld [vmem:[%s6530_s16 + $0xf8] ss:$28 sps:$4 sm:$0xff]  }
 0x172   : > { %v6918_v50 = vpop.f32.mrb[36].mxu1 }
 0x173   : > { %v2461_v52 = vpop.f32.mrb[37].mxu1 }
 0x174   : > { %v6921_v54 = vpop.f32.mrb[38].mxu1 }
 0x175   : > { %v2464_v59 = vpop.f32.mrb[39].mxu1 }
 0x176   : > { %v6193_v59 = vld [vmem:[%s6530_s16 + $0x130] ss:$28 sps:$4 sm:$0xff]  }
 0x177   : > { %2899 = vmatmul.mubr.bf16.gmra.mrb[112].mxu1 %v6156_v53  ;;  %3060 = vmatmul.mubr.bf16.gmra.mrb[48].mxu0 %v6157_v56  ;;  %v6189_v53 = vld [vmem:[%s6530_s16 + $0x404] ss:$28 sps:$4 sm:$0xff]  }
 0x178   : > { %2906 = vmatprep.mubr.bf16.mxu1 %v6159_v58  ;;  %3067 = vmatprep.mubr.bf16.mxu0 %v6161_v61 }
 0x17a   : > { %v6926_v62 = vpop.f32.mrb[40].mxu1 }
 0x17b   : > { %v2469_v63 = vpop.f32.mrb[41].mxu1 }
 0x17c   : > { %v6929_v3 = vpop.f32.mrb[42].mxu1  ;;  %v6192_v63 = vld [vmem:[%s6530_s16 + $0x400] ss:$28 sps:$4 sm:$0xff]  }
 0x17d   : > { %v2472_v7 = vpop.f32.mrb[43].mxu1 }
 0x17f   : > { %2907 = vmatmul.mubr.bf16.gmra.mrb[116].mxu1 %v6163_v0  ;;  %3068 = vmatmul.mubr.bf16.gmra.mrb[52].mxu0 %v6164_v4  ;;  %v6196_v0 = vld [vmem:[%s6530_s16 + $0x168] ss:$28 sps:$4 sm:$0xff]  }
 0x180   : > { %2914 = vmatprep.mubr.bf16.mxu1 %v6166_v6  ;;  %3075 = vmatprep.mubr.bf16.mxu0 %v6168_v8  ;;  %v6194_v6 = vld [vmem:[%s6530_s16 + $0x43c] ss:$28 sps:$4 sm:$0xff]  }
 0x182   : > { %v6934_v9 = vpop.f32.mrb[44].mxu1 }
 0x183   : > { %v2477_v11 = vpop.f32.mrb[45].mxu1 }
 0x184   : > { %v6937_v14 = vpop.f32.mrb[46].mxu1  ;;  %v6198_v11 = vld [vmem:[%s6530_s16 + $0x1a0] ss:$28 sps:$4 sm:$0xff]  }
 0x185   : > { %v2480_v17 = vpop.f32.mrb[47].mxu1 }
 0x187   : > { %2915 = vmatmul.mubr.bf16.gmra.mrb[120].mxu1 %v6170_v12  ;;  %3076 = vmatmul.mubr.bf16.gmra.mrb[56].mxu0 %v6171_v15  ;;  %v6197_v15 = vld [vmem:[%s6530_s16 + $0x438] ss:$28 sps:$4 sm:$0xff]  }
 0x188   : > { %2922 = vmatprep.mubr.bf16.mxu1 %v6172_v16  ;;  %3083 = vmatprep.mubr.bf16.mxu0 %v6174_v18  ;;  %v6201_v16 = vld [vmem:[%s6530_s16 + $0x1d8] ss:$28 sps:$4 sm:$0xff]  }
 0x189   : > { %v6199_v18 = vld [vmem:[%s6530_s16 + $0x474] ss:$28 sps:$4 sm:$0xff]  }
 0x18a   : > { %v6942_v19 = vpop.f32.mrb[48].mxu1 }
 0x18b   : > { %v2485_v21 = vpop.f32.mrb[49].mxu1 }
 0x18c   : > { %v6945_v24 = vpop.f32.mrb[50].mxu1 }
 0x18d   : > { %v2488_v55 = vpop.f32.mrb[51].mxu1 }
 0x18e   : > { %v6202_v55 = vld [vmem:[%s6530_s16 + $0x470] ss:$28 sps:$4 sm:$0xff]  }
 0x18f   : > { %2923 = vmatmul.mubr.bf16.gmra.mrb[124].mxu1 %v6177_v22  ;;  %3084 = vmatmul.mubr.bf16.gmra.mrb[60].mxu0 %v6178_v25  ;;  %v6203_v25 = vld [vmem:[%s6530_s16 + $0x210] ss:$28 sps:$4 sm:$0xff]  }
 0x190   : > { %5537 = vmatprep.mubr.msk.bf16.mxu1 %vm2256_vm0, %v6181_v26  ;;  %3091 = vmatprep.mubr.bf16.mxu0 %v6179_v27  ;;  %v6206_v27 = vld [vmem:[%s6530_s16 + $0x248] ss:$28 sps:$4 sm:$0xff]  }
 0x192   : > { %v6951_v28 = vpop.f32.mrb[52].mxu1 }
 0x193   : > { %v2493_v29 = vpop.f32.mrb[53].mxu1 }
 0x194   : > { %v6954_v33 = vpop.f32.mrb[54].mxu1 }
 0x195   : > { %v2496_v37 = vpop.f32.mrb[55].mxu1 }
 0x196   : > { %v6208_v37 = vld [vmem:[%s6530_s16 + $0x280] ss:$28 sps:$4 sm:$0xff]  }
 0x197   : > { %5538 = vmatmul.mubr.msk.bf16.vlgmr.msra.gmra.mrb[128].mxu1 %vm2256_vm0, %v6183_v30  ;;  %3092 = vmatmul.mubr.bf16.gmra.mrb[64].mxu0 %v6182_v34  ;;  %v6204_v30 = vld [vmem:[%s6530_s16 + $0x4ac] ss:$28 sps:$4 sm:$0xff]  }
 0x198   : > { %5541 = vmatprep.mubr.msk.bf16.mxu1 %vm2256_vm0, %v6186_v36  ;;  %3099 = vmatprep.mubr.bf16.mxu0 %v6184_v38 }
 0x19a   : > { %v6961_v41 = vpop.f32.mrb[56].mxu1 }
 0x19b   : > { %v2501_v42 = vpop.f32.mrb[57].mxu1 }
 0x19c   : > { %v6964_v46 = vpop.f32.mrb[58].mxu1  ;;  %v6207_v42 = vld [vmem:[%s6530_s16 + $0x4a8] ss:$28 sps:$4 sm:$0xff]  }
 0x19d   : > { %v2504_v52 = vpop.f32.mrb[59].mxu1 }
 0x19f   : > { %5542 = vmatmul.mubr.msk.bf16.gmra.mrb[132].mxu1 %vm2256_vm0, %v6188_v45  ;;  %3100 = vmatmul.mubr.bf16.gmra.mrb[68].mxu0 %v6187_v47  ;;  %v6211_v45 = vld [vmem:[%s6530_s16 + $0x2b8] ss:$28 sps:$4 sm:$0xff]  }
 0x1a0   : > { %5545 = vmatprep.mubr.msk.bf16.mxu1 %vm2256_vm0, %v6191_v49  ;;  %3107 = vmatprep.mubr.bf16.mxu0 %v6189_v53  ;;  %v6209_v49 = vld [vmem:[%s6530_s16 + $0x4e4] ss:$28 sps:$4 sm:$0xff]  }
 0x1a2   : > { %v6971_v56 = vpop.f32.mrb[60].mxu1 }
 0x1a3   : > { %v2509_v58 = vpop.f32.mrb[61].mxu1 }
 0x1a4   : > { %v6974_v61 = vpop.f32.mrb[62].mxu1  ;;  %v6213_v58 = vld [vmem:[%s6530_s16 + $0x2f0] ss:$28 sps:$4 sm:$0xff]  }
 0x1a5   : > { %v2512_v4 = vpop.f32.mrb[63].mxu1 }
 0x1a7   : > { %5546 = vmatmul.mubr.msk.bf16.gmra.mrb[136].mxu1 %vm2256_vm0, %v6193_v59  ;;  %3108 = vmatmul.mubr.bf16.gmra.mrb[72].mxu0 %v6192_v63  ;;  %v6212_v63 = vld [vmem:[%s6530_s16 + $0x4e0] ss:$28 sps:$4 sm:$0xff]  }
 0x1a8   : > { %5549 = vmatprep.mubr.msk.bf16.mxu1 %vm2256_vm0, %v6196_v0  ;;  %3115 = vmatprep.mubr.bf16.mxu0 %v6194_v6  ;;  %v6216_v0 = vld [vmem:[%s6530_s16 + $0x328] ss:$28 sps:$4 sm:$0xff]   ;;  %v6214_v6 = vld [vmem:[%s6530_s16 + $0x51c] ss:$28 sps:$4 sm:$0xff]  }
 0x1aa   : > { %v6981_v7 = vpop.f32.mrb[64].mxu1 }
 0x1ab   : > { %v2517_v8 = vpop.f32.mrb[65].mxu1 }
 0x1ac   : > { %v6984_v12 = vpop.f32.mrb[66].mxu1 }
 0x1ad   : > { %v2520_v17 = vpop.f32.mrb[67].mxu1 }
 0x1ae   : > { %v6217_v17 = vld [vmem:[%s6530_s16 + $0x518] ss:$28 sps:$4 sm:$0xff]  }
 0x1af   : > { %5550 = vmatmul.mubr.msk.bf16.gmra.mrb[140].mxu1 %vm2256_vm0, %v6198_v11  ;;  %3116 = vmatmul.mubr.bf16.gmra.mrb[76].mxu0 %v6197_v15  ;;  %v6218_v15 = vld [vmem:[%s6530_s16 + $0x360] ss:$28 sps:$4 sm:$0xff]  }
 0x1b0   : > { %5553 = vmatprep.mubr.msk.bf16.mxu1 %vm2256_vm0, %v6201_v16  ;;  %3123 = vmatprep.mubr.bf16.mxu0 %v6199_v18  ;;  %v6221_v18 = vld [vmem:[%s6530_s16 + $0x398] ss:$28 sps:$4 sm:$0xff]  }
 0x1b2   : > { %v6991_v21 = vpop.f32.mrb[68].mxu1 }
 0x1b3   : > { %v2525_v22 = vpop.f32.mrb[69].mxu1 }
 0x1b4   : > { %v6994_v26 = vpop.f32.mrb[70].mxu1 }
 0x1b5   : > { %v2528_v29 = vpop.f32.mrb[71].mxu1 }
 0x1b6   : > { %v6223_v29 = vld [vmem:[%s6530_s16 + $0x3d0] ss:$28 sps:$4 sm:$0xff]  }
 0x1b7   : > { %5554 = vmatmul.mubr.msk.bf16.gmra.mrb[144].mxu1 %vm2256_vm0, %v6203_v25  ;;  %3124 = vmatmul.mubr.bf16.gmra.mrb[80].mxu0 %v6202_v55  ;;  %v6219_v25 = vld [vmem:[%s6530_s16 + $0x554] ss:$28 sps:$4 sm:$0xff]  }
 0x1b8   : > { %5557 = vmatprep.mubr.msk.bf16.mxu1 %vm2256_vm0, %v6206_v27  ;;  %3131 = vmatprep.mubr.bf16.mxu0 %v6204_v30 }
 0x1ba   : > { %v7001_v34 = vpop.f32.mrb[72].mxu1 }
 0x1bb   : > { %v2533_v36 = vpop.f32.mrb[73].mxu1 }
 0x1bc   : > { %v7004_v38 = vpop.f32.mrb[74].mxu1  ;;  %v6222_v36 = vld [vmem:[%s6530_s16 + $0x550] ss:$28 sps:$4 sm:$0xff]  }
 0x1bd   : > { %v2536_v47 = vpop.f32.mrb[75].mxu1 }
 0x1bf   : > { %5558 = vmatmul.mubr.msk.bf16.gmra.mrb[148].mxu1 %vm2256_vm0, %v6208_v37  ;;  %3132 = vmatmul.mubr.bf16.gmra.mrb[84].mxu0 %v6207_v42  ;;  %v6226_v37 = vld [vmem:[%s6530_s16 + $0x408] ss:$28 sps:$4 sm:$0xff]  }
 0x1c0   : > { %5561 = vmatprep.mubr.msk.bf16.mxu1 %vm2256_vm0, %v6211_v45  ;;  %3139 = vmatprep.mubr.bf16.mxu0 %v6209_v49  ;;  %v6224_v45 = vld [vmem:[%s6530_s16 + $0x58c] ss:$28 sps:$4 sm:$0xff]  }
 0x1c2   : > { %v7011_v52 = vpop.f32.mrb[76].mxu1 }
 0x1c3   : > { %v2541_v53 = vpop.f32.mrb[77].mxu1 }
 0x1c4   : > { %v7014_v59 = vpop.f32.mrb[78].mxu1  ;;  %v6228_v53 = vld [vmem:[%s6530_s16 + $0x440] ss:$28 sps:$4 sm:$0xff]  }
 0x1c5   : > { %v2544_v4 = vpop.f32.mrb[79].mxu1 }
 0x1c7   : > { %5562 = vmatmul.mubr.msk.bf16.gmra.mrb[152].mxu1 %vm2256_vm0, %v6213_v58  ;;  %3140 = vmatmul.mubr.bf16.gmra.mrb[88].mxu0 %v6212_v63  ;;  %v6227_v63 = vld [vmem:[%s6530_s16 + $0x588] ss:$28 sps:$4 sm:$0xff]  }
 0x1c8   : > { %5565 = vmatprep.mubr.msk.bf16.mxu1 %vm2256_vm0, %v6216_v0  ;;  %3147 = vmatprep.mubr.bf16.mxu0 %v6214_v6  ;;  %v6231_v0 = vld [vmem:[%s6530_s16 + $0x478] ss:$28 sps:$4 sm:$0xff]   ;;  %v6229_v6 = vld [vmem:[%s6530_s16 + $0x5c4] ss:$28 sps:$4 sm:$0xff]  }
 0x1ca   : > { %v7021_v8 = vpop.f32.mrb[80].mxu1 }
 0x1cb   : > { %v2549_v11 = vpop.f32.mrb[81].mxu1 }
 0x1cc   : > { %v7024_v16 = vpop.f32.mrb[82].mxu1 }
 0x1cd   : > { %v2552_v22 = vpop.f32.mrb[83].mxu1 }
 0x1ce   : > { %v6232_v22 = vld [vmem:[%s6530_s16 + $0x5c0] ss:$28 sps:$4 sm:$0xff]  }
 0x1cf   : > { %5566 = vmatmul.mubr.msk.bf16.gmra.mrb[156].mxu1 %vm2256_vm0, %v6218_v15  ;;  %3148 = vmatmul.mubr.bf16.gmra.mrb[92].mxu0 %v6217_v17  ;;  %v6233_v17 = vld [vmem:[%s6530_s16 + $0x4b0] ss:$28 sps:$4 sm:$0xff]  }
 0x1d0   : > { %5569 = vmatprep.mubr.msk.bf16.mxu1 %vm2256_vm0, %v6221_v18  ;;  %3155 = vmatprep.mubr.bf16.mxu0 %v6219_v25  ;;  %v6236_v25 = vld [vmem:[%s6530_s16 + $0x4e8] ss:$28 sps:$4 sm:$0xff]  }
 0x1d2   : > { %v7031_v55 = vpop.f32.mrb[84].mxu1 }
 0x1d3   : > { %v2557_v27 = vpop.f32.mrb[85].mxu1 }
 0x1d4   : > { %v7034_v30 = vpop.f32.mrb[86].mxu1 }
 0x1d5   : > { %v2560_v42 = vpop.f32.mrb[87].mxu1 }
 0x1d7   : > { %5570 = vmatmul.mubr.msk.bf16.gmra.mrb[160].mxu1 %vm2256_vm0, %v6223_v29  ;;  %3156 = vmatmul.mubr.bf16.gmra.mrb[96].mxu0 %v6222_v36  ;;  %v6234_v29 = vld [vmem:[%s6530_s16 + $0x5fc] ss:$28 sps:$4 sm:$0xff]  }
 0x1d8   : > { %5573 = vmatprep.mubr.msk.bf16.mxu1 %vm2256_vm0, %v6226_v37  ;;  %3163 = vmatprep.mubr.bf16.mxu0 %v6224_v45  ;;  %v6238_v37 = vld [vmem:[%s6530_s16 + $0x520] ss:$28 sps:$4 sm:$0xff]  }
 0x1da   : > { %v7041_v47 = vpop.f32.mrb[88].mxu1 }
 0x1db   : > { %v2565_v49 = vpop.f32.mrb[89].mxu1 }
 0x1dc   : > { %v7044_v58 = vpop.f32.mrb[90].mxu1  ;;  %v6237_v49 = vld [vmem:[%s6530_s16 + $0x5f8] ss:$28 sps:$4 sm:$0xff]  }
 0x1dd   : > { %v2568_v4 = vpop.f32.mrb[91].mxu1 }
 0x1df   : > { %5574 = vmatmul.mubr.msk.bf16.gmra.mrb[164].mxu1 %vm2256_vm0, %v6228_v53  ;;  %3164 = vmatmul.mubr.bf16.gmra.mrb[100].mxu0 %v6227_v63  ;;  %v6241_v53 = vld [vmem:[%s6530_s16 + $0x558] ss:$28 sps:$4 sm:$0xff]  }
 0x1e0   : > { %5577 = vmatprep.mubr.msk.bf16.mxu1 %vm2256_vm0, %v6231_v0  ;;  %3171 = vmatprep.mubr.bf16.mxu0 %v6229_v6  ;;  %v6239_v0 = vld [vmem:[%s6530_s16 + $0x634] ss:$28 sps:$4 sm:$0xff]  }
 0x1e2   : > { %v7051_v11 = vpop.f32.mrb[92].mxu1 }
 0x1e3   : > { %v2573_v15 = vpop.f32.mrb[93].mxu1 }
 0x1e4   : > { %v7054_v18 = vpop.f32.mrb[94].mxu1  ;;  %v6243_v15 = vld [vmem:[%s6530_s16 + $0x590] ss:$28 sps:$4 sm:$0xff]  }
 0x1e5   : > { %8192 = vst [vmem:[#allocation6_spill] sm:$0xff] %v7054_v18  ;;  %v2576_v27 = vpop.f32.mrb[95].mxu1 }
 0x1e6   : > { %v6246_v27 = vld [vmem:[%s6530_s16 + $0x5c8] ss:$28 sps:$4 sm:$0xff]  }
 0x1e7   : > { %5578 = vmatmul.mubr.msk.bf16.gmra.mrb[168].mxu1 %vm2256_vm0, %v6233_v17  ;;  %3172 = vmatmul.mubr.bf16.gmra.mrb[104].mxu0 %v6232_v22 }
 0x1e8   : > { %5581 = vmatprep.mubr.msk.bf16.mxu1 %vm2256_vm0, %v6236_v25  ;;  %3179 = vmatprep.mubr.bf16.mxu0 %v6234_v29  ;;  %v6242_v25 = vld [vmem:[%s6530_s16 + $0x630] ss:$28 sps:$4 sm:$0xff]  }
 0x1e9   : > { %v6244_v29 = vld [vmem:[%s6530_s16 + $0x66c] ss:$28 sps:$4 sm:$0xff]  }
 0x1ea   : > { %v2965_v36 = vpop.f32.mrb[0].mxu0 }
 0x1eb   : > { %v7063_v42 = vadd.f32 %v2965_v36, %v6830_v32  ;;  %v2967_v45 = vpop.f32.mrb[1].mxu0 }
 0x1ec   : > { %v2968_v63 = vpop.f32.mrb[2].mxu0  ;;  %v6248_v45 = vld [vmem:[%s6530_s16 + $0x600] ss:$28 sps:$4 sm:$0xff]  }
 0x1ed   : > { %v7069_v4 = vadd.f32 %v2968_v63, %v6833_v35  ;;  %v2970_v6 = vpop.f32.mrb[3].mxu0  ;;  %v6247_v63 = vld [vmem:[%s6530_s16 + $0x668] ss:$28 sps:$4 sm:$0xff]  }
 0x1ee   : > { %v6249_v6 = vld [vmem:[%s6530_s16 + $0x6a4] ss:$28 sps:$4 sm:$0xff]  }
 0x1ef   : > { %5582 = vmatmul.mubr.msk.bf16.gmra.mrb[172].mxu1 %vm2256_vm0, %v6238_v37  ;;  %3180 = vmatmul.mubr.bf16.gmra.mrb[108].mxu0 %v6237_v49 }
 0x1f0   : > { %5585 = vmatprep.mubr.msk.bf16.mxu1 %vm2256_vm0, %v6241_v53  ;;  %3187 = vmatprep.mubr.bf16.mxu0 %v6239_v0  ;;  %v6251_v0 = vld [vmem:[%s6530_s16 + $0x638] ss:$28 sps:$4 sm:$0xff]  }
 0x1f2   : > { %v2973_v32 = vpop.f32.mrb[4].mxu0 }
 0x1f3   : > { %v7075_v17 = vadd.f32 %v2973_v32, %v6838_v40  ;;  %v2975_v22 = vpop.f32.mrb[5].mxu0 }
 0x1f4   : > { %v2976_v35 = vpop.f32.mrb[6].mxu0  ;;  %v6253_v22 = vld [vmem:[%s6530_s16 + $0x670] ss:$28 sps:$4 sm:$0xff]  }
 0x1f5   : > { %v7081_v36 = vadd.f32 %v2976_v35, %v6841_v43  ;;  %v2978_v37 = vpop.f32.mrb[7].mxu0  ;;  %v6252_v35 = vld [vmem:[%s6530_s16 + $0x6a0] ss:$28 sps:$4 sm:$0xff]  }
 0x1f7   : > { %5586 = vmatmul.mubr.msk.bf16.gmra.mrb[176].mxu1 %vm2256_vm0, %v6243_v15  ;;  %3188 = vmatmul.mubr.bf16.gmra.mrb[112].mxu0 %v6242_v25 }
 0x1f8   : > { %5589 = vmatprep.mubr.msk.bf16.mxu1 %vm2256_vm0, %v6246_v27  ;;  %3195 = vmatprep.mubr.bf16.mxu0 %v6244_v29  ;;  %v6256_v29 = vld [vmem:[%s6530_s16 + $0x6a8] ss:$28 sps:$4 sm:$0xff]  }
 0x1fa   : > { %v2981_v40 = vpop.f32.mrb[8].mxu0 }
 0x1fb   : > { %v7087_v49 = vadd.f32 %v2981_v40, %v6846_v48  ;;  %v2983_v53 = vpop.f32.mrb[9].mxu0 }
 0x1fc   : > { %v2984_v43 = vpop.f32.mrb[10].mxu0 }
 0x1fd   : > { %v7093_v32 = vadd.f32 %v2984_v43, %v6849_v51  ;;  %v2986_v15 = vpop.f32.mrb[11].mxu0  ;;  %v6254_v51 = vld [vmem:[%s6530_s16 + $0x6dc] ss:$28 sps:$4 sm:$0xff]  }
 0x1fe   : > { %v6257_v43 = vld [vmem:[%s6530_s16 + $0x6d8] ss:$28 sps:$4 sm:$0xff]  }
 0x1ff   : > { %5590 = vmatmul.mubr.msk.bf16.gmra.mrb[180].mxu1 %vm2256_vm0, %v6248_v45  ;;  %3196 = vmatmul.mubr.bf16.gmra.mrb[116].mxu0 %v6247_v63  ;;  %v6258_v63 = vld [vmem:[%s6530_s16 + $0x6e0] ss:$28 sps:$4 sm:$0xff]   ;;  %s4909_s16 = sshll.u32 %s8244_s12, 3  ;;  %s7291_s12 = sshll.u32 %s281_s9, 8 }
 0x200   : > { %5593 = vmatprep.mubr.msk.bf16.mxu1 %vm2256_vm0, %v6251_v0  ;;  %3203 = vmatprep.mubr.bf16.mxu0 %v6249_v6  ;;  %s7231_s17 = scalar_lea.vmem %s8187_s3, %s4909_s16  ;;  %s7277_s13 = scalar_lea.vmem %s8188_s4, %s4909_s16 }
 0x201   : > { %s7319_s16 = scalar_lea.vmem [#allocation3], %s7291_s12 }
 0x202   : > { %v2989_v48 = vpop.f32.mrb[12].mxu0  ;;  %s4771_s10 = sshll.u32 %s7319_s16, 4  ;;  %s8132_s10 = int_to_ptr.vmem [resolvable:$true] %s4771_s10 }
 0x203   : > { %v7099_v25 = vadd.f32 %v2989_v48, %v6854_v57  ;;  %v2991_v27 = vpop.f32.mrb[13].mxu0  ;;  %p6270_p1 = scmp.lt.s32.totalorder %s8132_s10, %s6268_s24 }
 0x204   : > { %v2992_v37 = vpop.f32.mrb[14].mxu0 }
 0x205   : > { %v7105_v40 = vadd.f32 %v2992_v37, %v6857_v60  ;;  %v2994_v45 = vpop.f32.mrb[15].mxu0 }
 0x207   : > { %5594 = vmatmul.mubr.msk.bf16.gmra.mrb[184].mxu1 %vm2256_vm0, %v6253_v22  ;;  %3204 = vmatmul.mubr.bf16.gmra.mrb[120].mxu0 %v6252_v35 }
 0x208   : > { %5597 = vmatprep.mubr.msk.bf16.mxu1 %vm2256_vm0, %v6256_v29  ;;  %3211 = vmatprep.mubr.bf16.mxu0 %v6254_v51 }
 0x20a   : > { %v2997_v53 = vpop.f32.mrb[16].mxu0 }
 0x20b   : > { %v7111_v57 = vadd.f32 %v2997_v53, %v6862_v2  ;;  %v2999_v0 = vpop.f32.mrb[17].mxu0 }
 0x20c   : > { %v3000_v6 = vpop.f32.mrb[18].mxu0 }
 0x20d   : > { %v7115_v15 = vadd.f32 %v3000_v6, %v6865_v5  ;;  %v3002_v60 = vpop.f32.mrb[19].mxu0 }
 0x20f   : > { %5598 = vmatmul.mubr.msk.bf16.gmra.mrb[188].mxu1 %vm2256_vm0, %v6258_v63  ;;  %3212 = vmatmul.mubr.bf16.gmra.mrb[124].mxu0 %v6257_v43 }
 0x212   : > { %v3005_v48 = vpop.f32.mrb[20].mxu0 }
 0x213   : > { %v7119_v22 = vadd.f32 %v3005_v48, %v6870_v10  ;;  %v3007_v27 = vpop.f32.mrb[21].mxu0 }
 0x214   : > { %v3008_v35 = vpop.f32.mrb[22].mxu0 }
 0x215   : > { %v7122_v29 = vadd.f32 %v3008_v35, %v6873_v13  ;;  %v3010_v2 = vpop.f32.mrb[23].mxu0 }
 0x21a   : > { %v3013_v37 = vpop.f32.mrb[24].mxu0 }
 0x21b   : > { %v7125_v51 = vadd.f32 %v3013_v37, %v6885_v20  ;;  %v3015_v5 = vpop.f32.mrb[25].mxu0 }
 0x21c   : > { %v3016_v45 = vpop.f32.mrb[26].mxu0 }
 0x21d   : > { %v7128_v53 = vadd.f32 %v3016_v45, %v6888_v23  ;;  %v3018_v63 = vpop.f32.mrb[27].mxu0 }
 0x222   : > { %v3021_v0 = vpop.f32.mrb[28].mxu0 }
 0x223   : > { %v7131_v10 = vadd.f32 %v3021_v0, %v6896_v1  ;;  %v3023_v43 = vpop.f32.mrb[29].mxu0 }
 0x224   : > { %v3024_v6 = vpop.f32.mrb[30].mxu0 }
 0x225   : > { %v7134_v13 = vadd.f32 %v3024_v6, %v6902_v31  ;;  %v3026_v60 = vpop.f32.mrb[31].mxu0 }
 0x22a   : > { %v7136_v48 = vpop.f32.mrb[96].mxu1  ;;  %v3029_v20 = vpop.f32.mrb[32].mxu0 }
 0x22b   : > { %8193 = vst [vmem:[#allocation7_spill] sm:$0xff] %v7136_v48  ;;  %v2870_v27 = vpop.f32.mrb[97].mxu1  ;;  %v7139_v35 = vadd.f32 %v3029_v20, %v6910_v39  ;;  %v3031_v23 = vpop.f32.mrb[33].mxu0 }
 0x22c   : > { %v7141_v2 = vpop.f32.mrb[98].mxu1  ;;  %v3032_v37 = vpop.f32.mrb[34].mxu0 }
 0x22d   : > { %8194 = vst [vmem:[#allocation8_spill] sm:$0xff] %v7141_v2  ;;  %v2873_v5 = vpop.f32.mrb[99].mxu1  ;;  %v7144_v1 = vadd.f32 %v3032_v37, %v6913_v44  ;;  %v3034_v45 = vpop.f32.mrb[35].mxu0 }
 0x232   : > { %v7146_v63 = vpop.f32.mrb[100].mxu1  ;;  %v3037_v31 = vpop.f32.mrb[36].mxu0 }
 0x233   : > { %8195 = vst [vmem:[#allocation9_spill] sm:$0xff] %v7146_v63  ;;  %v2878_v0 = vpop.f32.mrb[101].mxu1  ;;  %v7149_v43 = vadd.f32 %v3037_v31, %v6918_v50  ;;  %v3039_v6 = vpop.f32.mrb[37].mxu0 }
 0x234   : > { %v7151_v60 = vpop.f32.mrb[102].mxu1  ;;  %v3040_v39 = vpop.f32.mrb[38].mxu0 }
 0x235   : > { %8196 = vst [vmem:[#allocation10_spill] sm:$0xff] %v7151_v60  ;;  %v2881_v20 = vpop.f32.mrb[103].mxu1  ;;  %v7154_v27 = vadd.f32 %v3040_v39, %v6921_v54  ;;  %v3042_v23 = vpop.f32.mrb[39].mxu0 }
 0x23a   : > { %v7156_v5 = vpop.f32.mrb[104].mxu1  ;;  %v3045_v44 = vpop.f32.mrb[40].mxu0 }
 0x23b   : > { %8197 = vst [vmem:[#allocation11_spill] sm:$0xff] %v7156_v5  ;;  %v2886_v37 = vpop.f32.mrb[105].mxu1  ;;  %v7159_v45 = vadd.f32 %v3045_v44, %v6926_v62  ;;  %v3047_v0 = vpop.f32.mrb[41].mxu0 }
 0x23c   : > { %v7161_v63 = vpop.f32.mrb[106].mxu1  ;;  %v3048_v50 = vpop.f32.mrb[42].mxu0 }
 0x23d   : > { %8198 = vst [vmem:[#allocation12_spill] sm:$0xff] %v7161_v63  ;;  %v2889_v31 = vpop.f32.mrb[107].mxu1  ;;  %v7164_v6 = vadd.f32 %v3048_v50, %v6929_v3  ;;  %v3050_v20 = vpop.f32.mrb[43].mxu0 }
 0x242   : > { %v7166_v60 = vpop.f32.mrb[108].mxu1  ;;  %v3053_v54 = vpop.f32.mrb[44].mxu0 }
 0x243   : > { %8199 = vst [vmem:[#allocation13_spill] sm:$0xff] %v7166_v60  ;;  %v2894_v39 = vpop.f32.mrb[109].mxu1  ;;  %v7169_v23 = vadd.f32 %v3053_v54, %v6934_v9  ;;  %v3055_v37 = vpop.f32.mrb[45].mxu0 }
 0x244   : > { %v7171_v5 = vpop.f32.mrb[110].mxu1  ;;  %v3056_v62 = vpop.f32.mrb[46].mxu0 }
 0x245   : > { %8200 = vst [vmem:[#allocation14_spill] sm:$0xff] %v7171_v5  ;;  %v2897_v44 = vpop.f32.mrb[111].mxu1  ;;  %v7174_v0 = vadd.f32 %v3056_v62, %v6937_v14  ;;  %v3058_v31 = vpop.f32.mrb[47].mxu0 }
 0x24a   : > { %v7176_v63 = vpop.f32.mrb[112].mxu1  ;;  %v3061_v3 = vpop.f32.mrb[48].mxu0 }
 0x24b   : > { %8201 = vst [vmem:[#allocation15_spill] sm:$0xff] %v7176_v63  ;;  %v2902_v50 = vpop.f32.mrb[113].mxu1  ;;  %v7179_v20 = vadd.f32 %v3061_v3, %v6942_v19  ;;  %v3063_v39 = vpop.f32.mrb[49].mxu0 }
 0x24c   : > { %v7181_v60 = vpop.f32.mrb[114].mxu1  ;;  %v3064_v9 = vpop.f32.mrb[50].mxu0 }
 0x24d   : > { %8202 = vst [vmem:[#allocation16_spill] sm:$0xff] %v7181_v60  ;;  %v2905_v54 = vpop.f32.mrb[115].mxu1  ;;  %v7184_v37 = vadd.f32 %v3064_v9, %v6945_v24  ;;  %v3066_v44 = vpop.f32.mrb[51].mxu0 }
 0x252   : > { %v7186_v5 = vpop.f32.mrb[116].mxu1  ;;  %v3069_v14 = vpop.f32.mrb[52].mxu0 }
 0x253   : > { %8203 = vst [vmem:[#allocation17_spill] sm:$0xff] %v7186_v5  ;;  %v2910_v62 = vpop.f32.mrb[117].mxu1  ;;  %v7189_v31 = vadd.f32 %v3069_v14, %v6951_v28  ;;  %v3071_v50 = vpop.f32.mrb[53].mxu0 }
 0x254   : > { %v7191_v63 = vpop.f32.mrb[118].mxu1  ;;  %v3072_v19 = vpop.f32.mrb[54].mxu0 }
 0x255   : > { %8204 = vst [vmem:[#allocation18_spill] sm:$0xff] %v7191_v63  ;;  %v2913_v3 = vpop.f32.mrb[119].mxu1  ;;  %v7194_v39 = vadd.f32 %v3072_v19, %v6954_v33  ;;  %v3074_v54 = vpop.f32.mrb[55].mxu0 }
 0x25a   : > { %v7196_v60 = vpop.f32.mrb[120].mxu1  ;;  %v3077_v24 = vpop.f32.mrb[56].mxu0 }
 0x25b   : > { %8205 = vst [vmem:[#allocation19_spill] sm:$0xff] %v7196_v60  ;;  %v2918_v9 = vpop.f32.mrb[121].mxu1  ;;  %v7199_v44 = vadd.f32 %v3077_v24, %v6961_v41  ;;  %v3079_v62 = vpop.f32.mrb[57].mxu0 }
 0x25c   : > { %v7201_v28 = vpop.f32.mrb[122].mxu1  ;;  %v3080_v14 = vpop.f32.mrb[58].mxu0 }
 0x25d   : > { %8206 = vst [vmem:[#allocation20_spill] sm:$0xff] %v7201_v28  ;;  %v2921_v50 = vpop.f32.mrb[123].mxu1  ;;  %v7204_v63 = vadd.f32 %v3080_v14, %v6964_v46  ;;  %v3082_v3 = vpop.f32.mrb[59].mxu0  ;;  %v7220_v14 = vld [vmem:[%s8186_s2] ss:$0 sm:$0xff] }
 0x25f   : > { %8207 = vst [vmem:[#allocation21_spill] sm:$0xff] %v7204_v63 }
 0x262   : > { %v7206_v33 = vpop.f32.mrb[124].mxu1  ;;  %v3085_v19 = vpop.f32.mrb[60].mxu0 }
 0x263   : > { %8208 = vst [vmem:[#allocation22_spill] sm:$0xff] %v7206_v33  ;;  %v2926_v54 = vpop.f32.mrb[125].mxu1  ;;  %v7209_v9 = vadd.f32 %v3085_v19, %v6971_v56  ;;  %v3087_v41 = vpop.f32.mrb[61].mxu0 }
 0x264   : > { %v7211_v24 = vpop.f32.mrb[126].mxu1  ;;  %v3088_v62 = vpop.f32.mrb[62].mxu0 }
 0x265   : > { %8209 = vst [vmem:[#allocation23_spill] sm:$0xff] %v7211_v24  ;;  %v2929_v60 = vpop.f32.mrb[127].mxu1  ;;  %v7214_v28 = vadd.f32 %v3088_v62, %v6974_v61  ;;  %v3090_v50 = vpop.f32.mrb[63].mxu0  ;;  %v7236_v61 = vld [vmem:[%s8186_s2 + $0x1] ss:$0 sm:$0xff] }
 0x267   : > { %8210 = vst [vmem:[#allocation24_spill] sm:$0xff] %v7214_v28 }
 0x26a   : > { %v5539_v46 = vpop.f32.mrb[128].mxu1  ;;  %v3093_v3 = vpop.f32.mrb[64].mxu0 }
 0x26b   : > { %v3263_v56 = vadd.f32 %v7075_v17, %v5539_v46  ;;  %v3254_v19 = vpop.f32.mrb[129].mxu1  ;;  %v7224_v54 = vadd.f32 %v3093_v3, %v6981_v7  ;;  %v3095_v60 = vpop.f32.mrb[65].mxu0 }
 0x26c   : > { %v3255_v41 = vadd.f32 %v7063_v42, %v3254_v19  ;;  %v5540_v17 = vpop.f32.mrb[130].mxu1  ;;  %v3096_v62 = vpop.f32.mrb[66].mxu0  ;;  %v3972_v19 = vld [vmem:[%s7231_s17 + $0x10] sm:$0xff]  ;;  %v3970_v60 = vld [vmem:[%s7231_s17] sm:$0xff] }
 0x26d   : > { %8211 = vst [vmem:[#allocation25_spill] sm:$0xff] %v7224_v54  ;;  %v3711_v7 = vadd.f32 %v7220_v14, %v3263_v56  ;;  %v3266_v50 = vadd.f32 %v7081_v36, %v5540_v17  ;;  %v3257_v46 = vpop.f32.mrb[131].mxu1  ;;  %v7243_v24 = vadd.f32 %v3096_v62, %v6984_v12  ;;  %v3098_v33 = vpop.f32.mrb[67].mxu0  ;;  %v7255_v12 = vld [vmem:[%s8186_s2 + $0x2] ss:$0 sm:$0xff] }
 0x26e   : > { %v3709_v3 = vadd.f32 %v7220_v14, %v3255_v41  ;;  %v3258_v5 = vadd.f32 %v7069_v4, %v3257_v46  ;;  %v3973_v33 = vld [vmem:[%s7231_s17 + $0x18] sm:$0xff] }
 0x26f   : > { %8212 = vst [vmem:[#allocation26_spill] sm:$0xff] %v7243_v24  ;;  %vm3775_vm1 = vcmp.ge.f32.partialorder %v3711_v7, 0.0  ;;  %v3844_v42 = vmul.f32 %v7236_v61, %v3711_v7  ;;  %v3712_v56 = vadd.f32 %v7220_v14, %v3266_v50  ;;  %v3971_v24 = vld [vmem:[%s7231_s17 + $0x8] sm:$0xff] }
 0x270   : > { %vm3773_vm2 = vcmp.ge.f32.partialorder %v3709_v3, 0.0  ;;  %v3842_v36 = vmul.f32 %v7236_v61, %v3709_v3  ;;  %v3710_v41 = vadd.f32 %v7220_v14, %v3258_v5  ;;  %v7264_v5 = vld [vmem:[%s8186_s2 + $0x3] ss:$0 sm:$0xff] }
 0x271   : > { %v3908_v17 = vsel %vm3775_vm1, %v3711_v7, %v3844_v42  ;;  %vm3776_vm3 = vcmp.ge.f32.partialorder %v3712_v56, 0.0  ;;  %v3845_v4 = vmul.f32 %v7236_v61, %v3712_v56 }
 0x272   : > { %v4036_v62 = vadd.f32 %v3972_v19, %v3908_v17  ;;  %v3906_v46 = vsel %vm3773_vm2, %v3709_v3, %v3842_v36  ;;  %vm3774_vm4 = vcmp.ge.f32.partialorder %v3710_v41, 0.0  ;;  %v3843_v50 = vmul.f32 %v7236_v61, %v3710_v41  ;;  %v5543_v2 = vpop.f32.mrb[132].mxu1  ;;  %v3101_v54 = vpop.f32.mrb[68].mxu0 }
 0x273   : > { %v4034_v7 = vadd.f32 %v3970_v60, %v3906_v46  ;;  %v3909_v42 = vsel %vm3776_vm3, %v3712_v56, %v3845_v4  ;;  %v3279_v48 = vadd.f32 %v7099_v25, %v5543_v2  ;;  %v3270_v63 = vpop.f32.mrb[133].mxu1  ;;  %v7270_v17 = vadd.f32 %v3101_v54, %v6991_v21  ;;  %v3103_v28 = vpop.f32.mrb[69].mxu0 }
 0x274   : > { %v4105_v19 = vmul.f32 %v7255_v12, %v4036_v62  ;;  %v4037_v3 = vadd.f32 %v3973_v33, %v3909_v42  ;;  %v3907_v36 = vsel %vm3774_vm4, %v3710_v41, %v3843_v50  ;;  %v5544_v18 = vpop.f32.mrb[134].mxu1  ;;  %v3271_v60 = vadd.f32 %v7087_v49, %v3270_v63  ;;  %v3104_v21 = vpop.f32.mrb[70].mxu0  ;;  %v3976_v63 = vld [vmem:[%s7231_s17 + $0x30] sm:$0xff] }
 0x275   : > { %v4103_v25 = vmul.f32 %v7255_v12, %v4034_v7  ;;  %v4035_v2 = vadd.f32 %v3971_v24, %v3907_v36  ;;  %v3715_v56 = vadd.f32 %v7220_v14, %v3279_v48  ;;  %v3273_v54 = vpop.f32.mrb[135].mxu1  ;;  %v7285_v4 = vadd.f32 %v3104_v21, %v6994_v26  ;;  %v3106_v62 = vpop.f32.mrb[71].mxu0 }
 0x276   : > { %v4174_v28 = vadd.f32 %v7264_v5, %v4105_v19  ;;  %v4106_v41 = vmul.f32 %v7255_v12, %v4037_v3  ;;  %v3282_v33 = vadd.f32 %v7105_v40, %v5544_v18  ;;  %v3713_v18 = vadd.f32 %v7220_v14, %v3271_v60  ;;  %v3974_v60 = vld [vmem:[%s7231_s17 + $0x20] sm:$0xff] }
 0x277   : > { %8213 = vst [vmem:[#allocation27_spill] sm:$0xff] %v7285_v4  ;;  %v4172_v24 = vadd.f32 %v7264_v5, %v4103_v25  ;;  %v4104_v49 = vmul.f32 %v7255_v12, %v4035_v2  ;;  %vm3779_vm5 = vcmp.ge.f32.partialorder %v3715_v56, 0.0  ;;  %v3848_v48 = vmul.f32 %v7236_v61, %v3715_v56 }
 0x278   : > { %4238 = vst [vmem:[%s7277_s13 + $0x10] sm:$0xff] %v4174_v28  ;;  %vm4302_vm6 = vcmp.ge.f32.partialorder %v4174_v28, 0.0  ;;  %v4175_v26 = vadd.f32 %v7264_v5, %v4106_v41  ;;  %v3716_v40 = vadd.f32 %v7220_v14, %v3282_v33  ;;  %v6344_v46 = vmov -1.0  }
 0x279   : > { %v4366_v50 = vsel %vm4302_vm6, 1.0, %v6344_v46  ;;  %4236 = vst [vmem:[%s7277_s13] sm:$0xff] %v4172_v24  ;;  %vm4300_vm7 = vcmp.ge.f32.partialorder %v4172_v24, 0.0  ;;  %v4173_v7 = vadd.f32 %v7264_v5, %v4104_v49  ;;  %v3912_v42 = vsel %vm3779_vm5, %v3715_v56, %v3848_v48  ;;  %v3977_v24 = vld [vmem:[%s7231_s17 + $0x38] sm:$0xff] }
 0x27a   : > { %v4364_v19 = vsel %vm4300_vm7, 1.0, %v6344_v46  ;;  %4239 = vst [vmem:[%s7277_s13 + $0x18] sm:$0xff] %v4175_v26  ;;  %vm4303_vm8 = vcmp.ge.f32.partialorder %v4175_v26, 0.0  ;;  %v4040_v3 = vadd.f32 %v3976_v63, %v3912_v42  ;;  %vm3777_vm9 = vcmp.ge.f32.partialorder %v3713_v18, 0.0  ;;  %v5547_v36 = vpop.f32.mrb[136].mxu1  ;;  %v3109_v21 = vpop.f32.mrb[72].mxu0 }
 0x27b   : > { %v4367_v25 = vsel %vm4303_vm8, 1.0, %v6344_v46  ;;  %4237 = vst [vmem:[%s7277_s13 + $0x8] sm:$0xff] %v4173_v7  ;;  %vm4301_vm10 = vcmp.ge.f32.partialorder %v4173_v7, 0.0  ;;  %v3846_v2 = vmul.f32 %v7236_v61, %v3713_v18  ;;  %vm3780_vm11 = vcmp.ge.f32.partialorder %v3716_v40, 0.0  ;;  %v3286_v28 = vpop.f32.mrb[137].mxu1  ;;  %v3111_v49 = vpop.f32.mrb[73].mxu0 }
 0x27c   : > { %v5364_v56 = vpack.c.bf16 %v4367_v25, %v4366_v50  ;;  %v4365_v41 = vsel %vm4301_vm10, 1.0, %v6344_v46  ;;  %v4109_v33 = vmul.f32 %v7255_v12, %v4040_v3  ;;  %v3849_v62 = vmul.f32 %v7236_v61, %v3716_v40  ;;  %v5548_v48 = vpop.f32.mrb[138].mxu1  ;;  %v3112_v4 = vpop.f32.mrb[74].mxu0 }
 0x27d   : > { %v5361_v63 = vpack.c.bf16 %v4365_v41, %v4364_v19  ;;  %v3910_v26 = vsel %vm3777_vm9, %v3713_v18, %v3846_v2  ;;  %v3274_v7 = vadd.f32 %v7093_v32, %v3273_v54  ;;  %v7316_v42 = vadd.f32 %v3109_v21, %v7001_v34  ;;  %v3289_v50 = vpop.f32.mrb[139].mxu1  ;;  %v3114_v32 = vpop.f32.mrb[75].mxu0 }
 0x27e   : > { %5456 = vst [vmem:[%s7319_s16 + $0x8] sm:$0xff] %v5364_v56   ;;  %v4178_v3 = vadd.f32 %v7264_v5, %v4109_v33  ;;  %v4038_v25 = vadd.f32 %v3974_v60, %v3910_v26  ;;  %v3913_v19 = vsel %vm3780_vm11, %v3716_v40, %v3849_v62  ;;  %v3295_v18 = vadd.f32 %v7119_v22, %v5547_v36 }
 0x27f   : > { %5362 = vst [vmem:[%s7319_s16] sm:$0xff] %v5361_v63   ;;  %v4041_v54 = vadd.f32 %v3977_v24, %v3913_v19  ;;  %v3714_v34 = vadd.f32 %v7220_v14, %v3274_v7  ;;  %v3287_v2 = vadd.f32 %v7111_v57, %v3286_v28  ;;  %v7329_v21 = vadd.f32 %v3112_v4, %v7004_v38  ;;  %v3975_v57 = vld [vmem:[%s7231_s17 + $0x28] sm:$0xff]  ;;  %v3980_v28 = vld [vmem:[%s7231_s17 + $0x50] sm:$0xff] }
 0x280   : > { %4242 = vst [vmem:[%s7277_s13 + $0x30] sm:$0xff] %v4178_v3  ;;  %vm4306_vm12 = vcmp.ge.f32.partialorder %v4178_v3, 0.0  ;;  %v4107_v60 = vmul.f32 %v7255_v12, %v4038_v25  ;;  %v3719_v40 = vadd.f32 %v7220_v14, %v3295_v18  ;;  %v3298_v22 = vadd.f32 %v7122_v29, %v5548_v48 }
 0x281   : > { %v4370_v36 = vsel %vm4306_vm12, 1.0, %v6344_v46  ;;  %v4110_v56 = vmul.f32 %v7255_v12, %v4041_v54  ;;  %vm3778_vm13 = vcmp.ge.f32.partialorder %v3714_v34, 0.0  ;;  %v3847_v41 = vmul.f32 %v7236_v61, %v3714_v34 }
 0x282   : > { %v4176_v38 = vadd.f32 %v7264_v5, %v4107_v60  ;;  %vm3783_vm14 = vcmp.ge.f32.partialorder %v3719_v40, 0.0  ;;  %v3852_v4 = vmul.f32 %v7236_v61, %v3719_v40  ;;  %v3717_v33 = vadd.f32 %v7220_v14, %v3287_v2  ;;  %v5551_v62 = vpop.f32.mrb[140].mxu1  ;;  %v3117_v63 = vpop.f32.mrb[76].mxu0 }
 0x283   : > { %v4179_v29 = vadd.f32 %v7264_v5, %v4110_v56  ;;  %v3911_v24 = vsel %vm3778_vm13, %v3714_v34, %v3847_v41  ;;  %v3720_v49 = vadd.f32 %v7220_v14, %v3298_v22  ;;  %v3290_v48 = vadd.f32 %v7115_v15, %v3289_v50  ;;  %v3302_v26 = vpop.f32.mrb[141].mxu1  ;;  %v3119_v25 = vpop.f32.mrb[77].mxu0  ;;  %v3978_v34 = vld [vmem:[%s7231_s17 + $0x40] sm:$0xff]  ;;  %v3981_v22 = vld [vmem:[%s7231_s17 + $0x58] sm:$0xff] }
 0x284   : > { %4240 = vst [vmem:[%s7277_s13 + $0x20] sm:$0xff] %v4176_v38  ;;  %vm4304_vm15 = vcmp.ge.f32.partialorder %v4176_v38, 0.0  ;;  %v4039_v7 = vadd.f32 %v3975_v57, %v3911_v24  ;;  %v3916_v3 = vsel %vm3783_vm14, %v3719_v40, %v3852_v4  ;;  %vm3781_vm0 = vcmp.ge.f32.partialorder %v3717_v33, 0.0  ;;  %v5552_v19 = vpop.f32.mrb[142].mxu1  ;;  %v3120_v2 = vpop.f32.mrb[78].mxu0 }
 0x285   : > { %v4368_v18 = vsel %vm4304_vm15, 1.0, %v6344_v46  ;;  %4243 = vst [vmem:[%s7277_s13 + $0x38] sm:$0xff] %v4179_v29  ;;  %vm4307_vm1 = vcmp.ge.f32.partialorder %v4179_v29, 0.0  ;;  %v4044_v32 = vadd.f32 %v3980_v28, %v3916_v3  ;;  %v3850_v54 = vmul.f32 %v7236_v61, %v3717_v33  ;;  %v3305_v15 = vpop.f32.mrb[143].mxu1  ;;  %v3122_v56 = vpop.f32.mrb[79].mxu0 }
 0x286   : > { %v4371_v50 = vsel %vm4307_vm1, 1.0, %v6344_v46  ;;  %v4108_v60 = vmul.f32 %v7255_v12, %v4039_v7  ;;  %vm3784_vm2 = vcmp.ge.f32.partialorder %v3720_v49, 0.0  ;;  %v3853_v40 = vmul.f32 %v7236_v61, %v3720_v49 }
 0x287   : > { %v5370_v41 = vpack.c.bf16 %v4371_v50, %v4370_v36  ;;  %v4113_v57 = vmul.f32 %v7255_v12, %v4044_v32  ;;  %v3914_v38 = vsel %vm3781_vm0, %v3717_v33, %v3850_v54  ;;  %v3718_v4 = vadd.f32 %v7220_v14, %v3290_v48  ;;  %v3979_v32 = vld [vmem:[%s7231_s17 + $0x48] sm:$0xff] }
 0x288   : > { %v4177_v28 = vadd.f32 %v7264_v5, %v4108_v60  ;;  %v4042_v29 = vadd.f32 %v3978_v34, %v3914_v38  ;;  %v3917_v24 = vsel %vm3784_vm2, %v3720_v49, %v3853_v40  ;;  %v7360_v7 = vadd.f32 %v3117_v63, %v7011_v52 }
 0x289   : > { %5458 = vst [vmem:[%s7319_s16 + $0x18] sm:$0xff] %v5370_v41   ;;  %v4182_v3 = vadd.f32 %v7264_v5, %v4113_v57  ;;  %v4045_v25 = vadd.f32 %v3981_v22, %v3917_v24  ;;  %vm3782_vm3 = vcmp.ge.f32.partialorder %v3718_v4, 0.0  ;;  %v3851_v36 = vmul.f32 %v7236_v61, %v3718_v4 }
 0x28a   : > { %4241 = vst [vmem:[%s7277_s13 + $0x28] sm:$0xff] %v4177_v28  ;;  %vm4305_vm4 = vcmp.ge.f32.partialorder %v4177_v28, 0.0  ;;  %v4111_v33 = vmul.f32 %v7255_v12, %v4042_v29  ;;  %v3311_v48 = vadd.f32 %v7131_v10, %v5551_v62  ;;  %v3303_v54 = vadd.f32 %v7125_v51, %v3302_v26  ;;  %v7370_v49 = vpop.f32.mrb[144].mxu1  ;;  %v3125_v50 = vpop.f32.mrb[80].mxu0 }
 0x28b   : > { %v4369_v52 = vsel %vm4305_vm4, 1.0, %v6344_v46  ;;  %4246 = vst [vmem:[%s7277_s13 + $0x50] sm:$0xff] %v4182_v3  ;;  %vm4310_vm5 = vcmp.ge.f32.partialorder %v4182_v3, 0.0  ;;  %v4114_v63 = vmul.f32 %v7255_v12, %v4045_v25  ;;  %v3915_v34 = vsel %vm3782_vm3, %v3718_v4, %v3851_v36  ;;  %v3318_v60 = vpop.f32.mrb[145].mxu1  ;;  %v3127_v51 = vpop.f32.mrb[81].mxu0 }
 0x28c   : > { %v5367_v40 = vpack.c.bf16 %v4369_v52, %v4368_v18  ;;  %v4374_v22 = vsel %vm4310_vm5, 1.0, %v6344_v46  ;;  %v4180_v10 = vadd.f32 %v7264_v5, %v4111_v33  ;;  %v4043_v62 = vadd.f32 %v3979_v32, %v3915_v34  ;;  %v7377_v26 = vpop.f32.mrb[146].mxu1  ;;  %v3128_v18 = vpop.f32.mrb[82].mxu0 }
 0x28d   : > { %v4183_v56 = vadd.f32 %v7264_v5, %v4114_v63  ;;  %v3723_v41 = vadd.f32 %v7220_v14, %v3311_v48  ;;  %v3721_v57 = vadd.f32 %v7220_v14, %v3303_v54  ;;  %v7383_v38 = vadd.f32 %v3120_v2, %v7014_v59  ;;  %v7385_v4 = vpop.f32.mrb[147].mxu1  ;;  %v3130_v3 = vpop.f32.mrb[83].mxu0  ;;  %v3984_v2 = vld [vmem:[%s7231_s17 + $0x70] sm:$0xff] }
 0x28e   : > { %5457 = vst [vmem:[%s7319_s16 + $0x10] sm:$0xff] %v5367_v40   ;;  %4244 = vst [vmem:[%s7277_s13 + $0x40] sm:$0xff] %v4180_v10  ;;  %vm4308_vm6 = vcmp.ge.f32.partialorder %v4180_v10, 0.0  ;;  %v4112_v28 = vmul.f32 %v7255_v12, %v4043_v62  ;;  %v3314_v29 = vadd.f32 %v7134_v13, %v5552_v19  ;;  %v3306_v24 = vadd.f32 %v7128_v53, %v3305_v15  ;;  %v3982_v19 = vld [vmem:[%s7231_s17 + $0x60] sm:$0xff]  ;;  %v3985_v62 = vld [vmem:[%s7231_s17 + $0x78] sm:$0xff] }
 0x28f   : > { %v4372_v25 = vsel %vm4308_vm6, 1.0, %v6344_v46  ;;  %4247 = vst [vmem:[%s7277_s13 + $0x58] sm:$0xff] %v4183_v56  ;;  %vm4311_vm7 = vcmp.ge.f32.partialorder %v4183_v56, 0.0  ;;  %vm3787_vm8 = vcmp.ge.f32.partialorder %v3723_v41, 0.0  ;;  %v3856_v59 = vmul.f32 %v7236_v61, %v3723_v41 }
 0x290   : > { %v4375_v36 = vsel %vm4311_vm7, 1.0, %v6344_v46  ;;  %v4181_v32 = vadd.f32 %v7264_v5, %v4112_v28  ;;  %vm3785_vm9 = vcmp.ge.f32.partialorder %v3721_v57, 0.0  ;;  %v3854_v13 = vmul.f32 %v7236_v61, %v3721_v57 }
 0x291   : > { %v5376_v53 = vpack.c.bf16 %v4375_v36, %v4374_v22  ;;  %v3920_v15 = vsel %vm3787_vm8, %v3723_v41, %v3856_v59  ;;  %v3724_v33 = vadd.f32 %v7220_v14, %v3314_v29  ;;  %v3722_v48 = vadd.f32 %v7220_v14, %v3306_v24 }
 0x292   : > { %4245 = vst [vmem:[%s7277_s13 + $0x48] sm:$0xff] %v4181_v32  ;;  %vm4309_vm10 = vcmp.ge.f32.partialorder %v4181_v32, 0.0  ;;  %v4048_v54 = vadd.f32 %v3984_v2, %v3920_v15  ;;  %v3918_v52 = vsel %vm3785_vm9, %v3721_v57, %v3854_v13  ;;  %v7404_v63 = vadd.f32 %v3125_v50, %v7021_v8  ;;  %v5559_v34 = vpop.f32.mrb[148].mxu1  ;;  %v3133_v51 = vpop.f32.mrb[84].mxu0  ;;  %v3983_v50 = vld [vmem:[%s7231_s17 + $0x68] sm:$0xff] }
 0x293   : > { %5460 = vst [vmem:[%s7319_s16 + $0x28] sm:$0xff] %v5376_v53   ;;  %v4373_v40 = vsel %vm4309_vm10, 1.0, %v6344_v46  ;;  %v4046_v10 = vadd.f32 %v3982_v19, %v3918_v52  ;;  %vm3788_vm11 = vcmp.ge.f32.partialorder %v3724_v33, 0.0  ;;  %v3857_v22 = vmul.f32 %v7236_v61, %v3724_v33  ;;  %v7410_v56 = vpop.f32.mrb[149].mxu1  ;;  %v3135_v57 = vpop.f32.mrb[85].mxu0 }
 0x294   : > { %v5373_v41 = vpack.c.bf16 %v4373_v40, %v4372_v25  ;;  %v4117_v28 = vmul.f32 %v7255_v12, %v4048_v54  ;;  %vm3786_vm12 = vcmp.ge.f32.partialorder %v3722_v48, 0.0  ;;  %v3855_v8 = vmul.f32 %v7236_v61, %v3722_v48  ;;  %v7415_v29 = vpop.f32.mrb[150].mxu1  ;;  %v7421_v36 = vpop.f32.mrb[86].mxu0 }
 0x295   : > { %v4115_v24 = vmul.f32 %v7255_v12, %v4046_v10  ;;  %v3921_v3 = vsel %vm3788_vm11, %v3724_v33, %v3857_v22  ;;  %v3327_v59 = vadd.f32 %v7149_v43, %v7370_v49  ;;  %v3319_v2 = vadd.f32 %v7139_v35, %v3318_v60  ;;  %v7423_v25 = vpop.f32.mrb[151].mxu1  ;;  %v3138_v15 = vpop.f32.mrb[87].mxu0  ;;  %v3988_v22 = vld [vmem:[%s7231_s17 + $0x90] sm:$0xff] }
 0x296   : > { %5459 = vst [vmem:[%s7319_s16 + $0x20] sm:$0xff] %v5373_v41   ;;  %v4186_v32 = vadd.f32 %v7264_v5, %v4117_v28  ;;  %v4049_v13 = vadd.f32 %v3985_v62, %v3921_v3  ;;  %v3919_v19 = vsel %vm3786_vm12, %v3722_v48, %v3855_v8  ;;  %v7428_v53 = vadd.f32 %v3128_v18, %v7024_v16 }
 0x297   : > { %v4184_v33 = vadd.f32 %v7264_v5, %v4115_v24  ;;  %v4047_v54 = vadd.f32 %v3983_v50, %v3919_v19  ;;  %v3727_v35 = vadd.f32 %v7220_v14, %v3327_v59  ;;  %v3725_v43 = vadd.f32 %v7220_v14, %v3319_v2 }
 0x298   : > { %4250 = vst [vmem:[%s7277_s13 + $0x70] sm:$0xff] %v4186_v32  ;;  %vm4314_vm13 = vcmp.ge.f32.partialorder %v4186_v32, 0.0  ;;  %v4118_v49 = vmul.f32 %v7255_v12, %v4049_v13  ;;  %v3330_v60 = vadd.f32 %v7154_v27, %v7377_v26  ;;  %v3322_v16 = vadd.f32 %v7144_v1, %v7385_v4  ;;  %v3986_v4 = vld [vmem:[%s7231_s17 + $0x80] sm:$0xff] }
 0x299   : > { %v4378_v18 = vsel %vm4314_vm13, 1.0, %v6344_v46  ;;  %4248 = vst [vmem:[%s7277_s13 + $0x60] sm:$0xff] %v4184_v33  ;;  %vm4312_vm14 = vcmp.ge.f32.partialorder %v4184_v33, 0.0  ;;  %v4116_v48 = vmul.f32 %v7255_v12, %v4047_v54  ;;  %vm3791_vm15 = vcmp.ge.f32.partialorder %v3727_v35, 0.0 }
 0x29a   : > { %v4376_v52 = vsel %vm4312_vm14, 1.0, %v6344_v46  ;;  %v4187_v40 = vadd.f32 %v7264_v5, %v4118_v49  ;;  %v3860_v10 = vmul.f32 %v7236_v61, %v3727_v35  ;;  %vm3789_vm0 = vcmp.ge.f32.partialorder %v3725_v43, 0.0  ;;  %v7446_v27 = vpop.f32.mrb[152].mxu1  ;;  %v7453_v28 = vpop.f32.mrb[88].mxu0  ;;  %v3989_v49 = vld [vmem:[%s7231_s17 + $0x98] sm:$0xff] }
 0x29b   : > { %v4185_v1 = vadd.f32 %v7264_v5, %v4116_v48  ;;  %v3858_v26 = vmul.f32 %v7236_v61, %v3725_v43  ;;  %v3728_v62 = vadd.f32 %v7220_v14, %v3330_v60  ;;  %v3726_v41 = vadd.f32 %v7220_v14, %v3322_v16  ;;  %v7455_v8 = vpop.f32.mrb[153].mxu1  ;;  %v3143_v3 = vpop.f32.mrb[89].mxu0  ;;  %v3987_v16 = vld [vmem:[%s7231_s17 + $0x88] sm:$0xff] }
 0x29c   : > { %4251 = vst [vmem:[%s7277_s13 + $0x78] sm:$0xff] %v4187_v40  ;;  %vm4315_vm1 = vcmp.ge.f32.partialorder %v4187_v40, 0.0  ;;  %v3924_v50 = vsel %vm3791_vm15, %v3727_v35, %v3860_v10  ;;  %v7460_v57 = vadd.f32 %v3133_v51, %v7031_v55  ;;  %v3343_v24 = vadd.f32 %v7169_v23, %v5559_v34  ;;  %v7463_v59 = vpop.f32.mrb[154].mxu1  ;;  %v7468_v19 = vpop.f32.mrb[90].mxu0 }
 0x29d   : > { %v4379_v2 = vsel %vm4315_vm1, 1.0, %v6344_v46  ;;  %4249 = vst [vmem:[%s7277_s13 + $0x68] sm:$0xff] %v4185_v1  ;;  %vm4313_vm2 = vcmp.ge.f32.partialorder %v4185_v1, 0.0  ;;  %v4052_v32 = vadd.f32 %v3988_v22, %v3924_v50  ;;  %v3922_v13 = vsel %vm3789_vm0, %v3725_v43, %v3858_v26  ;;  %v7470_v15 = vpop.f32.mrb[155].mxu1  ;;  %v3146_v51 = vpop.f32.mrb[91].mxu0 }
 0x29e   : > { %v5382_v55 = vpack.c.bf16 %v4379_v2, %v4378_v18  ;;  %v4377_v23 = vsel %vm4313_vm2, 1.0, %v6344_v46  ;;  %v4050_v34 = vadd.f32 %v3986_v4, %v3922_v13  ;;  %vm3792_vm3 = vcmp.ge.f32.partialorder %v3728_v62, 0.0 }
 0x29f   : > { %v5379_v33 = vpack.c.bf16 %v4377_v23, %v4376_v52  ;;  %v4121_v54 = vmul.f32 %v7255_v12, %v4052_v32  ;;  %v3861_v35 = vmul.f32 %v7236_v61, %v3728_v62  ;;  %vm3790_vm4 = vcmp.ge.f32.partialorder %v3726_v41, 0.0 }
 0x2a0   : > { %5462 = vst [vmem:[%s7319_s16 + $0x38] sm:$0xff] %v5382_v55   ;;  %v4119_v43 = vmul.f32 %v7255_v12, %v4050_v34  ;;  %v3859_v60 = vmul.f32 %v7236_v61, %v3726_v41  ;;  %v3731_v18 = vadd.f32 %v7220_v14, %v3343_v24  ;;  %v3335_v48 = vadd.f32 %v7159_v45, %v7410_v56 }
 0x2a1   : > { %5461 = vst [vmem:[%s7319_s16 + $0x30] sm:$0xff] %v5379_v33   ;;  %v4190_v52 = vadd.f32 %v7264_v5, %v4121_v54  ;;  %v3925_v40 = vsel %vm3792_vm3, %v3728_v62, %v3861_v35  ;;  %v7487_v10 = vadd.f32 %v7421_v36, %v7034_v30  ;;  %v3346_v22 = vadd.f32 %v7174_v0, %v7415_v29  ;;  %v3992_v62 = vld [vmem:[%s7231_s17 + $0xb0] sm:$0xff]  ;;  %v3990_v35 = vld [vmem:[%s7231_s17 + $0xa0] sm:$0xff] }
 0x2a2   : > { %v4188_v1 = vadd.f32 %v7264_v5, %v4119_v43  ;;  %v4053_v26 = vadd.f32 %v3989_v49, %v3925_v40  ;;  %v3923_v4 = vsel %vm3790_vm4, %v3726_v41, %v3859_v60  ;;  %vm3795_vm5 = vcmp.ge.f32.partialorder %v3731_v18, 0.0  ;;  %v7492_v50 = vpop.f32.mrb[156].mxu1  ;;  %v7498_v36 = vpop.f32.mrb[92].mxu0 }
 0x2a3   : > { %4254 = vst [vmem:[%s7277_s13 + $0x90] sm:$0xff] %v4190_v52  ;;  %vm4318_vm6 = vcmp.ge.f32.partialorder %v4190_v52, 0.0  ;;  %v4051_v45 = vadd.f32 %v3987_v16, %v3923_v4  ;;  %v3864_v56 = vmul.f32 %v7236_v61, %v3731_v18  ;;  %v3729_v30 = vadd.f32 %v7220_v14, %v3335_v48  ;;  %v7500_v24 = vpop.f32.mrb[157].mxu1  ;;  %v3151_v3 = vpop.f32.mrb[93].mxu0  ;;  %v3993_v16 = vld [vmem:[%s7231_s17 + $0xb8] sm:$0xff] }
 0x2a4   : > { %v4382_v0 = vsel %vm4318_vm6, 1.0, %v6344_v46  ;;  %4252 = vst [vmem:[%s7277_s13 + $0x80] sm:$0xff] %v4188_v1  ;;  %vm4316_vm7 = vcmp.ge.f32.partialorder %v4188_v1, 0.0  ;;  %v4122_v29 = vmul.f32 %v7255_v12, %v4053_v26  ;;  %v3732_v41 = vadd.f32 %v7220_v14, %v3346_v22  ;;  %v7506_v2 = vpop.f32.mrb[158].mxu1  ;;  %v7511_v23 = vpop.f32.mrb[94].mxu0 }
 0x2a5   : > { %v4380_v32 = vsel %vm4316_vm7, 1.0, %v6344_v46  ;;  %v4120_v13 = vmul.f32 %v7255_v12, %v4051_v45  ;;  %v3928_v55 = vsel %vm3795_vm5, %v3731_v18, %v3864_v56  ;;  %vm3793_vm8 = vcmp.ge.f32.partialorder %v3729_v30, 0.0  ;;  %v7513_v34 = vpop.f32.mrb[159].mxu1  ;;  %v3154_v49 = vpop.f32.mrb[95].mxu0 }
 0x2a6   : > { %v4191_v51 = vadd.f32 %v7264_v5, %v4122_v29  ;;  %v4056_v33 = vadd.f32 %v3992_v62, %v3928_v55  ;;  %v3862_v54 = vmul.f32 %v7236_v61, %v3729_v30  ;;  %vm3796_vm9 = vcmp.ge.f32.partialorder %v3732_v41, 0.0 }
 0x2a7   : > { %v4189_v43 = vadd.f32 %v7264_v5, %v4120_v13  ;;  %v3865_v60 = vmul.f32 %v7236_v61, %v3732_v41  ;;  %v3338_v18 = vadd.f32 %v7164_v6, %v7423_v25  ;;  %v7525_v48 = vadd.f32 %v7453_v28, %v7041_v47 }
 0x2a8   : > { %4255 = vst [vmem:[%s7277_s13 + $0x98] sm:$0xff] %v4191_v51  ;;  %vm4319_vm10 = vcmp.ge.f32.partialorder %v4191_v51, 0.0  ;;  %v4125_v52 = vmul.f32 %v7255_v12, %v4056_v33  ;;  %v3926_v40 = vsel %vm3793_vm8, %v3729_v30, %v3862_v54  ;;  %v3359_v22 = vadd.f32 %v7189_v31, %v7446_v27  ;;  %v3991_v54 = vld [vmem:[%s7231_s17 + $0xa8] sm:$0xff] }
 0x2a9   : > { %v4383_v1 = vsel %vm4319_vm10, 1.0, %v6344_v46  ;;  %4253 = vst [vmem:[%s7277_s13 + $0x88] sm:$0xff] %v4189_v43  ;;  %vm4317_vm11 = vcmp.ge.f32.partialorder %v4189_v43, 0.0  ;;  %v4054_v6 = vadd.f32 %v3990_v35, %v3926_v40  ;;  %v3929_v25 = vsel %vm3796_vm9, %v3732_v41, %v3865_v60 }
 0x2aa   : > { %v5388_v47 = vpack.c.bf16 %v4383_v1, %v4382_v0  ;;  %v4381_v28 = vsel %vm4317_vm11, 1.0, %v6344_v46  ;;  %v4194_v26 = vadd.f32 %v7264_v5, %v4125_v52  ;;  %v4057_v4 = vadd.f32 %v3993_v16, %v3929_v25  ;;  %v7537_v45 = vpop.f32.mrb[160].mxu1  ;;  %v7542_v30 = vpop.f32.mrb[96].mxu0 }
 0x2ab   : > { %v5385_v56 = vpack.c.bf16 %v4381_v28, %v4380_v32  ;;  %v4123_v31 = vmul.f32 %v7255_v12, %v4054_v6  ;;  %v3730_v27 = vadd.f32 %v7220_v14, %v3338_v18  ;;  %v3735_v62 = vadd.f32 %v7220_v14, %v3359_v22  ;;  %v7544_v29 = vpop.f32.mrb[161].mxu1  ;;  %v3159_v32 = vpop.f32.mrb[97].mxu0 }
 0x2ac   : > { %5464 = vst [vmem:[%s7319_s16 + $0x48] sm:$0xff] %v5388_v47   ;;  %4258 = vst [vmem:[%s7277_s13 + $0xb0] sm:$0xff] %v4194_v26  ;;  %vm4322_vm12 = vcmp.ge.f32.partialorder %v4194_v26, 0.0  ;;  %v4126_v0 = vmul.f32 %v7255_v12, %v4057_v4  ;;  %v3351_v41 = vadd.f32 %v7179_v20, %v7455_v8  ;;  %v7553_v3 = vadd.f32 %v7468_v19, %v7044_v58  ;;  %v7555_v13 = vpop.f32.mrb[162].mxu1  ;;  %v7562_v35 = vpop.f32.mrb[98].mxu0  ;;  %v3996_v19 = vld [vmem:[%s7231_s17 + $0xd0] sm:$0xff] }
 0x2ad   : > { %5463 = vst [vmem:[%s7319_s16 + $0x40] sm:$0xff] %v5385_v56   ;;  %v4386_v55 = vsel %vm4322_vm12, 1.0, %v6344_v46  ;;  %v4192_v51 = vadd.f32 %v7264_v5, %v4123_v31  ;;  %vm3794_vm13 = vcmp.ge.f32.partialorder %v3730_v27, 0.0  ;;  %v3863_v33 = vmul.f32 %v7236_v61, %v3730_v27  ;;  %v7564_v20 = vpop.f32.mrb[163].mxu1  ;;  %v3162_v43 = vpop.f32.mrb[99].mxu0  ;;  %v3994_v47 = vld [vmem:[%s7231_s17 + $0xc0] sm:$0xff] }
 0x2ae   : > { %v4195_v58 = vadd.f32 %v7264_v5, %v4126_v0  ;;  %vm3799_vm14 = vcmp.ge.f32.partialorder %v3735_v62, 0.0  ;;  %v3868_v8 = vmul.f32 %v7236_v61, %v3735_v62  ;;  %v3733_v49 = vadd.f32 %v7220_v14, %v3351_v41 }
 0x2af   : > { %4256 = vst [vmem:[%s7277_s13 + $0xa0] sm:$0xff] %v4192_v51  ;;  %vm4320_vm15 = vcmp.ge.f32.partialorder %v4192_v51, 0.0  ;;  %v3927_v60 = vsel %vm3794_vm13, %v3730_v27, %v3863_v33  ;;  %v3362_v16 = vadd.f32 %v7194_v39, %v7463_v59  ;;  %v3354_v18 = vadd.f32 %v7184_v37, %v7470_v15 }
 0x2b0   : > { %v4384_v52 = vsel %vm4320_vm15, 1.0, %v6344_v46  ;;  %4259 = vst [vmem:[%s7277_s13 + $0xb8] sm:$0xff] %v4195_v58  ;;  %vm4323_vm0 = vcmp.ge.f32.partialorder %v4195_v58, 0.0  ;;  %v4055_v40 = vadd.f32 %v3991_v54, %v3927_v60  ;;  %v3932_v22 = vsel %vm3799_vm14, %v3735_v62, %v3868_v8 }
 0x2b1   : > { %v4387_v1 = vsel %vm4323_vm0, 1.0, %v6344_v46  ;;  %v4060_v6 = vadd.f32 %v3996_v19, %v3932_v22  ;;  %vm3797_vm1 = vcmp.ge.f32.partialorder %v3733_v49, 0.0  ;;  %v3866_v25 = vmul.f32 %v7236_v61, %v3733_v49 }
 0x2b2   : > { %v5394_v28 = vpack.c.bf16 %v4387_v1, %v4386_v55  ;;  %v4124_v39 = vmul.f32 %v7255_v12, %v4055_v40  ;;  %v3736_v37 = vadd.f32 %v7220_v14, %v3362_v16  ;;  %v3734_v59 = vadd.f32 %v7220_v14, %v3354_v18  ;;  %v7583_v15 = vpop.f32.mrb[164].mxu1  ;;  %v7592_v27 = vpop.f32.mrb[100].mxu0  ;;  %v3997_v55 = vld [vmem:[%s7231_s17 + $0xd8] sm:$0xff] }
 0x2b3   : > { %v4129_v26 = vmul.f32 %v7255_v12, %v4060_v6  ;;  %v3930_v4 = vsel %vm3797_vm1, %v3733_v49, %v3866_v25  ;;  %v7588_v56 = vadd.f32 %v7498_v36, %v7051_v11  ;;  %v3375_v31 = vadd.f32 %v7209_v9, %v7492_v50  ;;  %v7594_v62 = vpop.f32.mrb[165].mxu1  ;;  %v3167_v51 = vpop.f32.mrb[101].mxu0  ;;  %v3995_v50 = vld [vmem:[%s7231_s17 + $0xc8] sm:$0xff] }
 0x2b4   : > { %5466 = vst [vmem:[%s7319_s16 + $0x58] sm:$0xff] %v5394_v28   ;;  %v4193_v0 = vadd.f32 %v7264_v5, %v4124_v39  ;;  %v4058_v41 = vadd.f32 %v3994_v47, %v3930_v4  ;;  %vm3800_vm2 = vcmp.ge.f32.partialorder %v3736_v37, 0.0  ;;  %v3869_v32 = vmul.f32 %v7236_v61, %v3736_v37  ;;  %v7600_v11 = vpop.f32.mrb[166].mxu1  ;;  %v7606_v54 = vpop.f32.mrb[102].mxu0 }
 0x2b5   : > { %v4198_v36 = vadd.f32 %v7264_v5, %v4129_v26  ;;  %vm3798_vm3 = vcmp.ge.f32.partialorder %v3734_v59, 0.0  ;;  %v3867_v9 = vmul.f32 %v7236_v61, %v3734_v59  ;;  %v3739_v33 = vadd.f32 %v7220_v14, %v3375_v31  ;;  %v7608_v58 = vpop.f32.mrb[167].mxu1  ;;  %v3170_v43 = vpop.f32.mrb[103].mxu0 }
 0x2b6   : > { %4257 = vst [vmem:[%s7277_s13 + $0xa8] sm:$0xff] %v4193_v0  ;;  %vm4321_vm4 = vcmp.ge.f32.partialorder %v4193_v0, 0.0  ;;  %v4127_v8 = vmul.f32 %v7255_v12, %v4058_v41  ;;  %v3933_v19 = vsel %vm3800_vm2, %v3736_v37, %v3869_v32  ;;  %v3367_v49 = vadd.f32 %v7199_v44, %v7500_v24  ;;  %v4000_v24 = vld [vmem:[%s7231_s17 + $0xf0] sm:$0xff] }
 0x2b7   : > { %v4385_v60 = vsel %vm4321_vm4, 1.0, %v6344_v46  ;;  %4262 = vst [vmem:[%s7277_s13 + $0xd0] sm:$0xff] %v4198_v36  ;;  %vm4326_vm5 = vcmp.ge.f32.partialorder %v4198_v36, 0.0  ;;  %v4061_v16 = vadd.f32 %v3997_v55, %v3933_v19  ;;  %v3931_v18 = vsel %vm3798_vm3, %v3734_v59, %v3867_v9  ;;  %v8215_v37 = vld [vmem:[#allocation24_spill] sm:$0xff]  ;;  %v3998_v36 = vld [vmem:[%s7231_s17 + $0xe0] sm:$0xff]  ;;  %v8217_v19 = vld [vmem:[#allocation7_spill] sm:$0xff] }
 0x2b8   : > { %v5391_v40 = vpack.c.bf16 %v4385_v60, %v4384_v52  ;;  %v4390_v22 = vsel %vm4326_vm5, 1.0, %v6344_v46  ;;  %v4196_v1 = vadd.f32 %v7264_v5, %v4127_v8  ;;  %v4059_v6 = vadd.f32 %v3995_v50, %v3931_v18  ;;  %v8214_v52 = vld [vmem:[#allocation6_spill] sm:$0xff] }
 0x2b9   : > { %v4130_v25 = vmul.f32 %v7255_v12, %v4061_v16  ;;  %vm3803_vm6 = vcmp.ge.f32.partialorder %v3739_v33, 0.0  ;;  %v3872_v44 = vmul.f32 %v7236_v61, %v3739_v33  ;;  %v3737_v47 = vadd.f32 %v7220_v14, %v3367_v49 }
 0x2ba   : > { %5465 = vst [vmem:[%s7319_s16 + $0x50] sm:$0xff] %v5391_v40   ;;  %4260 = vst [vmem:[%s7277_s13 + $0xc0] sm:$0xff] %v4196_v1  ;;  %vm4324_vm7 = vcmp.ge.f32.partialorder %v4196_v1, 0.0  ;;  %v4128_v28 = vmul.f32 %v7255_v12, %v4059_v6  ;;  %v7628_v39 = vadd.f32 %v7511_v23, %v8214_v52  ;;  %v3378_v59 = vadd.f32 %v8215_v37, %v7506_v2  ;;  %v7632_v26 = vpop.f32.mrb[168].mxu1  ;;  %v7636_v41 = vpop.f32.mrb[104].mxu0 }
 0x2bb   : > { %v4388_v4 = vsel %vm4324_vm7, 1.0, %v6344_v46  ;;  %v4199_v31 = vadd.f32 %v7264_v5, %v4130_v25  ;;  %v3936_v0 = vsel %vm3803_vm6, %v3739_v33, %v3872_v44  ;;  %vm3801_vm8 = vcmp.ge.f32.partialorder %v3737_v47, 0.0  ;;  %v7638_v32 = vpop.f32.mrb[169].mxu1  ;;  %v3175_v9 = vpop.f32.mrb[105].mxu0  ;;  %v8216_v33 = vld [vmem:[#allocation21_spill] sm:$0xff] }
 0x2bc   : > { %v4197_v23 = vadd.f32 %v7264_v5, %v4128_v28  ;;  %v4064_v55 = vadd.f32 %v4000_v24, %v3936_v0  ;;  %v3870_v51 = vmul.f32 %v7236_v61, %v3737_v47  ;;  %v3740_v2 = vadd.f32 %v7220_v14, %v3378_v59  ;;  %v7644_v50 = vpop.f32.mrb[170].mxu1  ;;  %v7655_v60 = vpop.f32.mrb[106].mxu0  ;;  %v4001_v24 = vld [vmem:[%s7231_s17 + $0xf8] sm:$0xff]  ;;  %v8219_v59 = vld [vmem:[#allocation8_spill] sm:$0xff] }
 0x2bd   : > { %4263 = vst [vmem:[%s7277_s13 + $0xd8] sm:$0xff] %v4199_v31  ;;  %vm4327_vm9 = vcmp.ge.f32.partialorder %v4199_v31, 0.0  ;;  %v3370_v8 = vadd.f32 %v8216_v33, %v7513_v34  ;;  %v7651_v49 = vadd.f32 %v7542_v30, %v8217_v19  ;;  %v3391_v43 = vadd.f32 %v7270_v17, %v7537_v45  ;;  %v7657_v16 = vpop.f32.mrb[171].mxu1  ;;  %v3178_v30 = vpop.f32.mrb[107].mxu0  ;;  %v4004_v33 = vld [vmem:[%s7231_s17 + $0x110] sm:$0xff] }
 0x2be   : > { %v4391_v18 = vsel %vm4327_vm9, 1.0, %v6344_v46  ;;  %4261 = vst [vmem:[%s7277_s13 + $0xc8] sm:$0xff] %v4197_v23  ;;  %vm4325_vm10 = vcmp.ge.f32.partialorder %v4197_v23, 0.0  ;;  %v4133_v40 = vmul.f32 %v7255_v12, %v4064_v55  ;;  %v3934_v34 = vsel %vm3801_vm8, %v3737_v47, %v3870_v51  ;;  %v3999_v23 = vld [vmem:[%s7231_s17 + $0xe8] sm:$0xff] }
 0x2bf   : > { %v5400_v1 = vpack.c.bf16 %v4391_v18, %v4390_v22  ;;  %v4389_v17 = vsel %vm4325_vm10, 1.0, %v6344_v46  ;;  %v4062_v45 = vadd.f32 %v3998_v36, %v3934_v34  ;;  %vm3804_vm11 = vcmp.ge.f32.partialorder %v3740_v2, 0.0  ;;  %v8218_v22 = vld [vmem:[#allocation25_spill] sm:$0xff] }
 0x2c0   : > { %v5397_v6 = vpack.c.bf16 %v4389_v17, %v4388_v4  ;;  %v4202_v25 = vadd.f32 %v7264_v5, %v4133_v40  ;;  %v3873_v44 = vmul.f32 %v7236_v61, %v3740_v2  ;;  %v3738_v28 = vadd.f32 %v7220_v14, %v3370_v8  ;;  %v7701_v8 = vld [vmem:[%s8186_s2] ss:$0 sm:$0xff] }
 0x2c1   : > { %5468 = vst [vmem:[%s7319_s16 + $0x68] sm:$0xff] %v5400_v1   ;;  %v4131_v47 = vmul.f32 %v7255_v12, %v4062_v45  ;;  %v3743_v52 = vadd.f32 %v7220_v14, %v3391_v43  ;;  %v3383_v37 = vadd.f32 %v8218_v22, %v7544_v29  ;;  %v7675_v31 = vadd.f32 %v7562_v35, %v8219_v59  ;;  %v8220_v43 = vld [vmem:[#allocation27_spill] sm:$0xff]  ;;  %v8221_v17 = vld [vmem:[#allocation26_spill] sm:$0xff] }
 0x2c2   : > { %5467 = vst [vmem:[%s7319_s16 + $0x60] sm:$0xff] %v5397_v6   ;;  %4266 = vst [vmem:[%s7277_s13 + $0xf0] sm:$0xff] %v4202_v25  ;;  %vm4330_vm12 = vcmp.ge.f32.partialorder %v4202_v25, 0.0  ;;  %v3937_v4 = vsel %vm3804_vm11, %v3740_v2, %v3873_v44  ;;  %vm3802_vm13 = vcmp.ge.f32.partialorder %v3738_v28, 0.0  ;;  %v3871_v0 = vmul.f32 %v7236_v61, %v3738_v28  ;;  %v7681_v55 = vpop.f32.mrb[172].mxu1  ;;  %v7687_v35 = vpop.f32.mrb[108].mxu0 }
 0x2c3   : > { %v7684_v14 = vsel %vm4330_vm12, 1.0, %v6344_v46  ;;  %v4200_v29 = vadd.f32 %v7264_v5, %v4131_v47  ;;  %v4065_v51 = vadd.f32 %v4001_v24, %v3937_v4  ;;  %vm3807_vm14 = vcmp.ge.f32.partialorder %v3743_v52, 0.0  ;;  %v7689_v36 = vpop.f32.mrb[173].mxu1  ;;  %v7694_v61 = vld [vmem:[%s8186_s2 + $0x1] ss:$0 sm:$0xff]  ;;  %v3183_v40 = vpop.f32.mrb[109].mxu0 }
 0x2c4   : > { %v3935_v9 = vsel %vm3802_vm13, %v3738_v28, %v3871_v0  ;;  %v3876_v2 = vmul.f32 %v7694_v61, %v3743_v52  ;;  %v3741_v19 = vadd.f32 %v7701_v8, %v3383_v37  ;;  %v3394_v18 = vadd.f32 %v8220_v43, %v7555_v13  ;;  %v7706_v34 = vpop.f32.mrb[174].mxu1  ;;  %v7712_v6 = vpop.f32.mrb[110].mxu0  ;;  %v4002_v28 = vld [vmem:[%s7231_s17 + $0x100] sm:$0xff]  ;;  %v8222_v0 = vld [vmem:[#allocation9_spill] sm:$0xff] }
 0x2c5   : > { %4264 = vst [vmem:[%s7277_s13 + $0xe0] sm:$0xff] %v4200_v29  ;;  %vm4328_vm15 = vcmp.ge.f32.partialorder %v4200_v29, 0.0  ;;  %v4134_v30 = vmul.f32 %v7255_v12, %v4065_v51  ;;  %v4063_v1 = vadd.f32 %v3999_v23, %v3935_v9  ;;  %v3386_v45 = vadd.f32 %v8221_v17, %v7564_v20  ;;  %v7714_v25 = vpop.f32.mrb[175].mxu1  ;;  %v3186_v47 = vpop.f32.mrb[111].mxu0  ;;  %v7724_v20 = vld [vmem:[%s8186_s2 + $0x2] ss:$0 sm:$0xff] }
 0x2c6   : > { %v4392_v44 = vsel %vm4328_vm15, 1.0, %v6344_v46  ;;  %v3940_v13 = vsel %vm3807_vm14, %v3743_v52, %v3876_v2  ;;  %vm3805_vm0 = vcmp.ge.f32.partialorder %v3741_v19, 0.0  ;;  %v3874_v24 = vmul.f32 %v7694_v61, %v3741_v19  ;;  %v7739_v29 = vld [vmem:[%s8186_s2 + $0x3] ss:$0 sm:$0xff] }
 0x2c7   : > { %v4203_v12 = vadd.f32 %v7264_v5, %v4134_v30  ;;  %v4132_v22 = vmul.f32 %v7724_v20, %v4063_v1  ;;  %v4068_v37 = vadd.f32 %v4004_v33, %v3940_v13  ;;  %v3744_v59 = vadd.f32 %v7701_v8, %v3394_v18  ;;  %v4003_v13 = vld [vmem:[%s7231_s17 + $0x108] sm:$0xff] }
 0x2c8   : > { %v3938_v4 = vsel %vm3805_vm0, %v3741_v19, %v3874_v24  ;;  %v3742_v52 = vadd.f32 %v7701_v8, %v3386_v45  ;;  %v7731_v23 = vadd.f32 %v7592_v27, %v8222_v0  ;;  %v3407_v5 = vadd.f32 %v7360_v7, %v7583_v15  ;;  %v4005_v19 = vld [vmem:[%s7231_s17 + $0x118] sm:$0xff] }
 0x2c9   : > { %4267 = vst [vmem:[%s7277_s13 + $0xf8] sm:$0xff] %v4203_v12  ;;  %vm4331_vm1 = vcmp.ge.f32.partialorder %v4203_v12, 0.0  ;;  %v4201_v51 = vadd.f32 %v7739_v29, %v4132_v22  ;;  %v4137_v9 = vmul.f32 %v7724_v20, %v4068_v37  ;;  %v4066_v2 = vadd.f32 %v4002_v28, %v3938_v4 }
 0x2ca   : > { %v4395_v33 = vsel %vm4331_vm1, 1.0, %v6344_v46  ;;  %vm3808_vm2 = vcmp.ge.f32.partialorder %v3744_v59, 0.0  ;;  %v3877_v27 = vmul.f32 %v7694_v61, %v3744_v59  ;;  %vm3806_vm3 = vcmp.ge.f32.partialorder %v3742_v52, 0.0  ;;  %v7746_v7 = vpop.f32.mrb[176].mxu1  ;;  %v7752_v40 = vpop.f32.mrb[112].mxu0 }
 0x2cb   : > { %v5406_v15 = vpack.c.bf16 %v4395_v33, %v7684_v14  ;;  %4265 = vst [vmem:[%s7277_s13 + $0xe8] sm:$0xff] %v4201_v51  ;;  %vm4329_vm4 = vcmp.ge.f32.partialorder %v4201_v51, 0.0  ;;  %v4206_v43 = vadd.f32 %v7739_v29, %v4137_v9  ;;  %v4135_v18 = vmul.f32 %v7724_v20, %v4066_v2  ;;  %v7754_v30 = vpop.f32.mrb[177].mxu1  ;;  %v3191_v24 = vpop.f32.mrb[113].mxu0  ;;  %v4008_v51 = vld [vmem:[%s7231_s17 + $0x130] sm:$0xff] }
 0x2cc   : > { %v4393_v1 = vsel %vm4329_vm4, 1.0, %v6344_v46  ;;  %v3941_v17 = vsel %vm3808_vm2, %v3744_v59, %v3877_v27  ;;  %v3875_v45 = vmul.f32 %v7694_v61, %v3742_v52  ;;  %v3747_v14 = vadd.f32 %v7701_v8, %v3407_v5  ;;  %v7760_v28 = vpop.f32.mrb[178].mxu1  ;;  %v7765_v37 = vpop.f32.mrb[114].mxu0 }
 0x2cd   : > { %5470 = vst [vmem:[%s7319_s16 + $0x78] sm:$0xff] %v5406_v15   ;;  %v5403_v47 = vpack.c.bf16 %v4393_v1, %v4392_v44  ;;  %4270 = vst [vmem:[%s7277_s13 + $0x110] sm:$0xff] %v4206_v43  ;;  %vm4334_vm5 = vcmp.ge.f32.partialorder %v4206_v43, 0.0  ;;  %v4204_v12 = vadd.f32 %v7739_v29, %v4135_v18  ;;  %v4069_v22 = vadd.f32 %v4005_v19, %v3941_v17  ;;  %v7767_v59 = vpop.f32.mrb[179].mxu1  ;;  %v3194_v9 = vpop.f32.mrb[115].mxu0  ;;  %v8223_v15 = vld [vmem:[#allocation10_spill] sm:$0xff] }
 0x2ce   : > { %v4398_v4 = vsel %vm4334_vm5, 1.0, %v6344_v46  ;;  %v3939_v0 = vsel %vm3806_vm3, %v3742_v52, %v3875_v45  ;;  %vm3811_vm6 = vcmp.ge.f32.partialorder %v3747_v14, 0.0  ;;  %v3880_v5 = vmul.f32 %v7694_v61, %v3747_v14 }
 0x2cf   : > { %5469 = vst [vmem:[%s7319_s16 + $0x70] sm:$0xff] %v5403_v47   ;;  %4268 = vst [vmem:[%s7277_s13 + $0x100] sm:$0xff] %v4204_v12  ;;  %vm4332_vm7 = vcmp.ge.f32.partialorder %v4204_v12, 0.0  ;;  %v4138_v44 = vmul.f32 %v7724_v20, %v4069_v22  ;;  %v4067_v2 = vadd.f32 %v4003_v13, %v3939_v0  ;;  %v3399_v33 = vadd.f32 %v7316_v42, %v7594_v62  ;;  %v8224_v13 = vld [vmem:[#allocation11_spill] sm:$0xff]  ;;  %v4006_v12 = vld [vmem:[%s7231_s17 + $0x120] sm:$0xff] }
 0x2d0   : > { %v4396_v27 = vsel %vm4332_vm7, 1.0, %v6344_v46  ;;  %v3944_v19 = vsel %vm3811_vm6, %v3747_v14, %v3880_v5  ;;  %v7781_v52 = vadd.f32 %v7606_v54, %v8223_v15  ;;  %v3410_v43 = vadd.f32 %v7383_v38, %v7600_v11 }
 0x2d1   : > { %v4207_v18 = vadd.f32 %v7739_v29, %v4138_v44  ;;  %v4136_v1 = vmul.f32 %v7724_v20, %v4067_v2  ;;  %v4072_v17 = vadd.f32 %v4008_v51, %v3944_v19  ;;  %v3745_v45 = vadd.f32 %v7701_v8, %v3399_v33 }
 0x2d2   : > { %v3748_v42 = vadd.f32 %v7701_v8, %v3410_v43  ;;  %v3402_v62 = vadd.f32 %v7329_v21, %v7608_v58  ;;  %v7793_v54 = vadd.f32 %v7636_v41, %v8224_v13  ;;  %v3423_v38 = vadd.f32 %v7460_v57, %v7632_v26  ;;  %v7797_v11 = vpop.f32.mrb[180].mxu1  ;;  %v7802_v47 = vpop.f32.mrb[116].mxu0  ;;  %v4009_v26 = vld [vmem:[%s7231_s17 + $0x138] sm:$0xff] }
 0x2d3   : > { %4271 = vst [vmem:[%s7277_s13 + $0x118] sm:$0xff] %v4207_v18  ;;  %vm4335_vm8 = vcmp.ge.f32.partialorder %v4207_v18, 0.0  ;;  %v4205_v14 = vadd.f32 %v7739_v29, %v4136_v1  ;;  %v4141_v24 = vmul.f32 %v7724_v20, %v4072_v17  ;;  %vm3809_vm9 = vcmp.ge.f32.partialorder %v3745_v45, 0.0  ;;  %v7804_v21 = vpop.f32.mrb[181].mxu1  ;;  %v3199_v22 = vpop.f32.mrb[117].mxu0 }
 0x2d4   : > { %v4399_v58 = vsel %vm4335_vm8, 1.0, %v6344_v46  ;;  %v3878_v41 = vmul.f32 %v7694_v61, %v3745_v45  ;;  %vm3812_vm10 = vcmp.ge.f32.partialorder %v3748_v42, 0.0  ;;  %v3881_v57 = vmul.f32 %v7694_v61, %v3748_v42  ;;  %v7811_v0 = vpop.f32.mrb[182].mxu1  ;;  %v7816_v44 = vpop.f32.mrb[118].mxu0 }
 0x2d5   : > { %v5412_v5 = vpack.c.bf16 %v4399_v58, %v4398_v4  ;;  %4269 = vst [vmem:[%s7277_s13 + $0x108] sm:$0xff] %v4205_v14  ;;  %vm4333_vm11 = vcmp.ge.f32.partialorder %v4205_v14, 0.0  ;;  %v4210_v51 = vadd.f32 %v7739_v29, %v4141_v24  ;;  %v3746_v9 = vadd.f32 %v7701_v8, %v3402_v62  ;;  %v7818_v2 = vpop.f32.mrb[183].mxu1  ;;  %v3202_v4 = vpop.f32.mrb[119].mxu0  ;;  %v4007_v14 = vld [vmem:[%s7231_s17 + $0x128] sm:$0xff]  ;;  %v4012_v24 = vld [vmem:[%s7231_s17 + $0x150] sm:$0xff] }
 0x2d6   : > { %v4397_v33 = vsel %vm4333_vm11, 1.0, %v6344_v46  ;;  %v3942_v19 = vsel %vm3809_vm9, %v3745_v45, %v3878_v41  ;;  %v3945_v15 = vsel %vm3812_vm10, %v3748_v42, %v3881_v57  ;;  %v3751_v43 = vadd.f32 %v7701_v8, %v3423_v38  ;;  %v8225_v41 = vld [vmem:[#allocation12_spill] sm:$0xff] }
 0x2d7   : > { %5472 = vst [vmem:[%s7319_s16 + $0x88] sm:$0xff] %v5412_v5   ;;  %v5409_v18 = vpack.c.bf16 %v4397_v33, %v4396_v27  ;;  %4274 = vst [vmem:[%s7277_s13 + $0x130] sm:$0xff] %v4210_v51  ;;  %vm4338_vm12 = vcmp.ge.f32.partialorder %v4210_v51, 0.0  ;;  %v4070_v1 = vadd.f32 %v4006_v12, %v3942_v19  ;;  %v4073_v17 = vadd.f32 %v4009_v26, %v3945_v15 }
 0x2d8   : > { %v4402_v62 = vsel %vm4338_vm12, 1.0, %v6344_v46  ;;  %vm3810_vm13 = vcmp.ge.f32.partialorder %v3746_v9, 0.0  ;;  %v3879_v13 = vmul.f32 %v7694_v61, %v3746_v9  ;;  %vm3815_vm14 = vcmp.ge.f32.partialorder %v3751_v43, 0.0 }
 0x2d9   : > { %5471 = vst [vmem:[%s7319_s16 + $0x80] sm:$0xff] %v5409_v18   ;;  %v4139_v45 = vmul.f32 %v7724_v20, %v4070_v1  ;;  %v4142_v42 = vmul.f32 %v7724_v20, %v4073_v17  ;;  %v3884_v38 = vmul.f32 %v7694_v61, %v3751_v43  ;;  %v3415_v27 = vadd.f32 %v7404_v63, %v7638_v32 }
 0x2da   : > { %v3943_v58 = vsel %vm3810_vm13, %v3746_v9, %v3879_v13  ;;  %v7837_v12 = vadd.f32 %v7655_v60, %v8225_v41  ;;  %v3426_v57 = vadd.f32 %v7487_v10, %v7644_v50  ;;  %v3418_v26 = vadd.f32 %v7428_v53, %v7657_v16  ;;  %v7843_v22 = vpop.f32.mrb[184].mxu1  ;;  %v7847_v9 = vpop.f32.mrb[120].mxu0  ;;  %v4013_v41 = vld [vmem:[%s7231_s17 + $0x158] sm:$0xff] }
 0x2db   : > { %v4208_v5 = vadd.f32 %v7739_v29, %v4139_v45  ;;  %v4211_v51 = vadd.f32 %v7739_v29, %v4142_v42  ;;  %v4071_v63 = vadd.f32 %v4007_v14, %v3943_v58  ;;  %v3948_v32 = vsel %vm3815_vm14, %v3751_v43, %v3884_v38  ;;  %v7849_v60 = vpop.f32.mrb[185].mxu1  ;;  %v3207_v50 = vpop.f32.mrb[121].mxu0  ;;  %v8226_v43 = vld [vmem:[#allocation13_spill] sm:$0xff] }
 0x2dc   : > { %v4076_v33 = vadd.f32 %v4012_v24, %v3948_v32  ;;  %v3749_v19 = vadd.f32 %v7701_v8, %v3415_v27  ;;  %v3752_v10 = vadd.f32 %v7701_v8, %v3426_v57  ;;  %v3750_v53 = vadd.f32 %v7701_v8, %v3418_v26  ;;  %v7854_v16 = vpop.f32.mrb[186].mxu1  ;;  %v7863_v18 = vpop.f32.mrb[122].mxu0  ;;  %v4010_v24 = vld [vmem:[%s7231_s17 + $0x140] sm:$0xff] }
 0x2dd   : > { %4272 = vst [vmem:[%s7277_s13 + $0x120] sm:$0xff] %v4208_v5  ;;  %vm4336_vm15 = vcmp.ge.f32.partialorder %v4208_v5, 0.0  ;;  %4275 = vst [vmem:[%s7277_s13 + $0x138] sm:$0xff] %v4211_v51  ;;  %vm4339_vm0 = vcmp.ge.f32.partialorder %v4211_v51, 0.0  ;;  %v4140_v15 = vmul.f32 %v7724_v20, %v4071_v63  ;;  %v7861_v4 = vadd.f32 %v7687_v35, %v8226_v43  ;;  %v7865_v1 = vpop.f32.mrb[187].mxu1  ;;  %v3210_v45 = vpop.f32.mrb[123].mxu0 }
 0x2de   : > { %v4400_v17 = vsel %vm4336_vm15, 1.0, %v6344_v46  ;;  %v4403_v13 = vsel %vm4339_vm0, 1.0, %v6344_v46  ;;  %v4145_v14 = vmul.f32 %v7724_v20, %v4076_v33  ;;  %vm3813_vm1 = vcmp.ge.f32.partialorder %v3749_v19, 0.0 }
 0x2df   : > { %v5418_v42 = vpack.c.bf16 %v4403_v13, %v4402_v62  ;;  %v4209_v38 = vadd.f32 %v7739_v29, %v4140_v15  ;;  %v3882_v35 = vmul.f32 %v7694_v61, %v3749_v19  ;;  %vm3816_vm2 = vcmp.ge.f32.partialorder %v3752_v10, 0.0  ;;  %v4011_v62 = vld [vmem:[%s7231_s17 + $0x148] sm:$0xff] }
 0x2e0   : > { %v4214_v27 = vadd.f32 %v7739_v29, %v4145_v14  ;;  %v3885_v58 = vmul.f32 %v7694_v61, %v3752_v10  ;;  %vm3814_vm3 = vcmp.ge.f32.partialorder %v3750_v53, 0.0  ;;  %v3883_v57 = vmul.f32 %v7694_v61, %v3750_v53 }
 0x2e1   : > { %5474 = vst [vmem:[%s7319_s16 + $0x98] sm:$0xff] %v5418_v42   ;;  %4273 = vst [vmem:[%s7277_s13 + $0x128] sm:$0xff] %v4209_v38  ;;  %vm4337_vm4 = vcmp.ge.f32.partialorder %v4209_v38, 0.0  ;;  %v3946_v26 = vsel %vm3813_vm1, %v3749_v19, %v3882_v35  ;;  %v3439_v5 = vadd.f32 %v7588_v56, %v7681_v55  ;;  %v3431_v51 = vadd.f32 %v7525_v48, %v7689_v36 }
 0x2e2   : > { %v4401_v63 = vsel %vm4337_vm4, 1.0, %v6344_v46  ;;  %4278 = vst [vmem:[%s7277_s13 + $0x150] sm:$0xff] %v4214_v27  ;;  %vm4342_vm5 = vcmp.ge.f32.partialorder %v4214_v27, 0.0  ;;  %v4074_v32 = vadd.f32 %v4010_v24, %v3946_v26  ;;  %v3949_v33 = vsel %vm3816_vm2, %v3752_v10, %v3885_v58  ;;  %v7887_v50 = vpop.f32.mrb[188].mxu1  ;;  %v7891_v56 = vpop.f32.mrb[124].mxu0  ;;  %v4016_v26 = vld [vmem:[%s7231_s17 + $0x170] sm:$0xff] }
 0x2e3   : > { %v5415_v15 = vpack.c.bf16 %v4401_v63, %v4400_v17  ;;  %v4406_v19 = vsel %vm4342_vm5, 1.0, %v6344_v46  ;;  %v4077_v43 = vadd.f32 %v4013_v41, %v3949_v33  ;;  %v3947_v13 = vsel %vm3814_vm3, %v3750_v53, %v3883_v57  ;;  %v7893_v55 = vpop.f32.mrb[189].mxu1  ;;  %v3215_v45 = vpop.f32.mrb[125].mxu0  ;;  %v8227_v53 = vld [vmem:[#allocation14_spill] sm:$0xff] }
 0x2e4   : > { %v4143_v48 = vmul.f32 %v7724_v20, %v4074_v32  ;;  %v4075_v36 = vadd.f32 %v4011_v62, %v3947_v13  ;;  %v3755_v14 = vadd.f32 %v7701_v8, %v3439_v5  ;;  %v3753_v10 = vadd.f32 %v7701_v8, %v3431_v51  ;;  %v7898_v42 = vpop.f32.mrb[190].mxu1  ;;  %v7910_v27 = vpop.f32.mrb[126].mxu0 }
 0x2e5   : > { %5473 = vst [vmem:[%s7319_s16 + $0x90] sm:$0xff] %v5415_v15   ;;  %v4146_v17 = vmul.f32 %v7724_v20, %v4077_v43  ;;  %v7904_v38 = vadd.f32 %v7712_v6, %v8227_v53  ;;  %v3442_v35 = vadd.f32 %v7628_v39, %v7706_v34  ;;  %v3434_v24 = vadd.f32 %v7553_v3, %v7714_v25  ;;  %v7912_v58 = vpop.f32.mrb[191].mxu1  ;;  %v3218_v62 = vpop.f32.mrb[127].mxu0  ;;  %v4014_v39 = vld [vmem:[%s7231_s17 + $0x160] sm:$0xff] }
 0x2e6   : > { %v4212_v41 = vadd.f32 %v7739_v29, %v4143_v48  ;;  %v4144_v57 = vmul.f32 %v7724_v20, %v4075_v36  ;;  %vm3819_vm6 = vcmp.ge.f32.partialorder %v3755_v14, 0.0  ;;  %v3888_v6 = vmul.f32 %v7694_v61, %v3755_v14 }
 0x2e7   : > { %v4215_v5 = vadd.f32 %v7739_v29, %v4146_v17  ;;  %vm3817_vm7 = vcmp.ge.f32.partialorder %v3753_v10, 0.0  ;;  %v3886_v3 = vmul.f32 %v7694_v61, %v3753_v10  ;;  %v3756_v34 = vadd.f32 %v7701_v8, %v3442_v35  ;;  %v4017_v17 = vld [vmem:[%s7231_s17 + $0x178] sm:$0xff] }
 0x2e8   : > { %4276 = vst [vmem:[%s7277_s13 + $0x140] sm:$0xff] %v4212_v41  ;;  %vm4340_vm8 = vcmp.ge.f32.partialorder %v4212_v41, 0.0  ;;  %v4213_v25 = vadd.f32 %v7739_v29, %v4144_v57  ;;  %v3952_v51 = vsel %vm3819_vm6, %v3755_v14, %v3888_v6  ;;  %v3754_v63 = vadd.f32 %v7701_v8, %v3434_v24  ;;  %v4015_v24 = vld [vmem:[%s7231_s17 + $0x168] sm:$0xff] }
 0x2e9   : > { %v4404_v32 = vsel %vm4340_vm8, 1.0, %v6344_v46  ;;  %4279 = vst [vmem:[%s7277_s13 + $0x158] sm:$0xff] %v4215_v5  ;;  %vm4343_vm9 = vcmp.ge.f32.partialorder %v4215_v5, 0.0  ;;  %v4080_v33 = vadd.f32 %v4016_v26, %v3952_v51  ;;  %v3950_v15 = vsel %vm3817_vm7, %v3753_v10, %v3886_v3  ;;  %v8228_v57 = vld [vmem:[#allocation15_spill] sm:$0xff] }
 0x2ea   : > { %v4407_v43 = vsel %vm4343_vm9, 1.0, %v6344_v46  ;;  %4277 = vst [vmem:[%s7277_s13 + $0x148] sm:$0xff] %v4213_v25  ;;  %vm4341_vm10 = vcmp.ge.f32.partialorder %v4213_v25, 0.0  ;;  %v4078_v13 = vadd.f32 %v4014_v39, %v3950_v15  ;;  %vm3820_vm11 = vcmp.ge.f32.partialorder %v3756_v34, 0.0 }
 0x2eb   : > { %v5424_v48 = vpack.c.bf16 %v4407_v43, %v4406_v19  ;;  %v4405_v36 = vsel %vm4341_vm10, 1.0, %v6344_v46  ;;  %v4149_v14 = vmul.f32 %v7724_v20, %v4080_v33  ;;  %v3889_v45 = vmul.f32 %v7694_v61, %v3756_v34  ;;  %v4020_v33 = vld [vmem:[%s7231_s17 + $0x190] sm:$0xff]  ;;  %v4018_v43 = vld [vmem:[%s7231_s17 + $0x180] sm:$0xff] }
 0x2ec   : > { %v5421_v53 = vpack.c.bf16 %v4405_v36, %v4404_v32  ;;  %v4147_v10 = vmul.f32 %v7724_v20, %v4078_v13  ;;  %vm3818_vm12 = vcmp.ge.f32.partialorder %v3754_v63, 0.0  ;;  %v3887_v35 = vmul.f32 %v7694_v61, %v3754_v63 }
 0x2ed   : > { %5476 = vst [vmem:[%s7319_s16 + $0xa8] sm:$0xff] %v5424_v48   ;;  %v4218_v41 = vadd.f32 %v7739_v29, %v4149_v14  ;;  %v3953_v19 = vsel %vm3820_vm11, %v3756_v34, %v3889_v45  ;;  %v7940_v6 = vadd.f32 %v7752_v40, %v8228_v57  ;;  %v3455_v26 = vadd.f32 %v7731_v23, %v7746_v7  ;;  %v8229_v40 = vld [vmem:[#allocation16_spill] sm:$0xff]  ;;  %v8230_v45 = vld [vmem:[#allocation17_spill] sm:$0xff] }
 0x2ee   : > { %5475 = vst [vmem:[%s7319_s16 + $0xa0] sm:$0xff] %v5421_v53   ;;  %v4216_v62 = vadd.f32 %v7739_v29, %v4147_v10  ;;  %v4081_v5 = vadd.f32 %v4017_v17, %v3953_v19  ;;  %v3951_v3 = vsel %vm3818_vm12, %v3754_v63, %v3887_v35  ;;  %v3447_v39 = vadd.f32 %v7651_v49, %v7754_v30 }
 0x2ef   : > { %4282 = vst [vmem:[%s7277_s13 + $0x170] sm:$0xff] %v4218_v41  ;;  %vm4346_vm13 = vcmp.ge.f32.partialorder %v4218_v41, 0.0  ;;  %v4079_v25 = vadd.f32 %v4015_v24, %v3951_v3  ;;  %v3759_v34 = vadd.f32 %v7701_v8, %v3455_v26  ;;  %v7952_v51 = vadd.f32 %v7765_v37, %v8229_v40  ;;  %v4021_v26 = vld [vmem:[%s7231_s17 + $0x198] sm:$0xff]  ;;  %v4019_v3 = vld [vmem:[%s7231_s17 + $0x188] sm:$0xff] }
 0x2f0   : > { %v4410_v23 = vsel %vm4346_vm13, 1.0, %v6344_v46  ;;  %4280 = vst [vmem:[%s7277_s13 + $0x160] sm:$0xff] %v4216_v62  ;;  %vm4344_vm14 = vcmp.ge.f32.partialorder %v4216_v62, 0.0  ;;  %v4150_v7 = vmul.f32 %v7724_v20, %v4081_v5  ;;  %v3757_v63 = vadd.f32 %v7701_v8, %v3447_v39 }
 0x2f1   : > { %v4408_v49 = vsel %vm4344_vm14, 1.0, %v6344_v46  ;;  %v4148_v30 = vmul.f32 %v7724_v20, %v4079_v25  ;;  %vm3823_vm15 = vcmp.ge.f32.partialorder %v3759_v34, 0.0  ;;  %v3892_v32 = vmul.f32 %v7694_v61, %v3759_v34 }
 0x2f2   : > { %v4219_v37 = vadd.f32 %v7739_v29, %v4150_v7  ;;  %vm3821_vm0 = vcmp.ge.f32.partialorder %v3757_v63, 0.0  ;;  %v3890_v15 = vmul.f32 %v7694_v61, %v3757_v63  ;;  %v3458_v13 = vadd.f32 %v7781_v52, %v7760_v28 }
 0x2f3   : > { %v4217_v48 = vadd.f32 %v7739_v29, %v4148_v30  ;;  %v3956_v36 = vsel %vm3823_vm15, %v3759_v34, %v3892_v32  ;;  %v3450_v14 = vadd.f32 %v7675_v31, %v7767_v59  ;;  %v7972_v17 = vadd.f32 %v7802_v47, %v8230_v45 }
 0x2f4   : > { %4283 = vst [vmem:[%s7277_s13 + $0x178] sm:$0xff] %v4219_v37  ;;  %vm4347_vm1 = vcmp.ge.f32.partialorder %v4219_v37, 0.0  ;;  %v4084_v53 = vadd.f32 %v4020_v33, %v3956_v36  ;;  %v3954_v10 = vsel %vm3821_vm0, %v3757_v63, %v3890_v15  ;;  %v3760_v35 = vadd.f32 %v7701_v8, %v3458_v13  ;;  %v4022_v15 = vld [vmem:[%s7231_s17 + $0x1a0] sm:$0xff] }
 0x2f5   : > { %v4411_v28 = vsel %vm4347_vm1, 1.0, %v6344_v46  ;;  %4281 = vst [vmem:[%s7277_s13 + $0x168] sm:$0xff] %v4217_v48  ;;  %vm4345_vm2 = vcmp.ge.f32.partialorder %v4217_v48, 0.0  ;;  %v4082_v52 = vadd.f32 %v4018_v43, %v3954_v10  ;;  %v3758_v31 = vadd.f32 %v7701_v8, %v3450_v14  ;;  %v8232_v14 = vld [vmem:[#allocation19_spill] sm:$0xff] }
 0x2f6   : > { %v5430_v59 = vpack.c.bf16 %v4411_v28, %v4410_v23  ;;  %v4409_v47 = vsel %vm4345_vm2, 1.0, %v6344_v46  ;;  %v4153_v24 = vmul.f32 %v7724_v20, %v4084_v53  ;;  %vm3824_vm3 = vcmp.ge.f32.partialorder %v3760_v35, 0.0  ;;  %v8231_v23 = vld [vmem:[#allocation18_spill] sm:$0xff] }
 0x2f7   : > { %v5427_v41 = vpack.c.bf16 %v4409_v47, %v4408_v49  ;;  %v4151_v19 = vmul.f32 %v7724_v20, %v4082_v52  ;;  %v3893_v57 = vmul.f32 %v7694_v61, %v3760_v35  ;;  %vm3822_vm4 = vcmp.ge.f32.partialorder %v3758_v31, 0.0 }
 0x2f8   : > { %5478 = vst [vmem:[%s7319_s16 + $0xb8] sm:$0xff] %v5430_v59   ;;  %v4222_v62 = vadd.f32 %v7739_v29, %v4153_v24  ;;  %v3891_v5 = vmul.f32 %v7694_v61, %v3758_v31  ;;  %v3471_v39 = vadd.f32 %v7861_v4, %v7797_v11  ;;  %v3463_v25 = vadd.f32 %v7793_v54, %v7804_v21 }
 0x2f9   : > { %5477 = vst [vmem:[%s7319_s16 + $0xb0] sm:$0xff] %v5427_v41   ;;  %v4220_v34 = vadd.f32 %v7739_v29, %v4151_v19  ;;  %v3957_v40 = vsel %vm3824_vm3, %v3760_v35, %v3893_v57  ;;  %v5692_v7 = vadd.f32 %v7816_v44, %v8231_v23  ;;  %v3474_v63 = vadd.f32 %v7904_v38, %v7811_v0  ;;  %v4024_v38 = vld [vmem:[%s7231_s17 + $0x1b0] sm:$0xff] }
 0x2fa   : > { %4286 = vst [vmem:[%s7277_s13 + $0x190] sm:$0xff] %v4222_v62  ;;  %vm4350_vm5 = vcmp.ge.f32.partialorder %v4222_v62, 0.0  ;;  %v4085_v49 = vadd.f32 %v4021_v26, %v3957_v40  ;;  %v3955_v30 = vsel %vm3822_vm4, %v3758_v31, %v3891_v5  ;;  %v3763_v11 = vadd.f32 %v7701_v8, %v3471_v39  ;;  %v4025_v31 = vld [vmem:[%s7231_s17 + $0x1b8] sm:$0xff]  ;;  %v4023_v39 = vld [vmem:[%s7231_s17 + $0x1a8] sm:$0xff] }
 0x2fb   : > { %v4414_v54 = vsel %vm4350_vm5, 1.0, %v6344_v46  ;;  %4284 = vst [vmem:[%s7277_s13 + $0x180] sm:$0xff] %v4220_v34  ;;  %vm4348_vm6 = vcmp.ge.f32.partialorder %v4220_v34, 0.0  ;;  %v4083_v21 = vadd.f32 %v4019_v3, %v3955_v30  ;;  %v3761_v4 = vadd.f32 %v7701_v8, %v3463_v25  ;;  %v8233_v34 = vld [vmem:[#allocation20_spill] sm:$0xff] }
 0x2fc   : > { %v4412_v44 = vsel %vm4348_vm6, 1.0, %v6344_v46  ;;  %v4154_v32 = vmul.f32 %v7724_v20, %v4085_v49  ;;  %vm3827_vm7 = vcmp.ge.f32.partialorder %v3763_v11, 0.0  ;;  %v3896_v0 = vmul.f32 %v7694_v61, %v3763_v11 }
 0x2fd   : > { %v4152_v33 = vmul.f32 %v7724_v20, %v4083_v21  ;;  %vm3825_vm8 = vcmp.ge.f32.partialorder %v3761_v4, 0.0  ;;  %v3894_v37 = vmul.f32 %v7694_v61, %v3761_v4  ;;  %v3764_v43 = vadd.f32 %v7701_v8, %v3474_v63  ;;  %v8234_v21 = vld [vmem:[#allocation22_spill] sm:$0xff] }
 0x2fe   : > { %v4223_v13 = vadd.f32 %v7739_v29, %v4154_v32  ;;  %v3960_v48 = vsel %vm3827_vm7, %v3763_v11, %v3896_v0  ;;  %v3466_v36 = vadd.f32 %v7837_v12, %v7818_v2  ;;  %v5693_v45 = vadd.f32 %v7847_v9, %v8232_v14 }
 0x2ff   : > { %v4221_v53 = vadd.f32 %v7739_v29, %v4152_v33  ;;  %v4088_v10 = vadd.f32 %v4024_v38, %v3960_v48  ;;  %v3958_v35 = vsel %vm3825_vm8, %v3761_v4, %v3894_v37  ;;  %vm3828_vm9 = vcmp.ge.f32.partialorder %v3764_v43, 0.0 }
 0x300   : > { %4287 = vst [vmem:[%s7277_s13 + $0x198] sm:$0xff] %v4223_v13  ;;  %vm4351_vm10 = vcmp.ge.f32.partialorder %v4223_v13, 0.0  ;;  %v4086_v28 = vadd.f32 %v4022_v15, %v3958_v35  ;;  %v3897_v52 = vmul.f32 %v7694_v61, %v3764_v43  ;;  %v3762_v59 = vadd.f32 %v7701_v8, %v3466_v36 }
 0x301   : > { %v4415_v47 = vsel %vm4351_vm10, 1.0, %v6344_v46  ;;  %4285 = vst [vmem:[%s7277_s13 + $0x188] sm:$0xff] %v4221_v53  ;;  %vm4349_vm11 = vcmp.ge.f32.partialorder %v4221_v53, 0.0  ;;  %v4157_v2 = vmul.f32 %v7724_v20, %v4088_v10  ;;  %v3487_v12 = vadd.f32 %v7972_v17, %v7843_v22 }
 0x302   : > { %v5436_v9 = vpack.c.bf16 %v4415_v47, %v4414_v54  ;;  %v4413_v24 = vsel %vm4349_vm11, 1.0, %v6344_v46  ;;  %v4155_v41 = vmul.f32 %v7724_v20, %v4086_v28  ;;  %v3961_v19 = vsel %vm3828_vm9, %v3764_v43, %v3897_v52  ;;  %v4029_v43 = vld [vmem:[%s7231_s17 + $0x1d8] sm:$0xff] }
 0x303   : > { %v5433_v57 = vpack.c.bf16 %v4413_v24, %v4412_v44  ;;  %v4226_v26 = vadd.f32 %v7739_v29, %v4157_v2  ;;  %v4089_v62 = vadd.f32 %v4025_v31, %v3961_v19  ;;  %vm3826_vm12 = vcmp.ge.f32.partialorder %v3762_v59, 0.0 }
 0x304   : > { %5480 = vst [vmem:[%s7319_s16 + $0xc8] sm:$0xff] %v5436_v9   ;;  %v4224_v5 = vadd.f32 %v7739_v29, %v4155_v41  ;;  %v3895_v3 = vmul.f32 %v7694_v61, %v3762_v59  ;;  %v3767_v22 = vadd.f32 %v7701_v8, %v3487_v12  ;;  %v3479_v17 = vadd.f32 %v7940_v6, %v7849_v60  ;;  %v4030_v9 = vld [vmem:[%s7231_s17 + $0x1e0] sm:$0xff] }
 0x305   : > { %5479 = vst [vmem:[%s7319_s16 + $0xc0] sm:$0xff] %v5433_v57   ;;  %4290 = vst [vmem:[%s7277_s13 + $0x1b0] sm:$0xff] %v4226_v26  ;;  %vm4354_vm13 = vcmp.ge.f32.partialorder %v4226_v26, 0.0  ;;  %v4158_v25 = vmul.f32 %v7724_v20, %v4089_v62  ;;  %v8041_v40 = vadd.f32 %v7863_v18, %v8233_v34  ;;  %v3490_v23 = vadd.f32 %v5692_v7, %v7854_v16  ;;  %v4028_v18 = vld [vmem:[%s7231_s17 + $0x1d0] sm:$0xff] }
 0x306   : > { %v4418_v63 = vsel %vm4354_vm13, 1.0, %v6344_v46  ;;  %4288 = vst [vmem:[%s7277_s13 + $0x1a0] sm:$0xff] %v4224_v5  ;;  %vm4352_vm14 = vcmp.ge.f32.partialorder %v4224_v5, 0.0  ;;  %v3959_v49 = vsel %vm3826_vm12, %v3762_v59, %v3895_v3  ;;  %vm3831_vm15 = vcmp.ge.f32.partialorder %v3767_v22, 0.0  ;;  %v4027_v59 = vld [vmem:[%s7231_s17 + $0x1c8] sm:$0xff]  ;;  %v4032_v62 = vld [vmem:[%s7231_s17 + $0x1f0] sm:$0xff] }
 0x307   : > { %v4416_v60 = vsel %vm4352_vm14, 1.0, %v6344_v46  ;;  %v4227_v6 = vadd.f32 %v7739_v29, %v4158_v25  ;;  %v4087_v30 = vadd.f32 %v4023_v39, %v3959_v49  ;;  %v3900_v11 = vmul.f32 %v7694_v61, %v3767_v22  ;;  %v8235_v39 = vld [vmem:[#allocation23_spill] sm:$0xff] }
 0x308   : > { %v3765_v54 = vadd.f32 %v7701_v8, %v3479_v17  ;;  %v3768_v16 = vadd.f32 %v7701_v8, %v3490_v23  ;;  %v3482_v7 = vadd.f32 %v7952_v51, %v7865_v1  ;;  %v5695_v4 = vadd.f32 %v7891_v56, %v8234_v21  ;;  %v4026_v1 = vld [vmem:[%s7231_s17 + $0x1c0] sm:$0xff] }
 0x309   : > { %4291 = vst [vmem:[%s7277_s13 + $0x1b8] sm:$0xff] %v4227_v6  ;;  %vm4355_vm0 = vcmp.ge.f32.partialorder %v4227_v6, 0.0  ;;  %v4156_v44 = vmul.f32 %v7724_v20, %v4087_v30  ;;  %v3964_v32 = vsel %vm3831_vm15, %v3767_v22, %v3900_v11  ;;  %v3495_v0 = vadd.f32 %v5693_v45, %v7893_v55 }
 0x30a   : > { %v4419_v38 = vsel %vm4355_vm0, 1.0, %v6344_v46  ;;  %v4092_v33 = vadd.f32 %v4028_v18, %v3964_v32  ;;  %vm3829_vm1 = vcmp.ge.f32.partialorder %v3765_v54, 0.0  ;;  %v3898_v37 = vmul.f32 %v7694_v61, %v3765_v54 }
 0x30b   : > { %v5442_v51 = vpack.c.bf16 %v4419_v38, %v4418_v63  ;;  %v4225_v15 = vadd.f32 %v7739_v29, %v4156_v44  ;;  %vm3832_vm2 = vcmp.ge.f32.partialorder %v3768_v16, 0.0  ;;  %v3901_v56 = vmul.f32 %v7694_v61, %v3768_v16  ;;  %v4033_v44 = vld [vmem:[%s7231_s17 + $0x1f8] sm:$0xff] }
 0x30c   : > { %v4161_v13 = vmul.f32 %v7724_v20, %v4092_v33  ;;  %v3962_v48 = vsel %vm3829_vm1, %v3765_v54, %v3898_v37  ;;  %v3766_v55 = vadd.f32 %v7701_v8, %v3482_v7  ;;  %v3503_v36 = vadd.f32 %v5695_v4, %v7887_v50  ;;  %v4031_v54 = vld [vmem:[%s7231_s17 + $0x1e8] sm:$0xff]  ;;  %s5359_s17 = sshll.u32 %s6333_s21, 12  ;;  %s8138_s21 = scalar_lea.sflag [#allocation4], %s281_s9 }
 0x30d   : > { %5482 = vst [vmem:[%s7319_s16 + $0xd8] sm:$0xff] %v5442_v51   ;;  %4289 = vst [vmem:[%s7277_s13 + $0x1a8] sm:$0xff] %v4225_v15  ;;  %vm4353_vm3 = vcmp.ge.f32.partialorder %v4225_v15, 0.0  ;;  %v4090_v14 = vadd.f32 %v4026_v1, %v3962_v48  ;;  %v3965_v45 = vsel %vm3832_vm2, %v3768_v16, %v3901_v56  ;;  %v3769_v53 = vadd.f32 %v7701_v8, %v3495_v0  ;;  %s8130_s14 = scalar_lea.hbm %s8189_s5, %s5359_s17 }
 0x30e   : > { %v4417_v10 = vsel %vm4353_vm3, 1.0, %v6344_v46  ;;  %v4230_v35 = vadd.f32 %v7739_v29, %v4161_v13  ;;  %v4093_v28 = vadd.f32 %v4029_v43, %v3965_v45  ;;  %vm3830_vm4 = vcmp.ge.f32.partialorder %v3766_v55, 0.0 }
 0x30f   : > { %v5439_v52 = vpack.c.bf16 %v4417_v10, %v4416_v60  ;;  %v4159_v31 = vmul.f32 %v7724_v20, %v4090_v14  ;;  %v3899_v50 = vmul.f32 %v7694_v61, %v3766_v55  ;;  %v3771_v47 = vadd.f32 %v7701_v8, %v3503_v36 }
 0x310   : > { %4294 = vst [vmem:[%s7277_s13 + $0x1d0] sm:$0xff] %v4230_v35  ;;  %v4162_v2 = vmul.f32 %v7724_v20, %v4093_v28  ;;  %vm3833_vm5 = vcmp.ge.f32.partialorder %v3769_v53, 0.0  ;;  %v3902_v12 = vmul.f32 %v7694_v61, %v3769_v53  ;;  %vm4358_vm6 = vcmp.ge.f32.partialorder %v4230_v35, 0.0 }
 0x311   : > { %5481 = vst [vmem:[%s7319_s16 + $0xd0] sm:$0xff] %v5439_v52   ;;  %v4228_v24 = vadd.f32 %v7739_v29, %v4159_v31  ;;  %v3963_v41 = vsel %vm3830_vm4, %v3766_v55, %v3899_v50  ;;  %vm3835_vm7 = vcmp.ge.f32.partialorder %v3771_v47, 0.0  ;;  %v3904_v26 = vmul.f32 %v7694_v61, %v3771_v47 }
 0x312   : > { %v4231_v19 = vadd.f32 %v7739_v29, %v4162_v2  ;;  %v4091_v57 = vadd.f32 %v4027_v59, %v3963_v41  ;;  %v3966_v5 = vsel %vm3833_vm5, %v3769_v53, %v3902_v12  ;;  %v5696_v22 = vadd.f32 %v7910_v27, %v8235_v39 }
 0x313   : > { %4292 = vst [vmem:[%s7277_s13 + $0x1c0] sm:$0xff] %v4228_v24  ;;  %v4094_v3 = vadd.f32 %v4030_v9, %v3966_v5  ;;  %v3498_v17 = vadd.f32 %v8041_v40, %v7912_v58  ;;  %v4422_v25 = vsel %vm4358_vm6, 1.0, %v6344_v46  ;;  %v3968_v23 = vsel %vm3835_vm7, %v3771_v47, %v3904_v26 }
 0x314   : > { %4295 = vst [vmem:[%s7277_s13 + $0x1d8] sm:$0xff] %v4231_v19  ;;  %vm4359_vm8 = vcmp.ge.f32.partialorder %v4231_v19, 0.0  ;;  %v4160_v34 = vmul.f32 %v7724_v20, %v4091_v57  ;;  %v4096_v49 = vadd.f32 %v4032_v62, %v3968_v23  ;;  %v3506_v27 = vadd.f32 %v5696_v22, %v7898_v42 }
 0x315   : > { %v4423_v63 = vsel %vm4359_vm8, 1.0, %v6344_v46  ;;  %v4163_v60 = vmul.f32 %v7724_v20, %v4094_v3  ;;  %vm4356_vm9 = vcmp.ge.f32.partialorder %v4228_v24, 0.0  ;;  %v3770_v6 = vadd.f32 %v7701_v8, %v3498_v17 }
 0x316   : > { %v5448_v58 = vpack.c.bf16 %v4423_v63, %v4422_v25  ;;  %v4229_v40 = vadd.f32 %v7739_v29, %v4160_v34  ;;  %v4165_v30 = vmul.f32 %v7724_v20, %v4096_v49  ;;  %v3772_v18 = vadd.f32 %v7701_v8, %v3506_v27 }
 0x317   : > { %v4232_v11 = vadd.f32 %v7739_v29, %v4163_v60  ;;  %vm3834_vm11 = vcmp.ge.f32.partialorder %v3770_v6, 0.0  ;;  %v3903_v42 = vmul.f32 %v7694_v61, %v3770_v6  ;;  %v4420_v16 = vsel %vm4356_vm9, 1.0, %v6344_v46 }
 0x318   : > { %5484 = vst [vmem:[%s7319_s16 + $0xe8] sm:$0xff] %v5448_v58   ;;  %4293 = vst [vmem:[%s7277_s13 + $0x1c8] sm:$0xff] %v4229_v40  ;;  %vm4357_vm10 = vcmp.ge.f32.partialorder %v4229_v40, 0.0  ;;  %v4234_v21 = vadd.f32 %v7739_v29, %v4165_v30  ;;  %vm3836_vm12 = vcmp.ge.f32.partialorder %v3772_v18, 0.0  ;;  %v3905_v8 = vmul.f32 %v7694_v61, %v3772_v18 }
 0x319   : > { %v4421_v7 = vsel %vm4357_vm10, 1.0, %v6344_v46  ;;  %4296 = vst [vmem:[%s7277_s13 + $0x1e0] sm:$0xff] %v4232_v11  ;;  %v3967_v32 = vsel %vm3834_vm11, %v3770_v6, %v3903_v42  ;;  %vm4360_vm13 = vcmp.ge.f32.partialorder %v4232_v11, 0.0 }
 0x31a   : > { %v5445_v4 = vpack.c.bf16 %v4421_v7, %v4420_v16  ;;  %4298 = vst [vmem:[%s7277_s13 + $0x1f0] sm:$0xff] %v4234_v21  ;;  %v4095_v0 = vadd.f32 %v4031_v54, %v3967_v32  ;;  %v3969_v38 = vsel %vm3836_vm12, %v3772_v18, %v3905_v8  ;;  %vm4362_vm14 = vcmp.ge.f32.partialorder %v4234_v21, 0.0 }
 0x31b   : > { %v4097_v33 = vadd.f32 %v4033_v44, %v3969_v38  ;;  %v4424_v15 = vsel %vm4360_vm13, 1.0, %v6344_v46  ;;  %v4426_v43 = vsel %vm4362_vm14, 1.0, %v6344_v46 }
 0x31c   : > { %5483 = vst [vmem:[%s7319_s16 + $0xe0] sm:$0xff] %v5445_v4   ;;  %v4164_v37 = vmul.f32 %v7724_v20, %v4095_v0 }
 0x31d   : > { %v4166_v1 = vmul.f32 %v7724_v20, %v4097_v33 }
 0x31e   : > { %v4233_v51 = vadd.f32 %v7739_v29, %v4164_v37 }
 0x31f   : > { %v4235_v61 = vadd.f32 %v7739_v29, %v4166_v1 }
 0x320   : > { %4297 = vst [vmem:[%s7277_s13 + $0x1e8] sm:$0xff] %v4233_v51  ;;  %vm4361_vm15 = vcmp.ge.f32.partialorder %v4233_v51, 0.0 }
 0x321   : > { %v4425_v56 = vsel %vm4361_vm15, 1.0, %v6344_v46  ;;  %4299 = vst [vmem:[%s7277_s13 + $0x1f8] sm:$0xff] %v4235_v61  ;;  %vm4363_vm0 = vcmp.ge.f32.partialorder %v4235_v61, 0.0  ;;  %s6263_s13 = scalar_lea.vmem %s8132_s10, 4096 }
 0x322   : > { %v5451_v20 = vpack.c.bf16 %v4425_v56, %v4424_v15  ;;  %v4427_v13 = vsel %vm4363_vm0, 1.0, %v6344_v46  ;;  %p6264_p12 = scmp.ne.s32.totalorder %s8132_s10, %s6263_s13  ;;  %p6271_p2 = scmp.lt.s32.totalorder %s6269_s25, %s6263_s13 }
 0x323   : > { %v5454_v29 = vpack.c.bf16 %v4427_v13, %v4426_v43 }
 0x324   : > { %5485 = vst [vmem:[%s7319_s16 + $0xf0] sm:$0xff] %v5451_v20   ;;  %p6265_p13 = pnand %p6264_p12, %p6418_p4  ;;  %p6272_p3 = por %p6271_p2, %p6270_p1 }
 0x325   : > { %5486 = vst [vmem:[%s7319_s16 + $0xf8] sm:$0xff] %v5454_v29  }
 0x326   : > { %p6266_p0 = pneg %p6265_p13 }
 0x328   : > { %p6273_p5 = pnand %p6272_p3, %p6266_p0 }
 0x32a   : > { %6276 = shalt.err (!%p6273_p5)
}
 0x32b   : > { %s6277_s9 = scalar_lea.hbm %s8130_s14, 4096  ;;  %s6281_s29 = scalar_lea.hbm %s8189_s5, 16384 }
 0x32c   : > { %p6278_p6 = scmp.ne.s32.totalorder %s8130_s14, %s6277_s9  ;;  %p6282_p10 = scmp.lt.u32.totalorder %s8130_s14, %s8189_s5 }
 0x32d   : > { %p6283_p11 = scmp.lt.u32.totalorder %s6281_s29, %s6277_s9  ;;  %p6285_p13 = scmp.lt.u32.totalorder %s6277_s9, %s8130_s14 }
 0x32e   : > { %p6279_p7 = pnand %p6278_p6, %p6418_p4 }
 0x32f   : > { %p6284_p12 = por %p6283_p11, %p6282_p10 }
 0x330   : > { %p6280_p9 = pneg %p6279_p7 }
 0x331   : > { %p6286_p0 = por %p6285_p13, %p6284_p12 }
 0x333   : > { %p6287_p1 = pnand %p6286_p0, %p6280_p9 }
 0x335   : > { %6290 = shalt.err (!%p6287_p1)
}
 0x336   : > { %s6346_s17 = smov 64   ;;  %s6347_s11 = smov 4  }
 0x337   : > { %5826 = dma.vmem_to_hbm [thread:$0]  (%p6418_p4), %s8132_s10, 4096, %s8130_s14, %s8138_s21, %s6346_s17, %s6346_s17, %s6347_s11  }
 0x338 PF: > { %p5832_p2 = scmp.ge.s32.totalorder %s6341_s23, 2  ;;  %s4794_s12 = sand.u32 1, %s6321_s18  }
 0x339   : > { %s4795_s13 = scalar_lea.sflag [#allocation4], %s4794_s12 }
 0x33a   : > { %p5829_p3 = pnand %p5832_p2, %p6425_p8 }
 0x33c   : > { %6316 = dma.done.wait (!%p5829_p3), %s4795_s13, 4096  }
 0x33d   : > { %6318 = vsyncadd (!%p5829_p3), %s4795_s13, 4294963200  ;;  %s19_s23 = sadd.s32 1, %s6341_s23   ;;  %s8236_s18 = smov %s6325_s19 }
 0x33e   : > { %p16_p5 = scmp.ge.s32.totalorder %s19_s23, 6   ;;  %s8237_s19 = smov %s6329_s20 }
 0x33f   : > { %s8238_s20 = smov %s6431_s6  ;;  %s8239_s21 = smov %s6337_s22 }
 0x340   : > { %s8240_s22 = smov %s8242_s26  ;;  %18 = sbr.rel (!%p16_p5) target bundleno = 4 (0x4), region = 97 }
 0x347   :  { %4800 = vsyncpa [#allocation4], 1 }
 0x348   :  { %4802 = vsyncpa [#allocation4 + $0x1], 1 }

// kernel: resnet_forward.6
= control target key start
LH: loop header
LB: loop body
LE: loop exit
PB: predicated region body
PF: predicated region fallthrough
CT: control target
= control target key end

     0   :  { %s1970_s18 = smov 0   ;;  %s1972_s19 = smov 0   ;;  %s2386_s0 = inlined_call_operand.vmem [shape: bf16[512,144], index: 0, kind: input, shape index: {}]   ;;  %s2387_s1 = inlined_call_operand.vmem [shape: bf16[144,128], index: 1, kind: input, shape index: {}]   ;;  %s2388_s2 = inlined_call_operand.vmem [shape: f32[8,128], index: 2, kind: input, shape index: {}]   ;;  %s2389_s3 = inlined_call_operand.vmem [shape: f32[512,128], index: 3, kind: input, shape index: {}]   ;;  %s2390_s4 = inlined_call_operand.vmem [shape: f32[512,128], index: 4, kind: output, shape index: {0}]   ;;  %s2391_s5 = inlined_call_operand.vmem [shape: bf16[512,128], index: 5, kind: output, shape index: {1}]  }
   0x1   :  { %s1974_s20 = smov 0  }
   0x2 LB: > { %s28_s21 = sadd.s32 1, %s1932_s19  ;;  %p1612_p0 = scmp.ge.s32.totalorder %s1936_s20, 1  ;;  %s1936_s20 = sphi %s1974_s20, %s16_s20   ;;  %s1932_s19 = sphi %s1972_s19, %s2393_s19   ;;  %s1928_s18 = sphi %s1970_s18, %s2392_s18  }
   0x3   : > { %p30_p1 = scmp.ge.s32.totalorder %s28_s21, 2  ;;  %p233_p2 = scmp.lt.s32.totalorder %s1936_s20, 3 }
   0x5   : > { %s2395_s21 = smov (%p30_p1, %s28_s21), 0  ;;  %p234_p3 = pnand %p1612_p0, %p233_p2 }
   0x6   : > { %v1857_v0 = vld [vmem:[%s2387_s1] sm:$0xff] (!%p234_p3)   ;;  %v1938_v1 = vmov (!%p234_p3), 0   ;;  %s1613_s24 = sshll.u32 (!%p234_p3), %s1928_s18, 5  ;;  %v1858_v2 = vld [vmem:[%s2387_s1 + $0x8] sm:$0xff] (!%p234_p3)   ;;  %v1859_v3 = vld [vmem:[%s2387_s1 + $0x10] sm:$0xff] (!%p234_p3)   ;;  %vm634_vm0 = vcmask (!%p234_p3), 130048  }
   0x7   : > { %237 = sbr.rel (%p234_p3) target bundleno = 341 (0x155), region = 36  ;;  %683 = vmatprep.subr.bf16.mxu0 (!%p234_p3), %v1938_v1  ;;  %1813 = vmatprep.subr.bf16.mxu1 (!%p234_p3), %v1938_v1  ;;  %p283_p4 = scmp.lt.s32.totalorder (!%p234_p3), %s1613_s24, 63  ;;  %v1860_v4 = vld [vmem:[%s2387_s1 + $0x18] sm:$0xff] (!%p234_p3)   ;;  %v1861_v7 = vld [vmem:[%s2387_s1 + $0x20] sm:$0xff] (!%p234_p3)   ;;  %v1862_v8 = vld [vmem:[%s2387_s1 + $0x28] sm:$0xff] (!%p234_p3)  }
   0x8   : > { %684 = vmatpush1.bf16.msra.mxu0 (!%p234_p3), %v1857_v0  ;;  %1822 = vmatpush1.bf16.msra.mxu1 (!%p234_p3), %v1857_v0  ;;  %v1863_v9 = vld [vmem:[%s2387_s1 + $0x30] sm:$0xff] (!%p234_p3)   ;;  %v1864_v10 = vld [vmem:[%s2387_s1 + $0x38] sm:$0xff] (!%p234_p3)   ;;  %v1865_v11 = vld [vmem:[%s2387_s1 + $0x40] sm:$0xff] (!%p234_p3)  }
   0x9   : > { %685 = vmatprep.subr.bf16.mxu0 (!%p234_p3), %v1938_v1  ;;  %1814 = vmatprep.subr.bf16.mxu1 (!%p234_p3), %v1938_v1  ;;  %v2077_v42 = vld [vmem:[%s2388_s2] ss:$0 sm:$0xff] (!%p234_p3)  ;;  %v2088_v44 = vld [vmem:[%s2388_s2 + $0x1] ss:$0 sm:$0xff] (!%p234_p3)  ;;  %v2101_v61 = vld [vmem:[%s2388_s2 + $0x2] ss:$0 sm:$0xff] (!%p234_p3) }
   0xc   : > { %686 = vmatpush1.bf16.msra.mxu0 (!%p234_p3), %v1858_v2  ;;  %1823 = vmatpush1.bf16.msra.mxu1 (!%p234_p3), %v1858_v2 }
   0xd   : > { %687 = vmatprep.subr.bf16.mxu0 (!%p234_p3), %v1938_v1  ;;  %1815 = vmatprep.subr.bf16.mxu1 (!%p234_p3), %v1938_v1 }
   0xe   : > { %s2397_s24 = smov (!%p283_p4, %s1613_s24), 63 }
   0xf   : > { %s2000_s29 = sshll.u32 %s2397_s24, 3 }
  0x10   : > { %s2006_s7 = scalar_lea.vmem %s2386_s0, %s2000_s29  ;;  %688 = vmatpush1.bf16.msra.mxu0 %v1859_v3  ;;  %1824 = vmatpush1.bf16.msra.mxu1 %v1859_v3  ;;  %s2083_s28 = scalar_lea.vmem %s2389_s3, %s2000_s29  ;;  %v2108_v3 = vld [vmem:[%s2388_s2 + $0x3] ss:$0 sm:$0xff] }
  0x11   : > { %v1868_v5 = vld [vmem:[%s2006_s7 + $0x4] ss:$8 sps:$4 sm:$0xff]   ;;  %689 = vmatprep.subr.bf16.mxu0 %v1938_v1  ;;  %1816 = vmatprep.subr.bf16.mxu1 %v1938_v1  ;;  %v1866_v12 = vld [vmem:[%s2006_s7] ss:$8 sps:$4 sm:$0xff]   ;;  %v1872_v14 = vld [vmem:[%s2006_s7 + $0x14] ss:$8 sps:$4 sm:$0xff]   ;;  %s2118_s13 = scalar_lea.vmem %s2390_s4, %s2000_s29 }
  0x12   : > { %v1871_v6 = vld [vmem:[%s2006_s7 + $0x84] ss:$8 sps:$4 sm:$0xff]   ;;  %1663 = vmatprep.mubr.msk.bf16.mxu0 %vm634_vm0, %v1868_v5  ;;  %v1869_v13 = vld [vmem:[%s2006_s7 + $0x80] ss:$8 sps:$4 sm:$0xff]   ;;  %v1874_v15 = vld [vmem:[%s2006_s7 + $0x94] ss:$8 sps:$4 sm:$0xff]  }
  0x13   : > { %1671 = vmatprep.mubr.msk.bf16.mxu1 %vm634_vm0, %v1871_v6  ;;  %v1876_v16 = vld [vmem:[%s2006_s7 + $0x10] ss:$8 sps:$4 sm:$0xff]   ;;  %v1878_v18 = vld [vmem:[%s2006_s7 + $0x24] ss:$8 sps:$4 sm:$0xff]   ;;  %v1882_v20 = vld [vmem:[%s2006_s7 + $0x20] ss:$8 sps:$4 sm:$0xff]  }
  0x14   : > { %690 = vmatpush1.bf16.msra.mxu0 %v1860_v4  ;;  %1825 = vmatpush1.bf16.msra.mxu1 %v1860_v4  ;;  %v1877_v17 = vld [vmem:[%s2006_s7 + $0x90] ss:$8 sps:$4 sm:$0xff]   ;;  %v1880_v19 = vld [vmem:[%s2006_s7 + $0xa4] ss:$8 sps:$4 sm:$0xff]   ;;  %v1883_v21 = vld [vmem:[%s2006_s7 + $0xa0] ss:$8 sps:$4 sm:$0xff]  }
  0x15   : > { %691 = vmatprep.subr.bf16.mxu0 %v1938_v1  ;;  %1817 = vmatprep.subr.bf16.mxu1 %v1938_v1  ;;  %v1884_v22 = vld [vmem:[%s2006_s7 + $0x34] ss:$8 sps:$4 sm:$0xff]   ;;  %v1888_v24 = vld [vmem:[%s2006_s7 + $0x30] ss:$8 sps:$4 sm:$0xff]   ;;  %v1890_v26 = vld [vmem:[%s2006_s7 + $0x44] ss:$8 sps:$4 sm:$0xff]  }
  0x16   : > { %v1886_v23 = vld [vmem:[%s2006_s7 + $0xb4] ss:$8 sps:$4 sm:$0xff]   ;;  %v1889_v25 = vld [vmem:[%s2006_s7 + $0xb0] ss:$8 sps:$4 sm:$0xff]   ;;  %v1892_v27 = vld [vmem:[%s2006_s7 + $0xc4] ss:$8 sps:$4 sm:$0xff]  }
  0x17   : > { %v1894_v28 = vld [vmem:[%s2006_s7 + $0x40] ss:$8 sps:$4 sm:$0xff]   ;;  %v1896_v30 = vld [vmem:[%s2006_s7 + $0x54] ss:$8 sps:$4 sm:$0xff]   ;;  %v1900_v32 = vld [vmem:[%s2006_s7 + $0x50] ss:$8 sps:$4 sm:$0xff]  }
  0x18   : > { %692 = vmatpush1.bf16.msra.mxu0 %v1861_v7  ;;  %1826 = vmatpush1.bf16.msra.mxu1 %v1861_v7  ;;  %v1895_v29 = vld [vmem:[%s2006_s7 + $0xc0] ss:$8 sps:$4 sm:$0xff]   ;;  %v1898_v31 = vld [vmem:[%s2006_s7 + $0xd4] ss:$8 sps:$4 sm:$0xff]   ;;  %v1901_v33 = vld [vmem:[%s2006_s7 + $0xd0] ss:$8 sps:$4 sm:$0xff]  }
  0x19   : > { %693 = vmatprep.subr.bf16.mxu0 %v1938_v1  ;;  %1818 = vmatprep.subr.bf16.mxu1 %v1938_v1  ;;  %v1902_v34 = vld [vmem:[%s2006_s7 + $0x64] ss:$8 sps:$4 sm:$0xff]   ;;  %v1906_v36 = vld [vmem:[%s2006_s7 + $0x60] ss:$8 sps:$4 sm:$0xff]   ;;  %v1908_v38 = vld [vmem:[%s2006_s7 + $0x74] ss:$8 sps:$4 sm:$0xff]  }
  0x1a   : > { %v1904_v35 = vld [vmem:[%s2006_s7 + $0xe4] ss:$8 sps:$4 sm:$0xff]   ;;  %v1907_v37 = vld [vmem:[%s2006_s7 + $0xe0] ss:$8 sps:$4 sm:$0xff]   ;;  %v1910_v39 = vld [vmem:[%s2006_s7 + $0xf4] ss:$8 sps:$4 sm:$0xff]  }
  0x1b   : > { %v1912_v40 = vld [vmem:[%s2006_s7 + $0x70] ss:$8 sps:$4 sm:$0xff]   ;;  %v1081_v53 = vld [vmem:[%s2083_s28] sm:$0xff]  ;;  %v1082_v2 = vld [vmem:[%s2083_s28 + $0x8] sm:$0xff]  ;;  %s1621_s29 = sshll.u32 %s2397_s24, 2 }
  0x1c   : > { %694 = vmatpush1.bf16.msra.mxu0 %v1862_v8  ;;  %1827 = vmatpush1.bf16.msra.mxu1 %v1862_v8  ;;  %v1913_v41 = vld [vmem:[%s2006_s7 + $0xf0] ss:$8 sps:$4 sm:$0xff]   ;;  %v1097_v55 = vld [vmem:[%s2083_s28 + $0x80] sm:$0xff]  ;;  %v1098_v5 = vld [vmem:[%s2083_s28 + $0x88] sm:$0xff]  ;;  %s2145_s15 = scalar_lea.vmem %s2391_s5, %s1621_s29 }
  0x1d   : > { %695 = vmatprep.subr.bf16.mxu0 %v1938_v1  ;;  %1819 = vmatprep.subr.bf16.mxu1 %v1938_v1 }
  0x20   : > { %696 = vmatpush1.bf16.msra.mxu0 %v1863_v9  ;;  %1828 = vmatpush1.bf16.msra.mxu1 %v1863_v9 }
  0x21   : > { %697 = vmatprep.subr.bf16.mxu0 %v1938_v1  ;;  %1820 = vmatprep.subr.bf16.mxu1 %v1938_v1 }
  0x24   : > { %698 = vmatpush1.bf16.msra.mxu0 %v1864_v10  ;;  %1829 = vmatpush1.bf16.msra.mxu1 %v1864_v10 }
  0x25   : > { %699 = vmatprep.subr.bf16.mxu0 %v1938_v1  ;;  %1821 = vmatprep.subr.bf16.mxu1 %v1938_v1 }
  0x28   : > { %700 = vmatpush1.bf16.msra.mxu0 %v1865_v11  ;;  %1830 = vmatpush1.bf16.msra.mxu1 %v1865_v11 }
  0x2b   : > { %716 = vmatmul.mubr.bf16.vlgmr.msra.gmra.mrb[0].mxu0 %v1866_v12  ;;  %780 = vmatmul.mubr.bf16.vlgmr.msra.gmra.mrb[0].mxu1 %v1869_v13 }
  0x2c   : > { %1664 = vmatprep.mubr.msk.bf16.mxu0 %vm634_vm0, %v1872_v14  ;;  %1672 = vmatprep.mubr.msk.bf16.mxu1 %vm634_vm0, %v1874_v15 }
  0x33   : > { %724 = vmatmul.mubr.bf16.gmra.mrb[4].mxu0 %v1876_v16  ;;  %788 = vmatmul.mubr.bf16.gmra.mrb[4].mxu1 %v1877_v17 }
  0x34   : > { %1665 = vmatprep.mubr.msk.bf16.mxu0 %vm634_vm0, %v1878_v18  ;;  %1673 = vmatprep.mubr.msk.bf16.mxu1 %vm634_vm0, %v1880_v19 }
  0x3b   : > { %732 = vmatmul.mubr.bf16.gmra.mrb[8].mxu0 %v1882_v20  ;;  %796 = vmatmul.mubr.bf16.gmra.mrb[8].mxu1 %v1883_v21 }
  0x3c   : > { %1666 = vmatprep.mubr.msk.bf16.mxu0 %vm634_vm0, %v1884_v22  ;;  %1674 = vmatprep.mubr.msk.bf16.mxu1 %vm634_vm0, %v1886_v23 }
  0x43   : > { %740 = vmatmul.mubr.bf16.gmra.mrb[12].mxu0 %v1888_v24  ;;  %804 = vmatmul.mubr.bf16.gmra.mrb[12].mxu1 %v1889_v25  ;;  %v1083_v24 = vld [vmem:[%s2083_s28 + $0x10] sm:$0xff] }
  0x44   : > { %1667 = vmatprep.mubr.msk.bf16.mxu0 %vm634_vm0, %v1890_v26  ;;  %1675 = vmatprep.mubr.msk.bf16.mxu1 %vm634_vm0, %v1892_v27 }
  0x4b   : > { %748 = vmatmul.mubr.bf16.gmra.mrb[16].mxu0 %v1894_v28  ;;  %812 = vmatmul.mubr.bf16.gmra.mrb[16].mxu1 %v1895_v29  ;;  %v1099_v29 = vld [vmem:[%s2083_s28 + $0x90] sm:$0xff] }
  0x4c   : > { %1668 = vmatprep.mubr.msk.bf16.mxu0 %vm634_vm0, %v1896_v30  ;;  %1676 = vmatprep.mubr.msk.bf16.mxu1 %vm634_vm0, %v1898_v31  ;;  %v1939_v30 = vmov -1.0  }
  0x53   : > { %756 = vmatmul.mubr.bf16.gmra.mrb[20].mxu0 %v1900_v32  ;;  %820 = vmatmul.mubr.bf16.gmra.mrb[20].mxu1 %v1901_v33 }
  0x54   : > { %1669 = vmatprep.mubr.msk.bf16.mxu0 %vm634_vm0, %v1902_v34  ;;  %1677 = vmatprep.mubr.msk.bf16.mxu1 %vm634_vm0, %v1904_v35 }
  0x5b   : > { %764 = vmatmul.mubr.bf16.gmra.mrb[24].mxu0 %v1906_v36  ;;  %828 = vmatmul.mubr.bf16.gmra.mrb[24].mxu1 %v1907_v37 }
  0x5c   : > { %1670 = vmatprep.mubr.msk.bf16.mxu0 %vm634_vm0, %v1908_v38  ;;  %1678 = vmatprep.mubr.msk.bf16.mxu1 %vm634_vm0, %v1910_v39 }
  0x63   : > { %772 = vmatmul.mubr.bf16.gmra.mrb[28].mxu0 %v1912_v40  ;;  %836 = vmatmul.mubr.bf16.gmra.mrb[28].mxu1 %v1913_v41 }
  0xfe   : > { %v717_v43 = vpop.f32.mrb[0].mxu0  ;;  %v781_v45 = vpop.f32.mrb[0].mxu1 }
  0xff   : > { %v948_v46 = vadd.f32 %v2077_v42, %v717_v43  ;;  %v964_v47 = vadd.f32 %v2077_v42, %v781_v45  ;;  %v719_v48 = vpop.f32.mrb[1].mxu0  ;;  %v783_v49 = vpop.f32.mrb[1].mxu1 }
 0x100   : > { %v720_v50 = vpop.f32.mrb[2].mxu0  ;;  %v784_v51 = vpop.f32.mrb[2].mxu1 }
 0x101   : > { %vm980_vm1 = vcmp.ge.f32.partialorder %v948_v46, 0.0  ;;  %v1017_v52 = vmul.f32 %v2088_v44, %v948_v46  ;;  %vm996_vm2 = vcmp.ge.f32.partialorder %v964_v47, 0.0  ;;  %v1033_v54 = vmul.f32 %v2088_v44, %v964_v47  ;;  %v722_v56 = vpop.f32.mrb[3].mxu0  ;;  %v786_v57 = vpop.f32.mrb[3].mxu1 }
 0x102   : > { %v949_v58 = vadd.f32 %v2077_v42, %v720_v50  ;;  %v965_v59 = vadd.f32 %v2077_v42, %v784_v51  ;;  %v1084_v51 = vld [vmem:[%s2083_s28 + $0x18] sm:$0xff] }
 0x103   : > { %v1049_v60 = vsel %vm980_vm1, %v948_v46, %v1017_v52  ;;  %v1065_v62 = vsel %vm996_vm2, %v964_v47, %v1033_v54  ;;  %v1100_v57 = vld [vmem:[%s2083_s28 + $0x98] sm:$0xff] }
 0x104   : > { %v1113_v63 = vadd.f32 %v1081_v53, %v1049_v60  ;;  %v1129_v0 = vadd.f32 %v1097_v55, %v1065_v62  ;;  %vm981_vm3 = vcmp.ge.f32.partialorder %v949_v58, 0.0  ;;  %v1018_v1 = vmul.f32 %v2088_v44, %v949_v58 }
 0x105   : > { %vm997_vm4 = vcmp.ge.f32.partialorder %v965_v59, 0.0  ;;  %v1034_v4 = vmul.f32 %v2088_v44, %v965_v59 }
 0x106   : > { %v1150_v6 = vmul.f32 %v2101_v61, %v1113_v63  ;;  %v1166_v7 = vmul.f32 %v2101_v61, %v1129_v0  ;;  %v1050_v8 = vsel %vm981_vm3, %v949_v58, %v1018_v1  ;;  %v725_v9 = vpop.f32.mrb[4].mxu0  ;;  %v789_v10 = vpop.f32.mrb[4].mxu1 }
 0x107   : > { %v1114_v11 = vadd.f32 %v1082_v2, %v1050_v8  ;;  %v1066_v12 = vsel %vm997_vm4, %v965_v59, %v1034_v4  ;;  %v950_v13 = vadd.f32 %v2077_v42, %v725_v9  ;;  %v966_v14 = vadd.f32 %v2077_v42, %v789_v10  ;;  %v727_v15 = vpop.f32.mrb[5].mxu0  ;;  %v791_v16 = vpop.f32.mrb[5].mxu1 }
 0x108   : > { %v1187_v17 = vadd.f32 %v2108_v3, %v1150_v6  ;;  %v1203_v18 = vadd.f32 %v2108_v3, %v1166_v7  ;;  %v1130_v19 = vadd.f32 %v1098_v5, %v1066_v12  ;;  %v728_v20 = vpop.f32.mrb[6].mxu0  ;;  %v792_v21 = vpop.f32.mrb[6].mxu1  ;;  %v1086_v16 = vld [vmem:[%s2083_s28 + $0x28] sm:$0xff] }
 0x109   : > { %v1151_v22 = vmul.f32 %v2101_v61, %v1114_v11  ;;  %vm982_vm5 = vcmp.ge.f32.partialorder %v950_v13, 0.0  ;;  %v1019_v23 = vmul.f32 %v2088_v44, %v950_v13  ;;  %vm998_vm6 = vcmp.ge.f32.partialorder %v966_v14, 0.0  ;;  %v730_v25 = vpop.f32.mrb[7].mxu0  ;;  %v794_v26 = vpop.f32.mrb[7].mxu1  ;;  %v1085_v11 = vld [vmem:[%s2083_s28 + $0x20] sm:$0xff] }
 0x10a   : > { %1219 = vst [vmem:[%s2118_s13] sm:$0xff] %v1187_v17  ;;  %vm1251_vm7 = vcmp.ge.f32.partialorder %v1187_v17, 0.0  ;;  %1235 = vst [vmem:[%s2118_s13 + $0x80] sm:$0xff] %v1203_v18  ;;  %vm1267_vm8 = vcmp.ge.f32.partialorder %v1203_v18, 0.0  ;;  %v1167_v27 = vmul.f32 %v2101_v61, %v1130_v19  ;;  %v1035_v28 = vmul.f32 %v2088_v44, %v966_v14 }
 0x10b   : > { %v1283_v31 = vsel %vm1251_vm7, 1.0, %v1939_v30  ;;  %v1188_v32 = vadd.f32 %v2108_v3, %v1151_v22  ;;  %v1051_v33 = vsel %vm982_vm5, %v950_v13, %v1019_v23  ;;  %v951_v37 = vadd.f32 %v2077_v42, %v728_v20 }
 0x10c   : > { %v1204_v34 = vadd.f32 %v2108_v3, %v1167_v27  ;;  %v1115_v35 = vadd.f32 %v1083_v24, %v1051_v33  ;;  %v1067_v36 = vsel %vm998_vm6, %v966_v14, %v1035_v28  ;;  %v1299_v38 = vsel %vm1267_vm8, 1.0, %v1939_v30  ;;  %v1101_v14 = vld [vmem:[%s2083_s28 + $0xa0] sm:$0xff] }
 0x10d   : > { %1220 = vst [vmem:[%s2118_s13 + $0x8] sm:$0xff] %v1188_v32  ;;  %vm1252_vm9 = vcmp.ge.f32.partialorder %v1188_v32, 0.0  ;;  %v1131_v39 = vadd.f32 %v1099_v29, %v1067_v36  ;;  %v967_v40 = vadd.f32 %v2077_v42, %v792_v21  ;;  %vm983_vm11 = vcmp.ge.f32.partialorder %v951_v37, 0.0 }
 0x10e   : > { %v1284_v41 = vsel %vm1252_vm9, 1.0, %v1939_v30  ;;  %1236 = vst [vmem:[%s2118_s13 + $0x88] sm:$0xff] %v1204_v34  ;;  %vm1268_vm10 = vcmp.ge.f32.partialorder %v1204_v34, 0.0  ;;  %v1152_v43 = vmul.f32 %v2101_v61, %v1115_v35  ;;  %v733_v45 = vpop.f32.mrb[8].mxu0  ;;  %v797_v46 = vpop.f32.mrb[8].mxu1  ;;  %v1020_v50 = vmul.f32 %v2088_v44, %v951_v37 }
 0x10f   : > { %v1751_v47 = vpack.c.bf16 %v1284_v41, %v1283_v31  ;;  %v1300_v48 = vsel %vm1268_vm10, 1.0, %v1939_v30  ;;  %v1168_v49 = vmul.f32 %v2101_v61, %v1131_v39  ;;  %v735_v52 = vpop.f32.mrb[9].mxu0  ;;  %v799_v53 = vpop.f32.mrb[9].mxu1  ;;  %vm999_vm12 = vcmp.ge.f32.partialorder %v967_v40, 0.0 }
 0x110   : > { %v1775_v54 = vpack.c.bf16 %v1300_v48, %v1299_v38  ;;  %v1189_v55 = vadd.f32 %v2108_v3, %v1152_v43  ;;  %v1036_v56 = vmul.f32 %v2088_v44, %v967_v40  ;;  %v736_v58 = vpop.f32.mrb[10].mxu0  ;;  %v800_v59 = vpop.f32.mrb[10].mxu1  ;;  %v1052_v62 = vsel %vm983_vm11, %v951_v37, %v1020_v50  ;;  %v1102_v37 = vld [vmem:[%s2083_s28 + $0xa8] sm:$0xff] }
 0x111   : > { %1752 = vst [vmem:[%s2145_s15] sm:$0xff] %v1751_v47   ;;  %v1205_v60 = vadd.f32 %v2108_v3, %v1168_v49  ;;  %v952_v63 = vadd.f32 %v2077_v42, %v733_v45  ;;  %v968_v0 = vadd.f32 %v2077_v42, %v797_v46  ;;  %v738_v1 = vpop.f32.mrb[11].mxu0  ;;  %v802_v2 = vpop.f32.mrb[11].mxu1  ;;  %v1116_v4 = vadd.f32 %v1084_v51, %v1052_v62 }
 0x112   : > { %1805 = vst [vmem:[%s2145_s15 + $0x40] sm:$0xff] %v1775_v54   ;;  %1221 = vst [vmem:[%s2118_s13 + $0x10] sm:$0xff] %v1189_v55  ;;  %vm1253_vm13 = vcmp.ge.f32.partialorder %v1189_v55, 0.0  ;;  %v1068_v5 = vsel %vm999_vm12, %v967_v40, %v1036_v56  ;;  %v953_v6 = vadd.f32 %v2077_v42, %v736_v58  ;;  %v969_v20 = vadd.f32 %v2077_v42, %v800_v59  ;;  %v1087_v55 = vld [vmem:[%s2083_s28 + $0x30] sm:$0xff] }
 0x113   : > { %1237 = vst [vmem:[%s2118_s13 + $0x90] sm:$0xff] %v1205_v60  ;;  %vm1269_vm14 = vcmp.ge.f32.partialorder %v1205_v60, 0.0  ;;  %v1132_v7 = vadd.f32 %v1100_v57, %v1068_v5  ;;  %vm984_vm15 = vcmp.ge.f32.partialorder %v952_v63, 0.0  ;;  %v1285_v8 = vsel %vm1253_vm13, 1.0, %v1939_v30 }
 0x114   : > { %v1153_v9 = vmul.f32 %v2101_v61, %v1116_v4  ;;  %v1021_v10 = vmul.f32 %v2088_v44, %v952_v63  ;;  %vm1000_vm0 = vcmp.ge.f32.partialorder %v968_v0, 0.0  ;;  %v1037_v13 = vmul.f32 %v2088_v44, %v968_v0 }
 0x115   : > { %v1169_v12 = vmul.f32 %v2101_v61, %v1132_v7  ;;  %vm985_vm1 = vcmp.ge.f32.partialorder %v953_v6, 0.0  ;;  %v1022_v15 = vmul.f32 %v2088_v44, %v953_v6  ;;  %v1301_v17 = vsel %vm1269_vm14, 1.0, %v1939_v30 }
 0x116   : > { %v1190_v18 = vadd.f32 %v2108_v3, %v1153_v9  ;;  %v1053_v19 = vsel %vm984_vm15, %v952_v63, %v1021_v10  ;;  %v741_v21 = vpop.f32.mrb[12].mxu0  ;;  %v805_v22 = vpop.f32.mrb[12].mxu1  ;;  %v1069_v25 = vsel %vm1000_vm0, %v968_v0, %v1037_v13  ;;  %vm1001_vm3 = vcmp.ge.f32.partialorder %v969_v20, 0.0 }
 0x117   : > { %v1206_v23 = vadd.f32 %v2108_v3, %v1169_v12  ;;  %v1117_v24 = vadd.f32 %v1085_v11, %v1053_v19  ;;  %v1054_v26 = vsel %vm985_vm1, %v953_v6, %v1022_v15  ;;  %v743_v27 = vpop.f32.mrb[13].mxu0  ;;  %v807_v28 = vpop.f32.mrb[13].mxu1  ;;  %v1133_v29 = vadd.f32 %v1101_v14, %v1069_v25  ;;  %v1088_v12 = vld [vmem:[%s2083_s28 + $0x38] sm:$0xff] }
 0x118   : > { %1222 = vst [vmem:[%s2118_s13 + $0x18] sm:$0xff] %v1190_v18  ;;  %vm1254_vm2 = vcmp.ge.f32.partialorder %v1190_v18, 0.0  ;;  %v1118_v31 = vadd.f32 %v1086_v16, %v1054_v26  ;;  %v744_v32 = vpop.f32.mrb[14].mxu0  ;;  %v808_v33 = vpop.f32.mrb[14].mxu1  ;;  %v1038_v36 = vmul.f32 %v2088_v44, %v969_v20  ;;  %v954_v49 = vadd.f32 %v2077_v42, %v741_v21  ;;  %v1104_v27 = vld [vmem:[%s2083_s28 + $0xb8] sm:$0xff] }
 0x119   : > { %v1286_v34 = vsel %vm1254_vm2, 1.0, %v1939_v30  ;;  %1238 = vst [vmem:[%s2118_s13 + $0x98] sm:$0xff] %v1206_v23  ;;  %vm1270_vm4 = vcmp.ge.f32.partialorder %v1206_v23, 0.0  ;;  %v1154_v35 = vmul.f32 %v2101_v61, %v1117_v24  ;;  %v746_v38 = vpop.f32.mrb[15].mxu0  ;;  %v810_v39 = vpop.f32.mrb[15].mxu1  ;;  %v1170_v43 = vmul.f32 %v2101_v61, %v1133_v29 }
 0x11a   : > { %v1754_v40 = vpack.c.bf16 %v1286_v34, %v1285_v8  ;;  %v1302_v41 = vsel %vm1270_vm4, 1.0, %v1939_v30  ;;  %v1155_v45 = vmul.f32 %v2101_v61, %v1118_v31  ;;  %v1070_v48 = vsel %vm1001_vm3, %v969_v20, %v1038_v36  ;;  %v1103_v8 = vld [vmem:[%s2083_s28 + $0xb0] sm:$0xff]  ;;  %v1089_v31 = vld [vmem:[%s2083_s28 + $0x40] sm:$0xff] }
 0x11b   : > { %v1778_v46 = vpack.c.bf16 %v1302_v41, %v1301_v17  ;;  %v1191_v47 = vadd.f32 %v2108_v3, %v1154_v35  ;;  %v1207_v50 = vadd.f32 %v2108_v3, %v1170_v43  ;;  %v1134_v52 = vadd.f32 %v1102_v37, %v1070_v48  ;;  %v1105_v35 = vld [vmem:[%s2083_s28 + $0xc0] sm:$0xff] }
 0x11c   : > { %1798 = vst [vmem:[%s2145_s15 + $0x8] sm:$0xff] %v1754_v40   ;;  %v1192_v51 = vadd.f32 %v2108_v3, %v1155_v45  ;;  %v970_v53 = vadd.f32 %v2077_v42, %v805_v22  ;;  %vm986_vm6 = vcmp.ge.f32.partialorder %v954_v49, 0.0  ;;  %v1023_v54 = vmul.f32 %v2088_v44, %v954_v49 }
 0x11d   : > { %1806 = vst [vmem:[%s2145_s15 + $0x48] sm:$0xff] %v1778_v46   ;;  %1223 = vst [vmem:[%s2118_s13 + $0x20] sm:$0xff] %v1191_v47  ;;  %vm1255_vm5 = vcmp.ge.f32.partialorder %v1191_v47, 0.0  ;;  %v955_v56 = vadd.f32 %v2077_v42, %v744_v32  ;;  %vm1271_vm7 = vcmp.ge.f32.partialorder %v1207_v50, 0.0  ;;  %v1171_v58 = vmul.f32 %v2101_v61, %v1134_v52 }
 0x11e   : > { %v1287_v57 = vsel %vm1255_vm5, 1.0, %v1939_v30  ;;  %1239 = vst [vmem:[%s2118_s13 + $0xa0] sm:$0xff] %v1207_v50  ;;  %1224 = vst [vmem:[%s2118_s13 + $0x28] sm:$0xff] %v1192_v51  ;;  %vm1256_vm8 = vcmp.ge.f32.partialorder %v1192_v51, 0.0  ;;  %v749_v59 = vpop.f32.mrb[16].mxu0  ;;  %v813_v60 = vpop.f32.mrb[16].mxu1  ;;  %v1055_v0 = vsel %vm986_vm6, %v954_v49, %v1023_v54  ;;  %v1039_v7 = vmul.f32 %v2088_v44, %v970_v53 }
 0x11f   : > { %v1303_v62 = vsel %vm1271_vm7, 1.0, %v1939_v30  ;;  %v1288_v63 = vsel %vm1256_vm8, 1.0, %v1939_v30  ;;  %vm1002_vm9 = vcmp.ge.f32.partialorder %v970_v53, 0.0  ;;  %v751_v1 = vpop.f32.mrb[17].mxu0  ;;  %v815_v2 = vpop.f32.mrb[17].mxu1  ;;  %v1208_v5 = vadd.f32 %v2108_v3, %v1171_v58 }
 0x120   : > { %v1757_v4 = vpack.c.bf16 %v1288_v63, %v1287_v57  ;;  %v1119_v6 = vadd.f32 %v1087_v55, %v1055_v0  ;;  %v752_v9 = vpop.f32.mrb[18].mxu0  ;;  %v816_v10 = vpop.f32.mrb[18].mxu1  ;;  %vm987_vm10 = vcmp.ge.f32.partialorder %v955_v56, 0.0  ;;  %v1024_v11 = vmul.f32 %v2088_v44, %v955_v56  ;;  %v1090_v0 = vld [vmem:[%s2083_s28 + $0x48] sm:$0xff] }
 0x121   : > { %v971_v13 = vadd.f32 %v2077_v42, %v808_v33  ;;  %v956_v14 = vadd.f32 %v2077_v42, %v749_v59  ;;  %v754_v15 = vpop.f32.mrb[19].mxu0  ;;  %v818_v16 = vpop.f32.mrb[19].mxu1  ;;  %1240 = vst [vmem:[%s2118_s13 + $0xa8] sm:$0xff] %v1208_v5  ;;  %vm1272_vm11 = vcmp.ge.f32.partialorder %v1208_v5, 0.0  ;;  %v1071_v18 = vsel %vm1002_vm9, %v970_v53, %v1039_v7  ;;  %v1106_v5 = vld [vmem:[%s2083_s28 + $0xc8] sm:$0xff] }
 0x122   : > { %1799 = vst [vmem:[%s2145_s15 + $0x10] sm:$0xff] %v1757_v4   ;;  %v1156_v17 = vmul.f32 %v2101_v61, %v1119_v6  ;;  %v972_v19 = vadd.f32 %v2077_v42, %v813_v60  ;;  %v1304_v20 = vsel %vm1272_vm11, 1.0, %v1939_v30  ;;  %v1135_v21 = vadd.f32 %v1103_v8, %v1071_v18 }
 0x123   : > { %v1056_v22 = vsel %vm987_vm10, %v955_v56, %v1024_v11  ;;  %vm1003_vm12 = vcmp.ge.f32.partialorder %v971_v13, 0.0  ;;  %v1781_v23 = vpack.c.bf16 %v1304_v20, %v1303_v62  ;;  %v1040_v26 = vmul.f32 %v2088_v44, %v971_v13 }
 0x124   : > { %v1193_v24 = vadd.f32 %v2108_v3, %v1156_v17  ;;  %v1120_v25 = vadd.f32 %v1088_v12, %v1056_v22  ;;  %v1172_v28 = vmul.f32 %v2101_v61, %v1135_v21  ;;  %vm988_vm13 = vcmp.ge.f32.partialorder %v956_v14, 0.0  ;;  %v1091_v22 = vld [vmem:[%s2083_s28 + $0x50] sm:$0xff] }
 0x125   : > { %v1025_v29 = vmul.f32 %v2088_v44, %v956_v14  ;;  %vm1004_vm14 = vcmp.ge.f32.partialorder %v972_v19, 0.0  ;;  %1807 = vst [vmem:[%s2145_s15 + $0x50] sm:$0xff] %v1781_v23   ;;  %v1072_v33 = vsel %vm1003_vm12, %v971_v13, %v1040_v26  ;;  %v1041_v34 = vmul.f32 %v2088_v44, %v972_v19 }
 0x126   : > { %1225 = vst [vmem:[%s2118_s13 + $0x30] sm:$0xff] %v1193_v24  ;;  %vm1257_vm15 = vcmp.ge.f32.partialorder %v1193_v24, 0.0  ;;  %v1157_v32 = vmul.f32 %v2101_v61, %v1120_v25  ;;  %v757_v36 = vpop.f32.mrb[20].mxu0  ;;  %v2231_v37 = vpop.f32.mrb[20].mxu1  ;;  %v1209_v39 = vadd.f32 %v2108_v3, %v1172_v28  ;;  %v1136_v40 = vadd.f32 %v1104_v27, %v1072_v33 }
 0x127   : > { %v1289_v38 = vsel %vm1257_vm15, 1.0, %v1939_v30  ;;  %v1057_v41 = vsel %vm988_vm13, %v956_v14, %v1025_v29  ;;  %v759_v43 = vpop.f32.mrb[21].mxu0  ;;  %v823_v45 = vpop.f32.mrb[21].mxu1  ;;  %v1073_v48 = vsel %vm1004_vm14, %v972_v19, %v1041_v34  ;;  %v957_v49 = vadd.f32 %v2077_v42, %v752_v9 }
 0x128   : > { %v1194_v46 = vadd.f32 %v2108_v3, %v1157_v32  ;;  %v1121_v47 = vadd.f32 %v1089_v31, %v1057_v41  ;;  %v760_v50 = vpop.f32.mrb[22].mxu0  ;;  %v824_v51 = vpop.f32.mrb[22].mxu1  ;;  %1241 = vst [vmem:[%s2118_s13 + $0xb0] sm:$0xff] %v1209_v39  ;;  %vm1273_vm0 = vcmp.ge.f32.partialorder %v1209_v39, 0.0  ;;  %v1173_v52 = vmul.f32 %v2101_v61, %v1136_v40  ;;  %v1107_v39 = vld [vmem:[%s2083_s28 + $0xd0] sm:$0xff]  ;;  %v1092_v41 = vld [vmem:[%s2083_s28 + $0x58] sm:$0xff] }
 0x129   : > { %v1137_v53 = vadd.f32 %v1105_v35, %v1073_v48  ;;  %v973_v54 = vadd.f32 %v2077_v42, %v816_v10  ;;  %v762_v55 = vpop.f32.mrb[23].mxu0  ;;  %v826_v56 = vpop.f32.mrb[23].mxu1  ;;  %v1305_v57 = vsel %vm1273_vm0, 1.0, %v1939_v30  ;;  %vm989_vm2 = vcmp.ge.f32.partialorder %v957_v49, 0.0 }
 0x12a   : > { %1226 = vst [vmem:[%s2118_s13 + $0x38] sm:$0xff] %v1194_v46  ;;  %vm1258_vm1 = vcmp.ge.f32.partialorder %v1194_v46, 0.0  ;;  %v1158_v58 = vmul.f32 %v2101_v61, %v1121_v47  ;;  %v1210_v60 = vadd.f32 %v2108_v3, %v1173_v52  ;;  %v1026_v63 = vmul.f32 %v2088_v44, %v957_v49 }
 0x12b   : > { %v1290_v59 = vsel %vm1258_vm1, 1.0, %v1939_v30  ;;  %v1174_v62 = vmul.f32 %v2101_v61, %v1137_v53  ;;  %vm1005_vm3 = vcmp.ge.f32.partialorder %v973_v54, 0.0  ;;  %v1042_v4 = vmul.f32 %v2088_v44, %v973_v54 }
 0x12c   : > { %v1760_v1 = vpack.c.bf16 %v1290_v59, %v1289_v38  ;;  %v1195_v2 = vadd.f32 %v2108_v3, %v1158_v58  ;;  %1242 = vst [vmem:[%s2118_s13 + $0xb8] sm:$0xff] %v1210_v60  ;;  %vm1274_vm4 = vcmp.ge.f32.partialorder %v1210_v60, 0.0  ;;  %v1058_v7 = vsel %vm989_vm2, %v957_v49, %v1026_v63  ;;  %v1093_v63 = vld [vmem:[%s2083_s28 + $0x60] sm:$0xff] }
 0x12d   : > { %v1211_v6 = vadd.f32 %v2108_v3, %v1174_v62  ;;  %v958_v8 = vadd.f32 %v2077_v42, %v757_v36  ;;  %v1306_v9 = vsel %vm1274_vm4, 1.0, %v1939_v30  ;;  %v1122_v10 = vadd.f32 %v1090_v0, %v1058_v7 }
 0x12e   : > { %1800 = vst [vmem:[%s2145_s15 + $0x18] sm:$0xff] %v1760_v1   ;;  %1227 = vst [vmem:[%s2118_s13 + $0x40] sm:$0xff] %v1195_v2  ;;  %vm1259_vm5 = vcmp.ge.f32.partialorder %v1195_v2, 0.0  ;;  %v1074_v11 = vsel %vm1005_vm3, %v973_v54, %v1042_v4  ;;  %v765_v12 = vpop.f32.mrb[24].mxu0  ;;  %v829_v13 = vpop.f32.mrb[24].mxu1  ;;  %v1784_v14 = vpack.c.bf16 %v1306_v9, %v1305_v57  ;;  %v974_v26 = vadd.f32 %v2077_v42, %v2231_v37  ;;  %v1108_v57 = vld [vmem:[%s2083_s28 + $0xd8] sm:$0xff] }
 0x12f   : > { %v1291_v15 = vsel %vm1259_vm5, 1.0, %v1939_v30  ;;  %1243 = vst [vmem:[%s2118_s13 + $0xc0] sm:$0xff] %v1211_v6  ;;  %vm1275_vm6 = vcmp.ge.f32.partialorder %v1211_v6, 0.0  ;;  %v1138_v16 = vadd.f32 %v1106_v5, %v1074_v11  ;;  %v767_v17 = vpop.f32.mrb[25].mxu0  ;;  %v831_v18 = vpop.f32.mrb[25].mxu1  ;;  %v1159_v20 = vmul.f32 %v2101_v61, %v1122_v10  ;;  %v1109_v6 = vld [vmem:[%s2083_s28 + $0xe0] sm:$0xff] }
 0x130   : > { %v1307_v19 = vsel %vm1275_vm6, 1.0, %v1939_v30  ;;  %vm990_vm7 = vcmp.ge.f32.partialorder %v958_v8, 0.0  ;;  %v1027_v21 = vmul.f32 %v2088_v44, %v958_v8  ;;  %v2265_v23 = vpop.f32.mrb[26].mxu0  ;;  %v2267_v24 = vpop.f32.mrb[26].mxu1  ;;  %1808 = vst [vmem:[%s2145_s15 + $0x58] sm:$0xff] %v1784_v14   ;;  %v959_v27 = vadd.f32 %v2077_v42, %v760_v50 }
 0x131   : > { %v1175_v25 = vmul.f32 %v2101_v61, %v1138_v16  ;;  %v975_v28 = vadd.f32 %v2077_v42, %v824_v51  ;;  %v770_v29 = vpop.f32.mrb[27].mxu0  ;;  %v834_v31 = vpop.f32.mrb[27].mxu1  ;;  %v1196_v32 = vadd.f32 %v2108_v3, %v1159_v20  ;;  %v960_v34 = vadd.f32 %v2077_v42, %v765_v12 }
 0x132   : > { %v1059_v33 = vsel %vm990_vm7, %v958_v8, %v1027_v21  ;;  %v976_v35 = vadd.f32 %v2077_v42, %v829_v13  ;;  %vm1006_vm8 = vcmp.ge.f32.partialorder %v974_v26, 0.0  ;;  %v1043_v37 = vmul.f32 %v2088_v44, %v974_v26  ;;  %v1110_v29 = vld [vmem:[%s2083_s28 + $0xe8] sm:$0xff] }
 0x133   : > { %v1212_v36 = vadd.f32 %v2108_v3, %v1175_v25  ;;  %v1123_v38 = vadd.f32 %v1091_v22, %v1059_v33  ;;  %1228 = vst [vmem:[%s2118_s13 + $0x48] sm:$0xff] %v1196_v32  ;;  %vm1260_vm9 = vcmp.ge.f32.partialorder %v1196_v32, 0.0  ;;  %vm991_vm10 = vcmp.ge.f32.partialorder %v959_v27, 0.0 }
 0x134   : > { %v1028_v40 = vmul.f32 %v2088_v44, %v959_v27  ;;  %vm1007_vm11 = vcmp.ge.f32.partialorder %v975_v28, 0.0  ;;  %v1292_v43 = vsel %vm1260_vm9, 1.0, %v1939_v30  ;;  %v1075_v46 = vsel %vm1006_vm8, %v974_v26, %v1043_v37  ;;  %v1094_v26 = vld [vmem:[%s2083_s28 + $0x68] sm:$0xff] }
 0x135   : > { %1244 = vst [vmem:[%s2118_s13 + $0xc8] sm:$0xff] %v1212_v36  ;;  %vm1276_vm12 = vcmp.ge.f32.partialorder %v1212_v36, 0.0  ;;  %v1160_v45 = vmul.f32 %v2101_v61, %v1123_v38  ;;  %v1763_v47 = vpack.c.bf16 %v1292_v43, %v1291_v15  ;;  %v1139_v49 = vadd.f32 %v1107_v39, %v1075_v46  ;;  %v1095_v43 = vld [vmem:[%s2083_s28 + $0x70] sm:$0xff] }
 0x136   : > { %v1308_v48 = vsel %vm1276_vm12, 1.0, %v1939_v30  ;;  %v1060_v50 = vsel %vm991_vm10, %v959_v27, %v1028_v40  ;;  %v773_v51 = vpop.f32.mrb[28].mxu0  ;;  %v2288_v52 = vpop.f32.mrb[28].mxu1  ;;  %v1044_v56 = vmul.f32 %v2088_v44, %v975_v28  ;;  %vm992_vm13 = vcmp.ge.f32.partialorder %v960_v34, 0.0 }
 0x137   : > { %v1787_v53 = vpack.c.bf16 %v1308_v48, %v1307_v19  ;;  %v1197_v54 = vadd.f32 %v2108_v3, %v1160_v45  ;;  %v1124_v55 = vadd.f32 %v1092_v41, %v1060_v50  ;;  %v775_v58 = vpop.f32.mrb[29].mxu0  ;;  %v839_v59 = vpop.f32.mrb[29].mxu1  ;;  %1801 = vst [vmem:[%s2145_s15 + $0x20] sm:$0xff] %v1763_v47   ;;  %v1176_v60 = vmul.f32 %v2101_v61, %v1139_v49 }
 0x138   : > { %v1029_v62 = vmul.f32 %v2088_v44, %v960_v34  ;;  %vm1008_vm14 = vcmp.ge.f32.partialorder %v976_v35, 0.0  ;;  %v776_v0 = vpop.f32.mrb[30].mxu0  ;;  %v840_v1 = vpop.f32.mrb[30].mxu1  ;;  %v1076_v4 = vsel %vm1007_vm11, %v975_v28, %v1044_v56  ;;  %v1045_v5 = vmul.f32 %v2088_v44, %v976_v35 }
 0x139   : > { %1809 = vst [vmem:[%s2145_s15 + $0x60] sm:$0xff] %v1787_v53   ;;  %1229 = vst [vmem:[%s2118_s13 + $0x50] sm:$0xff] %v1197_v54  ;;  %vm1261_vm15 = vcmp.ge.f32.partialorder %v1197_v54, 0.0  ;;  %v1161_v2 = vmul.f32 %v2101_v61, %v1124_v55  ;;  %v778_v7 = vpop.f32.mrb[31].mxu0  ;;  %v842_v8 = vpop.f32.mrb[31].mxu1  ;;  %v1213_v9 = vadd.f32 %v2108_v3, %v1176_v60  ;;  %v1140_v10 = vadd.f32 %v1108_v57, %v1076_v4  ;;  %v1096_v57 = vld [vmem:[%s2083_s28 + $0x78] sm:$0xff] }
 0x13a   : > { %v1061_v11 = vsel %vm992_vm13, %v960_v34, %v1029_v62  ;;  %v1077_v14 = vsel %vm1008_vm14, %v976_v35, %v1045_v5  ;;  %v961_v15 = vadd.f32 %v2077_v42, %v2265_v23  ;;  %v1293_v16 = vsel %vm1261_vm15, 1.0, %v1939_v30  ;;  %v1112_v7 = vld [vmem:[%s2083_s28 + $0xf8] sm:$0xff] }
 0x13b   : > { %v1198_v12 = vadd.f32 %v2108_v3, %v1161_v2  ;;  %v1125_v13 = vadd.f32 %v1093_v63, %v1061_v11  ;;  %1245 = vst [vmem:[%s2118_s13 + $0xd0] sm:$0xff] %v1213_v9  ;;  %v1177_v17 = vmul.f32 %v2101_v61, %v1140_v10  ;;  %v1141_v18 = vadd.f32 %v1109_v6, %v1077_v14 }
 0x13c   : > { %v977_v19 = vadd.f32 %v2077_v42, %v2267_v24  ;;  %vm1277_vm0 = vcmp.ge.f32.partialorder %v1213_v9, 0.0  ;;  %vm993_vm2 = vcmp.ge.f32.partialorder %v961_v15, 0.0  ;;  %v1030_v25 = vmul.f32 %v2088_v44, %v961_v15 }
 0x13d   : > { %1230 = vst [vmem:[%s2118_s13 + $0x58] sm:$0xff] %v1198_v12  ;;  %vm1262_vm1 = vcmp.ge.f32.partialorder %v1198_v12, 0.0  ;;  %v1162_v20 = vmul.f32 %v2101_v61, %v1125_v13  ;;  %v1214_v22 = vadd.f32 %v2108_v3, %v1177_v17  ;;  %v1178_v23 = vmul.f32 %v2101_v61, %v1141_v18 }
 0x13e   : > { %v1294_v21 = vsel %vm1262_vm1, 1.0, %v1939_v30  ;;  %vm1009_vm3 = vcmp.ge.f32.partialorder %v977_v19, 0.0  ;;  %v1046_v28 = vmul.f32 %v2088_v44, %v977_v19  ;;  %v1062_v32 = vsel %vm993_vm2, %v961_v15, %v1030_v25 }
 0x13f   : > { %v1766_v27 = vpack.c.bf16 %v1294_v21, %v1293_v16  ;;  %v1199_v24 = vadd.f32 %v2108_v3, %v1162_v20  ;;  %1246 = vst [vmem:[%s2118_s13 + $0xd8] sm:$0xff] %v1214_v22  ;;  %vm1278_vm4 = vcmp.ge.f32.partialorder %v1214_v22, 0.0  ;;  %v1215_v31 = vadd.f32 %v2108_v3, %v1178_v23 }
 0x140   : > { %v962_v33 = vadd.f32 %v2077_v42, %v773_v51  ;;  %v1309_v34 = vsel %vm1277_vm0, 1.0, %v1939_v30  ;;  %v1310_v35 = vsel %vm1278_vm4, 1.0, %v1939_v30  ;;  %v1126_v36 = vadd.f32 %v1094_v26, %v1062_v32 }
 0x141   : > { %1802 = vst [vmem:[%s2145_s15 + $0x28] sm:$0xff] %v1766_v27   ;;  %1231 = vst [vmem:[%s2118_s13 + $0x60] sm:$0xff] %v1199_v24  ;;  %v1078_v38 = vsel %vm1009_vm3, %v977_v19, %v1046_v28  ;;  %v1790_v37 = vpack.c.bf16 %v1310_v35, %v1309_v34  ;;  %vm1263_vm5 = vcmp.ge.f32.partialorder %v1199_v24, 0.0  ;;  %vm1279_vm6 = vcmp.ge.f32.partialorder %v1215_v31, 0.0 }
 0x142   : > { %1247 = vst [vmem:[%s2118_s13 + $0xe0] sm:$0xff] %v1215_v31  ;;  %v1142_v39 = vadd.f32 %v1110_v29, %v1078_v38  ;;  %v1163_v40 = vmul.f32 %v2101_v61, %v1126_v36  ;;  %vm994_vm7 = vcmp.ge.f32.partialorder %v962_v33, 0.0  ;;  %v1031_v41 = vmul.f32 %v2088_v44, %v962_v33 }
 0x143   : > { %1810 = vst [vmem:[%s2145_s15 + $0x68] sm:$0xff] %v1790_v37   ;;  %v978_v46 = vadd.f32 %v2077_v42, %v2288_v52  ;;  %v963_v47 = vadd.f32 %v2077_v42, %v776_v0  ;;  %v979_v48 = vadd.f32 %v2077_v42, %v840_v1  ;;  %v1295_v49 = vsel %vm1263_vm5, 1.0, %v1939_v30  ;;  %v1111_v52 = vld [vmem:[%s2083_s28 + $0xf0] sm:$0xff] }
 0x144   : > { %v1179_v45 = vmul.f32 %v2101_v61, %v1142_v39  ;;  %v1311_v50 = vsel %vm1279_vm6, 1.0, %v1939_v30  ;;  %v1200_v51 = vadd.f32 %v2108_v3, %v1163_v40  ;;  %v1063_v53 = vsel %vm994_vm7, %v962_v33, %v1031_v41 }
 0x145   : > { %v1127_v55 = vadd.f32 %v1095_v43, %v1063_v53  ;;  %vm1010_vm8 = vcmp.ge.f32.partialorder %v978_v46, 0.0  ;;  %v1047_v56 = vmul.f32 %v2088_v44, %v978_v46  ;;  %vm995_vm10 = vcmp.ge.f32.partialorder %v963_v47, 0.0 }
 0x146   : > { %v1216_v54 = vadd.f32 %v2108_v3, %v1179_v45  ;;  %1232 = vst [vmem:[%s2118_s13 + $0x68] sm:$0xff] %v1200_v51  ;;  %vm1264_vm9 = vcmp.ge.f32.partialorder %v1200_v51, 0.0  ;;  %v1032_v42 = vmul.f32 %v2088_v44, %v963_v47  ;;  %vm1011_vm11 = vcmp.ge.f32.partialorder %v979_v48, 0.0 }
 0x147   : > { %v1296_v58 = vsel %vm1264_vm9, 1.0, %v1939_v30  ;;  %v1164_v59 = vmul.f32 %v2101_v61, %v1127_v55  ;;  %v1079_v60 = vsel %vm1010_vm8, %v978_v46, %v1047_v56  ;;  %v1048_v6 = vmul.f32 %v2088_v44, %v979_v48 }
 0x148   : > { %1248 = vst [vmem:[%s2118_s13 + $0xe8] sm:$0xff] %v1216_v54  ;;  %vm1280_vm12 = vcmp.ge.f32.partialorder %v1216_v54, 0.0  ;;  %v1769_v62 = vpack.c.bf16 %v1296_v58, %v1295_v49  ;;  %v1143_v0 = vadd.f32 %v1111_v52, %v1079_v60  ;;  %v1064_v1 = vsel %vm995_vm10, %v963_v47, %v1032_v42 }
 0x149   : > { %v1312_v63 = vsel %vm1280_vm12, 1.0, %v1939_v30  ;;  %v1201_v4 = vadd.f32 %v2108_v3, %v1164_v59  ;;  %v1128_v5 = vadd.f32 %v1096_v57, %v1064_v1  ;;  %v1080_v10 = vsel %vm1011_vm11, %v979_v48, %v1048_v6 }
 0x14a   : > { %v1793_v2 = vpack.c.bf16 %v1312_v63, %v1311_v50  ;;  %1803 = vst [vmem:[%s2145_s15 + $0x30] sm:$0xff] %v1769_v62   ;;  %v1180_v8 = vmul.f32 %v2101_v61, %v1143_v0  ;;  %v1144_v12 = vadd.f32 %v1112_v7, %v1080_v10 }
 0x14b   : > { %1233 = vst [vmem:[%s2118_s13 + $0x70] sm:$0xff] %v1201_v4  ;;  %v1165_v9 = vmul.f32 %v2101_v61, %v1128_v5  ;;  %vm1265_vm13 = vcmp.ge.f32.partialorder %v1201_v4, 0.0 }
 0x14c   : > { %1811 = vst [vmem:[%s2145_s15 + $0x70] sm:$0xff] %v1793_v2   ;;  %v1217_v11 = vadd.f32 %v2108_v3, %v1180_v8  ;;  %v1181_v44 = vmul.f32 %v2101_v61, %v1144_v12  ;;  %v1297_v14 = vsel %vm1265_vm13, 1.0, %v1939_v30 }
 0x14d   : > { %v1202_v13 = vadd.f32 %v2108_v3, %v1165_v9 }
 0x14e   : > { %1249 = vst [vmem:[%s2118_s13 + $0xf0] sm:$0xff] %v1217_v11  ;;  %vm1281_vm15 = vcmp.ge.f32.partialorder %v1217_v11, 0.0  ;;  %v1218_v16 = vadd.f32 %v2108_v3, %v1181_v44 }
 0x14f   : > { %1234 = vst [vmem:[%s2118_s13 + $0x78] sm:$0xff] %v1202_v13  ;;  %vm1266_vm14 = vcmp.ge.f32.partialorder %v1202_v13, 0.0  ;;  %v1313_v18 = vsel %vm1281_vm15, 1.0, %v1939_v30 }
 0x150   : > { %v1298_v15 = vsel %vm1266_vm14, 1.0, %v1939_v30  ;;  %1250 = vst [vmem:[%s2118_s13 + $0xf8] sm:$0xff] %v1218_v16  ;;  %vm1282_vm0 = vcmp.ge.f32.partialorder %v1218_v16, 0.0 }
 0x151   : > { %v1772_v17 = vpack.c.bf16 %v1298_v15, %v1297_v14  ;;  %v1314_v19 = vsel %vm1282_vm0, 1.0, %v1939_v30 }
 0x152   : > { %v1796_v20 = vpack.c.bf16 %v1314_v19, %v1313_v18 }
 0x153   : > { %1804 = vst [vmem:[%s2145_s15 + $0x38] sm:$0xff] %v1772_v17  }
 0x154   : > { %1812 = vst [vmem:[%s2145_s15 + $0x78] sm:$0xff] %v1796_v20  }
 0x155 PF: > { %s16_s20 = sadd.s32 1, %s1936_s20   ;;  %s2392_s18 = smov %s1932_s19 }
 0x156   : > { %p13_p5 = scmp.ge.s32.totalorder %s16_s20, 4   ;;  %s2393_s19 = smov %s2395_s21 }
 0x158   :  { %15 = sbr.rel (!%p13_p5) target bundleno = 2 (0x2), region = 92 }

// kernel: resnet_forward.7
= control target key start
LH: loop header
LB: loop body
LE: loop exit
PB: predicated region body
PF: predicated region fallthrough
CT: control target
= control target key end

     0   :  { %11 = vsyncpa [#allocation4], 0  ;;  %s3275_s0 = inlined_call_operand.vmem [shape: bf16[512,288], index: 0, kind: input, shape index: {}]   ;;  %s3276_s1 = inlined_call_operand.vmem [shape: bf16[288,128], index: 1, kind: input, shape index: {}]   ;;  %s3277_s2 = inlined_call_operand.vmem [shape: f32[8,128], index: 2, kind: input, shape index: {}]   ;;  %s3278_s3 = inlined_call_operand.vmem [shape: f32[512,128], index: 3, kind: input, shape index: {}]   ;;  %s3279_s4 = inlined_call_operand.vmem [shape: f32[512,128], index: 4, kind: output, shape index: {0}]   ;;  %s3280_s5 = inlined_call_operand.hbm [shape: bf16[512,128], index: 5, kind: output, shape index: {1}]  }
   0x1   :  { %13 = vsyncpa [#allocation4 + $0x1], 0  ;;  %s2654_s18 = smov 0   ;;  %s2656_s19 = smov 0  }
   0x2   :  { %s2658_s20 = smov 0   ;;  %s2660_s21 = smov 0  }
   0x3   :  { %s2662_s22 = smov 0   ;;  %s2664_s23 = smov 0  }
   0x4 LB: > { %s1985_s24 = sadd.s32 4294967295, %s2618_s23   ;;  %s1986_s25 = sadd.s32 4294967294, %s2618_s23   ;;  %s2618_s23 = sphi %s2664_s23, %s19_s23   ;;  %s2614_s22 = sphi %s2662_s22, %s3287_s22   ;;  %s2610_s21 = sphi %s2660_s21, %s3286_s21   ;;  %s2606_s20 = sphi %s2658_s20, %s3285_s20   ;;  %s2602_s19 = sphi %s2656_s19, %s3284_s19   ;;  %s2598_s18 = sphi %s2654_s18, %s3283_s18  }
   0x5   : > { %s31_s26 = sadd.s32 1, %s2614_s22  ;;  %s165_s27 = sadd.s32 1, %s2606_s20 }
   0x6   : > { %p33_p0 = scmp.ge.s32.totalorder %s31_s26, 2  ;;  %p175_p1 = scmp.ne.s32.totalorder %s2606_s20, %s2602_s19 }
   0x7   : > { %p176_p2 = scmp.eq.s32.totalorder %s1985_s24, 1  ;;  %p181_p3 = scmp.ne.s32.totalorder %s2602_s19, %s2598_s18 }
   0x8   : > { %s3289_s26 = smov (%p33_p0, %s31_s26), 0  ;;  %p182_p5 = scmp.eq.s32.totalorder %s1986_s25, 1 }
   0x9   : > { %p2694_p4 = por %p176_p2, %p175_p1  ;;  %s162_s29 = ssub.s32 %s2614_s22, %s3289_s26 }
   0xa   : > { %p1990_p6 = scmp.ge.s32.totalorder %s2618_s23, 1  ;;  %p163_p7 = scmp.eq.s32.totalorder %s162_s29, 0 }
   0xb   : > { %p2701_p8 = por %p182_p5, %p181_p3  ;;  %p236_p9 = scmp.lt.s32.totalorder %s2618_s23, 3 }
   0xc   : > { %s2707_s6 = scalar_select %p163_p7, %s2606_s20, %s165_s27  }
   0xd   : > { %p237_p10 = pnand %p1990_p6, %p236_p9 }
   0xe   : > { %v2458_v0 = vld [vmem:[%s3276_s1 + $0x40] sm:$0xff] (!%p237_p10)   ;;  %s1992_s9 = sshll.u32 (!%p237_p10), %s2610_s21, 5  ;;  %v2460_v2 = vld [vmem:[%s3276_s1 + $0x48] sm:$0xff] (!%p237_p10)   ;;  %v2462_v4 = vld [vmem:[%s3276_s1 + $0x50] sm:$0xff] (!%p237_p10)   ;;  %vm832_vm0 = vcmask (!%p237_p10), 261120   ;;  %s281_s25 = sand.u32 (!%p237_p10), 1, %s2602_s19  }
   0xf   : > { %240 = sbr.rel (%p237_p10) target bundleno = 404 (0x194), region = 36  ;;  %v2459_v1 = vld [vmem:[%s3276_s1] sm:$0xff] (!%p237_p10)   ;;  %2217 = vmatprep.subr.bf16.mxu0 (!%p237_p10), %v2458_v0  ;;  %2383 = vmatprep.subr.bf16.mxu1 (!%p237_p10), %v2458_v0  ;;  %p286_p11 = scmp.lt.s32.totalorder (!%p237_p10), %s1992_s9, 63  ;;  %v2461_v3 = vld [vmem:[%s3276_s1 + $0x8] sm:$0xff] (!%p237_p10)   ;;  %v2463_v5 = vld [vmem:[%s3276_s1 + $0x10] sm:$0xff] (!%p237_p10)  }
  0x10   : > { %2218 = vmatpush3.bf16.msra.mxu0 (!%p237_p10), %v2459_v1  ;;  %2391 = vmatpush3.bf16.msra.mxu1 (!%p237_p10), %v2459_v1  ;;  %v2464_v6 = vld [vmem:[%s3276_s1 + $0x58] sm:$0xff] (!%p237_p10)   ;;  %v2466_v8 = vld [vmem:[%s3276_s1 + $0x60] sm:$0xff] (!%p237_p10)   ;;  %v2468_v10 = vld [vmem:[%s3276_s1 + $0x68] sm:$0xff] (!%p237_p10)   ;;  %s2153_s8 = sshll.u32 (!%p237_p10), %s2610_s21, 11  ;;  %s3229_s13 = scalar_lea.sflag (!%p237_p10), [#allocation4], %s281_s25 }
  0x11   : > { %2219 = vmatprep.subr.bf16.mxu0 (!%p237_p10), %v2460_v2  ;;  %2384 = vmatprep.subr.bf16.mxu1 (!%p237_p10), %v2460_v2  ;;  %v2465_v7 = vld [vmem:[%s3276_s1 + $0x18] sm:$0xff] (!%p237_p10)   ;;  %v2467_v9 = vld [vmem:[%s3276_s1 + $0x20] sm:$0xff] (!%p237_p10)   ;;  %v2469_v13 = vld [vmem:[%s3276_s1 + $0x28] sm:$0xff] (!%p237_p10)   ;;  %s3221_s21 = scalar_lea.hbm (!%p237_p10), %s3280_s5, %s2153_s8  ;;  %s2621_s16 = smov (!%p237_p10), [#allocation3]  }
  0x12   : > { %v2470_v14 = vld [vmem:[%s3276_s1 + $0x70] sm:$0xff] (!%p237_p10)   ;;  %v2472_v16 = vld [vmem:[%s3276_s1 + $0x78] sm:$0xff] (!%p237_p10)   ;;  %v2480_v18 = vld [vmem:[%s3276_s1 + $0x80] sm:$0xff] (!%p237_p10)   ;;  %s2544_s17 = sshll.u32 (!%p237_p10), %s2621_s16, 4  ;;  %s2545_s17 = int_to_ptr.vmem [resolvable:$false] %s2544_s17 }
  0x13   : > { %v2471_v15 = vld [vmem:[%s3276_s1 + $0x30] sm:$0xff] (!%p237_p10)   ;;  %v2473_v17 = vld [vmem:[%s3276_s1 + $0x38] sm:$0xff] (!%p237_p10)   ;;  %v2493_v23 = vld [vmem:[%s3276_s1 + $0x88] sm:$0xff] (!%p237_p10)   ;;  %s2546_s24 = scalar_lea.vmem (!%p237_p10), %s2545_s17, 4096 }
  0x14   : > { %2220 = vmatpush3.bf16.msra.mxu0 (!%p237_p10), %v2461_v3  ;;  %2392 = vmatpush3.bf16.msra.mxu1 (!%p237_p10), %v2461_v3 }
  0x15   : > { %2221 = vmatprep.subr.bf16.mxu0 (!%p237_p10), %v2462_v4  ;;  %2385 = vmatprep.subr.bf16.mxu1 (!%p237_p10), %v2462_v4 }
  0x16   : > { %s3291_s9 = smov (!%p286_p11, %s1992_s9), 63 }
  0x17   : > { %s2399_s7 = smul.u32 12, %s3291_s9 }
  0x18   : > { %2222 = vmatpush3.bf16.msra.mxu0 %v2463_v5  ;;  %2393 = vmatpush3.bf16.msra.mxu1 %v2463_v5 }
  0x19   : > { %2223 = vmatprep.subr.bf16.mxu0 %v2464_v6  ;;  %2386 = vmatprep.subr.bf16.mxu1 %v2464_v6  ;;  %s2743_s15 = scalar_lea.vmem %s3275_s0, %s2399_s7 }
  0x1a   : > { %v2476_v11 = vld [vmem:[%s2743_s15 + $0x4] ss:$12 sps:$4 sm:$0xff]   ;;  %v2474_v19 = vld [vmem:[%s2743_s15] ss:$12 sps:$4 sm:$0xff]   ;;  %v2481_v21 = vld [vmem:[%s2743_s15 + $0x1c] ss:$12 sps:$4 sm:$0xff]  }
  0x1b   : > { %v2479_v12 = vld [vmem:[%s2743_s15 + $0x124] ss:$12 sps:$4 sm:$0xff]   ;;  %913 = vmatprep.mubr.bf16.mxu0 %v2476_v11  ;;  %v2477_v20 = vld [vmem:[%s2743_s15 + $0x120] ss:$12 sps:$4 sm:$0xff]   ;;  %v2483_v22 = vld [vmem:[%s2743_s15 + $0x13c] ss:$12 sps:$4 sm:$0xff]  }
  0x1c   : > { %2224 = vmatpush3.bf16.msra.mxu0 %v2465_v7  ;;  %2394 = vmatpush3.bf16.msra.mxu1 %v2465_v7  ;;  %v2485_v24 = vld [vmem:[%s2743_s15 + $0x18] ss:$12 sps:$4 sm:$0xff]   ;;  %v2487_v26 = vld [vmem:[%s2743_s15 + $0x34] ss:$12 sps:$4 sm:$0xff]   ;;  %v2491_v28 = vld [vmem:[%s2743_s15 + $0x30] ss:$12 sps:$4 sm:$0xff]  }
  0x1d   : > { %2225 = vmatprep.subr.bf16.mxu0 %v2466_v8  ;;  %2387 = vmatprep.subr.bf16.mxu1 %v2466_v8  ;;  %v2486_v25 = vld [vmem:[%s2743_s15 + $0x138] ss:$12 sps:$4 sm:$0xff]   ;;  %v2489_v27 = vld [vmem:[%s2743_s15 + $0x154] ss:$12 sps:$4 sm:$0xff]   ;;  %v2492_v29 = vld [vmem:[%s2743_s15 + $0x150] ss:$12 sps:$4 sm:$0xff]  }
  0x1e   : > { %1009 = vmatprep.mubr.bf16.mxu1 %v2479_v12  ;;  %v2494_v30 = vld [vmem:[%s2743_s15 + $0x4c] ss:$12 sps:$4 sm:$0xff]   ;;  %v2498_v32 = vld [vmem:[%s2743_s15 + $0x48] ss:$12 sps:$4 sm:$0xff]   ;;  %v2500_v34 = vld [vmem:[%s2743_s15 + $0x64] ss:$12 sps:$4 sm:$0xff]  }
  0x1f   : > { %v2496_v31 = vld [vmem:[%s2743_s15 + $0x16c] ss:$12 sps:$4 sm:$0xff]   ;;  %v2499_v33 = vld [vmem:[%s2743_s15 + $0x168] ss:$12 sps:$4 sm:$0xff]   ;;  %v2509_v41 = vld [vmem:[%s2743_s15 + $0x50] ss:$12 sps:$4 sm:$0xff]  }
  0x20   : > { %2226 = vmatpush3.bf16.msra.mxu0 %v2467_v9  ;;  %2395 = vmatpush3.bf16.msra.mxu1 %v2467_v9  ;;  %v2502_v35 = vld [vmem:[%s2743_s15 + $0x8] ss:$12 sps:$4 sm:$0xff]   ;;  %v2503_v36 = vld [vmem:[%s2743_s15 + $0x60] ss:$12 sps:$4 sm:$0xff]   ;;  %v2507_v39 = vld [vmem:[%s2743_s15 + $0x38] ss:$12 sps:$4 sm:$0xff]  }
  0x21   : > { %2227 = vmatprep.subr.bf16.mxu0 %v2468_v10  ;;  %2388 = vmatprep.subr.bf16.mxu1 %v2468_v10  ;;  %v2504_v37 = vld [vmem:[%s2743_s15 + $0x20] ss:$12 sps:$4 sm:$0xff]   ;;  %v2505_v38 = vld [vmem:[%s2743_s15 + $0x7c] ss:$12 sps:$4 sm:$0xff]   ;;  %v2508_v40 = vld [vmem:[%s2743_s15 + $0x78] ss:$12 sps:$4 sm:$0xff]  }
  0x22   : > { %v2510_v42 = vld [vmem:[%s2743_s15 + $0x94] ss:$12 sps:$4 sm:$0xff]   ;;  %v2513_v44 = vld [vmem:[%s2743_s15 + $0x90] ss:$12 sps:$4 sm:$0xff]   ;;  %v2515_v46 = vld [vmem:[%s2743_s15 + $0xac] ss:$12 sps:$4 sm:$0xff]  }
  0x23   : > { %v2512_v43 = vld [vmem:[%s2743_s15 + $0x68] ss:$12 sps:$4 sm:$0xff]   ;;  %v2514_v45 = vld [vmem:[%s2743_s15 + $0x80] ss:$12 sps:$4 sm:$0xff]   ;;  %v2517_v47 = vld [vmem:[%s2743_s15 + $0x98] ss:$12 sps:$4 sm:$0xff]  }
  0x24   : > { %2228 = vmatpush3.bf16.msra.mxu0 %v2469_v13  ;;  %2396 = vmatpush3.bf16.msra.mxu1 %v2469_v13  ;;  %v2518_v48 = vld [vmem:[%s2743_s15 + $0xa8] ss:$12 sps:$4 sm:$0xff]   ;;  %v2519_v49 = vld [vmem:[%s2743_s15 + $0xb0] ss:$12 sps:$4 sm:$0xff]   ;;  %v2523_v52 = vld [vmem:[%s2743_s15 + $0xc0] ss:$12 sps:$4 sm:$0xff]  }
  0x25   : > { %2229 = vmatprep.subr.bf16.mxu0 %v2470_v14  ;;  %2389 = vmatprep.subr.bf16.mxu1 %v2470_v14  ;;  %v2520_v50 = vld [vmem:[%s2743_s15 + $0xc4] ss:$12 sps:$4 sm:$0xff]   ;;  %v2522_v51 = vld [vmem:[%s2743_s15 + $0xc8] ss:$12 sps:$4 sm:$0xff]   ;;  %v2524_v53 = vld [vmem:[%s2743_s15 + $0xe0] ss:$12 sps:$4 sm:$0xff]  }
  0x26   : > { %v2525_v54 = vld [vmem:[%s2743_s15 + $0xdc] ss:$12 sps:$4 sm:$0xff]   ;;  %v2527_v55 = vld [vmem:[%s2743_s15 + $0xf8] ss:$12 sps:$4 sm:$0xff]   ;;  %v2530_v58 = vld [vmem:[%s2743_s15 + $0xf4] ss:$12 sps:$4 sm:$0xff]  }
  0x27   : > { %v2528_v56 = vld [vmem:[%s2743_s15 + $0xd8] ss:$12 sps:$4 sm:$0xff]   ;;  %v2529_v57 = vld [vmem:[%s2743_s15 + $0x110] ss:$12 sps:$4 sm:$0xff]   ;;  %v2532_v59 = vld [vmem:[%s2743_s15 + $0x128] ss:$12 sps:$4 sm:$0xff]  }
  0x28   : > { %2230 = vmatpush3.bf16.msra.mxu0 %v2471_v15  ;;  %2397 = vmatpush3.bf16.msra.mxu1 %v2471_v15  ;;  %v2533_v60 = vld [vmem:[%s2743_s15 + $0xf0] ss:$12 sps:$4 sm:$0xff]   ;;  %v2534_v61 = vld [vmem:[%s2743_s15 + $0x140] ss:$12 sps:$4 sm:$0xff]   ;;  %v2537_v63 = vld [vmem:[%s2743_s15 + $0x158] ss:$12 sps:$4 sm:$0xff]  }
  0x29   : > { %2231 = vmatprep.subr.bf16.mxu0 %v2472_v16  ;;  %2390 = vmatprep.subr.bf16.mxu1 %v2472_v16  ;;  %v2535_v62 = vld [vmem:[%s2743_s15 + $0x10c] ss:$12 sps:$4 sm:$0xff]   ;;  %v2538_v0 = vld [vmem:[%s2743_s15 + $0x108] ss:$12 sps:$4 sm:$0xff]   ;;  %v2539_v1 = vld [vmem:[%s2743_s15 + $0x170] ss:$12 sps:$4 sm:$0xff]  }
  0x2a   : > { %s1995_s15 = sshll.u32 %s3291_s9, 3  ;;  %s2920_s9 = sshll.u32 %s281_s25, 7 }
  0x2b   : > { %s2869_s11 = scalar_lea.vmem %s3278_s3, %s1995_s15  ;;  %s2909_s7 = scalar_lea.vmem %s3279_s4, %s1995_s15 }
  0x2c   : > { %2232 = vmatpush3.bf16.msra.mxu0 %v2473_v17  ;;  %2398 = vmatpush3.bf16.msra.mxu1 %v2473_v17  ;;  %s2945_s15 = scalar_lea.vmem [#allocation3], %s2920_s9 }
  0x2d   : > { %2347 = vmatprep.subr.bf16.mxu1 %v2480_v18  ;;  %s1857_s10 = sshll.u32 %s2945_s15, 4  ;;  %s3223_s10 = int_to_ptr.vmem [resolvable:$true] %s1857_s10 }
  0x2e   : > { %s2540_s14 = scalar_lea.vmem %s3223_s10, 2048  ;;  %p2547_p1 = scmp.lt.s32.totalorder %s3223_s10, %s2545_s17 }
  0x2f   : > { %914 = vmatmul.mubr.bf16.vlgmr.msra.gmra.mrb[0].mxu0 %v2474_v19  ;;  %1010 = vmatmul.mubr.bf16.vlgmr.msra.gmra.mrb[0].mxu1 %v2477_v20  ;;  %p2541_p12 = scmp.ne.s32.totalorder %s3223_s10, %s2540_s14  ;;  %p2548_p2 = scmp.lt.s32.totalorder %s2546_s24, %s2540_s14 }
  0x30   : > { %2348 = vmatpush3.bf16.msra.mxu1 %v2480_v18  ;;  %921 = vmatprep.mubr.bf16.mxu0 %v2481_v21 }
  0x31   : > { %1017 = vmatprep.mubr.bf16.mxu1 %v2483_v22  ;;  %2349 = vmatprep.subr.bf16.mxu1 %v2493_v23  ;;  %p2542_p13 = pnand %p2541_p12, %p2694_p4  ;;  %p2549_p3 = por %p2548_p2, %p2547_p1 }
  0x33   : > { %p2543_p0 = pneg %p2542_p13 }
  0x34   : > { %2350 = vmatpush3.bf16.msra.mxu1 %v2493_v23 }
  0x35   : > { %p2550_p5 = pnand %p2549_p3, %p2543_p0 }
  0x37   : > { %922 = vmatmul.mubr.bf16.gmra.mrb[4].mxu0 %v2485_v24  ;;  %1018 = vmatmul.mubr.bf16.gmra.mrb[4].mxu1 %v2486_v25 }
  0x38   : > { %929 = vmatprep.mubr.bf16.mxu0 %v2487_v26  ;;  %1025 = vmatprep.mubr.bf16.mxu1 %v2489_v27 }
  0x3f   : > { %930 = vmatmul.mubr.bf16.gmra.mrb[8].mxu0 %v2491_v28  ;;  %1026 = vmatmul.mubr.bf16.gmra.mrb[8].mxu1 %v2492_v29 }
  0x40   : > { %937 = vmatprep.mubr.bf16.mxu0 %v2494_v30  ;;  %1033 = vmatprep.mubr.bf16.mxu1 %v2496_v31 }
  0x47   : > { %938 = vmatmul.mubr.bf16.gmra.mrb[12].mxu0 %v2498_v32  ;;  %1034 = vmatmul.mubr.bf16.gmra.mrb[12].mxu1 %v2499_v33 }
  0x48   : > { %945 = vmatprep.mubr.bf16.mxu0 %v2500_v34  ;;  %2351 = vmatprep.mubr.msk.bf16.mxu1 %vm832_vm0, %v2502_v35 }
  0x4f   : > { %946 = vmatmul.mubr.bf16.gmra.mrb[16].mxu0 %v2503_v36  ;;  %2352 = vmatmul.mubr.msk.bf16.vlgmr.msra.gmra.mrb[16].mxu1 %vm832_vm0, %v2504_v37 }
  0x50   : > { %953 = vmatprep.mubr.bf16.mxu0 %v2505_v38  ;;  %2355 = vmatprep.mubr.msk.bf16.mxu1 %vm832_vm0, %v2507_v39 }
  0x57   : > { %954 = vmatmul.mubr.bf16.gmra.mrb[20].mxu0 %v2508_v40  ;;  %2356 = vmatmul.mubr.msk.bf16.gmra.mrb[20].mxu1 %vm832_vm0, %v2509_v41 }
  0x58   : > { %961 = vmatprep.mubr.bf16.mxu0 %v2510_v42  ;;  %2359 = vmatprep.mubr.msk.bf16.mxu1 %vm832_vm0, %v2512_v43 }
  0x5f   : > { %962 = vmatmul.mubr.bf16.gmra.mrb[24].mxu0 %v2513_v44  ;;  %2360 = vmatmul.mubr.msk.bf16.gmra.mrb[24].mxu1 %vm832_vm0, %v2514_v45 }
  0x60   : > { %969 = vmatprep.mubr.bf16.mxu0 %v2515_v46  ;;  %2363 = vmatprep.mubr.msk.bf16.mxu1 %vm832_vm0, %v2517_v47 }
  0x67   : > { %970 = vmatmul.mubr.bf16.gmra.mrb[28].mxu0 %v2518_v48  ;;  %2364 = vmatmul.mubr.msk.bf16.gmra.mrb[28].mxu1 %vm832_vm0, %v2519_v49 }
  0x68   : > { %977 = vmatprep.mubr.bf16.mxu0 %v2520_v50  ;;  %2367 = vmatprep.mubr.msk.bf16.mxu1 %vm832_vm0, %v2522_v51 }
  0x6f   : > { %978 = vmatmul.mubr.bf16.gmra.mrb[32].mxu0 %v2523_v52  ;;  %2368 = vmatmul.mubr.msk.bf16.gmra.mrb[32].mxu1 %vm832_vm0, %v2524_v53  ;;  %v2862_v52 = vld [vmem:[%s3277_s2] ss:$0 sm:$0xff] }
  0x70   : > { %985 = vmatprep.mubr.bf16.mxu0 %v2525_v54  ;;  %2371 = vmatprep.mubr.msk.bf16.mxu1 %vm832_vm0, %v2527_v55 }
  0x77   : > { %986 = vmatmul.mubr.bf16.gmra.mrb[36].mxu0 %v2528_v56  ;;  %2372 = vmatmul.mubr.msk.bf16.gmra.mrb[36].mxu1 %vm832_vm0, %v2529_v57  ;;  %v2874_v56 = vld [vmem:[%s3277_s2 + $0x1] ss:$0 sm:$0xff] }
  0x78   : > { %993 = vmatprep.mubr.bf16.mxu0 %v2530_v58  ;;  %2375 = vmatprep.mubr.msk.bf16.mxu1 %vm832_vm0, %v2532_v59 }
  0x7f   : > { %994 = vmatmul.mubr.bf16.gmra.mrb[40].mxu0 %v2533_v60  ;;  %2376 = vmatmul.mubr.msk.bf16.gmra.mrb[40].mxu1 %vm832_vm0, %v2534_v61 }
  0x80   : > { %1001 = vmatprep.mubr.bf16.mxu0 %v2535_v62  ;;  %2379 = vmatprep.mubr.msk.bf16.mxu1 %vm832_vm0, %v2537_v63 }
  0x87   : > { %1002 = vmatmul.mubr.bf16.gmra.mrb[44].mxu0 %v2538_v0  ;;  %2380 = vmatmul.mubr.msk.bf16.gmra.mrb[44].mxu1 %vm832_vm0, %v2539_v1 }
 0x102   : > { %v2233_v2 = vpop.f32.mrb[0].mxu0  ;;  %v2305_v3 = vpop.f32.mrb[0].mxu1 }
 0x103   : > { %v2234_v4 = vpop.f32.mrb[1].mxu0  ;;  %v2306_v5 = vpop.f32.mrb[1].mxu1 }
 0x104   : > { %v2235_v6 = vadd.f32 %v2234_v4, %v2233_v2  ;;  %v2836_v7 = vadd.f32 %v2306_v5, %v2305_v3  ;;  %v2236_v8 = vpop.f32.mrb[2].mxu0  ;;  %v2308_v9 = vpop.f32.mrb[2].mxu1  ;;  %v1442_v5 = vld [vmem:[%s2869_s11 + $0x10] sm:$0xff] }
 0x105   : > { %v2237_v10 = vpop.f32.mrb[3].mxu0  ;;  %v2309_v11 = vpop.f32.mrb[3].mxu1 }
 0x106   : > { %v2238_v12 = vadd.f32 %v2237_v10, %v2236_v8  ;;  %v2838_v13 = vadd.f32 %v2309_v11, %v2308_v9  ;;  %v1440_v9 = vld [vmem:[%s2869_s11] sm:$0xff] }
 0x10a   : > { %v2239_v14 = vpop.f32.mrb[4].mxu0  ;;  %v2311_v15 = vpop.f32.mrb[4].mxu1 }
 0x10b   : > { %v2240_v16 = vpop.f32.mrb[5].mxu0  ;;  %v2312_v17 = vpop.f32.mrb[5].mxu1 }
 0x10c   : > { %v2241_v18 = vadd.f32 %v2240_v16, %v2239_v14  ;;  %v2840_v19 = vadd.f32 %v2312_v17, %v2311_v15  ;;  %v2242_v20 = vpop.f32.mrb[6].mxu0  ;;  %v2314_v21 = vpop.f32.mrb[6].mxu1  ;;  %v2891_v14 = vld [vmem:[%s3277_s2 + $0x2] ss:$0 sm:$0xff]  ;;  %v1443_v15 = vld [vmem:[%s2869_s11 + $0x18] sm:$0xff] }
 0x10d   : > { %v2243_v22 = vpop.f32.mrb[7].mxu0  ;;  %v2315_v23 = vpop.f32.mrb[7].mxu1 }
 0x10e   : > { %v2244_v24 = vadd.f32 %v2243_v22, %v2242_v20  ;;  %v2842_v25 = vadd.f32 %v2315_v23, %v2314_v21  ;;  %v1441_v20 = vld [vmem:[%s2869_s11 + $0x8] sm:$0xff]  ;;  %v2900_v23 = vld [vmem:[%s3277_s2 + $0x3] ss:$0 sm:$0xff] }
 0x112   : > { %v2245_v26 = vpop.f32.mrb[8].mxu0  ;;  %v2317_v27 = vpop.f32.mrb[8].mxu1 }
 0x113   : > { %v2246_v28 = vpop.f32.mrb[9].mxu0  ;;  %v2318_v29 = vpop.f32.mrb[9].mxu1 }
 0x114   : > { %v2844_v30 = vadd.f32 %v2246_v28, %v2245_v26  ;;  %v2846_v31 = vadd.f32 %v2318_v29, %v2317_v27  ;;  %v2248_v32 = vpop.f32.mrb[10].mxu0  ;;  %v2320_v33 = vpop.f32.mrb[10].mxu1 }
 0x115   : > { %v2249_v34 = vpop.f32.mrb[11].mxu0  ;;  %v2321_v35 = vpop.f32.mrb[11].mxu1 }
 0x116   : > { %v2848_v36 = vadd.f32 %v2249_v34, %v2248_v32  ;;  %v2850_v37 = vadd.f32 %v2321_v35, %v2320_v33 }
 0x11a   : > { %v2251_v38 = vpop.f32.mrb[12].mxu0  ;;  %v2323_v39 = vpop.f32.mrb[12].mxu1 }
 0x11b   : > { %v2252_v40 = vpop.f32.mrb[13].mxu0  ;;  %v2324_v41 = vpop.f32.mrb[13].mxu1 }
 0x11c   : > { %v2253_v42 = vadd.f32 %v2252_v40, %v2251_v38  ;;  %v2852_v43 = vadd.f32 %v2324_v41, %v2323_v39  ;;  %v2254_v44 = vpop.f32.mrb[14].mxu0  ;;  %v2326_v45 = vpop.f32.mrb[14].mxu1 }
 0x11d   : > { %v2255_v46 = vpop.f32.mrb[15].mxu0  ;;  %v2327_v47 = vpop.f32.mrb[15].mxu1 }
 0x11e   : > { %v2854_v48 = vadd.f32 %v2255_v46, %v2254_v44  ;;  %v2856_v49 = vadd.f32 %v2327_v47, %v2326_v45 }
 0x122   : > { %v2257_v50 = vpop.f32.mrb[16].mxu0  ;;  %v2353_v51 = vpop.f32.mrb[16].mxu1 }
 0x123   : > { %v1085_v53 = vadd.f32 %v2353_v51, %v2241_v18  ;;  %v2258_v54 = vpop.f32.mrb[17].mxu0  ;;  %v1076_v55 = vpop.f32.mrb[17].mxu1 }
 0x124   : > { %v2876_v57 = vadd.f32 %v2258_v54, %v2257_v50  ;;  %v1077_v58 = vadd.f32 %v2235_v6, %v1076_v55  ;;  %v2260_v59 = vpop.f32.mrb[18].mxu0  ;;  %v2354_v60 = vpop.f32.mrb[18].mxu1 }
 0x125   : > { %v1309_v61 = vadd.f32 %v2862_v52, %v1085_v53  ;;  %v1088_v62 = vadd.f32 %v2354_v60, %v2244_v24  ;;  %v2261_v63 = vpop.f32.mrb[19].mxu0  ;;  %v1079_v0 = vpop.f32.mrb[19].mxu1 }
 0x126   : > { %v1307_v1 = vadd.f32 %v2862_v52, %v1077_v58  ;;  %v2880_v2 = vadd.f32 %v2261_v63, %v2260_v59  ;;  %v1080_v3 = vadd.f32 %v2238_v12, %v1079_v0  ;;  %v1446_v58 = vld [vmem:[%s2869_s11 + $0x30] sm:$0xff] }
 0x127   : > { %vm1341_vm1 = vcmp.ge.f32.partialorder %v1309_v61, 0.0  ;;  %v1378_v4 = vmul.f32 %v2874_v56, %v1309_v61  ;;  %v1310_v6 = vadd.f32 %v2862_v52, %v1088_v62 }
 0x128   : > { %vm1339_vm2 = vcmp.ge.f32.partialorder %v1307_v1, 0.0  ;;  %v1376_v8 = vmul.f32 %v2874_v56, %v1307_v1  ;;  %v1308_v10 = vadd.f32 %v2862_v52, %v1080_v3 }
 0x129   : > { %v1410_v11 = vsel %vm1341_vm1, %v1309_v61, %v1378_v4  ;;  %vm1342_vm3 = vcmp.ge.f32.partialorder %v1310_v6, 0.0  ;;  %v1379_v12 = vmul.f32 %v2874_v56, %v1310_v6  ;;  %v2620_v61 = vmov -1.0  }
 0x12a   : > { %v1474_v16 = vadd.f32 %v1442_v5, %v1410_v11  ;;  %v1408_v17 = vsel %vm1339_vm2, %v1307_v1, %v1376_v8  ;;  %vm1340_vm4 = vcmp.ge.f32.partialorder %v1308_v10, 0.0  ;;  %v1377_v18 = vmul.f32 %v2874_v56, %v1308_v10  ;;  %v2263_v21 = vpop.f32.mrb[20].mxu0  ;;  %v2357_v22 = vpop.f32.mrb[20].mxu1 }
 0x12b   : > { %v1472_v24 = vadd.f32 %v1440_v9, %v1408_v17  ;;  %v1411_v26 = vsel %vm1342_vm3, %v1310_v6, %v1379_v12  ;;  %v1101_v27 = vadd.f32 %v2357_v22, %v2253_v42  ;;  %v2264_v28 = vpop.f32.mrb[21].mxu0  ;;  %v1092_v29 = vpop.f32.mrb[21].mxu1  ;;  %v1444_v9 = vld [vmem:[%s2869_s11 + $0x20] sm:$0xff] }
 0x12c   : > { %v1511_v32 = vmul.f32 %v2891_v14, %v1474_v16  ;;  %v1475_v33 = vadd.f32 %v1443_v15, %v1411_v26  ;;  %v1409_v34 = vsel %vm1340_vm4, %v1308_v10, %v1377_v18  ;;  %v2265_v35 = vadd.f32 %v2264_v28, %v2263_v21  ;;  %v2266_v38 = vpop.f32.mrb[22].mxu0  ;;  %v2358_v39 = vpop.f32.mrb[22].mxu1  ;;  %v1447_v18 = vld [vmem:[%s2869_s11 + $0x38] sm:$0xff] }
 0x12d   : > { %v1509_v40 = vmul.f32 %v2891_v14, %v1472_v24  ;;  %v1473_v41 = vadd.f32 %v1441_v20, %v1409_v34  ;;  %v1313_v42 = vadd.f32 %v2862_v52, %v1101_v27  ;;  %v1093_v44 = vadd.f32 %v2844_v30, %v1092_v29  ;;  %v2267_v45 = vpop.f32.mrb[23].mxu0  ;;  %v1095_v46 = vpop.f32.mrb[23].mxu1 }
 0x12e   : > { %v1548_v47 = vadd.f32 %v2900_v23, %v1511_v32  ;;  %v1512_v50 = vmul.f32 %v2891_v14, %v1475_v33  ;;  %v1104_v51 = vadd.f32 %v2358_v39, %v2854_v48  ;;  %v2268_v53 = vadd.f32 %v2267_v45, %v2266_v38 }
 0x12f   : > { %v1546_v54 = vadd.f32 %v2900_v23, %v1509_v40  ;;  %v1510_v55 = vmul.f32 %v2891_v14, %v1473_v41  ;;  %vm1345_vm5 = vcmp.ge.f32.partialorder %v1313_v42, 0.0  ;;  %v1382_v30 = vmul.f32 %v2874_v56, %v1313_v42 }
 0x130   : > { %1580 = vst [vmem:[%s2909_s7 + $0x10] sm:$0xff] %v1548_v47  ;;  %vm1612_vm6 = vcmp.ge.f32.partialorder %v1548_v47, 0.0  ;;  %v1549_v59 = vadd.f32 %v2900_v23, %v1512_v50  ;;  %v1311_v60 = vadd.f32 %v2862_v52, %v1093_v44  ;;  %v1314_v48 = vadd.f32 %v2862_v52, %v1104_v51  ;;  %v1445_v50 = vld [vmem:[%s2869_s11 + $0x28] sm:$0xff] }
 0x131   : > { %v1644_v62 = vsel %vm1612_vm6, 1.0, %v2620_v61  ;;  %1578 = vst [vmem:[%s2909_s7] sm:$0xff] %v1546_v54  ;;  %vm1610_vm7 = vcmp.ge.f32.partialorder %v1546_v54, 0.0  ;;  %v1547_v63 = vadd.f32 %v2900_v23, %v1510_v55  ;;  %v1414_v0 = vsel %vm1345_vm5, %v1313_v42, %v1382_v30  ;;  %v1450_v54 = vld [vmem:[%s2869_s11 + $0x50] sm:$0xff] }
 0x132   : > { %v1642_v1 = vsel %vm1610_vm7, 1.0, %v2620_v61  ;;  %1581 = vst [vmem:[%s2909_s7 + $0x18] sm:$0xff] %v1549_v59  ;;  %vm1613_vm8 = vcmp.ge.f32.partialorder %v1549_v59, 0.0  ;;  %v1478_v3 = vadd.f32 %v1446_v58, %v1414_v0  ;;  %vm1343_vm9 = vcmp.ge.f32.partialorder %v1311_v60, 0.0  ;;  %v2269_v4 = vpop.f32.mrb[24].mxu0  ;;  %v2361_v5 = vpop.f32.mrb[24].mxu1 }
 0x133   : > { %v1645_v6 = vsel %vm1613_vm8, 1.0, %v2620_v61  ;;  %1579 = vst [vmem:[%s2909_s7 + $0x8] sm:$0xff] %v1547_v63  ;;  %vm1611_vm10 = vcmp.ge.f32.partialorder %v1547_v63, 0.0  ;;  %v1380_v8 = vmul.f32 %v2874_v56, %v1311_v60  ;;  %vm1346_vm11 = vcmp.ge.f32.partialorder %v1314_v48, 0.0  ;;  %v2270_v10 = vpop.f32.mrb[25].mxu0  ;;  %v1108_v11 = vpop.f32.mrb[25].mxu1 }
 0x134   : > { %v2158_v12 = vpack.c.bf16 %v1645_v6, %v1644_v62  ;;  %v1643_v15 = vsel %vm1611_vm10, 1.0, %v2620_v61  ;;  %v1515_v16 = vmul.f32 %v2891_v14, %v1478_v3  ;;  %v1383_v17 = vmul.f32 %v2874_v56, %v1314_v48  ;;  %v2272_v20 = vpop.f32.mrb[26].mxu0  ;;  %v2362_v21 = vpop.f32.mrb[26].mxu1 }
 0x135   : > { %v2155_v22 = vpack.c.bf16 %v1643_v15, %v1642_v1  ;;  %v1412_v24 = vsel %vm1343_vm9, %v1311_v60, %v1380_v8  ;;  %v1096_v26 = vadd.f32 %v2848_v36, %v1095_v46  ;;  %v1117_v27 = vadd.f32 %v2361_v5, %v2265_v35  ;;  %v2273_v28 = vpop.f32.mrb[27].mxu0  ;;  %v1111_v29 = vpop.f32.mrb[27].mxu1 }
 0x136   : > { %2202 = vst [vmem:[%s2945_s15 + $0x8] sm:$0xff] %v2158_v12   ;;  %v1552_v32 = vadd.f32 %v2900_v23, %v1515_v16  ;;  %v1476_v33 = vadd.f32 %v1444_v9, %v1412_v24  ;;  %v1415_v34 = vsel %vm1346_vm11, %v1314_v48, %v1383_v17  ;;  %v2950_v38 = vadd.f32 %v2270_v10, %v2269_v4  ;;  %v1448_v9 = vld [vmem:[%s2869_s11 + $0x40] sm:$0xff]  ;;  %v1451_v16 = vld [vmem:[%s2869_s11 + $0x58] sm:$0xff] }
 0x137   : > { %2156 = vst [vmem:[%s2945_s15] sm:$0xff] %v2155_v22   ;;  %v1479_v39 = vadd.f32 %v1447_v18, %v1415_v34  ;;  %v1312_v36 = vadd.f32 %v2862_v52, %v1096_v26  ;;  %v1317_v35 = vadd.f32 %v2862_v52, %v1117_v27  ;;  %v1109_v40 = vadd.f32 %v2876_v57, %v1108_v11 }
 0x138   : > { %1584 = vst [vmem:[%s2909_s7 + $0x30] sm:$0xff] %v1552_v32  ;;  %vm1616_vm12 = vcmp.ge.f32.partialorder %v1552_v32, 0.0  ;;  %v1513_v41 = vmul.f32 %v2891_v14, %v1476_v33  ;;  %v1120_v42 = vadd.f32 %v2362_v21, %v2268_v53  ;;  %v2958_v44 = vadd.f32 %v2273_v28, %v2272_v20  ;;  %v1449_v33 = vld [vmem:[%s2869_s11 + $0x48] sm:$0xff] }
 0x139   : > { %v1648_v45 = vsel %vm1616_vm12, 1.0, %v2620_v61  ;;  %v1516_v46 = vmul.f32 %v2891_v14, %v1479_v39  ;;  %vm1344_vm13 = vcmp.ge.f32.partialorder %v1312_v36, 0.0  ;;  %v1381_v47 = vmul.f32 %v2874_v56, %v1312_v36 }
 0x13a   : > { %v1550_v51 = vadd.f32 %v2900_v23, %v1513_v41  ;;  %vm1349_vm14 = vcmp.ge.f32.partialorder %v1317_v35, 0.0  ;;  %v1386_v57 = vmul.f32 %v2874_v56, %v1317_v35  ;;  %v1315_v55 = vadd.f32 %v2862_v52, %v1109_v40  ;;  %v2275_v53 = vpop.f32.mrb[28].mxu0  ;;  %v2365_v30 = vpop.f32.mrb[28].mxu1 }
 0x13b   : > { %v1553_v58 = vadd.f32 %v2900_v23, %v1516_v46  ;;  %v1413_v59 = vsel %vm1344_vm13, %v1312_v36, %v1381_v47  ;;  %v1318_v60 = vadd.f32 %v2862_v52, %v1120_v42  ;;  %v1112_v48 = vadd.f32 %v2880_v2, %v1111_v29  ;;  %v2276_v62 = vpop.f32.mrb[29].mxu0  ;;  %v1124_v63 = vpop.f32.mrb[29].mxu1 }
 0x13c   : > { %1582 = vst [vmem:[%s2909_s7 + $0x20] sm:$0xff] %v1550_v51  ;;  %vm1614_vm15 = vcmp.ge.f32.partialorder %v1550_v51, 0.0  ;;  %v1477_v0 = vadd.f32 %v1445_v50, %v1413_v59  ;;  %v1418_v1 = vsel %vm1349_vm14, %v1317_v35, %v1386_v57  ;;  %vm1347_vm0 = vcmp.ge.f32.partialorder %v1315_v55, 0.0  ;;  %v2278_v3 = vpop.f32.mrb[30].mxu0  ;;  %v2972_v4 = vpop.f32.mrb[30].mxu1 }
 0x13d   : > { %v1646_v5 = vsel %vm1614_vm15, 1.0, %v2620_v61  ;;  %1585 = vst [vmem:[%s2909_s7 + $0x38] sm:$0xff] %v1553_v58  ;;  %vm1617_vm1 = vcmp.ge.f32.partialorder %v1553_v58, 0.0  ;;  %v1482_v6 = vadd.f32 %v1450_v54, %v1418_v1  ;;  %v1384_v8 = vmul.f32 %v2874_v56, %v1315_v55  ;;  %v2279_v2 = vpop.f32.mrb[31].mxu0  ;;  %v1127_v10 = vpop.f32.mrb[31].mxu1 }
 0x13e   : > { %v1649_v11 = vsel %vm1617_vm1, 1.0, %v2620_v61  ;;  %v1514_v12 = vmul.f32 %v2891_v14, %v1477_v0  ;;  %vm1350_vm2 = vcmp.ge.f32.partialorder %v1318_v60, 0.0  ;;  %v1387_v15 = vmul.f32 %v2874_v56, %v1318_v60 }
 0x13f   : > { %v2164_v17 = vpack.c.bf16 %v1649_v11, %v1648_v45  ;;  %v1519_v18 = vmul.f32 %v2891_v14, %v1482_v6  ;;  %v1416_v20 = vsel %vm1347_vm0, %v1315_v55, %v1384_v8  ;;  %v1316_v21 = vadd.f32 %v2862_v52, %v1112_v48 }
 0x140   : > { %v1551_v22 = vadd.f32 %v2900_v23, %v1514_v12  ;;  %v1480_v24 = vadd.f32 %v1448_v9, %v1416_v20  ;;  %v1419_v26 = vsel %vm1350_vm2, %v1318_v60, %v1387_v15  ;;  %v2277_v27 = vadd.f32 %v2276_v62, %v2275_v53 }
 0x141   : > { %2204 = vst [vmem:[%s2945_s15 + $0x18] sm:$0xff] %v2164_v17   ;;  %v1556_v28 = vadd.f32 %v2900_v23, %v1519_v18  ;;  %v1483_v29 = vadd.f32 %v1451_v16, %v1419_v26  ;;  %vm1348_vm3 = vcmp.ge.f32.partialorder %v1316_v21, 0.0  ;;  %v1385_v32 = vmul.f32 %v2874_v56, %v1316_v21 }
 0x142   : > { %1583 = vst [vmem:[%s2909_s7 + $0x28] sm:$0xff] %v1551_v22  ;;  %vm1615_vm4 = vcmp.ge.f32.partialorder %v1551_v22, 0.0  ;;  %v1517_v34 = vmul.f32 %v2891_v14, %v1480_v24  ;;  %v1133_v39 = vadd.f32 %v2365_v30, %v2277_v27  ;;  %v1125_v36 = vadd.f32 %v2950_v38, %v1124_v63  ;;  %v2281_v35 = vpop.f32.mrb[32].mxu0  ;;  %v2993_v40 = vpop.f32.mrb[32].mxu1 }
 0x143   : > { %v1647_v41 = vsel %vm1615_vm4, 1.0, %v2620_v61  ;;  %1588 = vst [vmem:[%s2909_s7 + $0x50] sm:$0xff] %v1556_v28  ;;  %vm1620_vm5 = vcmp.ge.f32.partialorder %v1556_v28, 0.0  ;;  %v1520_v42 = vmul.f32 %v2891_v14, %v1483_v29  ;;  %v1417_v45 = vsel %vm1348_vm3, %v1316_v21, %v1385_v32  ;;  %v2282_v46 = vpop.f32.mrb[33].mxu0  ;;  %v1140_v47 = vpop.f32.mrb[33].mxu1  ;;  %v1453_v32 = vld [vmem:[%s2869_s11 + $0x68] sm:$0xff] }
 0x144   : > { %v2161_v50 = vpack.c.bf16 %v1647_v41, %v1646_v5  ;;  %v1652_v51 = vsel %vm1620_vm5, 1.0, %v2620_v61  ;;  %v1554_v57 = vadd.f32 %v2900_v23, %v1517_v34  ;;  %v1481_v38 = vadd.f32 %v1449_v33, %v1417_v45  ;;  %v2284_v54 = vpop.f32.mrb[34].mxu0  ;;  %v3000_v55 = vpop.f32.mrb[34].mxu1  ;;  %v1455_v41 = vld [vmem:[%s2869_s11 + $0x78] sm:$0xff] }
 0x145   : > { %v1557_v53 = vadd.f32 %v2900_v23, %v1520_v42  ;;  %v1321_v30 = vadd.f32 %v2862_v52, %v1133_v39  ;;  %v1319_v58 = vadd.f32 %v2862_v52, %v1125_v36  ;;  %v2280_v59 = vadd.f32 %v2279_v2, %v2278_v3  ;;  %v2285_v60 = vpop.f32.mrb[35].mxu0  ;;  %v1143_v48 = vpop.f32.mrb[35].mxu1  ;;  %v1454_v3 = vld [vmem:[%s2869_s11 + $0x70] sm:$0xff]  ;;  %v1452_v2 = vld [vmem:[%s2869_s11 + $0x60] sm:$0xff] }
 0x146   : > { %2203 = vst [vmem:[%s2945_s15 + $0x10] sm:$0xff] %v2161_v50   ;;  %1586 = vst [vmem:[%s2909_s7 + $0x40] sm:$0xff] %v1554_v57  ;;  %vm1618_vm6 = vcmp.ge.f32.partialorder %v1554_v57, 0.0  ;;  %v1518_v62 = vmul.f32 %v2891_v14, %v1481_v38  ;;  %v1128_v63 = vadd.f32 %v2958_v44, %v1127_v10  ;;  %v2283_v0 = vadd.f32 %v2282_v46, %v2281_v35  ;;  %v1456_v57 = vld [vmem:[%s2869_s11 + $0x80] sm:$0xff] }
 0x147   : > { %v1650_v1 = vsel %vm1618_vm6, 1.0, %v2620_v61  ;;  %1589 = vst [vmem:[%s2909_s7 + $0x58] sm:$0xff] %v1557_v53  ;;  %vm1621_vm7 = vcmp.ge.f32.partialorder %v1557_v53, 0.0  ;;  %vm1353_vm8 = vcmp.ge.f32.partialorder %v1321_v30, 0.0  ;;  %v1390_v5 = vmul.f32 %v2874_v56, %v1321_v30 }
 0x148   : > { %v1653_v6 = vsel %vm1621_vm7, 1.0, %v2620_v61  ;;  %v1555_v8 = vadd.f32 %v2900_v23, %v1518_v62  ;;  %vm1351_vm9 = vcmp.ge.f32.partialorder %v1319_v58, 0.0  ;;  %v1388_v9 = vmul.f32 %v2874_v56, %v1319_v58 }
 0x149   : > { %v2170_v44 = vpack.c.bf16 %v1653_v6, %v1652_v51  ;;  %v1422_v10 = vsel %vm1353_vm8, %v1321_v30, %v1390_v5  ;;  %v1136_v11 = vadd.f32 %v2972_v4, %v2280_v59  ;;  %v1320_v12 = vadd.f32 %v2862_v52, %v1128_v63 }
 0x14a   : > { %1587 = vst [vmem:[%s2909_s7 + $0x48] sm:$0xff] %v1555_v8  ;;  %vm1619_vm10 = vcmp.ge.f32.partialorder %v1555_v8, 0.0  ;;  %v1486_v15 = vadd.f32 %v1454_v3, %v1422_v10  ;;  %v1420_v16 = vsel %vm1351_vm9, %v1319_v58, %v1388_v9  ;;  %v1141_v17 = vadd.f32 %v2283_v0, %v1140_v47  ;;  %v2287_v18 = vpop.f32.mrb[36].mxu0  ;;  %v3020_v20 = vpop.f32.mrb[36].mxu1 }
 0x14b   : > { %2206 = vst [vmem:[%s2945_s15 + $0x28] sm:$0xff] %v2170_v44   ;;  %v1651_v21 = vsel %vm1619_vm10, 1.0, %v2620_v61  ;;  %v1484_v22 = vadd.f32 %v1452_v2, %v1420_v16  ;;  %v1322_v24 = vadd.f32 %v2862_v52, %v1136_v11  ;;  %vm1352_vm11 = vcmp.ge.f32.partialorder %v1320_v12, 0.0  ;;  %v2288_v4 = vpop.f32.mrb[37].mxu0  ;;  %v3025_v26 = vpop.f32.mrb[37].mxu1 }
 0x14c   : > { %v2167_v27 = vpack.c.bf16 %v1651_v21, %v1650_v1  ;;  %v1523_v28 = vmul.f32 %v2891_v14, %v1486_v15  ;;  %v1389_v29 = vmul.f32 %v2874_v56, %v1320_v12  ;;  %v1323_v33 = vadd.f32 %v2862_v52, %v1141_v17  ;;  %v2290_v34 = vpop.f32.mrb[38].mxu0  ;;  %v3031_v39 = vpop.f32.mrb[38].mxu1  ;;  %v1457_v17 = vld [vmem:[%s2869_s11 + $0x88] sm:$0xff] }
 0x14d   : > { %v1521_v36 = vmul.f32 %v2891_v14, %v1484_v22  ;;  %vm1354_vm12 = vcmp.ge.f32.partialorder %v1322_v24, 0.0  ;;  %v1391_v35 = vmul.f32 %v2874_v56, %v1322_v24  ;;  %v2286_v42 = vadd.f32 %v2285_v60, %v2284_v54  ;;  %v2291_v45 = vpop.f32.mrb[39].mxu0  ;;  %v3036_v46 = vpop.f32.mrb[39].mxu1 }
 0x14e   : > { %2205 = vst [vmem:[%s2945_s15 + $0x20] sm:$0xff] %v2167_v27   ;;  %v1560_v47 = vadd.f32 %v2900_v23, %v1523_v28  ;;  %v1421_v50 = vsel %vm1352_vm11, %v1320_v12, %v1389_v29  ;;  %vm1355_vm13 = vcmp.ge.f32.partialorder %v1323_v33, 0.0  ;;  %v1392_v51 = vmul.f32 %v2874_v56, %v1323_v33 }
 0x14f   : > { %v1558_v38 = vadd.f32 %v2900_v23, %v1521_v36  ;;  %v1423_v53 = vsel %vm1354_vm12, %v1322_v24, %v1391_v35  ;;  %v1485_v30 = vadd.f32 %v1453_v32, %v1421_v50  ;;  %v1144_v58 = vadd.f32 %v2286_v42, %v1143_v48  ;;  %v1466_v50 = vld [vmem:[%s2869_s11 + $0xd0] sm:$0xff] }
 0x150   : > { %1592 = vst [vmem:[%s2909_s7 + $0x70] sm:$0xff] %v1560_v47  ;;  %vm1624_vm14 = vcmp.ge.f32.partialorder %v1560_v47, 0.0  ;;  %v1487_v54 = vadd.f32 %v1455_v41, %v1423_v53  ;;  %v1424_v59 = vsel %vm1355_vm13, %v1323_v33, %v1392_v51  ;;  %v2289_v60 = vadd.f32 %v2288_v4, %v2287_v18  ;;  %v1458_v41 = vld [vmem:[%s2869_s11 + $0x90] sm:$0xff]  ;;  %v1459_v53 = vld [vmem:[%s2869_s11 + $0x98] sm:$0xff] }
 0x151   : > { %v1656_v62 = vsel %vm1624_vm14, 1.0, %v2620_v61  ;;  %1590 = vst [vmem:[%s2909_s7 + $0x60] sm:$0xff] %v1558_v38  ;;  %vm1622_vm15 = vcmp.ge.f32.partialorder %v1558_v38, 0.0  ;;  %v1522_v63 = vmul.f32 %v2891_v14, %v1485_v30  ;;  %v1488_v0 = vadd.f32 %v1456_v57, %v1424_v59 }
 0x152   : > { %v1654_v1 = vsel %vm1622_vm15, 1.0, %v2620_v61  ;;  %v1524_v5 = vmul.f32 %v2891_v14, %v1487_v54  ;;  %v1324_v3 = vadd.f32 %v2862_v52, %v1144_v58  ;;  %v1149_v48 = vadd.f32 %v2993_v40, %v2289_v60  ;;  %v2293_v6 = vpop.f32.mrb[40].mxu0  ;;  %v2377_v8 = vpop.f32.mrb[40].mxu1 }
 0x153   : > { %v1559_v9 = vadd.f32 %v2900_v23, %v1522_v63  ;;  %v1525_v2 = vmul.f32 %v2891_v14, %v1488_v0  ;;  %v2292_v44 = vadd.f32 %v2291_v45, %v2290_v34  ;;  %v1181_v10 = vadd.f32 %v2377_v8, %v2840_v19  ;;  %v2294_v11 = vpop.f32.mrb[41].mxu0  ;;  %v1172_v12 = vpop.f32.mrb[41].mxu1 }
 0x154   : > { %v1561_v15 = vadd.f32 %v2900_v23, %v1524_v5  ;;  %vm1356_vm0 = vcmp.ge.f32.partialorder %v1324_v3, 0.0  ;;  %v1393_v16 = vmul.f32 %v2874_v56, %v1324_v3  ;;  %v1325_v40 = vadd.f32 %v2862_v52, %v1149_v48  ;;  %v3059_v18 = vpop.f32.mrb[42].mxu0  ;;  %v2378_v21 = vpop.f32.mrb[42].mxu1 }
 0x155   : > { %1591 = vst [vmem:[%s2909_s7 + $0x68] sm:$0xff] %v1559_v9  ;;  %vm1623_vm1 = vcmp.ge.f32.partialorder %v1559_v9, 0.0  ;;  %v1562_v22 = vadd.f32 %v2900_v23, %v1525_v2  ;;  %v1152_v19 = vadd.f32 %v3000_v55, %v2292_v44  ;;  %v1333_v24 = vadd.f32 %v2862_v52, %v1181_v10  ;;  %v3065_v4 = vpop.f32.mrb[43].mxu0  ;;  %v3067_v27 = vpop.f32.mrb[43].mxu1 }
 0x156   : > { %1593 = vst [vmem:[%s2909_s7 + $0x78] sm:$0xff] %v1561_v15  ;;  %vm1625_vm2 = vcmp.ge.f32.partialorder %v1561_v15, 0.0  ;;  %v1655_v28 = vsel %vm1623_vm1, 1.0, %v2620_v61  ;;  %v1425_v29 = vsel %vm1356_vm0, %v1324_v3, %v1393_v16  ;;  %vm1357_vm3 = vcmp.ge.f32.partialorder %v1325_v40, 0.0  ;;  %v1464_v15 = vld [vmem:[%s2869_s11 + $0xc0] sm:$0xff] }
 0x157   : > { %v1657_v32 = vsel %vm1625_vm2, 1.0, %v2620_v61  ;;  %v2173_v55 = vpack.c.bf16 %v1655_v28, %v1654_v1  ;;  %1594 = vst [vmem:[%s2909_s7 + $0x80] sm:$0xff] %v1562_v22  ;;  %vm1626_vm4 = vcmp.ge.f32.partialorder %v1562_v22, 0.0  ;;  %v1489_v33 = vadd.f32 %v1457_v17, %v1425_v29 }
 0x158   : > { %v2176_v34 = vpack.c.bf16 %v1657_v32, %v1656_v62  ;;  %v1658_v36 = vsel %vm1626_vm4, 1.0, %v2620_v61  ;;  %v1394_v35 = vmul.f32 %v2874_v56, %v1325_v40  ;;  %v1326_v42 = vadd.f32 %v2862_v52, %v1152_v19  ;;  %v1460_v19 = vld [vmem:[%s2869_s11 + $0xa0] sm:$0xff] }
 0x159   : > { %2207 = vst [vmem:[%s2945_s15 + $0x30] sm:$0xff] %v2173_v55   ;;  %v1526_v45 = vmul.f32 %v2891_v14, %v1489_v33  ;;  %vm1365_vm5 = vcmp.ge.f32.partialorder %v1333_v24, 0.0  ;;  %v1402_v47 = vmul.f32 %v2874_v56, %v1333_v24  ;;  %v2295_v51 = vadd.f32 %v2294_v11, %v2293_v6 }
 0x15a   : > { %2208 = vst [vmem:[%s2945_s15 + $0x38] sm:$0xff] %v2176_v34   ;;  %v1426_v57 = vsel %vm1357_vm3, %v1325_v40, %v1394_v35  ;;  %vm1358_vm6 = vcmp.ge.f32.partialorder %v1326_v42, 0.0  ;;  %v1395_v38 = vmul.f32 %v2874_v56, %v1326_v42  ;;  %v1173_v30 = vadd.f32 %v2836_v7, %v1172_v12  ;;  %v2299_v58 = vpop.f32.mrb[44].mxu0  ;;  %v2381_v54 = vpop.f32.mrb[44].mxu1 }
 0x15b   : > { %v1563_v59 = vadd.f32 %v2900_v23, %v1526_v45  ;;  %v1490_v60 = vadd.f32 %v1458_v41, %v1426_v57  ;;  %v1434_v62 = vsel %vm1365_vm5, %v1333_v24, %v1402_v47  ;;  %v1157_v63 = vadd.f32 %v2295_v51, %v3025_v26  ;;  %v2300_v0 = vpop.f32.mrb[45].mxu0  ;;  %v3089_v1 = vpop.f32.mrb[45].mxu1  ;;  %v1467_v45 = vld [vmem:[%s2869_s11 + $0xd8] sm:$0xff] }
 0x15c   : > { %v1427_v5 = vsel %vm1358_vm6, %v1326_v42, %v1395_v38  ;;  %v1498_v3 = vadd.f32 %v1466_v50, %v1434_v62  ;;  %v1331_v48 = vadd.f32 %v2862_v52, %v1173_v30  ;;  %v1184_v6 = vadd.f32 %v2378_v21, %v2842_v25  ;;  %v3093_v8 = vpop.f32.mrb[46].mxu0  ;;  %v3095_v7 = vpop.f32.mrb[46].mxu1 }
 0x15d   : > { %1595 = vst [vmem:[%s2909_s7 + $0x88] sm:$0xff] %v1563_v59  ;;  %vm1627_vm7 = vcmp.ge.f32.partialorder %v1563_v59, 0.0  ;;  %v1527_v9 = vmul.f32 %v2891_v14, %v1490_v60  ;;  %v1491_v26 = vadd.f32 %v1459_v53, %v1427_v5  ;;  %v1327_v2 = vadd.f32 %v2862_v52, %v1157_v63  ;;  %v3100_v44 = vpop.f32.mrb[47].mxu0  ;;  %v3102_v10 = vpop.f32.mrb[47].mxu1  ;;  %v1461_v60 = vld [vmem:[%s2869_s11 + $0xa8] sm:$0xff] }
 0x15e   : > { %v1659_v25 = vsel %vm1627_vm7, 1.0, %v2620_v61  ;;  %v1535_v11 = vmul.f32 %v2891_v14, %v1498_v3  ;;  %vm1363_vm8 = vcmp.ge.f32.partialorder %v1331_v48, 0.0  ;;  %v1400_v12 = vmul.f32 %v2874_v56, %v1331_v48 }
 0x15f   : > { %v2179_v16 = vpack.c.bf16 %v1659_v25, %v1658_v36  ;;  %v1564_v17 = vadd.f32 %v2900_v23, %v1527_v9  ;;  %v1528_v40 = vmul.f32 %v2891_v14, %v1491_v26  ;;  %vm1359_vm9 = vcmp.ge.f32.partialorder %v1327_v2, 0.0 }
 0x160   : > { %v1572_v21 = vadd.f32 %v2900_v23, %v1535_v11  ;;  %v1396_v22 = vmul.f32 %v2874_v56, %v1327_v2  ;;  %v1432_v24 = vsel %vm1363_vm8, %v1331_v48, %v1400_v12  ;;  %v1334_v28 = vadd.f32 %v2862_v52, %v1184_v6  ;;  %v1470_v48 = vld [vmem:[%s2869_s11 + $0xf0] sm:$0xff] }
 0x161   : > { %2209 = vst [vmem:[%s2945_s15 + $0x40] sm:$0xff] %v2179_v16   ;;  %1596 = vst [vmem:[%s2909_s7 + $0x90] sm:$0xff] %v1564_v17  ;;  %vm1628_vm10 = vcmp.ge.f32.partialorder %v1564_v17, 0.0  ;;  %v1565_v29 = vadd.f32 %v2900_v23, %v1528_v40  ;;  %v1496_v32 = vadd.f32 %v1464_v15, %v1432_v24  ;;  %v2298_v55 = vadd.f32 %v3065_v4, %v3059_v18 }
 0x162   : > { %v1660_v33 = vsel %vm1628_vm10, 1.0, %v2620_v61  ;;  %1604 = vst [vmem:[%s2909_s7 + $0xd0] sm:$0xff] %v1572_v21  ;;  %vm1636_vm11 = vcmp.ge.f32.partialorder %v1572_v21, 0.0  ;;  %v1428_v34 = vsel %vm1359_vm9, %v1327_v2, %v1396_v22  ;;  %vm1366_vm13 = vcmp.ge.f32.partialorder %v1334_v28, 0.0  ;;  %v1462_v22 = vld [vmem:[%s2869_s11 + $0xb0] sm:$0xff] }
 0x163   : > { %1597 = vst [vmem:[%s2909_s7 + $0x98] sm:$0xff] %v1565_v29  ;;  %vm1629_vm12 = vcmp.ge.f32.partialorder %v1565_v29, 0.0  ;;  %v1492_v36 = vadd.f32 %v1460_v19, %v1428_v34  ;;  %v1533_v35 = vmul.f32 %v2891_v14, %v1496_v32  ;;  %v1403_v42 = vmul.f32 %v2874_v56, %v1334_v28  ;;  %v1468_v34 = vld [vmem:[%s2869_s11 + $0xe0] sm:$0xff] }
 0x164   : > { %v1661_v41 = vsel %vm1629_vm12, 1.0, %v2620_v61  ;;  %v1160_v18 = vadd.f32 %v2298_v55, %v3036_v46  ;;  %v1176_v4 = vadd.f32 %v2838_v13, %v3067_v27  ;;  %v1197_v57 = vadd.f32 %v2381_v54, %v2852_v43 }
 0x165   : > { %v2182_v47 = vpack.c.bf16 %v1661_v41, %v1660_v33  ;;  %v1529_v50 = vmul.f32 %v2891_v14, %v1492_v36  ;;  %v1570_v51 = vadd.f32 %v2900_v23, %v1533_v35  ;;  %v1435_v38 = vsel %vm1366_vm13, %v1334_v28, %v1403_v42 }
 0x166   : > { %v1328_v53 = vadd.f32 %v2862_v52, %v1160_v18  ;;  %v1332_v30 = vadd.f32 %v2862_v52, %v1176_v4  ;;  %v2301_v59 = vadd.f32 %v2300_v0, %v2299_v58  ;;  %v1499_v13 = vadd.f32 %v1467_v45, %v1435_v38  ;;  %v1465_v0 = vld [vmem:[%s2869_s11 + $0xc8] sm:$0xff] }
 0x167   : > { %2210 = vst [vmem:[%s2945_s15 + $0x48] sm:$0xff] %v2182_v47   ;;  %v1566_v46 = vadd.f32 %v2900_v23, %v1529_v50  ;;  %1602 = vst [vmem:[%s2909_s7 + $0xc0] sm:$0xff] %v1570_v51  ;;  %vm1634_vm14 = vcmp.ge.f32.partialorder %v1570_v51, 0.0  ;;  %v1337_v27 = vadd.f32 %v2862_v52, %v1197_v57  ;;  %v1668_v43 = vsel %vm1636_vm11, 1.0, %v2620_v61  ;;  %v1471_v50 = vld [vmem:[%s2869_s11 + $0xf8] sm:$0xff] }
 0x168   : > { %vm1360_vm15 = vcmp.ge.f32.partialorder %v1328_v53, 0.0  ;;  %v1397_v54 = vmul.f32 %v2874_v56, %v1328_v53  ;;  %vm1364_vm0 = vcmp.ge.f32.partialorder %v1332_v30, 0.0  ;;  %v1666_v58 = vsel %vm1634_vm14, 1.0, %v2620_v61 }
 0x169   : > { %1598 = vst [vmem:[%s2909_s7 + $0xa0] sm:$0xff] %v1566_v46  ;;  %v1536_v62 = vmul.f32 %v2891_v14, %v1499_v13  ;;  %v1401_v63 = vmul.f32 %v2874_v56, %v1332_v30  ;;  %vm1369_vm1 = vcmp.ge.f32.partialorder %v1337_v27, 0.0  ;;  %vm1630_vm2 = vcmp.ge.f32.partialorder %v1566_v46, 0.0 }
 0x16a   : > { %v1429_v5 = vsel %vm1360_vm15, %v1328_v53, %v1397_v54  ;;  %v1406_v3 = vmul.f32 %v2874_v56, %v1337_v27  ;;  %v1165_v6 = vadd.f32 %v3020_v20, %v2301_v59  ;;  %v1189_v25 = vadd.f32 %v2846_v31, %v3089_v1  ;;  %v1469_v54 = vld [vmem:[%s2869_s11 + $0xe8] sm:$0xff] }
 0x16b   : > { %v1573_v9 = vadd.f32 %v2900_v23, %v1536_v62  ;;  %v1493_v26 = vadd.f32 %v1461_v60, %v1429_v5  ;;  %v1433_v2 = vsel %vm1364_vm0, %v1332_v30, %v1401_v63  ;;  %v1200_v16 = vadd.f32 %v3095_v7, %v2856_v49 }
 0x16c   : > { %v1497_v11 = vadd.f32 %v1465_v0, %v1433_v2  ;;  %v1438_v12 = vsel %vm1369_vm1, %v1337_v27, %v1406_v3  ;;  %v1329_v15 = vadd.f32 %v2862_v52, %v1165_v6  ;;  %v1335_v40 = vadd.f32 %v2862_v52, %v1189_v25 }
 0x16d   : > { %1605 = vst [vmem:[%s2909_s7 + $0xd8] sm:$0xff] %v1573_v9  ;;  %vm1637_vm3 = vcmp.ge.f32.partialorder %v1573_v9, 0.0  ;;  %v1530_v17 = vmul.f32 %v2891_v14, %v1493_v26  ;;  %v1502_v20 = vadd.f32 %v1470_v48, %v1438_v12  ;;  %v1338_v32 = vadd.f32 %v2862_v52, %v1200_v16 }
 0x16e   : > { %v1669_v21 = vsel %vm1637_vm3, 1.0, %v2620_v61  ;;  %v1534_v31 = vmul.f32 %v2891_v14, %v1497_v11  ;;  %vm1361_vm4 = vcmp.ge.f32.partialorder %v1329_v15, 0.0  ;;  %v1398_v1 = vmul.f32 %v2874_v56, %v1329_v15 }
 0x16f   : > { %v2194_v19 = vpack.c.bf16 %v1669_v21, %v1668_v43  ;;  %v1567_v49 = vadd.f32 %v2900_v23, %v1530_v17  ;;  %v1539_v7 = vmul.f32 %v2891_v14, %v1502_v20  ;;  %vm1367_vm5 = vcmp.ge.f32.partialorder %v1335_v40, 0.0 }
 0x170   : > { %v1571_v24 = vadd.f32 %v2900_v23, %v1534_v31  ;;  %v1430_v28 = vsel %vm1361_vm4, %v1329_v15, %v1398_v1  ;;  %v1404_v29 = vmul.f32 %v2874_v56, %v1335_v40  ;;  %v2304_v36 = vadd.f32 %v3100_v44, %v3093_v8 }
 0x171   : > { %2214 = vst [vmem:[%s2945_s15 + $0x68] sm:$0xff] %v2194_v19   ;;  %1599 = vst [vmem:[%s2909_s7 + $0xa8] sm:$0xff] %v1567_v49  ;;  %vm1631_vm6 = vcmp.ge.f32.partialorder %v1567_v49, 0.0  ;;  %v1576_v55 = vadd.f32 %v2900_v23, %v1539_v7  ;;  %v1494_v33 = vadd.f32 %v1462_v22, %v1430_v28  ;;  %v1662_v35 = vsel %vm1630_vm2, 1.0, %v2620_v61 }
 0x172   : > { %v1663_v41 = vsel %vm1631_vm6, 1.0, %v2620_v61  ;;  %1603 = vst [vmem:[%s2909_s7 + $0xc8] sm:$0xff] %v1571_v24  ;;  %vm1635_vm7 = vcmp.ge.f32.partialorder %v1571_v24, 0.0  ;;  %v1436_v42 = vsel %vm1367_vm5, %v1335_v40, %v1404_v29  ;;  %vm1370_vm8 = vcmp.ge.f32.partialorder %v1338_v32, 0.0 }
 0x173   : > { %v2185_v45 = vpack.c.bf16 %v1663_v41, %v1662_v35  ;;  %v1667_v18 = vsel %vm1635_vm7, 1.0, %v2620_v61  ;;  %1608 = vst [vmem:[%s2909_s7 + $0xf0] sm:$0xff] %v1576_v55  ;;  %v1531_v4 = vmul.f32 %v2891_v14, %v1494_v33  ;;  %v1500_v8 = vadd.f32 %v1468_v34, %v1436_v42 }
 0x174   : > { %v2191_v47 = vpack.c.bf16 %v1667_v18, %v1666_v58  ;;  %v1407_v44 = vmul.f32 %v2874_v56, %v1338_v32  ;;  %v1168_v57 = vadd.f32 %v3031_v39, %v2304_v36  ;;  %v1192_v38 = vadd.f32 %v2850_v37, %v3102_v10  ;;  %v1463_v37 = vld [vmem:[%s2869_s11 + $0xb8] sm:$0xff] }
 0x175   : > { %2211 = vst [vmem:[%s2945_s15 + $0x50] sm:$0xff] %v2185_v45   ;;  %v1568_v51 = vadd.f32 %v2900_v23, %v1531_v4  ;;  %v1537_v53 = vmul.f32 %v2891_v14, %v1500_v8  ;;  %vm1640_vm11 = vcmp.ge.f32.partialorder %v1576_v55, 0.0 }
 0x176   : > { %2213 = vst [vmem:[%s2945_s15 + $0x60] sm:$0xff] %v2191_v47   ;;  %v1439_v30 = vsel %vm1370_vm8, %v1338_v32, %v1407_v44  ;;  %v1330_v46 = vadd.f32 %v2862_v52, %v1168_v57  ;;  %v1336_v13 = vadd.f32 %v2862_v52, %v1192_v38  ;;  %v1672_v0 = vsel %vm1640_vm11, 1.0, %v2620_v61 }
 0x177   : > { %1600 = vst [vmem:[%s2909_s7 + $0xb0] sm:$0xff] %v1568_v51  ;;  %v1503_v59 = vadd.f32 %v1471_v50, %v1439_v30  ;;  %v1574_v27 = vadd.f32 %v2900_v23, %v1537_v53  ;;  %vm1632_vm13 = vcmp.ge.f32.partialorder %v1568_v51, 0.0 }
 0x178   : > { %vm1362_vm9 = vcmp.ge.f32.partialorder %v1330_v46, 0.0  ;;  %v1399_v39 = vmul.f32 %v2874_v56, %v1330_v46  ;;  %vm1368_vm10 = vcmp.ge.f32.partialorder %v1336_v13, 0.0  ;;  %v1405_v10 = vmul.f32 %v2874_v56, %v1336_v13 }
 0x179   : > { %v1540_v43 = vmul.f32 %v2891_v14, %v1503_v59  ;;  %1606 = vst [vmem:[%s2909_s7 + $0xe0] sm:$0xff] %v1574_v27  ;;  %vm1638_vm14 = vcmp.ge.f32.partialorder %v1574_v27, 0.0  ;;  %v1664_v26 = vsel %vm1632_vm13, 1.0, %v2620_v61 }
 0x17a   : > { %v1431_v58 = vsel %vm1362_vm9, %v1330_v46, %v1399_v39  ;;  %v1437_v62 = vsel %vm1368_vm10, %v1336_v13, %v1405_v10 }
 0x17b   : > { %v1577_v60 = vadd.f32 %v2900_v23, %v1540_v43  ;;  %v1495_v52 = vadd.f32 %v1463_v37, %v1431_v58  ;;  %v1501_v63 = vadd.f32 %v1469_v54, %v1437_v62 }
 0x17d   : > { %1609 = vst [vmem:[%s2909_s7 + $0xf8] sm:$0xff] %v1577_v60  ;;  %vm1641_vm12 = vcmp.ge.f32.partialorder %v1577_v60, 0.0  ;;  %v1532_v56 = vmul.f32 %v2891_v14, %v1495_v52  ;;  %v1538_v48 = vmul.f32 %v2891_v14, %v1501_v63  ;;  %v1670_v14 = vsel %vm1638_vm14, 1.0, %v2620_v61 }
 0x17e   : > { %v1673_v5 = vsel %vm1641_vm12, 1.0, %v2620_v61 }
 0x17f   : > { %v2200_v3 = vpack.c.bf16 %v1673_v5, %v1672_v0  ;;  %v1569_v6 = vadd.f32 %v2900_v23, %v1532_v56  ;;  %v1575_v9 = vadd.f32 %v2900_v23, %v1538_v48 }
 0x181   : > { %2216 = vst [vmem:[%s2945_s15 + $0x78] sm:$0xff] %v2200_v3   ;;  %1601 = vst [vmem:[%s2909_s7 + $0xb8] sm:$0xff] %v1569_v6  ;;  %vm1633_vm15 = vcmp.ge.f32.partialorder %v1569_v6, 0.0  ;;  %vm1639_vm0 = vcmp.ge.f32.partialorder %v1575_v9, 0.0 }
 0x182   : > { %v1665_v2 = vsel %vm1633_vm15, 1.0, %v2620_v61  ;;  %1607 = vst [vmem:[%s2909_s7 + $0xe8] sm:$0xff] %v1575_v9  ;;  %v1671_v11 = vsel %vm1639_vm0, 1.0, %v2620_v61 }
 0x183   : > { %v2188_v25 = vpack.c.bf16 %v1665_v2, %v1664_v26  ;;  %v2197_v23 = vpack.c.bf16 %v1671_v11, %v1670_v14 }
 0x185   : > { %2212 = vst [vmem:[%s2945_s15 + $0x58] sm:$0xff] %v2188_v25   ;;  %2215 = vst [vmem:[%s2945_s15 + $0x70] sm:$0xff] %v2197_v23  }
 0x186   : > { %2553 = shalt.err (!%p2550_p5)
}
 0x187   : > { %s2554_s25 = scalar_lea.hbm %s3221_s21, 2048  ;;  %s2558_s7 = scalar_lea.hbm %s3280_s5, 4096 }
 0x188   : > { %p2555_p6 = scmp.ne.s32.totalorder %s3221_s21, %s2554_s25  ;;  %p2559_p10 = scmp.lt.u32.totalorder %s3221_s21, %s3280_s5 }
 0x189   : > { %p2560_p11 = scmp.lt.u32.totalorder %s2558_s7, %s2554_s25  ;;  %p2562_p13 = scmp.lt.u32.totalorder %s2554_s25, %s3221_s21 }
 0x18a   : > { %p2556_p7 = pnand %p2555_p6, %p2694_p4 }
 0x18b   : > { %p2561_p12 = por %p2560_p11, %p2559_p10 }
 0x18c   : > { %p2557_p9 = pneg %p2556_p7 }
 0x18d   : > { %p2563_p0 = por %p2562_p13, %p2561_p12 }
 0x18f   : > { %p2564_p1 = pnand %p2563_p0, %p2557_p9 }
 0x191   : > { %2567 = shalt.err (!%p2564_p1)
}
 0x192   : > { %s2622_s8 = smov 64   ;;  %s2623_s11 = smov 4  }
 0x193   : > { %2400 = dma.vmem_to_hbm [thread:$0]  (%p2694_p4), %s3223_s10, 2048, %s3221_s21, %s3229_s13, %s2622_s8, %s2622_s8, %s2623_s11  }
 0x194 PF: > { %p2406_p2 = scmp.ge.s32.totalorder %s2618_s23, 2  ;;  %s1880_s12 = sand.u32 1, %s2598_s18  }
 0x195   : > { %s1881_s14 = scalar_lea.sflag [#allocation4], %s1880_s12 }
 0x196   : > { %p2403_p3 = pnand %p2406_p2, %p2701_p8 }
 0x198   : > { %2593 = dma.done.wait (!%p2403_p3), %s1881_s14, 2048  }
 0x199   : > { %2595 = vsyncadd (!%p2403_p3), %s1881_s14, 4294965248  ;;  %s19_s23 = sadd.s32 1, %s2618_s23   ;;  %s3283_s18 = smov %s2602_s19 }
 0x19a   : > { %p16_p5 = scmp.ge.s32.totalorder %s19_s23, 4   ;;  %s3284_s19 = smov %s2606_s20 }
 0x19b   : > { %s3285_s20 = smov %s2707_s6  ;;  %s3286_s21 = smov %s2614_s22 }
 0x19c   : > { %s3287_s22 = smov %s3289_s26  ;;  %18 = sbr.rel (!%p16_p5) target bundleno = 4 (0x4), region = 97 }
 0x1a3   :  { %1886 = vsyncpa [#allocation4], 1 }
 0x1a4   :  { %1888 = vsyncpa [#allocation4 + $0x1], 1 }

// kernel: resnet_forward.8
= control target key start
LH: loop header
LB: loop body
LE: loop exit
PB: predicated region body
PF: predicated region fallthrough
CT: control target
= control target key end

     0   :  { %s2542_s18 = smov 0   ;;  %s2544_s19 = smov 0   ;;  %s3075_s0 = inlined_call_operand.vmem [shape: bf16[512,288], index: 0, kind: input, shape index: {}]   ;;  %s3076_s1 = inlined_call_operand.vmem [shape: bf16[288,128], index: 1, kind: input, shape index: {}]   ;;  %s3077_s2 = inlined_call_operand.vmem [shape: f32[8,128], index: 2, kind: input, shape index: {}]   ;;  %s3078_s3 = inlined_call_operand.vmem [shape: f32[512,128], index: 3, kind: input, shape index: {}]   ;;  %s3079_s4 = inlined_call_operand.vmem [shape: f32[512,128], index: 4, kind: output, shape index: {0}]   ;;  %s3080_s5 = inlined_call_operand.vmem [shape: bf16[512,128], index: 5, kind: output, shape index: {1}]  }
   0x1   :  { %s2546_s20 = smov 0  }
   0x2 LB: > { %s28_s21 = sadd.s32 1, %s2505_s19  ;;  %p1973_p0 = scmp.ge.s32.totalorder %s2509_s20, 1  ;;  %s2509_s20 = sphi %s2546_s20, %s16_s20   ;;  %s2505_s19 = sphi %s2544_s19, %s3082_s19   ;;  %s2501_s18 = sphi %s2542_s18, %s3081_s18  }
   0x3   : > { %p30_p1 = scmp.ge.s32.totalorder %s28_s21, 2  ;;  %p233_p2 = scmp.lt.s32.totalorder %s2509_s20, 3 }
   0x5   : > { %s3084_s21 = smov (%p30_p1, %s28_s21), 0  ;;  %p234_p3 = pnand %p1973_p0, %p233_p2 }
   0x6   : > { %v2405_v0 = vld [vmem:[%s3076_s1 + $0x40] sm:$0xff] (!%p234_p3)   ;;  %s1974_s24 = sshll.u32 (!%p234_p3), %s2501_s18, 5  ;;  %v2407_v2 = vld [vmem:[%s3076_s1 + $0x48] sm:$0xff] (!%p234_p3)   ;;  %v2409_v4 = vld [vmem:[%s3076_s1 + $0x50] sm:$0xff] (!%p234_p3)   ;;  %vm834_vm0 = vcmask (!%p234_p3), 261120  }
   0x7   : > { %237 = sbr.rel (%p234_p3) target bundleno = 383 (0x17f), region = 36  ;;  %v2406_v1 = vld [vmem:[%s3076_s1] sm:$0xff] (!%p234_p3)   ;;  %2197 = vmatprep.subr.bf16.mxu0 (!%p234_p3), %v2405_v0  ;;  %2363 = vmatprep.subr.bf16.mxu1 (!%p234_p3), %v2405_v0  ;;  %p283_p4 = scmp.lt.s32.totalorder (!%p234_p3), %s1974_s24, 63  ;;  %v2408_v3 = vld [vmem:[%s3076_s1 + $0x8] sm:$0xff] (!%p234_p3)   ;;  %v2410_v5 = vld [vmem:[%s3076_s1 + $0x10] sm:$0xff] (!%p234_p3)  }
   0x8   : > { %2198 = vmatpush3.bf16.msra.mxu0 (!%p234_p3), %v2406_v1  ;;  %2371 = vmatpush3.bf16.msra.mxu1 (!%p234_p3), %v2406_v1  ;;  %v2411_v6 = vld [vmem:[%s3076_s1 + $0x58] sm:$0xff] (!%p234_p3)   ;;  %v2413_v8 = vld [vmem:[%s3076_s1 + $0x60] sm:$0xff] (!%p234_p3)   ;;  %v2415_v10 = vld [vmem:[%s3076_s1 + $0x68] sm:$0xff] (!%p234_p3)  }
   0x9   : > { %2199 = vmatprep.subr.bf16.mxu0 (!%p234_p3), %v2407_v2  ;;  %2364 = vmatprep.subr.bf16.mxu1 (!%p234_p3), %v2407_v2  ;;  %v2412_v7 = vld [vmem:[%s3076_s1 + $0x18] sm:$0xff] (!%p234_p3)   ;;  %v2414_v9 = vld [vmem:[%s3076_s1 + $0x20] sm:$0xff] (!%p234_p3)   ;;  %v2416_v13 = vld [vmem:[%s3076_s1 + $0x28] sm:$0xff] (!%p234_p3)  }
   0xa   : > { %v2417_v14 = vld [vmem:[%s3076_s1 + $0x70] sm:$0xff] (!%p234_p3)   ;;  %v2419_v16 = vld [vmem:[%s3076_s1 + $0x78] sm:$0xff] (!%p234_p3)   ;;  %v2427_v18 = vld [vmem:[%s3076_s1 + $0x80] sm:$0xff] (!%p234_p3)  }
   0xb   : > { %v2418_v15 = vld [vmem:[%s3076_s1 + $0x30] sm:$0xff] (!%p234_p3)   ;;  %v2420_v17 = vld [vmem:[%s3076_s1 + $0x38] sm:$0xff] (!%p234_p3)   ;;  %v2440_v23 = vld [vmem:[%s3076_s1 + $0x88] sm:$0xff] (!%p234_p3)  }
   0xc   : > { %2200 = vmatpush3.bf16.msra.mxu0 (!%p234_p3), %v2408_v3  ;;  %2372 = vmatpush3.bf16.msra.mxu1 (!%p234_p3), %v2408_v3 }
   0xd   : > { %2201 = vmatprep.subr.bf16.mxu0 (!%p234_p3), %v2409_v4  ;;  %2365 = vmatprep.subr.bf16.mxu1 (!%p234_p3), %v2409_v4 }
   0xe   : > { %s3086_s24 = smov (!%p283_p4, %s1974_s24), 63 }
   0xf   : > { %s2379_s12 = smul.u32 12, %s3086_s24  ;;  %s1977_s17 = sshll.u32 %s3086_s24, 3 }
  0x10   : > { %2202 = vmatpush3.bf16.msra.mxu0 %v2410_v5  ;;  %2373 = vmatpush3.bf16.msra.mxu1 %v2410_v5  ;;  %s2719_s26 = scalar_lea.vmem %s3078_s3, %s1977_s17  ;;  %s2758_s10 = scalar_lea.vmem %s3079_s4, %s1977_s17 }
  0x11   : > { %2203 = vmatprep.subr.bf16.mxu0 %v2411_v6  ;;  %2366 = vmatprep.subr.bf16.mxu1 %v2411_v6  ;;  %s2593_s22 = scalar_lea.vmem %s3075_s0, %s2379_s12  ;;  %s1981_s11 = sshll.u32 %s3086_s24, 2 }
  0x12   : > { %v2423_v11 = vld [vmem:[%s2593_s22 + $0x4] ss:$12 sps:$4 sm:$0xff]   ;;  %v2421_v19 = vld [vmem:[%s2593_s22] ss:$12 sps:$4 sm:$0xff]   ;;  %v2428_v21 = vld [vmem:[%s2593_s22 + $0x1c] ss:$12 sps:$4 sm:$0xff]   ;;  %s2783_s13 = scalar_lea.vmem %s3080_s5, %s1981_s11 }
  0x13   : > { %v2426_v12 = vld [vmem:[%s2593_s22 + $0x124] ss:$12 sps:$4 sm:$0xff]   ;;  %915 = vmatprep.mubr.bf16.mxu0 %v2423_v11  ;;  %v2424_v20 = vld [vmem:[%s2593_s22 + $0x120] ss:$12 sps:$4 sm:$0xff]   ;;  %v2430_v22 = vld [vmem:[%s2593_s22 + $0x13c] ss:$12 sps:$4 sm:$0xff]  }
  0x14   : > { %2204 = vmatpush3.bf16.msra.mxu0 %v2412_v7  ;;  %2374 = vmatpush3.bf16.msra.mxu1 %v2412_v7  ;;  %v2432_v24 = vld [vmem:[%s2593_s22 + $0x18] ss:$12 sps:$4 sm:$0xff]   ;;  %v2434_v26 = vld [vmem:[%s2593_s22 + $0x34] ss:$12 sps:$4 sm:$0xff]   ;;  %v2438_v28 = vld [vmem:[%s2593_s22 + $0x30] ss:$12 sps:$4 sm:$0xff]  }
  0x15   : > { %2205 = vmatprep.subr.bf16.mxu0 %v2413_v8  ;;  %2367 = vmatprep.subr.bf16.mxu1 %v2413_v8  ;;  %v2433_v25 = vld [vmem:[%s2593_s22 + $0x138] ss:$12 sps:$4 sm:$0xff]   ;;  %v2436_v27 = vld [vmem:[%s2593_s22 + $0x154] ss:$12 sps:$4 sm:$0xff]   ;;  %v2439_v29 = vld [vmem:[%s2593_s22 + $0x150] ss:$12 sps:$4 sm:$0xff]  }
  0x16   : > { %1011 = vmatprep.mubr.bf16.mxu1 %v2426_v12  ;;  %v2441_v30 = vld [vmem:[%s2593_s22 + $0x4c] ss:$12 sps:$4 sm:$0xff]   ;;  %v2445_v32 = vld [vmem:[%s2593_s22 + $0x48] ss:$12 sps:$4 sm:$0xff]   ;;  %v2447_v34 = vld [vmem:[%s2593_s22 + $0x64] ss:$12 sps:$4 sm:$0xff]  }
  0x17   : > { %v2443_v31 = vld [vmem:[%s2593_s22 + $0x16c] ss:$12 sps:$4 sm:$0xff]   ;;  %v2446_v33 = vld [vmem:[%s2593_s22 + $0x168] ss:$12 sps:$4 sm:$0xff]   ;;  %v2456_v41 = vld [vmem:[%s2593_s22 + $0x50] ss:$12 sps:$4 sm:$0xff]  }
  0x18   : > { %2206 = vmatpush3.bf16.msra.mxu0 %v2414_v9  ;;  %2375 = vmatpush3.bf16.msra.mxu1 %v2414_v9  ;;  %v2449_v35 = vld [vmem:[%s2593_s22 + $0x8] ss:$12 sps:$4 sm:$0xff]   ;;  %v2450_v36 = vld [vmem:[%s2593_s22 + $0x60] ss:$12 sps:$4 sm:$0xff]   ;;  %v2454_v39 = vld [vmem:[%s2593_s22 + $0x38] ss:$12 sps:$4 sm:$0xff]  }
  0x19   : > { %2207 = vmatprep.subr.bf16.mxu0 %v2415_v10  ;;  %2368 = vmatprep.subr.bf16.mxu1 %v2415_v10  ;;  %v2451_v37 = vld [vmem:[%s2593_s22 + $0x20] ss:$12 sps:$4 sm:$0xff]   ;;  %v2452_v38 = vld [vmem:[%s2593_s22 + $0x7c] ss:$12 sps:$4 sm:$0xff]   ;;  %v2455_v40 = vld [vmem:[%s2593_s22 + $0x78] ss:$12 sps:$4 sm:$0xff]  }
  0x1a   : > { %v2457_v42 = vld [vmem:[%s2593_s22 + $0x94] ss:$12 sps:$4 sm:$0xff]   ;;  %v2460_v44 = vld [vmem:[%s2593_s22 + $0x90] ss:$12 sps:$4 sm:$0xff]   ;;  %v2462_v46 = vld [vmem:[%s2593_s22 + $0xac] ss:$12 sps:$4 sm:$0xff]  }
  0x1b   : > { %v2459_v43 = vld [vmem:[%s2593_s22 + $0x68] ss:$12 sps:$4 sm:$0xff]   ;;  %v2461_v45 = vld [vmem:[%s2593_s22 + $0x80] ss:$12 sps:$4 sm:$0xff]   ;;  %v2464_v47 = vld [vmem:[%s2593_s22 + $0x98] ss:$12 sps:$4 sm:$0xff]  }
  0x1c   : > { %2208 = vmatpush3.bf16.msra.mxu0 %v2416_v13  ;;  %2376 = vmatpush3.bf16.msra.mxu1 %v2416_v13  ;;  %v2465_v48 = vld [vmem:[%s2593_s22 + $0xa8] ss:$12 sps:$4 sm:$0xff]   ;;  %v2466_v49 = vld [vmem:[%s2593_s22 + $0xb0] ss:$12 sps:$4 sm:$0xff]   ;;  %v2470_v52 = vld [vmem:[%s2593_s22 + $0xc0] ss:$12 sps:$4 sm:$0xff]  }
  0x1d   : > { %2209 = vmatprep.subr.bf16.mxu0 %v2417_v14  ;;  %2369 = vmatprep.subr.bf16.mxu1 %v2417_v14  ;;  %v2467_v50 = vld [vmem:[%s2593_s22 + $0xc4] ss:$12 sps:$4 sm:$0xff]   ;;  %v2469_v51 = vld [vmem:[%s2593_s22 + $0xc8] ss:$12 sps:$4 sm:$0xff]   ;;  %v2471_v53 = vld [vmem:[%s2593_s22 + $0xe0] ss:$12 sps:$4 sm:$0xff]  }
  0x1e   : > { %v2472_v54 = vld [vmem:[%s2593_s22 + $0xdc] ss:$12 sps:$4 sm:$0xff]   ;;  %v2474_v55 = vld [vmem:[%s2593_s22 + $0xf8] ss:$12 sps:$4 sm:$0xff]   ;;  %v2477_v58 = vld [vmem:[%s2593_s22 + $0xf4] ss:$12 sps:$4 sm:$0xff]  }
  0x1f   : > { %v2475_v56 = vld [vmem:[%s2593_s22 + $0xd8] ss:$12 sps:$4 sm:$0xff]   ;;  %v2476_v57 = vld [vmem:[%s2593_s22 + $0x110] ss:$12 sps:$4 sm:$0xff]   ;;  %v2479_v59 = vld [vmem:[%s2593_s22 + $0x128] ss:$12 sps:$4 sm:$0xff]  }
  0x20   : > { %2210 = vmatpush3.bf16.msra.mxu0 %v2418_v15  ;;  %2377 = vmatpush3.bf16.msra.mxu1 %v2418_v15  ;;  %v2480_v60 = vld [vmem:[%s2593_s22 + $0xf0] ss:$12 sps:$4 sm:$0xff]   ;;  %v2481_v61 = vld [vmem:[%s2593_s22 + $0x140] ss:$12 sps:$4 sm:$0xff]   ;;  %v2484_v63 = vld [vmem:[%s2593_s22 + $0x158] ss:$12 sps:$4 sm:$0xff]  }
  0x21   : > { %2211 = vmatprep.subr.bf16.mxu0 %v2419_v16  ;;  %2370 = vmatprep.subr.bf16.mxu1 %v2419_v16  ;;  %v2482_v62 = vld [vmem:[%s2593_s22 + $0x10c] ss:$12 sps:$4 sm:$0xff]   ;;  %v2485_v0 = vld [vmem:[%s2593_s22 + $0x108] ss:$12 sps:$4 sm:$0xff]   ;;  %v2486_v1 = vld [vmem:[%s2593_s22 + $0x170] ss:$12 sps:$4 sm:$0xff]  }
  0x24   : > { %2212 = vmatpush3.bf16.msra.mxu0 %v2420_v17  ;;  %2378 = vmatpush3.bf16.msra.mxu1 %v2420_v17 }
  0x25   : > { %2327 = vmatprep.subr.bf16.mxu1 %v2427_v18 }
  0x27   : > { %916 = vmatmul.mubr.bf16.vlgmr.msra.gmra.mrb[0].mxu0 %v2421_v19  ;;  %1012 = vmatmul.mubr.bf16.vlgmr.msra.gmra.mrb[0].mxu1 %v2424_v20 }
  0x28   : > { %2328 = vmatpush3.bf16.msra.mxu1 %v2427_v18  ;;  %923 = vmatprep.mubr.bf16.mxu0 %v2428_v21 }
  0x29   : > { %1019 = vmatprep.mubr.bf16.mxu1 %v2430_v22  ;;  %2329 = vmatprep.subr.bf16.mxu1 %v2440_v23 }
  0x2c   : > { %2330 = vmatpush3.bf16.msra.mxu1 %v2440_v23 }
  0x2f   : > { %924 = vmatmul.mubr.bf16.gmra.mrb[4].mxu0 %v2432_v24  ;;  %1020 = vmatmul.mubr.bf16.gmra.mrb[4].mxu1 %v2433_v25 }
  0x30   : > { %931 = vmatprep.mubr.bf16.mxu0 %v2434_v26  ;;  %1027 = vmatprep.mubr.bf16.mxu1 %v2436_v27 }
  0x37   : > { %932 = vmatmul.mubr.bf16.gmra.mrb[8].mxu0 %v2438_v28  ;;  %1028 = vmatmul.mubr.bf16.gmra.mrb[8].mxu1 %v2439_v29 }
  0x38   : > { %939 = vmatprep.mubr.bf16.mxu0 %v2441_v30  ;;  %1035 = vmatprep.mubr.bf16.mxu1 %v2443_v31 }
  0x3f   : > { %940 = vmatmul.mubr.bf16.gmra.mrb[12].mxu0 %v2445_v32  ;;  %1036 = vmatmul.mubr.bf16.gmra.mrb[12].mxu1 %v2446_v33 }
  0x40   : > { %947 = vmatprep.mubr.bf16.mxu0 %v2447_v34  ;;  %2331 = vmatprep.mubr.msk.bf16.mxu1 %vm834_vm0, %v2449_v35 }
  0x47   : > { %948 = vmatmul.mubr.bf16.gmra.mrb[16].mxu0 %v2450_v36  ;;  %2332 = vmatmul.mubr.msk.bf16.vlgmr.msra.gmra.mrb[16].mxu1 %vm834_vm0, %v2451_v37 }
  0x48   : > { %955 = vmatprep.mubr.bf16.mxu0 %v2452_v38  ;;  %2335 = vmatprep.mubr.msk.bf16.mxu1 %vm834_vm0, %v2454_v39 }
  0x4f   : > { %956 = vmatmul.mubr.bf16.gmra.mrb[20].mxu0 %v2455_v40  ;;  %2336 = vmatmul.mubr.msk.bf16.gmra.mrb[20].mxu1 %vm834_vm0, %v2456_v41 }
  0x50   : > { %963 = vmatprep.mubr.bf16.mxu0 %v2457_v42  ;;  %2339 = vmatprep.mubr.msk.bf16.mxu1 %vm834_vm0, %v2459_v43 }
  0x57   : > { %964 = vmatmul.mubr.bf16.gmra.mrb[24].mxu0 %v2460_v44  ;;  %2340 = vmatmul.mubr.msk.bf16.gmra.mrb[24].mxu1 %vm834_vm0, %v2461_v45 }
  0x58   : > { %971 = vmatprep.mubr.bf16.mxu0 %v2462_v46  ;;  %2343 = vmatprep.mubr.msk.bf16.mxu1 %vm834_vm0, %v2464_v47 }
  0x5f   : > { %972 = vmatmul.mubr.bf16.gmra.mrb[28].mxu0 %v2465_v48  ;;  %2344 = vmatmul.mubr.msk.bf16.gmra.mrb[28].mxu1 %vm834_vm0, %v2466_v49 }
  0x60   : > { %979 = vmatprep.mubr.bf16.mxu0 %v2467_v50  ;;  %2347 = vmatprep.mubr.msk.bf16.mxu1 %vm834_vm0, %v2469_v51 }
  0x67   : > { %980 = vmatmul.mubr.bf16.gmra.mrb[32].mxu0 %v2470_v52  ;;  %2348 = vmatmul.mubr.msk.bf16.gmra.mrb[32].mxu1 %vm834_vm0, %v2471_v53  ;;  %v2712_v52 = vld [vmem:[%s3077_s2] ss:$0 sm:$0xff] }
  0x68   : > { %987 = vmatprep.mubr.bf16.mxu0 %v2472_v54  ;;  %2351 = vmatprep.mubr.msk.bf16.mxu1 %vm834_vm0, %v2474_v55 }
  0x6f   : > { %988 = vmatmul.mubr.bf16.gmra.mrb[36].mxu0 %v2475_v56  ;;  %2352 = vmatmul.mubr.msk.bf16.gmra.mrb[36].mxu1 %vm834_vm0, %v2476_v57  ;;  %v2724_v56 = vld [vmem:[%s3077_s2 + $0x1] ss:$0 sm:$0xff] }
  0x70   : > { %995 = vmatprep.mubr.bf16.mxu0 %v2477_v58  ;;  %2355 = vmatprep.mubr.msk.bf16.mxu1 %vm834_vm0, %v2479_v59 }
  0x77   : > { %996 = vmatmul.mubr.bf16.gmra.mrb[40].mxu0 %v2480_v60  ;;  %2356 = vmatmul.mubr.msk.bf16.gmra.mrb[40].mxu1 %vm834_vm0, %v2481_v61 }
  0x78   : > { %1003 = vmatprep.mubr.bf16.mxu0 %v2482_v62  ;;  %2359 = vmatprep.mubr.msk.bf16.mxu1 %vm834_vm0, %v2484_v63 }
  0x7f   : > { %1004 = vmatmul.mubr.bf16.gmra.mrb[44].mxu0 %v2485_v0  ;;  %2360 = vmatmul.mubr.msk.bf16.gmra.mrb[44].mxu1 %vm834_vm0, %v2486_v1 }
  0xfa   : > { %v2213_v2 = vpop.f32.mrb[0].mxu0  ;;  %v2285_v3 = vpop.f32.mrb[0].mxu1 }
  0xfb   : > { %v2214_v4 = vpop.f32.mrb[1].mxu0  ;;  %v2286_v5 = vpop.f32.mrb[1].mxu1 }
  0xfc   : > { %v2215_v6 = vadd.f32 %v2214_v4, %v2213_v2  ;;  %v2686_v7 = vadd.f32 %v2286_v5, %v2285_v3  ;;  %v2216_v8 = vpop.f32.mrb[2].mxu0  ;;  %v2288_v9 = vpop.f32.mrb[2].mxu1  ;;  %v1444_v5 = vld [vmem:[%s2719_s26 + $0x10] sm:$0xff] }
  0xfd   : > { %v2217_v10 = vpop.f32.mrb[3].mxu0  ;;  %v2289_v11 = vpop.f32.mrb[3].mxu1 }
  0xfe   : > { %v2218_v12 = vadd.f32 %v2217_v10, %v2216_v8  ;;  %v2688_v13 = vadd.f32 %v2289_v11, %v2288_v9  ;;  %v1442_v9 = vld [vmem:[%s2719_s26] sm:$0xff] }
 0x102   : > { %v2219_v14 = vpop.f32.mrb[4].mxu0  ;;  %v2291_v15 = vpop.f32.mrb[4].mxu1 }
 0x103   : > { %v2220_v16 = vpop.f32.mrb[5].mxu0  ;;  %v2292_v17 = vpop.f32.mrb[5].mxu1 }
 0x104   : > { %v2221_v18 = vadd.f32 %v2220_v16, %v2219_v14  ;;  %v2690_v19 = vadd.f32 %v2292_v17, %v2291_v15  ;;  %v2222_v20 = vpop.f32.mrb[6].mxu0  ;;  %v2294_v21 = vpop.f32.mrb[6].mxu1  ;;  %v2741_v14 = vld [vmem:[%s3077_s2 + $0x2] ss:$0 sm:$0xff]  ;;  %v1445_v15 = vld [vmem:[%s2719_s26 + $0x18] sm:$0xff] }
 0x105   : > { %v2223_v22 = vpop.f32.mrb[7].mxu0  ;;  %v2295_v23 = vpop.f32.mrb[7].mxu1 }
 0x106   : > { %v2224_v24 = vadd.f32 %v2223_v22, %v2222_v20  ;;  %v2692_v25 = vadd.f32 %v2295_v23, %v2294_v21  ;;  %v1443_v20 = vld [vmem:[%s2719_s26 + $0x8] sm:$0xff]  ;;  %v2750_v23 = vld [vmem:[%s3077_s2 + $0x3] ss:$0 sm:$0xff] }
 0x10a   : > { %v2225_v26 = vpop.f32.mrb[8].mxu0  ;;  %v2297_v27 = vpop.f32.mrb[8].mxu1 }
 0x10b   : > { %v2226_v28 = vpop.f32.mrb[9].mxu0  ;;  %v2298_v29 = vpop.f32.mrb[9].mxu1 }
 0x10c   : > { %v2694_v30 = vadd.f32 %v2226_v28, %v2225_v26  ;;  %v2696_v31 = vadd.f32 %v2298_v29, %v2297_v27  ;;  %v2228_v32 = vpop.f32.mrb[10].mxu0  ;;  %v2300_v33 = vpop.f32.mrb[10].mxu1 }
 0x10d   : > { %v2229_v34 = vpop.f32.mrb[11].mxu0  ;;  %v2301_v35 = vpop.f32.mrb[11].mxu1 }
 0x10e   : > { %v2698_v36 = vadd.f32 %v2229_v34, %v2228_v32  ;;  %v2700_v37 = vadd.f32 %v2301_v35, %v2300_v33 }
 0x112   : > { %v2231_v38 = vpop.f32.mrb[12].mxu0  ;;  %v2303_v39 = vpop.f32.mrb[12].mxu1 }
 0x113   : > { %v2232_v40 = vpop.f32.mrb[13].mxu0  ;;  %v2304_v41 = vpop.f32.mrb[13].mxu1 }
 0x114   : > { %v2233_v42 = vadd.f32 %v2232_v40, %v2231_v38  ;;  %v2702_v43 = vadd.f32 %v2304_v41, %v2303_v39  ;;  %v2234_v44 = vpop.f32.mrb[14].mxu0  ;;  %v2306_v45 = vpop.f32.mrb[14].mxu1 }
 0x115   : > { %v2235_v46 = vpop.f32.mrb[15].mxu0  ;;  %v2307_v47 = vpop.f32.mrb[15].mxu1 }
 0x116   : > { %v2704_v48 = vadd.f32 %v2235_v46, %v2234_v44  ;;  %v2706_v49 = vadd.f32 %v2307_v47, %v2306_v45 }
 0x11a   : > { %v2237_v50 = vpop.f32.mrb[16].mxu0  ;;  %v2333_v51 = vpop.f32.mrb[16].mxu1 }
 0x11b   : > { %v1087_v53 = vadd.f32 %v2333_v51, %v2221_v18  ;;  %v2238_v54 = vpop.f32.mrb[17].mxu0  ;;  %v1078_v55 = vpop.f32.mrb[17].mxu1 }
 0x11c   : > { %v2726_v57 = vadd.f32 %v2238_v54, %v2237_v50  ;;  %v1079_v58 = vadd.f32 %v2215_v6, %v1078_v55  ;;  %v2240_v59 = vpop.f32.mrb[18].mxu0  ;;  %v2334_v60 = vpop.f32.mrb[18].mxu1 }
 0x11d   : > { %v1311_v61 = vadd.f32 %v2712_v52, %v1087_v53  ;;  %v1090_v62 = vadd.f32 %v2334_v60, %v2224_v24  ;;  %v2241_v63 = vpop.f32.mrb[19].mxu0  ;;  %v1081_v0 = vpop.f32.mrb[19].mxu1 }
 0x11e   : > { %v1309_v1 = vadd.f32 %v2712_v52, %v1079_v58  ;;  %v2730_v2 = vadd.f32 %v2241_v63, %v2240_v59  ;;  %v1082_v3 = vadd.f32 %v2218_v12, %v1081_v0  ;;  %v1448_v59 = vld [vmem:[%s2719_s26 + $0x30] sm:$0xff] }
 0x11f   : > { %vm1343_vm1 = vcmp.ge.f32.partialorder %v1311_v61, 0.0  ;;  %v1380_v4 = vmul.f32 %v2724_v56, %v1311_v61  ;;  %v1312_v6 = vadd.f32 %v2712_v52, %v1090_v62 }
 0x120   : > { %vm1341_vm2 = vcmp.ge.f32.partialorder %v1309_v1, 0.0  ;;  %v1378_v8 = vmul.f32 %v2724_v56, %v1309_v1  ;;  %v1310_v10 = vadd.f32 %v2712_v52, %v1082_v3 }
 0x121   : > { %v1412_v11 = vsel %vm1343_vm1, %v1311_v61, %v1380_v4  ;;  %vm1344_vm3 = vcmp.ge.f32.partialorder %v1312_v6, 0.0  ;;  %v1381_v12 = vmul.f32 %v2724_v56, %v1312_v6 }
 0x122   : > { %v1476_v16 = vadd.f32 %v1444_v5, %v1412_v11  ;;  %v1410_v17 = vsel %vm1341_vm2, %v1309_v1, %v1378_v8  ;;  %vm1342_vm4 = vcmp.ge.f32.partialorder %v1310_v10, 0.0  ;;  %v1379_v18 = vmul.f32 %v2724_v56, %v1310_v10  ;;  %v2243_v21 = vpop.f32.mrb[20].mxu0  ;;  %v2337_v22 = vpop.f32.mrb[20].mxu1 }
 0x123   : > { %v1474_v24 = vadd.f32 %v1442_v9, %v1410_v17  ;;  %v1413_v26 = vsel %vm1344_vm3, %v1312_v6, %v1381_v12  ;;  %v1103_v27 = vadd.f32 %v2337_v22, %v2233_v42  ;;  %v2244_v28 = vpop.f32.mrb[21].mxu0  ;;  %v1094_v29 = vpop.f32.mrb[21].mxu1  ;;  %v1446_v9 = vld [vmem:[%s2719_s26 + $0x20] sm:$0xff] }
 0x124   : > { %v1513_v32 = vmul.f32 %v2741_v14, %v1476_v16  ;;  %v1477_v33 = vadd.f32 %v1445_v15, %v1413_v26  ;;  %v1411_v34 = vsel %vm1342_vm4, %v1310_v10, %v1379_v18  ;;  %v2245_v35 = vadd.f32 %v2244_v28, %v2243_v21  ;;  %v2246_v38 = vpop.f32.mrb[22].mxu0  ;;  %v2338_v39 = vpop.f32.mrb[22].mxu1  ;;  %v1449_v18 = vld [vmem:[%s2719_s26 + $0x38] sm:$0xff] }
 0x125   : > { %v1511_v40 = vmul.f32 %v2741_v14, %v1474_v24  ;;  %v1475_v41 = vadd.f32 %v1443_v20, %v1411_v34  ;;  %v1315_v42 = vadd.f32 %v2712_v52, %v1103_v27  ;;  %v1095_v44 = vadd.f32 %v2694_v30, %v1094_v29  ;;  %v2247_v45 = vpop.f32.mrb[23].mxu0  ;;  %v1097_v46 = vpop.f32.mrb[23].mxu1 }
 0x126   : > { %v1550_v47 = vadd.f32 %v2750_v23, %v1513_v32  ;;  %v1514_v50 = vmul.f32 %v2741_v14, %v1477_v33  ;;  %v1106_v51 = vadd.f32 %v2338_v39, %v2704_v48  ;;  %v2248_v53 = vadd.f32 %v2247_v45, %v2246_v38 }
 0x127   : > { %v1548_v54 = vadd.f32 %v2750_v23, %v1511_v40  ;;  %v1512_v55 = vmul.f32 %v2741_v14, %v1475_v41  ;;  %vm1347_vm5 = vcmp.ge.f32.partialorder %v1315_v42, 0.0  ;;  %v1384_v58 = vmul.f32 %v2724_v56, %v1315_v42 }
 0x128   : > { %1582 = vst [vmem:[%s2758_s10 + $0x10] sm:$0xff] %v1550_v47  ;;  %vm1614_vm6 = vcmp.ge.f32.partialorder %v1550_v47, 0.0  ;;  %v1551_v30 = vadd.f32 %v2750_v23, %v1514_v50  ;;  %v1313_v60 = vadd.f32 %v2712_v52, %v1095_v44  ;;  %v1316_v61 = vadd.f32 %v2712_v52, %v1106_v51  ;;  %v1447_v50 = vld [vmem:[%s2719_s26 + $0x28] sm:$0xff] }
 0x129   : > { %v2511_v48 = vmov -1.0   ;;  %1580 = vst [vmem:[%s2758_s10] sm:$0xff] %v1548_v54  ;;  %vm1612_vm7 = vcmp.ge.f32.partialorder %v1548_v54, 0.0  ;;  %v1549_v63 = vadd.f32 %v2750_v23, %v1512_v55  ;;  %v1416_v0 = vsel %vm1347_vm5, %v1315_v42, %v1384_v58  ;;  %v1452_v54 = vld [vmem:[%s2719_s26 + $0x50] sm:$0xff] }
 0x12a   : > { %v1646_v62 = vsel %vm1614_vm6, 1.0, %v2511_v48  ;;  %v1644_v1 = vsel %vm1612_vm7, 1.0, %v2511_v48  ;;  %1583 = vst [vmem:[%s2758_s10 + $0x18] sm:$0xff] %v1551_v30  ;;  %vm1615_vm8 = vcmp.ge.f32.partialorder %v1551_v30, 0.0  ;;  %v1480_v3 = vadd.f32 %v1448_v59, %v1416_v0  ;;  %v2249_v4 = vpop.f32.mrb[24].mxu0  ;;  %v2341_v5 = vpop.f32.mrb[24].mxu1 }
 0x12b   : > { %vm1345_vm9 = vcmp.ge.f32.partialorder %v1313_v60, 0.0  ;;  %v1647_v6 = vsel %vm1615_vm8, 1.0, %v2511_v48  ;;  %1581 = vst [vmem:[%s2758_s10 + $0x8] sm:$0xff] %v1549_v63  ;;  %vm1613_vm10 = vcmp.ge.f32.partialorder %v1549_v63, 0.0  ;;  %v1382_v8 = vmul.f32 %v2724_v56, %v1313_v60  ;;  %v2250_v10 = vpop.f32.mrb[25].mxu0  ;;  %v1110_v11 = vpop.f32.mrb[25].mxu1 }
 0x12c   : > { %vm1348_vm11 = vcmp.ge.f32.partialorder %v1316_v61, 0.0  ;;  %v2138_v12 = vpack.c.bf16 %v1647_v6, %v1646_v62  ;;  %v1645_v15 = vsel %vm1613_vm10, 1.0, %v2511_v48  ;;  %v1517_v16 = vmul.f32 %v2741_v14, %v1480_v3  ;;  %v2252_v20 = vpop.f32.mrb[26].mxu0  ;;  %v2342_v21 = vpop.f32.mrb[26].mxu1 }
 0x12d   : > { %v1385_v17 = vmul.f32 %v2724_v56, %v1316_v61  ;;  %v2135_v22 = vpack.c.bf16 %v1645_v15, %v1644_v1  ;;  %v1414_v24 = vsel %vm1345_vm9, %v1313_v60, %v1382_v8  ;;  %v1098_v26 = vadd.f32 %v2698_v36, %v1097_v46  ;;  %v2253_v28 = vpop.f32.mrb[27].mxu0  ;;  %v1113_v29 = vpop.f32.mrb[27].mxu1 }
 0x12e   : > { %v1119_v27 = vadd.f32 %v2341_v5, %v2245_v35  ;;  %2182 = vst [vmem:[%s2783_s13 + $0x8] sm:$0xff] %v2138_v12   ;;  %v1554_v32 = vadd.f32 %v2750_v23, %v1517_v16  ;;  %v1478_v33 = vadd.f32 %v1446_v9, %v1414_v24  ;;  %v2798_v38 = vadd.f32 %v2250_v10, %v2249_v4  ;;  %v1450_v9 = vld [vmem:[%s2719_s26 + $0x40] sm:$0xff]  ;;  %v1453_v16 = vld [vmem:[%s2719_s26 + $0x58] sm:$0xff] }
 0x12f   : > { %v1417_v34 = vsel %vm1348_vm11, %v1316_v61, %v1385_v17  ;;  %2136 = vst [vmem:[%s2783_s13] sm:$0xff] %v2135_v22   ;;  %v1314_v40 = vadd.f32 %v2712_v52, %v1098_v26  ;;  %v1111_v36 = vadd.f32 %v2726_v57, %v1110_v11  ;;  %v1122_v42 = vadd.f32 %v2342_v21, %v2248_v53 }
 0x130   : > { %v1481_v39 = vadd.f32 %v1449_v18, %v1417_v34  ;;  %v1319_v41 = vadd.f32 %v2712_v52, %v1119_v27  ;;  %1586 = vst [vmem:[%s2758_s10 + $0x30] sm:$0xff] %v1554_v32  ;;  %vm1618_vm12 = vcmp.ge.f32.partialorder %v1554_v32, 0.0  ;;  %v1515_v35 = vmul.f32 %v2741_v14, %v1478_v33  ;;  %v1451_v33 = vld [vmem:[%s2719_s26 + $0x48] sm:$0xff] }
 0x131   : > { %v2806_v44 = vadd.f32 %v2253_v28, %v2252_v20  ;;  %v1650_v45 = vsel %vm1618_vm12, 1.0, %v2511_v48  ;;  %vm1346_vm13 = vcmp.ge.f32.partialorder %v1314_v40, 0.0  ;;  %v1383_v47 = vmul.f32 %v2724_v56, %v1314_v40 }
 0x132   : > { %v1518_v46 = vmul.f32 %v2741_v14, %v1481_v39  ;;  %v1552_v51 = vadd.f32 %v2750_v23, %v1515_v35  ;;  %vm1351_vm14 = vcmp.ge.f32.partialorder %v1319_v41, 0.0  ;;  %v1388_v57 = vmul.f32 %v2724_v56, %v1319_v41  ;;  %v2255_v53 = vpop.f32.mrb[28].mxu0  ;;  %v2345_v58 = vpop.f32.mrb[28].mxu1 }
 0x133   : > { %v1317_v55 = vadd.f32 %v2712_v52, %v1111_v36  ;;  %v1415_v30 = vsel %vm1346_vm13, %v1314_v40, %v1383_v47  ;;  %v1320_v60 = vadd.f32 %v2712_v52, %v1122_v42  ;;  %v1114_v61 = vadd.f32 %v2730_v2, %v1113_v29  ;;  %v2256_v62 = vpop.f32.mrb[29].mxu0  ;;  %v1126_v63 = vpop.f32.mrb[29].mxu1 }
 0x134   : > { %v1555_v59 = vadd.f32 %v2750_v23, %v1518_v46  ;;  %1584 = vst [vmem:[%s2758_s10 + $0x20] sm:$0xff] %v1552_v51  ;;  %vm1616_vm15 = vcmp.ge.f32.partialorder %v1552_v51, 0.0  ;;  %v1479_v0 = vadd.f32 %v1447_v50, %v1415_v30  ;;  %v1420_v1 = vsel %vm1351_vm14, %v1319_v41, %v1388_v57  ;;  %v2258_v3 = vpop.f32.mrb[30].mxu0  ;;  %v2820_v4 = vpop.f32.mrb[30].mxu1 }
 0x135   : > { %vm1349_vm0 = vcmp.ge.f32.partialorder %v1317_v55, 0.0  ;;  %v1648_v5 = vsel %vm1616_vm15, 1.0, %v2511_v48  ;;  %v1484_v6 = vadd.f32 %v1452_v54, %v1420_v1  ;;  %v1386_v8 = vmul.f32 %v2724_v56, %v1317_v55  ;;  %v2259_v2 = vpop.f32.mrb[31].mxu0  ;;  %v1129_v10 = vpop.f32.mrb[31].mxu1 }
 0x136   : > { %1587 = vst [vmem:[%s2758_s10 + $0x38] sm:$0xff] %v1555_v59  ;;  %vm1619_vm1 = vcmp.ge.f32.partialorder %v1555_v59, 0.0  ;;  %v1516_v12 = vmul.f32 %v2741_v14, %v1479_v0  ;;  %vm1352_vm2 = vcmp.ge.f32.partialorder %v1320_v60, 0.0  ;;  %v1389_v15 = vmul.f32 %v2724_v56, %v1320_v60 }
 0x137   : > { %v1651_v11 = vsel %vm1619_vm1, 1.0, %v2511_v48  ;;  %v1521_v18 = vmul.f32 %v2741_v14, %v1484_v6  ;;  %v1418_v20 = vsel %vm1349_vm0, %v1317_v55, %v1386_v8  ;;  %v1318_v21 = vadd.f32 %v2712_v52, %v1114_v61 }
 0x138   : > { %v2144_v17 = vpack.c.bf16 %v1651_v11, %v1650_v45  ;;  %v1553_v22 = vadd.f32 %v2750_v23, %v1516_v12  ;;  %v1482_v24 = vadd.f32 %v1450_v9, %v1418_v20  ;;  %v1421_v26 = vsel %vm1352_vm2, %v1320_v60, %v1389_v15 }
 0x139   : > { %v2257_v27 = vadd.f32 %v2256_v62, %v2255_v53  ;;  %v1558_v28 = vadd.f32 %v2750_v23, %v1521_v18  ;;  %v1485_v29 = vadd.f32 %v1453_v16, %v1421_v26  ;;  %vm1350_vm3 = vcmp.ge.f32.partialorder %v1318_v21, 0.0 }
 0x13a   : > { %2184 = vst [vmem:[%s2783_s13 + $0x18] sm:$0xff] %v2144_v17   ;;  %v1387_v32 = vmul.f32 %v2724_v56, %v1318_v21  ;;  %1585 = vst [vmem:[%s2758_s10 + $0x28] sm:$0xff] %v1553_v22  ;;  %vm1617_vm4 = vcmp.ge.f32.partialorder %v1553_v22, 0.0  ;;  %v1519_v34 = vmul.f32 %v2741_v14, %v1482_v24  ;;  %v1127_v40 = vadd.f32 %v2798_v38, %v1126_v63  ;;  %v2261_v41 = vpop.f32.mrb[32].mxu0  ;;  %v2841_v36 = vpop.f32.mrb[32].mxu1 }
 0x13b   : > { %v1135_v39 = vadd.f32 %v2345_v58, %v2257_v27  ;;  %v1649_v35 = vsel %vm1617_vm4, 1.0, %v2511_v48  ;;  %1590 = vst [vmem:[%s2758_s10 + $0x50] sm:$0xff] %v1558_v28  ;;  %vm1622_vm5 = vcmp.ge.f32.partialorder %v1558_v28, 0.0  ;;  %v1522_v42 = vmul.f32 %v2741_v14, %v1485_v29  ;;  %v2262_v46 = vpop.f32.mrb[33].mxu0  ;;  %v1142_v47 = vpop.f32.mrb[33].mxu1 }
 0x13c   : > { %v1419_v45 = vsel %vm1350_vm3, %v1318_v21, %v1387_v32  ;;  %v2141_v50 = vpack.c.bf16 %v1649_v35, %v1648_v5  ;;  %v1654_v51 = vsel %vm1622_vm5, 1.0, %v2511_v48  ;;  %v1556_v57 = vadd.f32 %v2750_v23, %v1519_v34  ;;  %v2264_v54 = vpop.f32.mrb[34].mxu0  ;;  %v2848_v55 = vpop.f32.mrb[34].mxu1  ;;  %v1455_v32 = vld [vmem:[%s2719_s26 + $0x68] sm:$0xff]  ;;  %v1457_v35 = vld [vmem:[%s2719_s26 + $0x78] sm:$0xff] }
 0x13d   : > { %v1483_v38 = vadd.f32 %v1451_v33, %v1419_v45  ;;  %v1559_v53 = vadd.f32 %v2750_v23, %v1522_v42  ;;  %v1323_v58 = vadd.f32 %v2712_v52, %v1135_v39  ;;  %v1321_v59 = vadd.f32 %v2712_v52, %v1127_v40  ;;  %v2265_v60 = vpop.f32.mrb[35].mxu0  ;;  %v1145_v61 = vpop.f32.mrb[35].mxu1 }
 0x13e   : > { %v2260_v30 = vadd.f32 %v2259_v2, %v2258_v3  ;;  %2183 = vst [vmem:[%s2783_s13 + $0x10] sm:$0xff] %v2141_v50   ;;  %1588 = vst [vmem:[%s2758_s10 + $0x40] sm:$0xff] %v1556_v57  ;;  %vm1620_vm6 = vcmp.ge.f32.partialorder %v1556_v57, 0.0  ;;  %v1130_v63 = vadd.f32 %v2806_v44, %v1129_v10  ;;  %v2263_v0 = vadd.f32 %v2262_v46, %v2261_v41  ;;  %v1456_v3 = vld [vmem:[%s2719_s26 + $0x70] sm:$0xff]  ;;  %v1454_v2 = vld [vmem:[%s2719_s26 + $0x60] sm:$0xff] }
 0x13f   : > { %v1520_v62 = vmul.f32 %v2741_v14, %v1483_v38  ;;  %v1652_v1 = vsel %vm1620_vm6, 1.0, %v2511_v48  ;;  %1591 = vst [vmem:[%s2758_s10 + $0x58] sm:$0xff] %v1559_v53  ;;  %vm1623_vm7 = vcmp.ge.f32.partialorder %v1559_v53, 0.0  ;;  %vm1355_vm8 = vcmp.ge.f32.partialorder %v1323_v58, 0.0  ;;  %v1458_v57 = vld [vmem:[%s2719_s26 + $0x80] sm:$0xff] }
 0x140   : > { %v1392_v5 = vmul.f32 %v2724_v56, %v1323_v58  ;;  %v1655_v6 = vsel %vm1623_vm7, 1.0, %v2511_v48  ;;  %vm1353_vm9 = vcmp.ge.f32.partialorder %v1321_v59, 0.0  ;;  %v1390_v9 = vmul.f32 %v2724_v56, %v1321_v59 }
 0x141   : > { %v1557_v8 = vadd.f32 %v2750_v23, %v1520_v62  ;;  %v2150_v44 = vpack.c.bf16 %v1655_v6, %v1654_v51  ;;  %v1138_v11 = vadd.f32 %v2820_v4, %v2260_v30  ;;  %v1322_v12 = vadd.f32 %v2712_v52, %v1130_v63 }
 0x142   : > { %v1424_v10 = vsel %vm1355_vm8, %v1323_v58, %v1392_v5  ;;  %v1422_v16 = vsel %vm1353_vm9, %v1321_v59, %v1390_v9  ;;  %v1143_v17 = vadd.f32 %v2263_v0, %v1142_v47  ;;  %v2267_v18 = vpop.f32.mrb[36].mxu0  ;;  %v2868_v20 = vpop.f32.mrb[36].mxu1  ;;  %v2266_v42 = vadd.f32 %v2265_v60, %v2264_v54 }
 0x143   : > { %1589 = vst [vmem:[%s2758_s10 + $0x48] sm:$0xff] %v1557_v8  ;;  %vm1621_vm10 = vcmp.ge.f32.partialorder %v1557_v8, 0.0  ;;  %v1488_v15 = vadd.f32 %v1456_v3, %v1424_v10  ;;  %2186 = vst [vmem:[%s2783_s13 + $0x28] sm:$0xff] %v2150_v44   ;;  %v1486_v22 = vadd.f32 %v1454_v2, %v1422_v16  ;;  %v1324_v24 = vadd.f32 %v2712_v52, %v1138_v11  ;;  %v2268_v4 = vpop.f32.mrb[37].mxu0  ;;  %v2873_v26 = vpop.f32.mrb[37].mxu1 }
 0x144   : > { %v1653_v21 = vsel %vm1621_vm10, 1.0, %v2511_v48  ;;  %vm1354_vm11 = vcmp.ge.f32.partialorder %v1322_v12, 0.0  ;;  %v1391_v29 = vmul.f32 %v2724_v56, %v1322_v12  ;;  %v1325_v33 = vadd.f32 %v2712_v52, %v1143_v17  ;;  %v2270_v34 = vpop.f32.mrb[38].mxu0  ;;  %v2879_v39 = vpop.f32.mrb[38].mxu1  ;;  %v1459_v17 = vld [vmem:[%s2719_s26 + $0x88] sm:$0xff] }
 0x145   : > { %v2147_v27 = vpack.c.bf16 %v1653_v21, %v1652_v1  ;;  %v1525_v28 = vmul.f32 %v2741_v14, %v1488_v15  ;;  %v1523_v40 = vmul.f32 %v2741_v14, %v1486_v22  ;;  %vm1356_vm12 = vcmp.ge.f32.partialorder %v1324_v24, 0.0  ;;  %v2271_v45 = vpop.f32.mrb[39].mxu0  ;;  %v2884_v46 = vpop.f32.mrb[39].mxu1 }
 0x146   : > { %v1393_v41 = vmul.f32 %v2724_v56, %v1324_v24  ;;  %v1423_v50 = vsel %vm1354_vm11, %v1322_v12, %v1391_v29  ;;  %vm1357_vm13 = vcmp.ge.f32.partialorder %v1325_v33, 0.0  ;;  %v1394_v51 = vmul.f32 %v2724_v56, %v1325_v33 }
 0x147   : > { %2185 = vst [vmem:[%s2783_s13 + $0x20] sm:$0xff] %v2147_v27   ;;  %v1562_v47 = vadd.f32 %v2750_v23, %v1525_v28  ;;  %v1560_v38 = vadd.f32 %v2750_v23, %v1523_v40  ;;  %v1487_v58 = vadd.f32 %v1455_v32, %v1423_v50  ;;  %v1146_v59 = vadd.f32 %v2266_v42, %v1145_v61  ;;  %v1468_v50 = vld [vmem:[%s2719_s26 + $0xd0] sm:$0xff] }
 0x148   : > { %v1425_v53 = vsel %vm1356_vm12, %v1324_v24, %v1393_v41  ;;  %v1426_v30 = vsel %vm1357_vm13, %v1325_v33, %v1394_v51  ;;  %v2269_v60 = vadd.f32 %v2268_v4, %v2267_v18  ;;  %v2272_v44 = vadd.f32 %v2271_v45, %v2270_v34 }
 0x149   : > { %1594 = vst [vmem:[%s2758_s10 + $0x70] sm:$0xff] %v1562_v47  ;;  %vm1626_vm14 = vcmp.ge.f32.partialorder %v1562_v47, 0.0  ;;  %v1489_v54 = vadd.f32 %v1457_v35, %v1425_v53  ;;  %1592 = vst [vmem:[%s2758_s10 + $0x60] sm:$0xff] %v1560_v38  ;;  %vm1624_vm15 = vcmp.ge.f32.partialorder %v1560_v38, 0.0  ;;  %v1524_v63 = vmul.f32 %v2741_v14, %v1487_v58  ;;  %v1460_v35 = vld [vmem:[%s2719_s26 + $0x90] sm:$0xff]  ;;  %v1461_v53 = vld [vmem:[%s2719_s26 + $0x98] sm:$0xff] }
 0x14a   : > { %v1658_v62 = vsel %vm1626_vm14, 1.0, %v2511_v48  ;;  %v1490_v0 = vadd.f32 %v1458_v57, %v1426_v30  ;;  %v1656_v1 = vsel %vm1624_vm15, 1.0, %v2511_v48  ;;  %v1326_v3 = vadd.f32 %v2712_v52, %v1146_v59  ;;  %v2273_v6 = vpop.f32.mrb[40].mxu0  ;;  %v2357_v8 = vpop.f32.mrb[40].mxu1 }
 0x14b   : > { %v1526_v5 = vmul.f32 %v2741_v14, %v1489_v54  ;;  %v1151_v61 = vadd.f32 %v2841_v36, %v2269_v60  ;;  %v1561_v9 = vadd.f32 %v2750_v23, %v1524_v63  ;;  %v1183_v10 = vadd.f32 %v2357_v8, %v2690_v19  ;;  %v2274_v11 = vpop.f32.mrb[41].mxu0  ;;  %v1174_v12 = vpop.f32.mrb[41].mxu1 }
 0x14c   : > { %v1527_v2 = vmul.f32 %v2741_v14, %v1490_v0  ;;  %vm1358_vm0 = vcmp.ge.f32.partialorder %v1326_v3, 0.0  ;;  %v1395_v16 = vmul.f32 %v2724_v56, %v1326_v3  ;;  %v2907_v18 = vpop.f32.mrb[42].mxu0  ;;  %v2358_v21 = vpop.f32.mrb[42].mxu1  ;;  %v1154_v19 = vadd.f32 %v2848_v55, %v2272_v44 }
 0x14d   : > { %v1563_v15 = vadd.f32 %v2750_v23, %v1526_v5  ;;  %v1327_v36 = vadd.f32 %v2712_v52, %v1151_v61  ;;  %1593 = vst [vmem:[%s2758_s10 + $0x68] sm:$0xff] %v1561_v9  ;;  %vm1625_vm1 = vcmp.ge.f32.partialorder %v1561_v9, 0.0  ;;  %v1335_v24 = vadd.f32 %v2712_v52, %v1183_v10  ;;  %v2913_v4 = vpop.f32.mrb[43].mxu0  ;;  %v2915_v27 = vpop.f32.mrb[43].mxu1 }
 0x14e   : > { %v1564_v22 = vadd.f32 %v2750_v23, %v1527_v2  ;;  %v1657_v28 = vsel %vm1625_vm1, 1.0, %v2511_v48  ;;  %v1427_v29 = vsel %vm1358_vm0, %v1326_v3, %v1395_v16  ;;  %v1328_v42 = vadd.f32 %v2712_v52, %v1154_v19  ;;  %v1462_v19 = vld [vmem:[%s2719_s26 + $0xa0] sm:$0xff] }
 0x14f   : > { %1595 = vst [vmem:[%s2758_s10 + $0x78] sm:$0xff] %v1563_v15  ;;  %vm1627_vm2 = vcmp.ge.f32.partialorder %v1563_v15, 0.0  ;;  %vm1359_vm3 = vcmp.ge.f32.partialorder %v1327_v36, 0.0  ;;  %v2153_v55 = vpack.c.bf16 %v1657_v28, %v1656_v1  ;;  %v1491_v33 = vadd.f32 %v1459_v17, %v1427_v29  ;;  %v1466_v15 = vld [vmem:[%s2719_s26 + $0xc0] sm:$0xff] }
 0x150   : > { %v1659_v32 = vsel %vm1627_vm2, 1.0, %v2511_v48  ;;  %1596 = vst [vmem:[%s2758_s10 + $0x80] sm:$0xff] %v1564_v22  ;;  %vm1628_vm4 = vcmp.ge.f32.partialorder %v1564_v22, 0.0  ;;  %v1396_v41 = vmul.f32 %v2724_v56, %v1327_v36  ;;  %vm1367_vm5 = vcmp.ge.f32.partialorder %v1335_v24, 0.0 }
 0x151   : > { %v2156_v34 = vpack.c.bf16 %v1659_v32, %v1658_v62  ;;  %v1660_v40 = vsel %vm1628_vm4, 1.0, %v2511_v48  ;;  %2187 = vst [vmem:[%s2783_s13 + $0x30] sm:$0xff] %v2153_v55   ;;  %v1528_v45 = vmul.f32 %v2741_v14, %v1491_v33  ;;  %v1404_v47 = vmul.f32 %v2724_v56, %v1335_v24 }
 0x152   : > { %v2275_v51 = vadd.f32 %v2274_v11, %v2273_v6  ;;  %v1428_v57 = vsel %vm1359_vm3, %v1327_v36, %v1396_v41  ;;  %vm1360_vm6 = vcmp.ge.f32.partialorder %v1328_v42, 0.0  ;;  %v1397_v38 = vmul.f32 %v2724_v56, %v1328_v42  ;;  %v2279_v59 = vpop.f32.mrb[44].mxu0  ;;  %v2361_v54 = vpop.f32.mrb[44].mxu1 }
 0x153   : > { %2188 = vst [vmem:[%s2783_s13 + $0x38] sm:$0xff] %v2156_v34   ;;  %v1175_v58 = vadd.f32 %v2686_v7, %v1174_v12  ;;  %v1565_v30 = vadd.f32 %v2750_v23, %v1528_v45  ;;  %v1492_v60 = vadd.f32 %v1460_v35, %v1428_v57  ;;  %v1436_v62 = vsel %vm1367_vm5, %v1335_v24, %v1404_v47  ;;  %v2280_v0 = vpop.f32.mrb[45].mxu0  ;;  %v2937_v1 = vpop.f32.mrb[45].mxu1  ;;  %v1469_v45 = vld [vmem:[%s2719_s26 + $0xd8] sm:$0xff] }
 0x154   : > { %v1159_v63 = vadd.f32 %v2275_v51, %v2873_v26  ;;  %v1429_v5 = vsel %vm1360_vm6, %v1328_v42, %v1397_v38  ;;  %v1500_v3 = vadd.f32 %v1468_v50, %v1436_v62  ;;  %v1186_v6 = vadd.f32 %v2358_v21, %v2692_v25  ;;  %v2941_v8 = vpop.f32.mrb[46].mxu0  ;;  %v2943_v7 = vpop.f32.mrb[46].mxu1 }
 0x155   : > { %v1333_v61 = vadd.f32 %v2712_v52, %v1175_v58  ;;  %1597 = vst [vmem:[%s2758_s10 + $0x88] sm:$0xff] %v1565_v30  ;;  %vm1629_vm7 = vcmp.ge.f32.partialorder %v1565_v30, 0.0  ;;  %v1529_v9 = vmul.f32 %v2741_v14, %v1492_v60  ;;  %v1493_v26 = vadd.f32 %v1461_v53, %v1429_v5  ;;  %v2948_v44 = vpop.f32.mrb[47].mxu0  ;;  %v2950_v10 = vpop.f32.mrb[47].mxu1  ;;  %v1463_v60 = vld [vmem:[%s2719_s26 + $0xa8] sm:$0xff] }
 0x156   : > { %v1329_v2 = vadd.f32 %v2712_v52, %v1159_v63  ;;  %v1661_v25 = vsel %vm1629_vm7, 1.0, %v2511_v48  ;;  %v1537_v11 = vmul.f32 %v2741_v14, %v1500_v3  ;;  %v1336_v28 = vadd.f32 %v2712_v52, %v1186_v6 }
 0x157   : > { %vm1365_vm8 = vcmp.ge.f32.partialorder %v1333_v61, 0.0  ;;  %v1402_v12 = vmul.f32 %v2724_v56, %v1333_v61  ;;  %v2159_v16 = vpack.c.bf16 %v1661_v25, %v1660_v40  ;;  %v1566_v17 = vadd.f32 %v2750_v23, %v1529_v9 }
 0x158   : > { %v1530_v36 = vmul.f32 %v2741_v14, %v1493_v26  ;;  %vm1361_vm9 = vcmp.ge.f32.partialorder %v1329_v2, 0.0  ;;  %v1574_v21 = vadd.f32 %v2750_v23, %v1537_v11  ;;  %v1398_v22 = vmul.f32 %v2724_v56, %v1329_v2 }
 0x159   : > { %v1434_v24 = vsel %vm1365_vm8, %v1333_v61, %v1402_v12  ;;  %2189 = vst [vmem:[%s2783_s13 + $0x40] sm:$0xff] %v2159_v16   ;;  %1598 = vst [vmem:[%s2758_s10 + $0x90] sm:$0xff] %v1566_v17  ;;  %vm1630_vm10 = vcmp.ge.f32.partialorder %v1566_v17, 0.0  ;;  %v2278_v55 = vadd.f32 %v2913_v4, %v2907_v18  ;;  %vm1368_vm13 = vcmp.ge.f32.partialorder %v1336_v28, 0.0  ;;  %v1472_v61 = vld [vmem:[%s2719_s26 + $0xf0] sm:$0xff] }
 0x15a   : > { %v1567_v29 = vadd.f32 %v2750_v23, %v1530_v36  ;;  %v1498_v32 = vadd.f32 %v1466_v15, %v1434_v24  ;;  %v1662_v33 = vsel %vm1630_vm10, 1.0, %v2511_v48  ;;  %1606 = vst [vmem:[%s2758_s10 + $0xd0] sm:$0xff] %v1574_v21  ;;  %vm1638_vm11 = vcmp.ge.f32.partialorder %v1574_v21, 0.0 }
 0x15b   : > { %v1430_v34 = vsel %vm1361_vm9, %v1329_v2, %v1398_v22  ;;  %v1405_v42 = vmul.f32 %v2724_v56, %v1336_v28  ;;  %v1162_v18 = vadd.f32 %v2278_v55, %v2884_v46  ;;  %v1178_v4 = vadd.f32 %v2688_v13, %v2915_v27  ;;  %v1464_v22 = vld [vmem:[%s2719_s26 + $0xb0] sm:$0xff] }
 0x15c   : > { %1599 = vst [vmem:[%s2758_s10 + $0x98] sm:$0xff] %v1567_v29  ;;  %vm1631_vm12 = vcmp.ge.f32.partialorder %v1567_v29, 0.0  ;;  %v1494_v40 = vadd.f32 %v1462_v19, %v1430_v34  ;;  %v1535_v41 = vmul.f32 %v2741_v14, %v1498_v32  ;;  %v1199_v57 = vadd.f32 %v2361_v54, %v2702_v43  ;;  %v1470_v34 = vld [vmem:[%s2719_s26 + $0xe0] sm:$0xff] }
 0x15d   : > { %v1663_v35 = vsel %vm1631_vm12, 1.0, %v2511_v48  ;;  %v1437_v38 = vsel %vm1368_vm13, %v1336_v28, %v1405_v42  ;;  %v1330_v53 = vadd.f32 %v2712_v52, %v1162_v18  ;;  %v1334_v58 = vadd.f32 %v2712_v52, %v1178_v4 }
 0x15e   : > { %v2162_v47 = vpack.c.bf16 %v1663_v35, %v1662_v33  ;;  %v1531_v50 = vmul.f32 %v2741_v14, %v1494_v40  ;;  %v1572_v51 = vadd.f32 %v2750_v23, %v1535_v41  ;;  %v2281_v30 = vadd.f32 %v2280_v0, %v2279_v59  ;;  %v1467_v0 = vld [vmem:[%s2719_s26 + $0xc8] sm:$0xff] }
 0x15f   : > { %v1501_v13 = vadd.f32 %v1469_v45, %v1437_v38  ;;  %v1339_v27 = vadd.f32 %v2712_v52, %v1199_v57  ;;  %v1670_v43 = vsel %vm1638_vm11, 1.0, %v2511_v48  ;;  %vm1362_vm15 = vcmp.ge.f32.partialorder %v1330_v53, 0.0 }
 0x160   : > { %2190 = vst [vmem:[%s2783_s13 + $0x48] sm:$0xff] %v2162_v47   ;;  %v1568_v46 = vadd.f32 %v2750_v23, %v1531_v50  ;;  %1604 = vst [vmem:[%s2758_s10 + $0xc0] sm:$0xff] %v1572_v51  ;;  %vm1636_vm14 = vcmp.ge.f32.partialorder %v1572_v51, 0.0  ;;  %v1399_v54 = vmul.f32 %v2724_v56, %v1330_v53  ;;  %vm1366_vm0 = vcmp.ge.f32.partialorder %v1334_v58, 0.0  ;;  %v1473_v50 = vld [vmem:[%s2719_s26 + $0xf8] sm:$0xff] }
 0x161   : > { %v1668_v59 = vsel %vm1636_vm14, 1.0, %v2511_v48  ;;  %v1538_v62 = vmul.f32 %v2741_v14, %v1501_v13  ;;  %v1403_v63 = vmul.f32 %v2724_v56, %v1334_v58  ;;  %vm1371_vm1 = vcmp.ge.f32.partialorder %v1339_v27, 0.0 }
 0x162   : > { %1600 = vst [vmem:[%s2758_s10 + $0xa0] sm:$0xff] %v1568_v46  ;;  %vm1632_vm2 = vcmp.ge.f32.partialorder %v1568_v46, 0.0  ;;  %v1431_v5 = vsel %vm1362_vm15, %v1330_v53, %v1399_v54  ;;  %v1408_v3 = vmul.f32 %v2724_v56, %v1339_v27  ;;  %v1167_v6 = vadd.f32 %v2868_v20, %v2281_v30  ;;  %v1471_v54 = vld [vmem:[%s2719_s26 + $0xe8] sm:$0xff] }
 0x163   : > { %v1575_v9 = vadd.f32 %v2750_v23, %v1538_v62  ;;  %v1495_v26 = vadd.f32 %v1463_v60, %v1431_v5  ;;  %v1435_v2 = vsel %vm1366_vm0, %v1334_v58, %v1403_v63  ;;  %v1191_v25 = vadd.f32 %v2696_v31, %v2937_v1 }
 0x164   : > { %v1499_v11 = vadd.f32 %v1467_v0, %v1435_v2  ;;  %v1440_v12 = vsel %vm1371_vm1, %v1339_v27, %v1408_v3  ;;  %v1331_v15 = vadd.f32 %v2712_v52, %v1167_v6  ;;  %v1202_v16 = vadd.f32 %v2943_v7, %v2706_v49 }
 0x165   : > { %1607 = vst [vmem:[%s2758_s10 + $0xd8] sm:$0xff] %v1575_v9  ;;  %vm1639_vm3 = vcmp.ge.f32.partialorder %v1575_v9, 0.0  ;;  %v1532_v17 = vmul.f32 %v2741_v14, %v1495_v26  ;;  %v1504_v20 = vadd.f32 %v1472_v61, %v1440_v12  ;;  %v1337_v36 = vadd.f32 %v2712_v52, %v1191_v25 }
 0x166   : > { %v1671_v21 = vsel %vm1639_vm3, 1.0, %v2511_v48  ;;  %v1536_v31 = vmul.f32 %v2741_v14, %v1499_v11  ;;  %vm1363_vm4 = vcmp.ge.f32.partialorder %v1331_v15, 0.0  ;;  %v1400_v1 = vmul.f32 %v2724_v56, %v1331_v15 }
 0x167   : > { %v2174_v19 = vpack.c.bf16 %v1671_v21, %v1670_v43  ;;  %v1569_v49 = vadd.f32 %v2750_v23, %v1532_v17  ;;  %v1541_v7 = vmul.f32 %v2741_v14, %v1504_v20  ;;  %vm1369_vm5 = vcmp.ge.f32.partialorder %v1337_v36, 0.0 }
 0x168   : > { %v1573_v24 = vadd.f32 %v2750_v23, %v1536_v31  ;;  %v1432_v28 = vsel %vm1363_vm4, %v1331_v15, %v1400_v1  ;;  %v1406_v29 = vmul.f32 %v2724_v56, %v1337_v36  ;;  %v1340_v32 = vadd.f32 %v2712_v52, %v1202_v16 }
 0x169   : > { %2194 = vst [vmem:[%s2783_s13 + $0x68] sm:$0xff] %v2174_v19   ;;  %1601 = vst [vmem:[%s2758_s10 + $0xa8] sm:$0xff] %v1569_v49  ;;  %vm1633_vm6 = vcmp.ge.f32.partialorder %v1569_v49, 0.0  ;;  %v1578_v55 = vadd.f32 %v2750_v23, %v1541_v7  ;;  %v1496_v33 = vadd.f32 %v1464_v22, %v1432_v28  ;;  %v2284_v40 = vadd.f32 %v2948_v44, %v2941_v8 }
 0x16a   : > { %v1664_v41 = vsel %vm1632_vm2, 1.0, %v2511_v48  ;;  %v1665_v35 = vsel %vm1633_vm6, 1.0, %v2511_v48  ;;  %1605 = vst [vmem:[%s2758_s10 + $0xc8] sm:$0xff] %v1573_v24  ;;  %vm1637_vm7 = vcmp.ge.f32.partialorder %v1573_v24, 0.0  ;;  %v1438_v42 = vsel %vm1369_vm5, %v1337_v36, %v1406_v29 }
 0x16b   : > { %v2165_v45 = vpack.c.bf16 %v1665_v35, %v1664_v41  ;;  %v1669_v18 = vsel %vm1637_vm7, 1.0, %v2511_v48  ;;  %1610 = vst [vmem:[%s2758_s10 + $0xf0] sm:$0xff] %v1578_v55  ;;  %v1533_v4 = vmul.f32 %v2741_v14, %v1496_v33  ;;  %vm1372_vm8 = vcmp.ge.f32.partialorder %v1340_v32, 0.0 }
 0x16c   : > { %v2171_v47 = vpack.c.bf16 %v1669_v18, %v1668_v59  ;;  %v1502_v8 = vadd.f32 %v1470_v34, %v1438_v42  ;;  %v1409_v44 = vmul.f32 %v2724_v56, %v1340_v32  ;;  %v1170_v57 = vadd.f32 %v2879_v39, %v2284_v40 }
 0x16d   : > { %2191 = vst [vmem:[%s2783_s13 + $0x50] sm:$0xff] %v2165_v45   ;;  %v1570_v51 = vadd.f32 %v2750_v23, %v1533_v4  ;;  %v1194_v38 = vadd.f32 %v2700_v37, %v2950_v10  ;;  %v1465_v37 = vld [vmem:[%s2719_s26 + $0xb8] sm:$0xff]  ;;  %vm1642_vm11 = vcmp.ge.f32.partialorder %v1578_v55, 0.0 }
 0x16e   : > { %2193 = vst [vmem:[%s2783_s13 + $0x60] sm:$0xff] %v2171_v47   ;;  %v1539_v53 = vmul.f32 %v2741_v14, %v1502_v8  ;;  %v1441_v58 = vsel %vm1372_vm8, %v1340_v32, %v1409_v44  ;;  %v1332_v46 = vadd.f32 %v2712_v52, %v1170_v57  ;;  %v1674_v0 = vsel %vm1642_vm11, 1.0, %v2511_v48 }
 0x16f   : > { %1602 = vst [vmem:[%s2758_s10 + $0xb0] sm:$0xff] %v1570_v51  ;;  %v1505_v30 = vadd.f32 %v1473_v50, %v1441_v58  ;;  %v1338_v13 = vadd.f32 %v2712_v52, %v1194_v38  ;;  %vm1634_vm13 = vcmp.ge.f32.partialorder %v1570_v51, 0.0 }
 0x170   : > { %v1576_v27 = vadd.f32 %v2750_v23, %v1539_v53  ;;  %vm1364_vm9 = vcmp.ge.f32.partialorder %v1332_v46, 0.0  ;;  %v1401_v39 = vmul.f32 %v2724_v56, %v1332_v46  ;;  %v1666_v26 = vsel %vm1634_vm13, 1.0, %v2511_v48 }
 0x171   : > { %v1542_v43 = vmul.f32 %v2741_v14, %v1505_v30  ;;  %vm1370_vm10 = vcmp.ge.f32.partialorder %v1338_v13, 0.0  ;;  %v1407_v10 = vmul.f32 %v2724_v56, %v1338_v13 }
 0x172   : > { %1608 = vst [vmem:[%s2758_s10 + $0xe0] sm:$0xff] %v1576_v27  ;;  %v1433_v59 = vsel %vm1364_vm9, %v1332_v46, %v1401_v39  ;;  %vm1640_vm14 = vcmp.ge.f32.partialorder %v1576_v27, 0.0 }
 0x173   : > { %v1579_v60 = vadd.f32 %v2750_v23, %v1542_v43  ;;  %v1497_v52 = vadd.f32 %v1465_v37, %v1433_v59  ;;  %v1439_v62 = vsel %vm1370_vm10, %v1338_v13, %v1407_v10  ;;  %v1672_v25 = vsel %vm1640_vm14, 1.0, %v2511_v48 }
 0x174   : > { %v1503_v63 = vadd.f32 %v1471_v54, %v1439_v62 }
 0x175   : > { %1611 = vst [vmem:[%s2758_s10 + $0xf8] sm:$0xff] %v1579_v60  ;;  %vm1643_vm12 = vcmp.ge.f32.partialorder %v1579_v60, 0.0  ;;  %v1534_v3 = vmul.f32 %v2741_v14, %v1497_v52 }
 0x176   : > { %v1675_v5 = vsel %vm1643_vm12, 1.0, %v2511_v48  ;;  %v1540_v61 = vmul.f32 %v2741_v14, %v1503_v63 }
 0x177   : > { %v2180_v56 = vpack.c.bf16 %v1675_v5, %v1674_v0  ;;  %v1571_v6 = vadd.f32 %v2750_v23, %v1534_v3 }
 0x178   : > { %v1577_v9 = vadd.f32 %v2750_v23, %v1540_v61 }
 0x179   : > { %2196 = vst [vmem:[%s2783_s13 + $0x78] sm:$0xff] %v2180_v56   ;;  %1603 = vst [vmem:[%s2758_s10 + $0xb8] sm:$0xff] %v1571_v6  ;;  %vm1635_vm15 = vcmp.ge.f32.partialorder %v1571_v6, 0.0 }
 0x17a   : > { %v1667_v2 = vsel %vm1635_vm15, 1.0, %v2511_v48  ;;  %1609 = vst [vmem:[%s2758_s10 + $0xe8] sm:$0xff] %v1577_v9  ;;  %vm1641_vm0 = vcmp.ge.f32.partialorder %v1577_v9, 0.0 }
 0x17b   : > { %v2168_v14 = vpack.c.bf16 %v1667_v2, %v1666_v26  ;;  %v1673_v11 = vsel %vm1641_vm0, 1.0, %v2511_v48 }
 0x17c   : > { %v2177_v12 = vpack.c.bf16 %v1673_v11, %v1672_v25 }
 0x17d   : > { %2192 = vst [vmem:[%s2783_s13 + $0x58] sm:$0xff] %v2168_v14  }
 0x17e   : > { %2195 = vst [vmem:[%s2783_s13 + $0x70] sm:$0xff] %v2177_v12  }
 0x17f PF: > { %s16_s20 = sadd.s32 1, %s2509_s20   ;;  %s3081_s18 = smov %s2505_s19 }
 0x180   : > { %p13_p5 = scmp.ge.s32.totalorder %s16_s20, 4   ;;  %s3082_s19 = smov %s3084_s21 }
 0x182   :  { %15 = sbr.rel (!%p13_p5) target bundleno = 2 (0x2), region = 92 }

</bundles_post_ra>
